<compile_context>
chip_gen: v5e
topology: v5e:2x2
jax: 0.10.0
libtpu: 0.0.40
codegen_flags: <defaults>
</compile_context>

<pallas_src>
import functools
import math

import jax
import jax.numpy as jnp
from jax import lax
from jax.experimental import pallas as pl
from jax.experimental.pallas import tpu as pltpu


_VMEM_LIMIT = 48 * 1024 * 1024   # safe on v5e/v6e (128 MiB) and v7x (64 MiB)
_ROW_TILE = 1024                 # row-tile cap for the row-parallel kernels
_WEIGHT_DTYPE = jnp.bfloat16     # HBM storage dtype for weights
_ACT_DTYPE = jnp.bfloat16        # HBM storage dtype for inter-kernel activations


def _cparams(*sem):
    return pltpu.CompilerParams(dimension_semantics=sem,
                                vmem_limit_bytes=_VMEM_LIMIT)


def _round_up(x, m):
    return ((x + m - 1) // m) * m


# ----------------------------------------------------------------------------
# Dense (pointwise conv / projections); optional fused LayerNorm and residual
# ----------------------------------------------------------------------------

def _dense_kernel(*refs, act, eps, has_ln, has_res):
    it = iter(refs)
    x_ref = next(it)
    if has_ln:
        g_ref = next(it)
        bln_ref = next(it)
    w_ref = next(it)
    b_ref = next(it)
    r_ref = next(it) if has_res else None
    o_ref = next(it)

    x = x_ref[...].astype(jnp.float32)
    if has_ln:
        mu = jnp.mean(x, axis=-1, keepdims=True)
        xc = x - mu
        var = jnp.mean(xc * xc, axis=-1, keepdims=True)
        x = xc * lax.rsqrt(var + eps) * g_ref[...] + bln_ref[...]
    # f32 x f32 MXU matmul (bf16 operands are unsupported by the interpret path)
    y = jnp.dot(x, w_ref[...].astype(jnp.float32),
                preferred_element_type=jnp.float32) + b_ref[...]
    if act == "relu":
        y = jnp.maximum(y, 0.0)
    if has_res:
        y = y + r_ref[...].astype(jnp.float32)
    o_ref[...] = y.astype(o_ref.dtype)


def dense(x, w, b=None, *, act="none", ln=None, residual=None, eps=1e-5,
          out_dtype=_ACT_DTYPE):
    """(M, K) @ (K, N) + b with optional fused input-LayerNorm and residual add."""
    M, K = x.shape
    N = w.shape[1]
    if b is None:
        b = jnp.zeros((N,), jnp.float32)
    b2 = b.reshape(1, N).astype(jnp.float32)

    tm = min(_ROW_TILE, _round_up(M, 8))
    Mp = _round_up(M, tm)

    def padded(a):
        return a if Mp == M else jnp.pad(a, ((0, Mp - M), (0, 0)))

    args = [padded(x)]
    in_specs = [pl.BlockSpec((tm, K), lambda i: (i, 0))]
    if ln is not None:
        g, bb = ln
        args += [g.reshape(1, K).astype(jnp.float32),
                 bb.reshape(1, K).astype(jnp.float32)]
        in_specs += [pl.BlockSpec((1, K), lambda i: (0, 0)),
                     pl.BlockSpec((1, K), lambda i: (0, 0))]
    args += [w.astype(_WEIGHT_DTYPE), b2]
    in_specs += [pl.BlockSpec((K, N), lambda i: (0, 0)),
                 pl.BlockSpec((1, N), lambda i: (0, 0))]
    if residual is not None:
        args.append(padded(residual))
        in_specs.append(pl.BlockSpec((tm, N), lambda i: (i, 0)))

    y = pl.pallas_call(
        functools.partial(_dense_kernel, act=act, eps=eps,
                          has_ln=ln is not None, has_res=residual is not None),
        out_shape=jax.ShapeDtypeStruct((Mp, N), out_dtype),
        grid=(Mp // tm,),
        in_specs=in_specs,
        out_specs=pl.BlockSpec((tm, N), lambda i: (i, 0)),
        compiler_params=_cparams("parallel"),
    )(*args)
    return y if Mp == M else y[:M]


# ----------------------------------------------------------------------------
# Fused (PE add) + LayerNorm + depthwise conv1d + pointwise conv + ReLU + residual
# ----------------------------------------------------------------------------

def _dsconv_kernel(*refs, ksize, seq_len, pad, eps, has_pe):
    if has_pe:
        xp_ref, pe_ref, g_ref, bln_ref, dw_ref, pw_ref, pb_ref, o_ref = refs
    else:
        xp_ref, g_ref, bln_ref, dw_ref, pw_ref, pb_ref, o_ref = refs
        pe_ref = None

    x0 = xp_ref[0].astype(jnp.float32)                      # (Lp, D), zero-padded
    if pe_ref is not None:
        x0 = x0 + pe_ref[...]                               # PE is zero-padded too
    mu = jnp.mean(x0, axis=-1, keepdims=True)
    xc = x0 - mu
    var = jnp.mean(xc * xc, axis=-1, keepdims=True)
    xn = xc * lax.rsqrt(var + eps) * g_ref[...] + bln_ref[...]
    # LN of a zero pad row is beta, not zero -> mask pad rows back to zero so the
    # depthwise halo sees zeros, matching Conv1d(padding=K//2) on the LN output.
    rows = lax.broadcasted_iota(jnp.int32, (seq_len + 2 * pad, 1), 0)
    valid = jnp.logical_and(rows >= pad, rows < pad + seq_len).astype(jnp.float32)
    xn = xn * valid

    dw = dw_ref[...]                                        # (K, D) f32
    acc = jnp.zeros((seq_len, x0.shape[1]), jnp.float32)
    for k in range(ksize):                                  # static unrolled taps
        # TODO(synk): per-tap slices can materialize VMEM copies when k isn't a
        # multiple of 8; pltpu.roll + mask would route this through the idle XLU.
        acc = acc + xn[k:k + seq_len, :] * dw[k:k + 1, :]
    y = jnp.dot(acc, pw_ref[...].astype(jnp.float32),
                preferred_element_type=jnp.float32) + pb_ref[...]
    y = jnp.maximum(y, 0.0)
    out = x0[pad:pad + seq_len, :] + y                      # fused residual (incl. PE)
    o_ref[0] = out.astype(o_ref.dtype)


def dep_sep_conv(x, p, pe=None):
    """x: (B, L, D).  [+PE] ; x + (LN -> depthwise 'same' conv -> 1x1 conv -> ReLU)."""
    B, L, D = x.shape
    K = p["depthwise_w"].shape[0]
    pad = K // 2            # odd kernel size, matching the reference configs
    xp = jnp.pad(x, ((0, 0), (pad, pad), (0, 0)))
    Lp = L + 2 * pad
    has_pe = pe is not None

    args = [xp]
    in_specs = [pl.BlockSpec((1, Lp, D), lambda b: (b, 0, 0))]
    if has_pe:
        args.append(jnp.pad(pe.astype(jnp.float32), ((pad, pad), (0, 0))))
        in_specs.append(pl.BlockSpec((Lp, D), lambda b: (0, 0)))
    args += [p["ln_g"].reshape(1, D), p["ln_b"].reshape(1, D),
             p["depthwise_w"], p["pointwise_w"].astype(_WEIGHT_DTYPE),
             p["pointwise_b"].reshape(1, D)]
    in_specs += [pl.BlockSpec((1, D), lambda b: (0, 0)),
                 pl.BlockSpec((1, D), lambda b: (0, 0)),
                 pl.BlockSpec((K, D), lambda b: (0, 0)),
                 pl.BlockSpec((D, D), lambda b: (0, 0)),
                 pl.BlockSpec((1, D), lambda b: (0, 0))]

    return pl.pallas_call(
        functools.partial(_dsconv_kernel, ksize=K, seq_len=L, pad=pad,
                          eps=1e-5, has_pe=has_pe),
        out_shape=jax.ShapeDtypeStruct((B, L, D), _ACT_DTYPE),
        grid=(B,),
        in_specs=in_specs,
        out_specs=pl.BlockSpec((1, L, D), lambda b: (b, 0, 0)),
        compiler_params=_cparams("parallel"),
    )(*args)


# ----------------------------------------------------------------------------
# Multi-head self-attention: fused LN+QKV dense, all-heads-per-step attention
# ----------------------------------------------------------------------------

def _attn_kernel(qt_ref, kv_ref, bias_ref, o_ref, *, num_heads, scale):
    H = num_heads
    qt = qt_ref[0].astype(jnp.float32)                      # (tq, 3D)
    kv = kv_ref[0].astype(jnp.float32)                      # (Lk, 3D)
    D3 = qt.shape[1]
    D = D3 // 3
    dh = D // H
    tq = qt.shape[0]
    Lk = kv.shape[0]

    q = qt[:, 0:D].reshape(tq, H, dh)
    k = kv[:, D:2 * D].reshape(Lk, H, dh)
    v = kv[:, 2 * D:3 * D].reshape(Lk, H, dh)

    s = jnp.einsum("qhd,khd->hqk", q, k,
                   preferred_element_type=jnp.float32) * scale        # (H, tq, Lk)
    s = s + bias_ref[0][None]                               # (1, 1, Lk) key-mask bias
    s = s - jnp.max(s, axis=-1, keepdims=True)
    p = jnp.exp(s)
    p = p / jnp.sum(p, axis=-1, keepdims=True)
    o = jnp.einsum("hqk,khd->qhd", p, v,
                   preferred_element_type=jnp.float32)                # (tq, H, dh)
    o_ref[0] = o.reshape(tq, D).astype(o_ref.dtype)


def attention_core(qkv, bias, *, num_heads, scale):
    """qkv: (B, L, 3D) packed heads; bias: (B, 1, L).  Scores never leave VMEM."""
    B, L, D3 = qkv.shape
    D = D3 // 3
    tq = L if L <= 128 else 128
    Lqp = _round_up(L, tq)
    qkv_q = qkv if Lqp == L else jnp.pad(qkv, ((0, 0), (0, Lqp - L), (0, 0)))
    o = pl.pallas_call(
        functools.partial(_attn_kernel, num_heads=num_heads, scale=scale),
        out_shape=jax.ShapeDtypeStruct((B, Lqp, D), _ACT_DTYPE),
        grid=(B, Lqp // tq),
        in_specs=[
            pl.BlockSpec((1, tq, D3), lambda b, i: (b, i, 0)),   # Q tile
            pl.BlockSpec((1, L, D3), lambda b, i: (b, 0, 0)),    # full K/V
            pl.BlockSpec((1, 1, L), lambda b, i: (b, 0, 0)),     # key-mask bias
        ],
        out_specs=pl.BlockSpec((1, tq, D), lambda b, i: (b, i, 0)),
        compiler_params=_cparams("parallel", "parallel"),
    )(qkv_q, qkv, bias)
    return o if Lqp == L else o[:, :L]


def multi_head_attention(x, bias, p, num_heads):
    B, L, D = x.shape
    dh = D // num_heads
    x2 = x.reshape(B * L, D)
    # fused LayerNorm + (D, 3D) QKV projection in one matmul; no head transposes
    qkv = dense(x2, p["w_qkv"], p["b_qkv"], ln=(p["ln_g"], p["ln_b"]))
    qkv = qkv.reshape(B, L, 3 * D)
    if bias is None:
        bias = jnp.zeros((B, 1, L), jnp.float32)
    o = attention_core(qkv, bias, num_heads=num_heads, scale=float(dh) ** -0.5)
    # output projection with the residual add fused in
    y = dense(o.reshape(B * L, D), p["wo"], p["bo"], residual=x2)
    return y.reshape(B, L, D)


# ----------------------------------------------------------------------------
# Fused LayerNorm + positionwise FFN + residual
# ----------------------------------------------------------------------------

def _ffn_kernel(x_ref, g_ref, bln_ref, w1_ref, b1_ref, w2_ref, b2_ref, o_ref, *, eps):
    x = x_ref[...].astype(jnp.float32)
    mu = jnp.mean(x, axis=-1, keepdims=True)
    xc = x - mu
    var = jnp.mean(xc * xc, axis=-1, keepdims=True)
    xn = xc * lax.rsqrt(var + eps) * g_ref[...] + bln_ref[...]
    h = jnp.dot(xn, w1_ref[...].astype(jnp.float32),
                preferred_element_type=jnp.float32) + b1_ref[...]
    h = jnp.maximum(h, 0.0)
    y = jnp.dot(h, w2_ref[...].astype(jnp.float32),
                preferred_element_type=jnp.float32) + b2_ref[...]
    o_ref[...] = (x + y).astype(o_ref.dtype)                # fused residual


def positionwise_ffn(x, p):
    B, L, D = x.shape
    M = B * L
    Dh = p["w1"].shape[1]
    tm = min(_ROW_TILE, _round_up(M, 8))
    Mp = _round_up(M, tm)
    x2 = x.reshape(M, D)
    xp = x2 if Mp == M else jnp.pad(x2, ((0, Mp - M), (0, 0)))
    y = pl.pallas_call(
        functools.partial(_ffn_kernel, eps=1e-5),
        out_shape=jax.ShapeDtypeStruct((Mp, D), _ACT_DTYPE),
        grid=(Mp // tm,),
        in_specs=[
            pl.BlockSpec((tm, D), lambda i: (i, 0)),
            pl.BlockSpec((1, D), lambda i: (0, 0)),
            pl.BlockSpec((1, D), lambda i: (0, 0)),
            pl.BlockSpec((D, Dh), lambda i: (0, 0)),
            pl.BlockSpec((1, Dh), lambda i: (0, 0)),
            pl.BlockSpec((Dh, D), lambda i: (0, 0)),
            pl.BlockSpec((1, D), lambda i: (0, 0)),
        ],
        out_specs=pl.BlockSpec((tm, D), lambda i: (i, 0)),
        compiler_params=_cparams("parallel"),
    )(xp, p["ln_g"].reshape(1, D), p["ln_b"].reshape(1, D),
      p["w1"].astype(_WEIGHT_DTYPE), p["b1"].reshape(1, Dh),
      p["w2"].astype(_WEIGHT_DTYPE), p["b2"].reshape(1, D))
    y = y if Mp == M else y[:M]
    return y.reshape(B, L, D)


# ----------------------------------------------------------------------------
# Fused co-attention (trilinear similarity + both masked softmaxes + re-assoc
# double bmm) fused with the following 4D -> D pointwise conv
# ----------------------------------------------------------------------------

def _coattn_kernel(c_ref, q_ref, wc_ref, wq_ref, wm_ref, cm_ref, qm_ref,
                   pw_ref, pb_ref, o_ref):
    C = c_ref[0].astype(jnp.float32)                        # (Lc, D)
    Q = q_ref[0].astype(jnp.float32)                        # (Lq, D)
    D = C.shape[1]
    wc = wc_ref[...]                                        # (1, D)
    wq = wq_ref[...]
    wm = wm_ref[...]
    cm = cm_ref[0]                                          # (1, Lc)
    qm = qm_ref[0]                                          # (1, Lq)

    # trilinear similarity S[i, j] = wc.C_i + wq.Q_j + wm.(C_i * Q_j)
    cw = jnp.sum(C * wc, axis=-1, keepdims=True)                        # (Lc, 1)
    qw = lax.dot_general(wq, Q, (((1,), (1,)), ((), ())),
                         preferred_element_type=jnp.float32)            # (1, Lq)
    cross = lax.dot_general(C * wm, Q, (((1,), (1,)), ((), ())),
                            preferred_element_type=jnp.float32)         # (Lc, Lq)
    S = cross + cw + qw

    # masked softmax over the query axis
    sq = qm * S + (1.0 - qm) * (-1e30)
    sq = sq - jnp.max(sq, axis=-1, keepdims=True)
    eq = jnp.exp(sq)
    S_q = eq / jnp.sum(eq, axis=-1, keepdims=True)                      # (Lc, Lq)

    # masked softmax over the context axis (applied to S^T)
    St = S.T                                                            # (Lq, Lc)
    sc = cm * St + (1.0 - cm) * (-1e30)
    sc = sc - jnp.max(sc, axis=-1, keepdims=True)
    ec = jnp.exp(sc)
    S_cT = ec / jnp.sum(ec, axis=-1, keepdims=True)                     # (Lq, Lc)

    A = jnp.dot(S_q, Q, preferred_element_type=jnp.float32)             # (Lc, D)
    Baux = jnp.dot(S_cT, C, preferred_element_type=jnp.float32)         # (Lq, D)
    Bm = jnp.dot(S_q, Baux, preferred_element_type=jnp.float32)         # (Lc, D)

    # fused 1x1 conv over the concat [C, A, C*A, C*Bm] (4D -> D), piecewise so
    # the (Lc, 4D) tensor is never materialized
    pw = pw_ref[...].astype(jnp.float32)                                # (4D, D)
    y = (jnp.dot(C, pw[0:D], preferred_element_type=jnp.float32)
         + jnp.dot(A, pw[D:2 * D], preferred_element_type=jnp.float32)
         + jnp.dot(C * A, pw[2 * D:3 * D], preferred_element_type=jnp.float32)
         + jnp.dot(C * Bm, pw[3 * D:4 * D], preferred_element_type=jnp.float32)
         + pb_ref[...])
    o_ref[0] = y.astype(o_ref.dtype)


def co_attention(Cx, Qx, c_mask, q_mask, p, pconv):
    B, Lc, D = Cx.shape
    Lq = Qx.shape[1]
    return pl.pallas_call(
        _coattn_kernel,
        out_shape=jax.ShapeDtypeStruct((B, Lc, D), _ACT_DTYPE),
        grid=(B,),
        in_specs=[
            pl.BlockSpec((1, Lc, D), lambda b: (b, 0, 0)),
            pl.BlockSpec((1, Lq, D), lambda b: (b, 0, 0)),
            pl.BlockSpec((1, D), lambda b: (0, 0)),
            pl.BlockSpec((1, D), lambda b: (0, 0)),
            pl.BlockSpec((1, D), lambda b: (0, 0)),
            pl.BlockSpec((1, 1, Lc), lambda b: (b, 0, 0)),
            pl.BlockSpec((1, 1, Lq), lambda b: (b, 0, 0)),
            pl.BlockSpec((4 * D, D), lambda b: (0, 0)),
            pl.BlockSpec((1, D), lambda b: (0, 0)),
        ],
        out_specs=pl.BlockSpec((1, Lc, D), lambda b: (b, 0, 0)),
        compiler_params=_cparams("parallel"),
    )(Cx, Qx, p["w_c"].reshape(1, D), p["w_q"].reshape(1, D),
      p["w_m"].reshape(1, D), c_mask.reshape(B, 1, Lc), q_mask.reshape(B, 1, Lq),
      pconv["w"].astype(_WEIGHT_DTYPE), pconv["b"].reshape(1, D))


# ----------------------------------------------------------------------------
# Pointer: N=1 projections + fused masked log-softmax, lane-dense (1, L) logits
# ----------------------------------------------------------------------------

def _pointer_kernel(m0_ref, m1_ref, m2_ref, ws_ref, we_ref, mask_ref,
                    p1_ref, p2_ref):
    m0 = m0_ref[0].astype(jnp.float32)                      # (L, D)
    m1 = m1_ref[0].astype(jnp.float32)
    m2 = m2_ref[0].astype(jnp.float32)
    ws = ws_ref[...]                                        # (2, D)
    we = we_ref[...]
    mask = mask_ref[0]                                      # (1, L)

    def rowdot(w_row, m):                                   # (1, D) . (L, D)^T -> (1, L)
        return lax.dot_general(w_row, m, (((1,), (1,)), ((), ())),
                               preferred_element_type=jnp.float32)

    def masked_log_softmax(logits):                         # lane-axis reduction
        ml = mask * logits + (1.0 - mask) * (-1e30)
        mx = jnp.max(ml, axis=-1, keepdims=True)
        z = ml - mx
        lse = jnp.log(jnp.sum(jnp.exp(z), axis=-1, keepdims=True))
        return z - lse

    l1 = rowdot(ws[0:1], m0) + rowdot(ws[1:2], m1)          # (1, L)
    l2 = rowdot(we[0:1], m0) + rowdot(we[1:2], m2)
    p1_ref[0] = masked_log_softmax(l1)
    p2_ref[0] = masked_log_softmax(l2)


def pointer(m0, m1, m2, c_mask, p):
    B, L, D = m0.shape
    ws = p["w_start"].reshape(2, D).astype(jnp.float32)  # row 0 -> m0, row 1 -> m1
    we = p["w_end"].reshape(2, D).astype(jnp.float32)
    mask3 = c_mask.reshape(B, 1, L)
    p1, p2 = pl.pallas_call(
        _pointer_kernel,
        out_shape=(jax.ShapeDtypeStruct((B, 1, L), jnp.float32),
                   jax.ShapeDtypeStruct((B, 1, L), jnp.float32)),
        grid=(B,),
        in_specs=[
            pl.BlockSpec((1, L, D), lambda b: (b, 0, 0)),
            pl.BlockSpec((1, L, D), lambda b: (b, 0, 0)),
            pl.BlockSpec((1, L, D), lambda b: (b, 0, 0)),
            pl.BlockSpec((2, D), lambda b: (0, 0)),
            pl.BlockSpec((2, D), lambda b: (0, 0)),
            pl.BlockSpec((1, 1, L), lambda b: (b, 0, 0)),
        ],
        out_specs=(pl.BlockSpec((1, 1, L), lambda b: (b, 0, 0)),
                   pl.BlockSpec((1, 1, L), lambda b: (b, 0, 0))),
        compiler_params=_cparams("parallel"),
    )(m0, m1, m2, ws, we, mask3)
    return p1.reshape(B, L), p2.reshape(B, L)


# ----------------------------------------------------------------------------
# Highway (embedding): single fused (de, 2*de) matmul + gating in one kernel
# ----------------------------------------------------------------------------

def _highway_kernel(x_ref, w_ref, b_ref, o_ref):
    x = x_ref[...].astype(jnp.float32)
    de = x.shape[1]
    y = jnp.dot(x, w_ref[...].astype(jnp.float32),
                preferred_element_type=jnp.float32) + b_ref[...]
    h = jnp.maximum(y[:, :de], 0.0)
    t = jax.nn.sigmoid(y[:, de:])
    o_ref[...] = (t * h + (1.0 - t) * x).astype(o_ref.dtype)


def highway(x2, hw):
    M, de = x2.shape
    tm = min(_ROW_TILE, _round_up(M, 8))
    Mp = _round_up(M, tm)
    xp = x2 if Mp == M else jnp.pad(x2, ((0, Mp - M), (0, 0)))
    y = pl.pallas_call(
        _highway_kernel,
        out_shape=jax.ShapeDtypeStruct((Mp, de), _ACT_DTYPE),
        grid=(Mp // tm,),
        in_specs=[
            pl.BlockSpec((tm, de), lambda i: (i, 0)),
            pl.BlockSpec((de, 2 * de), lambda i: (0, 0)),
            pl.BlockSpec((1, 2 * de), lambda i: (0, 0)),
        ],
        out_specs=pl.BlockSpec((tm, de), lambda i: (i, 0)),
        compiler_params=_cparams("parallel"),
    )(xp, hw["w"].astype(_WEIGHT_DTYPE), hw["b"].reshape(1, 2 * de))
    return y if Mp == M else y[:M]


# ----------------------------------------------------------------------------
# Model glue (plain JAX: gathers, reshapes, positional-encoding table)
# ----------------------------------------------------------------------------

def positional_encoding_table(L, D):
    position = jnp.arange(L, dtype=jnp.float32)[:, None]
    div_term = jnp.exp(jnp.arange(0, D, 2, dtype=jnp.float32)
                       * (-math.log(10000.0) / D))
    pe = jnp.zeros((L, D), jnp.float32)
    pe = pe.at[:, 0::2].set(jnp.sin(position * div_term))
    pe = pe.at[:, 1::2].set(jnp.cos(position * div_term))
    return pe


def pointwise_conv(x, w, b):
    B, L, Din = x.shape
    return dense(x.reshape(B * L, Din), w, b).reshape(B, L, -1)


def encoder_block(x, bias, p, num_heads, pe):
    # residual connections: x + sublayer(layernorm(x)); dropouts identity (eval).
    # The positional-encoding add is fused into the first conv sublayer.
    if p["convs"]:
        for i, cp in enumerate(p["convs"]):
            x = dep_sep_conv(x, cp, pe=pe if i == 0 else None)
    else:
        x = (x.astype(jnp.float32) + pe[None, :, :]).astype(_ACT_DTYPE)
    x = multi_head_attention(x, bias, p["attn"], num_heads)
    x = positionwise_ffn(x, p["ffn"])
    return x


def embedding(word_idxs, char_idxs, p):
    # TODO(synk): exact claf Embedding internals (char-CNN vs. max-pool, highway depth)
    # are not in the provided source; reconstructed as word-emb + max-pooled char-emb +
    # 2-layer highway (dropouts identity in eval mode).
    w = p["word_vectors"][word_idxs]                      # (B, L, dw)
    c = jnp.max(p["char_vectors"][char_idxs], axis=2)     # (B, L, dc)
    x = jnp.concatenate([w, c], axis=-1)
    B, L, de = x.shape
    x2 = x.reshape(B * L, de)
    for hw in p["highway"]:
        x2 = highway(x2, hw)
    return x2.reshape(B, L, de)


def qanet_forward(params, cw_idxs, cc_idxs, qw_idxs, qc_idxs, *, num_heads):
    c_mask = (cw_idxs != 0).astype(jnp.float32)
    q_mask = (qw_idxs != 0).astype(jnp.float32)
    B, Lc = cw_idxs.shape
    Lq = qw_idxs.shape[1]

    c_emb = embedding(cw_idxs, cc_idxs, params["c_emb"])
    q_emb = embedding(qw_idxs, qc_idxs, params["q_emb"])

    # PointwiseConv on the permuted (NCL) embedding == per-position dense here
    context = pointwise_conv(c_emb, params["c_conv"]["w"], params["c_conv"]["b"])
    query = pointwise_conv(q_emb, params["q_conv"]["w"], params["q_conv"]["b"])

    D = context.shape[-1]
    pe_c = positional_encoding_table(Lc, D)
    pe_q = positional_encoding_table(Lq, D)
    c_bias = ((1.0 - c_mask) * (-1e9)).reshape(B, 1, Lc)   # kept (B,1,L), not per-head

    for bp in params["embed_blocks"]:
        context = encoder_block(context, None, bp, num_heads, pe_c)
        query = encoder_block(query, None, bp, num_heads, pe_q)

    # co-attention fused with the following 4D -> D pointwise conv
    x = co_attention(context, query, c_mask, q_mask,
                     params["co_attention"], params["pointwise_conv"])

    stacked = []
    for _ in range(3):
        for bp in params["model_blocks"]:
            x = encoder_block(x, c_bias, bp, num_heads, pe_c)
        stacked.append(x)

    return pointer(stacked[0], stacked[1], stacked[2], c_mask, params["pointer"])


# ----------------------------------------------------------------------------
# Deterministic parameter initialization
# ----------------------------------------------------------------------------

def init_params(key, cfg):
    keys = iter(jax.random.split(key, 512))

    def w_init(shape, scale=0.1):
        return jax.random.normal(next(keys), shape, jnp.float32) * scale

    D = cfg["model_dim"]

    def linear(din, dout):
        return w_init((din, dout)), jnp.zeros((dout,), jnp.float32)

    def enc_block(kernel_size, num_convs):
        convs = []
        for _ in range(num_convs):
            convs.append(dict(
                ln_g=jnp.ones((D,), jnp.float32), ln_b=jnp.zeros((D,), jnp.float32),
                depthwise_w=w_init((kernel_size, D)),
                pointwise_w=w_init((D, D)), pointwise_b=jnp.zeros((D,), jnp.float32)))
        w_qkv, b_qkv = linear(D, 3 * D)     # fused Q/K/V projection
        wo, bo = linear(D, D)
        attn = dict(ln_g=jnp.ones((D,), jnp.float32), ln_b=jnp.zeros((D,), jnp.float32),
                    w_qkv=w_qkv, b_qkv=b_qkv, wo=wo, bo=bo)
        w1, b1 = linear(D, 4 * D)
        w2, b2 = linear(4 * D, D)
        ffn = dict(ln_g=jnp.ones((D,), jnp.float32), ln_b=jnp.zeros((D,), jnp.float32),
                   w1=w1, b1=b1, w2=w2, b2=b2)
        return dict(convs=convs, attn=attn, ffn=ffn)

    def emb_params():
        wv_ = w_init((cfg["word_vocab"], cfg["d_word"]), 0.5)
        cv_ = w_init((cfg["char_vocab"], cfg["d_char"]), 0.5)
        de = cfg["d_word"] + cfg["d_char"]
        hwy = []
        for _ in range(2):
            # fused highway weights: columns [:de] -> transform (ReLU), [de:] -> gate
            w, b = linear(de, 2 * de)
            hwy.append(dict(w=w, b=b))
        return dict(word_vectors=wv_, char_vectors=cv_, highway=hwy), de

    c_emb, de = emb_params()
    q_emb, _ = emb_params()
    cw, cb = linear(de, D)
    qw_, qb = linear(de, D)

    return dict(
        c_emb=c_emb, q_emb=q_emb,
        c_conv=dict(w=cw, b=cb), q_conv=dict(w=qw_, b=qb),
        embed_blocks=[enc_block(cfg["embed_kernel"], cfg["embed_convs"])
                      for _ in range(cfg["embed_blocks"])],
        co_attention=dict(w_c=w_init((D,)), w_q=w_init((D,)), w_m=w_init((D,))),
        pointwise_conv=dict(w=w_init((4 * D, D)), b=jnp.zeros((D,), jnp.float32)),
        model_blocks=[enc_block(cfg["model_kernel"], cfg["model_convs"])
                      for _ in range(cfg["model_blocks"])],
        pointer=dict(w_start=w_init((2 * D, 1)), w_end=w_init((2 * D, 1))),
    )


# ----------------------------------------------------------------------------
# Demo
# ----------------------------------------------------------------------------

if __name__ == "__main__":
    # Small config consistent with the module (model_dim/blocks shrunk for the demo).
    cfg = dict(model_dim=32, num_heads=8,
               word_vocab=50, char_vocab=30, d_word=16, d_char=8,
               embed_kernel=7, embed_convs=2, embed_blocks=1,
               model_kernel=5, model_convs=2, model_blocks=2)
    B, Lc, Lq, Cch = 2, 16, 8, 6

    key = jax.random.PRNGKey(0)
    kp, k1, k2, k3, k4 = jax.random.split(key, 5)
    params = init_params(kp, cfg)

    cw_idxs = jax.random.randint(k1, (B, Lc), 1, cfg["word_vocab"])
    cw_idxs = cw_idxs.at[1, Lc - 4:].set(0)            # padded tail in 2nd example
    qw_idxs = jax.random.randint(k2, (B, Lq), 1, cfg["word_vocab"])
    qw_idxs = qw_idxs.at[1, Lq - 2:].set(0)
    cc_idxs = jax.random.randint(k3, (B, Lc, Cch), 1, cfg["char_vocab"])
    qc_idxs = jax.random.randint(k4, (B, Lq, Cch), 1, cfg["char_vocab"])

    fwd = jax.jit(functools.partial(qanet_forward, num_heads=cfg["num_heads"]))
    log_p1, log_p2 = fwd(params, cw_idxs, cc_idxs, qw_idxs, qc_idxs)
    jax.block_until_ready((log_p1, log_p2))

    assert log_p1.shape == (B, Lc) and log_p2.shape == (B, Lc)
    assert bool(jnp.all(jnp.isfinite(log_p1))) and bool(jnp.all(jnp.isfinite(log_p2)))
    print("KERNEL_OK")
</pallas_src>

<mosaic_0001>
module attributes {stable_mosaic.version = 11 : i64} {
  func.func @_dense_kernel(%arg0: i32, %arg1: memref<32x24xbf16, #tpu.memory_space<vmem>>, %arg2: memref<24x32xbf16, #tpu.memory_space<vmem>>, %arg3: memref<1x32xf32, #tpu.memory_space<vmem>>, %arg4: memref<32x32xbf16, #tpu.memory_space<vmem>>) attributes {dimension_semantics = [#tpu.dimension_semantics<parallel>], iteration_bounds = array<i64: 1>, scalar_prefetch = 0 : i64, scratch_operands = 0 : i64, tpu.core_type = #tpu.core_type<tc>, window_params = [{transform_indices = @transform_0, window_bounds = array<i64: 32, 24>}, {pipeline_mode = #tpu.pipeline_mode<synchronous>, transform_indices = @transform_1, window_bounds = array<i64: 24, 32>}, {pipeline_mode = #tpu.pipeline_mode<synchronous>, transform_indices = @transform_2, window_bounds = array<i64: 1, 32>}, {transform_indices = @transform_3, window_bounds = array<i64: 32, 32>}]} {
    %c0 = arith.constant 0 : index
    %c0_0 = arith.constant 0 : index
    %0 = vector.load %arg1[%c0, %c0_0] : memref<32x24xbf16, #tpu.memory_space<vmem>>, vector<32x24xbf16>
    %1 = arith.extf %0 : vector<32x24xbf16> to vector<32x24xf32>
    %c0_1 = arith.constant 0 : index
    %c0_2 = arith.constant 0 : index
    %2 = vector.load %arg2[%c0_1, %c0_2] : memref<24x32xbf16, #tpu.memory_space<vmem>>, vector<24x32xbf16>
    %3 = arith.extf %2 : vector<24x32xbf16> to vector<24x32xf32>
    %cst = arith.constant dense<0.000000e+00> : vector<32x32xf32>
    %4 = tpu.matmul %1, %3, %cst {dimension_numbers = #tpu.dot_dimension_numbers<[1], [0], [0], [1], [0, 0, 1, 1], [], []>} : vector<32x24xf32>, vector<24x32xf32>, vector<32x32xf32> -> vector<32x32xf32>
    %c0_3 = arith.constant 0 : index
    %c0_4 = arith.constant 0 : index
    %5 = vector.load %arg3[%c0_3, %c0_4] : memref<1x32xf32, #tpu.memory_space<vmem>>, vector<1x32xf32>
    %6 = vector.broadcast %5 : vector<1x32xf32> to vector<32x32xf32>
    %7 = arith.addf %4, %6 : vector<32x32xf32>
    %8 = arith.truncf %7 : vector<32x32xf32> to vector<32x32xbf16>
    %c0_5 = arith.constant 0 : index
    %c0_6 = arith.constant 0 : index
    %9 = vector.load %arg4[%c0_5, %c0_6] : memref<32x32xbf16, #tpu.memory_space<vmem>>, vector<32x32xbf16>
    tpu.vector_store %arg4[%c0_5, %c0_6], %8 {strides = array<i32>} : memref<32x32xbf16, #tpu.memory_space<vmem>>, vector<32x32xbf16>,
    return
  }
  func.func @transform_0(%arg0: i32) -> (i32, i32) {
    %c0_i32 = arith.constant 0 : i32
    %c0_i32_0 = arith.constant 0 : i32
    return %arg0, %c0_i32 : i32, i32
  }
  func.func @transform_1(%arg0: i32) -> (i32, i32) {
    %c0_i32 = arith.constant 0 : i32
    %c0_i32_0 = arith.constant 0 : i32
    %c0_i32_1 = arith.constant 0 : i32
    return %c0_i32, %c0_i32_0 : i32, i32
  }
  func.func @transform_2(%arg0: i32) -> (i32, i32) {
    %c0_i32 = arith.constant 0 : i32
    %c0_i32_0 = arith.constant 0 : i32
    %c0_i32_1 = arith.constant 0 : i32
    return %c0_i32, %c0_i32_0 : i32, i32
  }
  func.func @transform_3(%arg0: i32) -> (i32, i32) {
    %c0_i32 = arith.constant 0 : i32
    %c0_i32_0 = arith.constant 0 : i32
    return %arg0, %c0_i32 : i32, i32
  }
}

module attributes {stable_mosaic.version = 11 : i64} {
  func.func @_highway_kernel(%arg0: i32, %arg1: memref<32x24xf32, #tpu.memory_space<vmem>>, %arg2: memref<24x48xbf16, #tpu.memory_space<vmem>>, %arg3: memref<1x48xf32, #tpu.memory_space<vmem>>, %arg4: memref<32x24xbf16, #tpu.memory_space<vmem>>) attributes {dimension_semantics = [#tpu.dimension_semantics<parallel>], iteration_bounds = array<i64: 1>, scalar_prefetch = 0 : i64, scratch_operands = 0 : i64, tpu.core_type = #tpu.core_type<tc>, window_params = [{transform_indices = @transform_0, window_bounds = array<i64: 32, 24>}, {pipeline_mode = #tpu.pipeline_mode<synchronous>, transform_indices = @transform_1, window_bounds = array<i64: 24, 48>}, {pipeline_mode = #tpu.pipeline_mode<synchronous>, transform_indices = @transform_2, window_bounds = array<i64: 1, 48>}, {transform_indices = @transform_3, window_bounds = array<i64: 32, 24>}]} {
    %c0 = arith.constant 0 : index
    %c0_0 = arith.constant 0 : index
    %0 = vector.load %arg1[%c0, %c0_0] : memref<32x24xf32, #tpu.memory_space<vmem>>, vector<32x24xf32>
    %c0_1 = arith.constant 0 : index
    %c0_2 = arith.constant 0 : index
    %1 = vector.load %arg2[%c0_1, %c0_2] : memref<24x48xbf16, #tpu.memory_space<vmem>>, vector<24x48xbf16>
    %2 = arith.extf %1 : vector<24x48xbf16> to vector<24x48xf32>
    %cst = arith.constant dense<0.000000e+00> : vector<32x48xf32>
    %3 = tpu.matmul %0, %2, %cst {dimension_numbers = #tpu.dot_dimension_numbers<[1], [0], [0], [1], [0, 0, 1, 1], [], []>} : vector<32x24xf32>, vector<24x48xf32>, vector<32x48xf32> -> vector<32x48xf32>
    %c0_3 = arith.constant 0 : index
    %c0_4 = arith.constant 0 : index
    %4 = vector.load %arg3[%c0_3, %c0_4] : memref<1x48xf32, #tpu.memory_space<vmem>>, vector<1x48xf32>
    %5 = vector.broadcast %4 : vector<1x48xf32> to vector<32x48xf32>
    %6 = arith.addf %3, %5 : vector<32x48xf32>
    %7 = vector.extract_strided_slice %6 {offsets = [0, 0], sizes = [32, 24], strides = [1, 1]} : vector<32x48xf32> to vector<32x24xf32>
    %cst_5 = arith.constant 0.000000e+00 : f32
    %8 = vector.broadcast %cst_5 : f32 to vector<32x24xf32>
    %9 = arith.maximumf %7, %8 : vector<32x24xf32>
    %10 = vector.extract_strided_slice %6 {offsets = [0, 24], sizes = [32, 24], strides = [1, 1]} : vector<32x48xf32> to vector<32x24xf32>
    %11 = arith.negf %10 : vector<32x24xf32>
    %12 = math.exp %11 : vector<32x24xf32>
    %cst_6 = arith.constant 1.000000e+00 : f32
    %13 = vector.broadcast %cst_6 : f32 to vector<32x24xf32>
    %14 = arith.addf %13, %12 : vector<32x24xf32>
    %15 = arith.divf %13, %14 : vector<32x24xf32>
    %16 = arith.mulf %15, %9 : vector<32x24xf32>
    %cst_7 = arith.constant 1.000000e+00 : f32
    %17 = vector.broadcast %cst_7 : f32 to vector<32x24xf32>
    %18 = arith.subf %17, %15 : vector<32x24xf32>
    %19 = arith.mulf %18, %0 : vector<32x24xf32>
    %20 = arith.addf %16, %19 : vector<32x24xf32>
    %21 = arith.truncf %20 : vector<32x24xf32> to vector<32x24xbf16>
    %c0_8 = arith.constant 0 : index
    %c0_9 = arith.constant 0 : index
    %22 = vector.load %arg4[%c0_8, %c0_9] : memref<32x24xbf16, #tpu.memory_space<vmem>>, vector<32x24xbf16>
    tpu.vector_store %arg4[%c0_8, %c0_9], %21 {strides = array<i32>} : memref<32x24xbf16, #tpu.memory_space<vmem>>, vector<32x24xbf16>,
    return
  }
  func.func @transform_0(%arg0: i32) -> (i32, i32) {
    %c0_i32 = arith.constant 0 : i32
    %c0_i32_0 = arith.constant 0 : i32
    return %arg0, %c0_i32 : i32, i32
  }
  func.func @transform_1(%arg0: i32) -> (i32, i32) {
    %c0_i32 = arith.constant 0 : i32
    %c0_i32_0 = arith.constant 0 : i32
    %c0_i32_1 = arith.constant 0 : i32
    return %c0_i32, %c0_i32_0 : i32, i32
  }
  func.func @transform_2(%arg0: i32) -> (i32, i32) {
    %c0_i32 = arith.constant 0 : i32
    %c0_i32_0 = arith.constant 0 : i32
    %c0_i32_1 = arith.constant 0 : i32
    return %c0_i32, %c0_i32_0 : i32, i32
  }
  func.func @transform_3(%arg0: i32) -> (i32, i32) {
    %c0_i32 = arith.constant 0 : i32
    %c0_i32_0 = arith.constant 0 : i32
    return %arg0, %c0_i32 : i32, i32
  }
}

module attributes {stable_mosaic.version = 11 : i64} {
  func.func @_highway_kernel(%arg0: i32, %arg1: memref<32x24xbf16, #tpu.memory_space<vmem>>, %arg2: memref<24x48xbf16, #tpu.memory_space<vmem>>, %arg3: memref<1x48xf32, #tpu.memory_space<vmem>>, %arg4: memref<32x24xbf16, #tpu.memory_space<vmem>>) attributes {dimension_semantics = [#tpu.dimension_semantics<parallel>], iteration_bounds = array<i64: 1>, scalar_prefetch = 0 : i64, scratch_operands = 0 : i64, tpu.core_type = #tpu.core_type<tc>, window_params = [{transform_indices = @transform_0, window_bounds = array<i64: 32, 24>}, {pipeline_mode = #tpu.pipeline_mode<synchronous>, transform_indices = @transform_1, window_bounds = array<i64: 24, 48>}, {pipeline_mode = #tpu.pipeline_mode<synchronous>, transform_indices = @transform_2, window_bounds = array<i64: 1, 48>}, {transform_indices = @transform_3, window_bounds = array<i64: 32, 24>}]} {
    %c0 = arith.constant 0 : index
    %c0_0 = arith.constant 0 : index
    %0 = vector.load %arg1[%c0, %c0_0] : memref<32x24xbf16, #tpu.memory_space<vmem>>, vector<32x24xbf16>
    %1 = arith.extf %0 : vector<32x24xbf16> to vector<32x24xf32>
    %c0_1 = arith.constant 0 : index
    %c0_2 = arith.constant 0 : index
    %2 = vector.load %arg2[%c0_1, %c0_2] : memref<24x48xbf16, #tpu.memory_space<vmem>>, vector<24x48xbf16>
    %3 = arith.extf %2 : vector<24x48xbf16> to vector<24x48xf32>
    %cst = arith.constant dense<0.000000e+00> : vector<32x48xf32>
    %4 = tpu.matmul %1, %3, %cst {dimension_numbers = #tpu.dot_dimension_numbers<[1], [0], [0], [1], [0, 0, 1, 1], [], []>} : vector<32x24xf32>, vector<24x48xf32>, vector<32x48xf32> -> vector<32x48xf32>
    %c0_3 = arith.constant 0 : index
    %c0_4 = arith.constant 0 : index
    %5 = vector.load %arg3[%c0_3, %c0_4] : memref<1x48xf32, #tpu.memory_space<vmem>>, vector<1x48xf32>
    %6 = vector.broadcast %5 : vector<1x48xf32> to vector<32x48xf32>
    %7 = arith.addf %4, %6 : vector<32x48xf32>
    %8 = vector.extract_strided_slice %7 {offsets = [0, 0], sizes = [32, 24], strides = [1, 1]} : vector<32x48xf32> to vector<32x24xf32>
    %cst_5 = arith.constant 0.000000e+00 : f32
    %9 = vector.broadcast %cst_5 : f32 to vector<32x24xf32>
    %10 = arith.maximumf %8, %9 : vector<32x24xf32>
    %11 = vector.extract_strided_slice %7 {offsets = [0, 24], sizes = [32, 24], strides = [1, 1]} : vector<32x48xf32> to vector<32x24xf32>
    %12 = arith.negf %11 : vector<32x24xf32>
    %13 = math.exp %12 : vector<32x24xf32>
    %cst_6 = arith.constant 1.000000e+00 : f32
    %14 = vector.broadcast %cst_6 : f32 to vector<32x24xf32>
    %15 = arith.addf %14, %13 : vector<32x24xf32>
    %16 = arith.divf %14, %15 : vector<32x24xf32>
    %17 = arith.mulf %16, %10 : vector<32x24xf32>
    %cst_7 = arith.constant 1.000000e+00 : f32
    %18 = vector.broadcast %cst_7 : f32 to vector<32x24xf32>
    %19 = arith.subf %18, %16 : vector<32x24xf32>
    %20 = arith.mulf %19, %1 : vector<32x24xf32>
    %21 = arith.addf %17, %20 : vector<32x24xf32>
    %22 = arith.truncf %21 : vector<32x24xf32> to vector<32x24xbf16>
    %c0_8 = arith.constant 0 : index
    %c0_9 = arith.constant 0 : index
    %23 = vector.load %arg4[%c0_8, %c0_9] : memref<32x24xbf16, #tpu.memory_space<vmem>>, vector<32x24xbf16>
    tpu.vector_store %arg4[%c0_8, %c0_9], %22 {strides = array<i32>} : memref<32x24xbf16, #tpu.memory_space<vmem>>, vector<32x24xbf16>,
    return
  }
  func.func @transform_0(%arg0: i32) -> (i32, i32) {
    %c0_i32 = arith.constant 0 : i32
    %c0_i32_0 = arith.constant 0 : i32
    return %arg0, %c0_i32 : i32, i32
  }
  func.func @transform_1(%arg0: i32) -> (i32, i32) {
    %c0_i32 = arith.constant 0 : i32
    %c0_i32_0 = arith.constant 0 : i32
    %c0_i32_1 = arith.constant 0 : i32
    return %c0_i32, %c0_i32_0 : i32, i32
  }
  func.func @transform_2(%arg0: i32) -> (i32, i32) {
    %c0_i32 = arith.constant 0 : i32
    %c0_i32_0 = arith.constant 0 : i32
    %c0_i32_1 = arith.constant 0 : i32
    return %c0_i32, %c0_i32_0 : i32, i32
  }
  func.func @transform_3(%arg0: i32) -> (i32, i32) {
    %c0_i32 = arith.constant 0 : i32
    %c0_i32_0 = arith.constant 0 : i32
    return %arg0, %c0_i32 : i32, i32
  }
}

module attributes {stable_mosaic.version = 11 : i64} {
  func.func @_dsconv_kernel(%arg0: i32, %arg1: memref<1x22x32xbf16, #tpu.memory_space<vmem>>, %arg2: memref<22x32xf32, #tpu.memory_space<vmem>>, %arg3: memref<1x32xf32, #tpu.memory_space<vmem>>, %arg4: memref<1x32xf32, #tpu.memory_space<vmem>>, %arg5: memref<7x32xf32, #tpu.memory_space<vmem>>, %arg6: memref<32x32xbf16, #tpu.memory_space<vmem>>, %arg7: memref<1x32xf32, #tpu.memory_space<vmem>>, %arg8: memref<1x16x32xbf16, #tpu.memory_space<vmem>>) attributes {dimension_semantics = [#tpu.dimension_semantics<parallel>], iteration_bounds = array<i64: 2>, scalar_prefetch = 0 : i64, scratch_operands = 0 : i64, tpu.core_type = #tpu.core_type<tc>, window_params = [{transform_indices = @transform_0, window_bounds = array<i64: 1, 22, 32>}, {pipeline_mode = #tpu.pipeline_mode<synchronous>, transform_indices = @transform_1, window_bounds = array<i64: 22, 32>}, {pipeline_mode = #tpu.pipeline_mode<synchronous>, transform_indices = @transform_2, window_bounds = array<i64: 1, 32>}, {pipeline_mode = #tpu.pipeline_mode<synchronous>, transform_indices = @transform_3, window_bounds = array<i64: 1, 32>}, {pipeline_mode = #tpu.pipeline_mode<synchronous>, transform_indices = @transform_4, window_bounds = array<i64: 7, 32>}, {pipeline_mode = #tpu.pipeline_mode<synchronous>, transform_indices = @transform_5, window_bounds = array<i64: 32, 32>}, {pipeline_mode = #tpu.pipeline_mode<synchronous>, transform_indices = @transform_6, window_bounds = array<i64: 1, 32>}, {transform_indices = @transform_7, window_bounds = array<i64: 1, 16, 32>}]} {
    %c0 = arith.constant 0 : index
    %c0_0 = arith.constant 0 : index
    %c0_1 = arith.constant 0 : index
    %0 = vector.load %arg1[%c0, %c0_0, %c0_1] : memref<1x22x32xbf16, #tpu.memory_space<vmem>>, vector<1x22x32xbf16>
    %1 = vector.shape_cast %0 : vector<1x22x32xbf16> to vector<22x32xbf16>
    %2 = arith.extf %1 : vector<22x32xbf16> to vector<22x32xf32>
    %c0_2 = arith.constant 0 : index
    %c0_3 = arith.constant 0 : index
    %3 = vector.load %arg2[%c0_2, %c0_3] : memref<22x32xf32, #tpu.memory_space<vmem>>, vector<22x32xf32>
    %4 = arith.addf %2, %3 : vector<22x32xf32>
    %cst = arith.constant dense<0.000000e+00> : vector<22xf32>
    %5 = vector.multi_reduction <add>, %4, %cst [1] : vector<22x32xf32> to vector<22xf32>
    %6 = vector.shape_cast %5 : vector<22xf32> to vector<22x1xf32>
    %cst_4 = arith.constant 3.200000e+01 : f32
    %7 = vector.broadcast %cst_4 : f32 to vector<22x1xf32>
    %8 = arith.divf %6, %7 : vector<22x1xf32>
    %9 = vector.broadcast %8 : vector<22x1xf32> to vector<22x32xf32>
    %10 = arith.subf %4, %9 : vector<22x32xf32>
    %11 = arith.mulf %10, %10 : vector<22x32xf32>
    %cst_5 = arith.constant dense<0.000000e+00> : vector<22xf32>
    %12 = vector.multi_reduction <add>, %11, %cst_5 [1] : vector<22x32xf32> to vector<22xf32>
    %13 = vector.shape_cast %12 : vector<22xf32> to vector<22x1xf32>
    %cst_6 = arith.constant 3.200000e+01 : f32
    %14 = vector.broadcast %cst_6 : f32 to vector<22x1xf32>
    %15 = arith.divf %13, %14 : vector<22x1xf32>
    %cst_7 = arith.constant 9.99999974E-6 : f32
    %16 = vector.broadcast %cst_7 : f32 to vector<22x1xf32>
    %17 = arith.addf %15, %16 : vector<22x1xf32>
    %18 = math.rsqrt %17 : vector<22x1xf32>
    %19 = vector.broadcast %18 : vector<22x1xf32> to vector<22x32xf32>
    %20 = arith.mulf %10, %19 : vector<22x32xf32>
    %c0_8 = arith.constant 0 : index
    %c0_9 = arith.constant 0 : index
    %21 = vector.load %arg3[%c0_8, %c0_9] : memref<1x32xf32, #tpu.memory_space<vmem>>, vector<1x32xf32>
    %22 = vector.broadcast %21 : vector<1x32xf32> to vector<22x32xf32>
    %23 = arith.mulf %20, %22 : vector<22x32xf32>
    %c0_10 = arith.constant 0 : index
    %c0_11 = arith.constant 0 : index
    %24 = vector.load %arg4[%c0_10, %c0_11] : memref<1x32xf32, #tpu.memory_space<vmem>>, vector<1x32xf32>
    %25 = vector.broadcast %24 : vector<1x32xf32> to vector<22x32xf32>
    %26 = arith.addf %23, %25 : vector<22x32xf32>
    %27 = tpu.iota {dimensions = array<i32: 0>} : vector<22x1xi32>
    %c3_i32 = arith.constant 3 : i32
    %28 = vector.broadcast %c3_i32 : i32 to vector<22x1xi32>
    %29 = arith.cmpi sge, %27, %28 : vector<22x1xi32>
    %c19_i32 = arith.constant 19 : i32
    %30 = vector.broadcast %c19_i32 : i32 to vector<22x1xi32>
    %31 = arith.cmpi slt, %27, %30 : vector<22x1xi32>
    %32 = arith.andi %29, %31 : vector<22x1xi1>
    %33 = arith.extui %32 : vector<22x1xi1> to vector<22x1xi32>
    %34 = arith.sitofp %33 : vector<22x1xi32> to vector<22x1xf32>
    %35 = vector.broadcast %34 : vector<22x1xf32> to vector<22x32xf32>
    %36 = arith.mulf %26, %35 : vector<22x32xf32>
    %c0_12 = arith.constant 0 : index
    %c0_13 = arith.constant 0 : index
    %37 = vector.load %arg5[%c0_12, %c0_13] : memref<7x32xf32, #tpu.memory_space<vmem>>, vector<7x32xf32>
    %cst_14 = arith.constant 0.000000e+00 : f32
    %38 = vector.broadcast %cst_14 : f32 to vector<16x32xf32>
    %39 = vector.extract_strided_slice %36 {offsets = [0, 0], sizes = [16, 32], strides = [1, 1]} : vector<22x32xf32> to vector<16x32xf32>
    %40 = vector.extract_strided_slice %37 {offsets = [0, 0], sizes = [1, 32], strides = [1, 1]} : vector<7x32xf32> to vector<1x32xf32>
    %41 = vector.broadcast %40 : vector<1x32xf32> to vector<16x32xf32>
    %42 = arith.mulf %39, %41 : vector<16x32xf32>
    %43 = arith.addf %38, %42 : vector<16x32xf32>
    %44 = vector.extract_strided_slice %36 {offsets = [1, 0], sizes = [16, 32], strides = [1, 1]} : vector<22x32xf32> to vector<16x32xf32>
    %45 = vector.extract_strided_slice %37 {offsets = [1, 0], sizes = [1, 32], strides = [1, 1]} : vector<7x32xf32> to vector<1x32xf32>
    %46 = vector.broadcast %45 : vector<1x32xf32> to vector<16x32xf32>
    %47 = arith.mulf %44, %46 : vector<16x32xf32>
    %48 = arith.addf %43, %47 : vector<16x32xf32>
    %49 = vector.extract_strided_slice %36 {offsets = [2, 0], sizes = [16, 32], strides = [1, 1]} : vector<22x32xf32> to vector<16x32xf32>
    %50 = vector.extract_strided_slice %37 {offsets = [2, 0], sizes = [1, 32], strides = [1, 1]} : vector<7x32xf32> to vector<1x32xf32>
    %51 = vector.broadcast %50 : vector<1x32xf32> to vector<16x32xf32>
    %52 = arith.mulf %49, %51 : vector<16x32xf32>
    %53 = arith.addf %48, %52 : vector<16x32xf32>
    %54 = vector.extract_strided_slice %36 {offsets = [3, 0], sizes = [16, 32], strides = [1, 1]} : vector<22x32xf32> to vector<16x32xf32>
    %55 = vector.extract_strided_slice %37 {offsets = [3, 0], sizes = [1, 32], strides = [1, 1]} : vector<7x32xf32> to vector<1x32xf32>
    %56 = vector.broadcast %55 : vector<1x32xf32> to vector<16x32xf32>
    %57 = arith.mulf %54, %56 : vector<16x32xf32>
    %58 = arith.addf %53, %57 : vector<16x32xf32>
    %59 = vector.extract_strided_slice %36 {offsets = [4, 0], sizes = [16, 32], strides = [1, 1]} : vector<22x32xf32> to vector<16x32xf32>
    %60 = vector.extract_strided_slice %37 {offsets = [4, 0], sizes = [1, 32], strides = [1, 1]} : vector<7x32xf32> to vector<1x32xf32>
    %61 = vector.broadcast %60 : vector<1x32xf32> to vector<16x32xf32>
    %62 = arith.mulf %59, %61 : vector<16x32xf32>
    %63 = arith.addf %58, %62 : vector<16x32xf32>
    %64 = vector.extract_strided_slice %36 {offsets = [5, 0], sizes = [16, 32], strides = [1, 1]} : vector<22x32xf32> to vector<16x32xf32>
    %65 = vector.extract_strided_slice %37 {offsets = [5, 0], sizes = [1, 32], strides = [1, 1]} : vector<7x32xf32> to vector<1x32xf32>
    %66 = vector.broadcast %65 : vector<1x32xf32> to vector<16x32xf32>
    %67 = arith.mulf %64, %66 : vector<16x32xf32>
    %68 = arith.addf %63, %67 : vector<16x32xf32>
    %69 = vector.extract_strided_slice %36 {offsets = [6, 0], sizes = [16, 32], strides = [1, 1]} : vector<22x32xf32> to vector<16x32xf32>
    %70 = vector.extract_strided_slice %37 {offsets = [6, 0], sizes = [1, 32], strides = [1, 1]} : vector<7x32xf32> to vector<1x32xf32>
    %71 = vector.broadcast %70 : vector<1x32xf32> to vector<16x32xf32>
    %72 = arith.mulf %69, %71 : vector<16x32xf32>
    %73 = arith.addf %68, %72 : vector<16x32xf32>
    %c0_15 = arith.constant 0 : index
    %c0_16 = arith.constant 0 : index
    %74 = vector.load %arg6[%c0_15, %c0_16] : memref<32x32xbf16, #tpu.memory_space<vmem>>, vector<32x32xbf16>
    %75 = arith.extf %74 : vector<32x32xbf16> to vector<32x32xf32>
    %cst_17 = arith.constant dense<0.000000e+00> : vector<16x32xf32>
    %76 = tpu.matmul %73, %75, %cst_17 {dimension_numbers = #tpu.dot_dimension_numbers<[1], [0], [0], [1], [0, 0, 1, 1], [], []>} : vector<16x32xf32>, vector<32x32xf32>, vector<16x32xf32> -> vector<16x32xf32>
    %c0_18 = arith.constant 0 : index
    %c0_19 = arith.constant 0 : index
    %77 = vector.load %arg7[%c0_18, %c0_19] : memref<1x32xf32, #tpu.memory_space<vmem>>, vector<1x32xf32>
    %78 = vector.broadcast %77 : vector<1x32xf32> to vector<16x32xf32>
    %79 = arith.addf %76, %78 : vector<16x32xf32>
    %cst_20 = arith.constant 0.000000e+00 : f32
    %80 = vector.broadcast %cst_20 : f32 to vector<16x32xf32>
    %81 = arith.maximumf %79, %80 : vector<16x32xf32>
    %82 = vector.extract_strided_slice %4 {offsets = [3, 0], sizes = [16, 32], strides = [1, 1]} : vector<22x32xf32> to vector<16x32xf32>
    %83 = arith.addf %82, %81 : vector<16x32xf32>
    %84 = arith.truncf %83 : vector<16x32xf32> to vector<16x32xbf16>
    %c0_21 = arith.constant 0 : index
    %c0_22 = arith.constant 0 : index
    %c0_23 = arith.constant 0 : index
    %85 = vector.load %arg8[%c0_21, %c0_22, %c0_23] : memref<1x16x32xbf16, #tpu.memory_space<vmem>>, vector<1x16x32xbf16>
    %86 = vector.shape_cast %85 : vector<1x16x32xbf16> to vector<16x32xbf16>
    %87 = vector.shape_cast %84 : vector<16x32xbf16> to vector<1x16x32xbf16>
    tpu.vector_store %arg8[%c0_21, %c0_22, %c0_23], %87 {strides = array<i32>} : memref<1x16x32xbf16, #tpu.memory_space<vmem>>, vector<1x16x32xbf16>,
    return
  }
  func.func @transform_0(%arg0: i32) -> (i32, i32, i32) {
    %c0_i32 = arith.constant 0 : i32
    %c0_i32_0 = arith.constant 0 : i32
    %c0_i32_1 = arith.constant 0 : i32
    return %arg0, %c0_i32, %c0_i32_0 : i32, i32, i32
  }
  func.func @transform_1(%arg0: i32) -> (i32, i32) {
    %c0_i32 = arith.constant 0 : i32
    %c0_i32_0 = arith.constant 0 : i32
    %c0_i32_1 = arith.constant 0 : i32
    return %c0_i32, %c0_i32_0 : i32, i32
  }
  func.func @transform_2(%arg0: i32) -> (i32, i32) {
    %c0_i32 = arith.constant 0 : i32
    %c0_i32_0 = arith.constant 0 : i32
    %c0_i32_1 = arith.constant 0 : i32
    return %c0_i32, %c0_i32_0 : i32, i32
  }
  func.func @transform_3(%arg0: i32) -> (i32, i32) {
    %c0_i32 = arith.constant 0 : i32
    %c0_i32_0 = arith.constant 0 : i32
    %c0_i32_1 = arith.constant 0 : i32
    return %c0_i32, %c0_i32_0 : i32, i32
  }
  func.func @transform_4(%arg0: i32) -> (i32, i32) {
    %c0_i32 = arith.constant 0 : i32
    %c0_i32_0 = arith.constant 0 : i32
    %c0_i32_1 = arith.constant 0 : i32
    return %c0_i32, %c0_i32_0 : i32, i32
  }
  func.func @transform_5(%arg0: i32) -> (i32, i32) {
    %c0_i32 = arith.constant 0 : i32
    %c0_i32_0 = arith.constant 0 : i32
    %c0_i32_1 = arith.constant 0 : i32
    return %c0_i32, %c0_i32_0 : i32, i32
  }
  func.func @transform_6(%arg0: i32) -> (i32, i32) {
    %c0_i32 = arith.constant 0 : i32
    %c0_i32_0 = arith.constant 0 : i32
    %c0_i32_1 = arith.constant 0 : i32
    return %c0_i32, %c0_i32_0 : i32, i32
  }
  func.func @transform_7(%arg0: i32) -> (i32, i32, i32) {
    %c0_i32 = arith.constant 0 : i32
    %c0_i32_0 = arith.constant 0 : i32
    %c0_i32_1 = arith.constant 0 : i32
    return %arg0, %c0_i32, %c0_i32_0 : i32, i32, i32
  }
}

module attributes {stable_mosaic.version = 11 : i64} {
  func.func @_dsconv_kernel(%arg0: i32, %arg1: memref<1x22x32xbf16, #tpu.memory_space<vmem>>, %arg2: memref<1x32xf32, #tpu.memory_space<vmem>>, %arg3: memref<1x32xf32, #tpu.memory_space<vmem>>, %arg4: memref<7x32xf32, #tpu.memory_space<vmem>>, %arg5: memref<32x32xbf16, #tpu.memory_space<vmem>>, %arg6: memref<1x32xf32, #tpu.memory_space<vmem>>, %arg7: memref<1x16x32xbf16, #tpu.memory_space<vmem>>) attributes {dimension_semantics = [#tpu.dimension_semantics<parallel>], iteration_bounds = array<i64: 2>, scalar_prefetch = 0 : i64, scratch_operands = 0 : i64, tpu.core_type = #tpu.core_type<tc>, window_params = [{transform_indices = @transform_0, window_bounds = array<i64: 1, 22, 32>}, {pipeline_mode = #tpu.pipeline_mode<synchronous>, transform_indices = @transform_1, window_bounds = array<i64: 1, 32>}, {pipeline_mode = #tpu.pipeline_mode<synchronous>, transform_indices = @transform_2, window_bounds = array<i64: 1, 32>}, {pipeline_mode = #tpu.pipeline_mode<synchronous>, transform_indices = @transform_3, window_bounds = array<i64: 7, 32>}, {pipeline_mode = #tpu.pipeline_mode<synchronous>, transform_indices = @transform_4, window_bounds = array<i64: 32, 32>}, {pipeline_mode = #tpu.pipeline_mode<synchronous>, transform_indices = @transform_5, window_bounds = array<i64: 1, 32>}, {transform_indices = @transform_6, window_bounds = array<i64: 1, 16, 32>}]} {
    %c0 = arith.constant 0 : index
    %c0_0 = arith.constant 0 : index
    %c0_1 = arith.constant 0 : index
    %0 = vector.load %arg1[%c0, %c0_0, %c0_1] : memref<1x22x32xbf16, #tpu.memory_space<vmem>>, vector<1x22x32xbf16>
    %1 = vector.shape_cast %0 : vector<1x22x32xbf16> to vector<22x32xbf16>
    %2 = arith.extf %1 : vector<22x32xbf16> to vector<22x32xf32>
    %cst = arith.constant dense<0.000000e+00> : vector<22xf32>
    %3 = vector.multi_reduction <add>, %2, %cst [1] : vector<22x32xf32> to vector<22xf32>
    %4 = vector.shape_cast %3 : vector<22xf32> to vector<22x1xf32>
    %cst_2 = arith.constant 3.200000e+01 : f32
    %5 = vector.broadcast %cst_2 : f32 to vector<22x1xf32>
    %6 = arith.divf %4, %5 : vector<22x1xf32>
    %7 = vector.broadcast %6 : vector<22x1xf32> to vector<22x32xf32>
    %8 = arith.subf %2, %7 : vector<22x32xf32>
    %9 = arith.mulf %8, %8 : vector<22x32xf32>
    %cst_3 = arith.constant dense<0.000000e+00> : vector<22xf32>
    %10 = vector.multi_reduction <add>, %9, %cst_3 [1] : vector<22x32xf32> to vector<22xf32>
    %11 = vector.shape_cast %10 : vector<22xf32> to vector<22x1xf32>
    %cst_4 = arith.constant 3.200000e+01 : f32
    %12 = vector.broadcast %cst_4 : f32 to vector<22x1xf32>
    %13 = arith.divf %11, %12 : vector<22x1xf32>
    %cst_5 = arith.constant 9.99999974E-6 : f32
    %14 = vector.broadcast %cst_5 : f32 to vector<22x1xf32>
    %15 = arith.addf %13, %14 : vector<22x1xf32>
    %16 = math.rsqrt %15 : vector<22x1xf32>
    %17 = vector.broadcast %16 : vector<22x1xf32> to vector<22x32xf32>
    %18 = arith.mulf %8, %17 : vector<22x32xf32>
    %c0_6 = arith.constant 0 : index
    %c0_7 = arith.constant 0 : index
    %19 = vector.load %arg2[%c0_6, %c0_7] : memref<1x32xf32, #tpu.memory_space<vmem>>, vector<1x32xf32>
    %20 = vector.broadcast %19 : vector<1x32xf32> to vector<22x32xf32>
    %21 = arith.mulf %18, %20 : vector<22x32xf32>
    %c0_8 = arith.constant 0 : index
    %c0_9 = arith.constant 0 : index
    %22 = vector.load %arg3[%c0_8, %c0_9] : memref<1x32xf32, #tpu.memory_space<vmem>>, vector<1x32xf32>
    %23 = vector.broadcast %22 : vector<1x32xf32> to vector<22x32xf32>
    %24 = arith.addf %21, %23 : vector<22x32xf32>
    %25 = tpu.iota {dimensions = array<i32: 0>} : vector<22x1xi32>
    %c3_i32 = arith.constant 3 : i32
    %26 = vector.broadcast %c3_i32 : i32 to vector<22x1xi32>
    %27 = arith.cmpi sge, %25, %26 : vector<22x1xi32>
    %c19_i32 = arith.constant 19 : i32
    %28 = vector.broadcast %c19_i32 : i32 to vector<22x1xi32>
    %29 = arith.cmpi slt, %25, %28 : vector<22x1xi32>
    %30 = arith.andi %27, %29 : vector<22x1xi1>
    %31 = arith.extui %30 : vector<22x1xi1> to vector<22x1xi32>
    %32 = arith.sitofp %31 : vector<22x1xi32> to vector<22x1xf32>
    %33 = vector.broadcast %32 : vector<22x1xf32> to vector<22x32xf32>
    %34 = arith.mulf %24, %33 : vector<22x32xf32>
    %c0_10 = arith.constant 0 : index
    %c0_11 = arith.constant 0 : index
    %35 = vector.load %arg4[%c0_10, %c0_11] : memref<7x32xf32, #tpu.memory_space<vmem>>, vector<7x32xf32>
    %cst_12 = arith.constant 0.000000e+00 : f32
    %36 = vector.broadcast %cst_12 : f32 to vector<16x32xf32>
    %37 = vector.extract_strided_slice %34 {offsets = [0, 0], sizes = [16, 32], strides = [1, 1]} : vector<22x32xf32> to vector<16x32xf32>
    %38 = vector.extract_strided_slice %35 {offsets = [0, 0], sizes = [1, 32], strides = [1, 1]} : vector<7x32xf32> to vector<1x32xf32>
    %39 = vector.broadcast %38 : vector<1x32xf32> to vector<16x32xf32>
    %40 = arith.mulf %37, %39 : vector<16x32xf32>
    %41 = arith.addf %36, %40 : vector<16x32xf32>
    %42 = vector.extract_strided_slice %34 {offsets = [1, 0], sizes = [16, 32], strides = [1, 1]} : vector<22x32xf32> to vector<16x32xf32>
    %43 = vector.extract_strided_slice %35 {offsets = [1, 0], sizes = [1, 32], strides = [1, 1]} : vector<7x32xf32> to vector<1x32xf32>
    %44 = vector.broadcast %43 : vector<1x32xf32> to vector<16x32xf32>
    %45 = arith.mulf %42, %44 : vector<16x32xf32>
    %46 = arith.addf %41, %45 : vector<16x32xf32>
    %47 = vector.extract_strided_slice %34 {offsets = [2, 0], sizes = [16, 32], strides = [1, 1]} : vector<22x32xf32> to vector<16x32xf32>
    %48 = vector.extract_strided_slice %35 {offsets = [2, 0], sizes = [1, 32], strides = [1, 1]} : vector<7x32xf32> to vector<1x32xf32>
    %49 = vector.broadcast %48 : vector<1x32xf32> to vector<16x32xf32>
    %50 = arith.mulf %47, %49 : vector<16x32xf32>
    %51 = arith.addf %46, %50 : vector<16x32xf32>
    %52 = vector.extract_strided_slice %34 {offsets = [3, 0], sizes = [16, 32], strides = [1, 1]} : vector<22x32xf32> to vector<16x32xf32>
    %53 = vector.extract_strided_slice %35 {offsets = [3, 0], sizes = [1, 32], strides = [1, 1]} : vector<7x32xf32> to vector<1x32xf32>
    %54 = vector.broadcast %53 : vector<1x32xf32> to vector<16x32xf32>
    %55 = arith.mulf %52, %54 : vector<16x32xf32>
    %56 = arith.addf %51, %55 : vector<16x32xf32>
    %57 = vector.extract_strided_slice %34 {offsets = [4, 0], sizes = [16, 32], strides = [1, 1]} : vector<22x32xf32> to vector<16x32xf32>
    %58 = vector.extract_strided_slice %35 {offsets = [4, 0], sizes = [1, 32], strides = [1, 1]} : vector<7x32xf32> to vector<1x32xf32>
    %59 = vector.broadcast %58 : vector<1x32xf32> to vector<16x32xf32>
    %60 = arith.mulf %57, %59 : vector<16x32xf32>
    %61 = arith.addf %56, %60 : vector<16x32xf32>
    %62 = vector.extract_strided_slice %34 {offsets = [5, 0], sizes = [16, 32], strides = [1, 1]} : vector<22x32xf32> to vector<16x32xf32>
    %63 = vector.extract_strided_slice %35 {offsets = [5, 0], sizes = [1, 32], strides = [1, 1]} : vector<7x32xf32> to vector<1x32xf32>
    %64 = vector.broadcast %63 : vector<1x32xf32> to vector<16x32xf32>
    %65 = arith.mulf %62, %64 : vector<16x32xf32>
    %66 = arith.addf %61, %65 : vector<16x32xf32>
    %67 = vector.extract_strided_slice %34 {offsets = [6, 0], sizes = [16, 32], strides = [1, 1]} : vector<22x32xf32> to vector<16x32xf32>
    %68 = vector.extract_strided_slice %35 {offsets = [6, 0], sizes = [1, 32], strides = [1, 1]} : vector<7x32xf32> to vector<1x32xf32>
    %69 = vector.broadcast %68 : vector<1x32xf32> to vector<16x32xf32>
    %70 = arith.mulf %67, %69 : vector<16x32xf32>
    %71 = arith.addf %66, %70 : vector<16x32xf32>
    %c0_13 = arith.constant 0 : index
    %c0_14 = arith.constant 0 : index
    %72 = vector.load %arg5[%c0_13, %c0_14] : memref<32x32xbf16, #tpu.memory_space<vmem>>, vector<32x32xbf16>
    %73 = arith.extf %72 : vector<32x32xbf16> to vector<32x32xf32>
    %cst_15 = arith.constant dense<0.000000e+00> : vector<16x32xf32>
    %74 = tpu.matmul %71, %73, %cst_15 {dimension_numbers = #tpu.dot_dimension_numbers<[1], [0], [0], [1], [0, 0, 1, 1], [], []>} : vector<16x32xf32>, vector<32x32xf32>, vector<16x32xf32> -> vector<16x32xf32>
    %c0_16 = arith.constant 0 : index
    %c0_17 = arith.constant 0 : index
    %75 = vector.load %arg6[%c0_16, %c0_17] : memref<1x32xf32, #tpu.memory_space<vmem>>, vector<1x32xf32>
    %76 = vector.broadcast %75 : vector<1x32xf32> to vector<16x32xf32>
    %77 = arith.addf %74, %76 : vector<16x32xf32>
    %cst_18 = arith.constant 0.000000e+00 : f32
    %78 = vector.broadcast %cst_18 : f32 to vector<16x32xf32>
    %79 = arith.maximumf %77, %78 : vector<16x32xf32>
    %80 = vector.extract_strided_slice %2 {offsets = [3, 0], sizes = [16, 32], strides = [1, 1]} : vector<22x32xf32> to vector<16x32xf32>
    %81 = arith.addf %80, %79 : vector<16x32xf32>
    %82 = arith.truncf %81 : vector<16x32xf32> to vector<16x32xbf16>
    %c0_19 = arith.constant 0 : index
    %c0_20 = arith.constant 0 : index
    %c0_21 = arith.constant 0 : index
    %83 = vector.load %arg7[%c0_19, %c0_20, %c0_21] : memref<1x16x32xbf16, #tpu.memory_space<vmem>>, vector<1x16x32xbf16>
    %84 = vector.shape_cast %83 : vector<1x16x32xbf16> to vector<16x32xbf16>
    %85 = vector.shape_cast %82 : vector<16x32xbf16> to vector<1x16x32xbf16>
    tpu.vector_store %arg7[%c0_19, %c0_20, %c0_21], %85 {strides = array<i32>} : memref<1x16x32xbf16, #tpu.memory_space<vmem>>, vector<1x16x32xbf16>,
    return
  }
  func.func @transform_0(%arg0: i32) -> (i32, i32, i32) {
    %c0_i32 = arith.constant 0 : i32
    %c0_i32_0 = arith.constant 0 : i32
    %c0_i32_1 = arith.constant 0 : i32
    return %arg0, %c0_i32, %c0_i32_0 : i32, i32, i32
  }
  func.func @transform_1(%arg0: i32) -> (i32, i32) {
    %c0_i32 = arith.constant 0 : i32
    %c0_i32_0 = arith.constant 0 : i32
    %c0_i32_1 = arith.constant 0 : i32
    return %c0_i32, %c0_i32_0 : i32, i32
  }
  func.func @transform_2(%arg0: i32) -> (i32, i32) {
    %c0_i32 = arith.constant 0 : i32
    %c0_i32_0 = arith.constant 0 : i32
    %c0_i32_1 = arith.constant 0 : i32
    return %c0_i32, %c0_i32_0 : i32, i32
  }
  func.func @transform_3(%arg0: i32) -> (i32, i32) {
    %c0_i32 = arith.constant 0 : i32
    %c0_i32_0 = arith.constant 0 : i32
    %c0_i32_1 = arith.constant 0 : i32
    return %c0_i32, %c0_i32_0 : i32, i32
  }
  func.func @transform_4(%arg0: i32) -> (i32, i32) {
    %c0_i32 = arith.constant 0 : i32
    %c0_i32_0 = arith.constant 0 : i32
    %c0_i32_1 = arith.constant 0 : i32
    return %c0_i32, %c0_i32_0 : i32, i32
  }
  func.func @transform_5(%arg0: i32) -> (i32, i32) {
    %c0_i32 = arith.constant 0 : i32
    %c0_i32_0 = arith.constant 0 : i32
    %c0_i32_1 = arith.constant 0 : i32
    return %c0_i32, %c0_i32_0 : i32, i32
  }
  func.func @transform_6(%arg0: i32) -> (i32, i32, i32) {
    %c0_i32 = arith.constant 0 : i32
    %c0_i32_0 = arith.constant 0 : i32
    %c0_i32_1 = arith.constant 0 : i32
    return %arg0, %c0_i32, %c0_i32_0 : i32, i32, i32
  }
}

module attributes {stable_mosaic.version = 11 : i64} {
  func.func @_attn_kernel(%arg0: i32, %arg1: i32, %arg2: memref<1x16x96xbf16, #tpu.memory_space<vmem>>, %arg3: memref<1x16x96xbf16, #tpu.memory_space<vmem>>, %arg4: memref<1x1x16xf32, #tpu.memory_space<vmem>>, %arg5: memref<1x16x32xbf16, #tpu.memory_space<vmem>>) attributes {dimension_semantics = [#tpu.dimension_semantics<parallel>, #tpu.dimension_semantics<parallel>], iteration_bounds = array<i64: 2, 1>, scalar_prefetch = 0 : i64, scratch_operands = 0 : i64, tpu.core_type = #tpu.core_type<tc>, window_params = [{transform_indices = @transform_0, window_bounds = array<i64: 1, 16, 96>}, {transform_indices = @transform_1, window_bounds = array<i64: 1, 16, 96>}, {transform_indices = @transform_2, window_bounds = array<i64: 1, 1, 16>}, {transform_indices = @transform_3, window_bounds = array<i64: 1, 16, 32>}]} {
    %c0 = arith.constant 0 : index
    %c0_0 = arith.constant 0 : index
    %c0_1 = arith.constant 0 : index
    %0 = vector.load %arg2[%c0, %c0_0, %c0_1] : memref<1x16x96xbf16, #tpu.memory_space<vmem>>, vector<1x16x96xbf16>
    %1 = vector.shape_cast %0 : vector<1x16x96xbf16> to vector<16x96xbf16>
    %2 = arith.extf %1 : vector<16x96xbf16> to vector<16x96xf32>
    %c0_2 = arith.constant 0 : index
    %c0_3 = arith.constant 0 : index
    %c0_4 = arith.constant 0 : index
    %3 = vector.load %arg3[%c0_2, %c0_3, %c0_4] : memref<1x16x96xbf16, #tpu.memory_space<vmem>>, vector<1x16x96xbf16>
    %4 = vector.shape_cast %3 : vector<1x16x96xbf16> to vector<16x96xbf16>
    %5 = arith.extf %4 : vector<16x96xbf16> to vector<16x96xf32>
    %6 = vector.extract_strided_slice %2 {offsets = [0, 0], sizes = [16, 32], strides = [1, 1]} : vector<16x96xf32> to vector<16x32xf32>
    %7 = vector.shape_cast %6 : vector<16x32xf32> to vector<16x8x4xf32>
    %8 = vector.extract_strided_slice %5 {offsets = [0, 32], sizes = [16, 32], strides = [1, 1]} : vector<16x96xf32> to vector<16x32xf32>
    %9 = vector.shape_cast %8 : vector<16x32xf32> to vector<16x8x4xf32>
    %10 = vector.extract_strided_slice %5 {offsets = [0, 64], sizes = [16, 32], strides = [1, 1]} : vector<16x96xf32> to vector<16x32xf32>
    %11 = vector.shape_cast %10 : vector<16x32xf32> to vector<16x8x4xf32>
    "tpu.trace_start"() <{level = 10 : i32, message = "qhd,khd->hqk"}> : () -> ()
    %cst = arith.constant dense<0.000000e+00> : vector<8x16x16xf32>
    %12 = tpu.matmul %7, %9, %cst {dimension_numbers = #tpu.dot_dimension_numbers<[2], [2], [0], [0], [0, 1, 0, 0, 1, 0], [1], [1]>} : vector<16x8x4xf32>, vector<16x8x4xf32>, vector<8x16x16xf32> -> vector<8x16x16xf32>
    "tpu.trace_stop"() : () -> ()
    %cst_5 = arith.constant 5.000000e-01 : f32
    %13 = vector.broadcast %cst_5 : f32 to vector<8x16x16xf32>
    %14 = arith.mulf %12, %13 : vector<8x16x16xf32>
    %c0_6 = arith.constant 0 : index
    %c0_7 = arith.constant 0 : index
    %c0_8 = arith.constant 0 : index
    %15 = vector.load %arg4[%c0_6, %c0_7, %c0_8] : memref<1x1x16xf32, #tpu.memory_space<vmem>>, vector<1x1x16xf32>
    %16 = vector.shape_cast %15 : vector<1x1x16xf32> to vector<1x16xf32>
    %17 = vector.shape_cast %16 : vector<1x16xf32> to vector<1x1x16xf32>
    %18 = vector.broadcast %17 : vector<1x1x16xf32> to vector<8x16x16xf32>
    %19 = arith.addf %14, %18 : vector<8x16x16xf32>
    %cst_9 = arith.constant dense<0xFF800000> : vector<8x16xf32>
    %20 = vector.multi_reduction <maximumf>, %19, %cst_9 [2] : vector<8x16x16xf32> to vector<8x16xf32>
    %21 = vector.shape_cast %20 : vector<8x16xf32> to vector<8x16x1xf32>
    %22 = vector.broadcast %21 : vector<8x16x1xf32> to vector<8x16x16xf32>
    %23 = arith.subf %19, %22 : vector<8x16x16xf32>
    %24 = math.exp %23 : vector<8x16x16xf32>
    %cst_10 = arith.constant dense<0.000000e+00> : vector<8x16xf32>
    %25 = vector.multi_reduction <add>, %24, %cst_10 [2] : vector<8x16x16xf32> to vector<8x16xf32>
    %26 = vector.shape_cast %25 : vector<8x16xf32> to vector<8x16x1xf32>
    %27 = vector.broadcast %26 : vector<8x16x1xf32> to vector<8x16x16xf32>
    %28 = arith.divf %24, %27 : vector<8x16x16xf32>
    "tpu.trace_start"() <{level = 10 : i32, message = "hqk,khd->qhd"}> : () -> ()
    %cst_11 = arith.constant dense<0.000000e+00> : vector<8x4x16xf32>
    %29 = tpu.matmul %11, %28, %cst_11 {dimension_numbers = #tpu.dot_dimension_numbers<[0], [2], [2], [1], [0, 1, 0, 2, 1, 1], [1], [0]>} : vector<16x8x4xf32>, vector<8x16x16xf32>, vector<8x4x16xf32> -> vector<8x4x16xf32>
    %30 = tpu.transpose %29, [2, 0, 1] : vector<8x4x16xf32> -> vector<16x8x4xf32>
    "tpu.trace_stop"() : () -> ()
    %31 = vector.shape_cast %30 : vector<16x8x4xf32> to vector<16x32xf32>
    %32 = arith.truncf %31 : vector<16x32xf32> to vector<16x32xbf16>
    %c0_12 = arith.constant 0 : index
    %c0_13 = arith.constant 0 : index
    %c0_14 = arith.constant 0 : index
    %33 = vector.load %arg5[%c0_12, %c0_13, %c0_14] : memref<1x16x32xbf16, #tpu.memory_space<vmem>>, vector<1x16x32xbf16>
    %34 = vector.shape_cast %33 : vector<1x16x32xbf16> to vector<16x32xbf16>
    %35 = vector.shape_cast %32 : vector<16x32xbf16> to vector<1x16x32xbf16>
    tpu.vector_store %arg5[%c0_12, %c0_13, %c0_14], %35 {strides = array<i32>} : memref<1x16x32xbf16, #tpu.memory_space<vmem>>, vector<1x16x32xbf16>,
    return
  }
  func.func @transform_0(%arg0: i32, %arg1: i32) -> (i32, i32, i32) {
    %c0_i32 = arith.constant 0 : i32
    %c0_i32_0 = arith.constant 0 : i32
    return %arg0, %arg1, %c0_i32 : i32, i32, i32
  }
  func.func @transform_1(%arg0: i32, %arg1: i32) -> (i32, i32, i32) {
    %c0_i32 = arith.constant 0 : i32
    %c0_i32_0 = arith.constant 0 : i32
    %c0_i32_1 = arith.constant 0 : i32
    return %arg0, %c0_i32, %c0_i32_0 : i32, i32, i32
  }
  func.func @transform_2(%arg0: i32, %arg1: i32) -> (i32, i32, i32) {
    %c0_i32 = arith.constant 0 : i32
    %c0_i32_0 = arith.constant 0 : i32
    %c0_i32_1 = arith.constant 0 : i32
    return %arg0, %c0_i32, %c0_i32_0 : i32, i32, i32
  }
  func.func @transform_3(%arg0: i32, %arg1: i32) -> (i32, i32, i32) {
    %c0_i32 = arith.constant 0 : i32
    %c0_i32_0 = arith.constant 0 : i32
    return %arg0, %arg1, %c0_i32 : i32, i32, i32
  }
}

module attributes {stable_mosaic.version = 11 : i64} {
  func.func @_dense_kernel(%arg0: i32, %arg1: memref<32x32xbf16, #tpu.memory_space<vmem>>, %arg2: memref<1x32xf32, #tpu.memory_space<vmem>>, %arg3: memref<1x32xf32, #tpu.memory_space<vmem>>, %arg4: memref<32x96xbf16, #tpu.memory_space<vmem>>, %arg5: memref<1x96xf32, #tpu.memory_space<vmem>>, %arg6: memref<32x96xbf16, #tpu.memory_space<vmem>>) attributes {dimension_semantics = [#tpu.dimension_semantics<parallel>], iteration_bounds = array<i64: 1>, scalar_prefetch = 0 : i64, scratch_operands = 0 : i64, tpu.core_type = #tpu.core_type<tc>, window_params = [{transform_indices = @transform_0, window_bounds = array<i64: 32, 32>}, {pipeline_mode = #tpu.pipeline_mode<synchronous>, transform_indices = @transform_1, window_bounds = array<i64: 1, 32>}, {pipeline_mode = #tpu.pipeline_mode<synchronous>, transform_indices = @transform_2, window_bounds = array<i64: 1, 32>}, {pipeline_mode = #tpu.pipeline_mode<synchronous>, transform_indices = @transform_3, window_bounds = array<i64: 32, 96>}, {pipeline_mode = #tpu.pipeline_mode<synchronous>, transform_indices = @transform_4, window_bounds = array<i64: 1, 96>}, {transform_indices = @transform_5, window_bounds = array<i64: 32, 96>}]} {
    %c0 = arith.constant 0 : index
    %c0_0 = arith.constant 0 : index
    %0 = vector.load %arg1[%c0, %c0_0] : memref<32x32xbf16, #tpu.memory_space<vmem>>, vector<32x32xbf16>
    %1 = arith.extf %0 : vector<32x32xbf16> to vector<32x32xf32>
    %cst = arith.constant dense<0.000000e+00> : vector<32xf32>
    %2 = vector.multi_reduction <add>, %1, %cst [1] : vector<32x32xf32> to vector<32xf32>
    %3 = vector.shape_cast %2 : vector<32xf32> to vector<32x1xf32>
    %cst_1 = arith.constant 3.200000e+01 : f32
    %4 = vector.broadcast %cst_1 : f32 to vector<32x1xf32>
    %5 = arith.divf %3, %4 : vector<32x1xf32>
    %6 = vector.broadcast %5 : vector<32x1xf32> to vector<32x32xf32>
    %7 = arith.subf %1, %6 : vector<32x32xf32>
    %8 = arith.mulf %7, %7 : vector<32x32xf32>
    %cst_2 = arith.constant dense<0.000000e+00> : vector<32xf32>
    %9 = vector.multi_reduction <add>, %8, %cst_2 [1] : vector<32x32xf32> to vector<32xf32>
    %10 = vector.shape_cast %9 : vector<32xf32> to vector<32x1xf32>
    %cst_3 = arith.constant 3.200000e+01 : f32
    %11 = vector.broadcast %cst_3 : f32 to vector<32x1xf32>
    %12 = arith.divf %10, %11 : vector<32x1xf32>
    %cst_4 = arith.constant 9.99999974E-6 : f32
    %13 = vector.broadcast %cst_4 : f32 to vector<32x1xf32>
    %14 = arith.addf %12, %13 : vector<32x1xf32>
    %15 = math.rsqrt %14 : vector<32x1xf32>
    %16 = vector.broadcast %15 : vector<32x1xf32> to vector<32x32xf32>
    %17 = arith.mulf %7, %16 : vector<32x32xf32>
    %c0_5 = arith.constant 0 : index
    %c0_6 = arith.constant 0 : index
    %18 = vector.load %arg2[%c0_5, %c0_6] : memref<1x32xf32, #tpu.memory_space<vmem>>, vector<1x32xf32>
    %19 = vector.broadcast %18 : vector<1x32xf32> to vector<32x32xf32>
    %20 = arith.mulf %17, %19 : vector<32x32xf32>
    %c0_7 = arith.constant 0 : index
    %c0_8 = arith.constant 0 : index
    %21 = vector.load %arg3[%c0_7, %c0_8] : memref<1x32xf32, #tpu.memory_space<vmem>>, vector<1x32xf32>
    %22 = vector.broadcast %21 : vector<1x32xf32> to vector<32x32xf32>
    %23 = arith.addf %20, %22 : vector<32x32xf32>
    %c0_9 = arith.constant 0 : index
    %c0_10 = arith.constant 0 : index
    %24 = vector.load %arg4[%c0_9, %c0_10] : memref<32x96xbf16, #tpu.memory_space<vmem>>, vector<32x96xbf16>
    %25 = arith.extf %24 : vector<32x96xbf16> to vector<32x96xf32>
    %cst_11 = arith.constant dense<0.000000e+00> : vector<32x96xf32>
    %26 = tpu.matmul %23, %25, %cst_11 {dimension_numbers = #tpu.dot_dimension_numbers<[1], [0], [0], [1], [0, 0, 1, 1], [], []>} : vector<32x32xf32>, vector<32x96xf32>, vector<32x96xf32> -> vector<32x96xf32>
    %c0_12 = arith.constant 0 : index
    %c0_13 = arith.constant 0 : index
    %27 = vector.load %arg5[%c0_12, %c0_13] : memref<1x96xf32, #tpu.memory_space<vmem>>, vector<1x96xf32>
    %28 = vector.broadcast %27 : vector<1x96xf32> to vector<32x96xf32>
    %29 = arith.addf %26, %28 : vector<32x96xf32>
    %30 = arith.truncf %29 : vector<32x96xf32> to vector<32x96xbf16>
    %c0_14 = arith.constant 0 : index
    %c0_15 = arith.constant 0 : index
    %31 = vector.load %arg6[%c0_14, %c0_15] : memref<32x96xbf16, #tpu.memory_space<vmem>>, vector<32x96xbf16>
    tpu.vector_store %arg6[%c0_14, %c0_15], %30 {strides = array<i32>} : memref<32x96xbf16, #tpu.memory_space<vmem>>, vector<32x96xbf16>,
    return
  }
  func.func @transform_0(%arg0: i32) -> (i32, i32) {
    %c0_i32 = arith.constant 0 : i32
    %c0_i32_0 = arith.constant 0 : i32
    return %arg0, %c0_i32 : i32, i32
  }
  func.func @transform_1(%arg0: i32) -> (i32, i32) {
    %c0_i32 = arith.constant 0 : i32
    %c0_i32_0 = arith.constant 0 : i32
    %c0_i32_1 = arith.constant 0 : i32
    return %c0_i32, %c0_i32_0 : i32, i32
  }
  func.func @transform_2(%arg0: i32) -> (i32, i32) {
    %c0_i32 = arith.constant 0 : i32
    %c0_i32_0 = arith.constant 0 : i32
    %c0_i32_1 = arith.constant 0 : i32
    return %c0_i32, %c0_i32_0 : i32, i32
  }
  func.func @transform_3(%arg0: i32) -> (i32, i32) {
    %c0_i32 = arith.constant 0 : i32
    %c0_i32_0 = arith.constant 0 : i32
    %c0_i32_1 = arith.constant 0 : i32
    return %c0_i32, %c0_i32_0 : i32, i32
  }
  func.func @transform_4(%arg0: i32) -> (i32, i32) {
    %c0_i32 = arith.constant 0 : i32
    %c0_i32_0 = arith.constant 0 : i32
    %c0_i32_1 = arith.constant 0 : i32
    return %c0_i32, %c0_i32_0 : i32, i32
  }
  func.func @transform_5(%arg0: i32) -> (i32, i32) {
    %c0_i32 = arith.constant 0 : i32
    %c0_i32_0 = arith.constant 0 : i32
    return %arg0, %c0_i32 : i32, i32
  }
}

module attributes {stable_mosaic.version = 11 : i64} {
  func.func @_dense_kernel(%arg0: i32, %arg1: memref<32x32xbf16, #tpu.memory_space<vmem>>, %arg2: memref<32x32xbf16, #tpu.memory_space<vmem>>, %arg3: memref<1x32xf32, #tpu.memory_space<vmem>>, %arg4: memref<32x32xbf16, #tpu.memory_space<vmem>>, %arg5: memref<32x32xbf16, #tpu.memory_space<vmem>>) attributes {dimension_semantics = [#tpu.dimension_semantics<parallel>], iteration_bounds = array<i64: 1>, scalar_prefetch = 0 : i64, scratch_operands = 0 : i64, tpu.core_type = #tpu.core_type<tc>, window_params = [{transform_indices = @transform_0, window_bounds = array<i64: 32, 32>}, {pipeline_mode = #tpu.pipeline_mode<synchronous>, transform_indices = @transform_1, window_bounds = array<i64: 32, 32>}, {pipeline_mode = #tpu.pipeline_mode<synchronous>, transform_indices = @transform_2, window_bounds = array<i64: 1, 32>}, {transform_indices = @transform_3, window_bounds = array<i64: 32, 32>}, {transform_indices = @transform_4, window_bounds = array<i64: 32, 32>}]} {
    %c0 = arith.constant 0 : index
    %c0_0 = arith.constant 0 : index
    %0 = vector.load %arg1[%c0, %c0_0] : memref<32x32xbf16, #tpu.memory_space<vmem>>, vector<32x32xbf16>
    %1 = arith.extf %0 : vector<32x32xbf16> to vector<32x32xf32>
    %c0_1 = arith.constant 0 : index
    %c0_2 = arith.constant 0 : index
    %2 = vector.load %arg2[%c0_1, %c0_2] : memref<32x32xbf16, #tpu.memory_space<vmem>>, vector<32x32xbf16>
    %3 = arith.extf %2 : vector<32x32xbf16> to vector<32x32xf32>
    %cst = arith.constant dense<0.000000e+00> : vector<32x32xf32>
    %4 = tpu.matmul %1, %3, %cst {dimension_numbers = #tpu.dot_dimension_numbers<[1], [0], [0], [1], [0, 0, 1, 1], [], []>} : vector<32x32xf32>, vector<32x32xf32>, vector<32x32xf32> -> vector<32x32xf32>
    %c0_3 = arith.constant 0 : index
    %c0_4 = arith.constant 0 : index
    %5 = vector.load %arg3[%c0_3, %c0_4] : memref<1x32xf32, #tpu.memory_space<vmem>>, vector<1x32xf32>
    %6 = vector.broadcast %5 : vector<1x32xf32> to vector<32x32xf32>
    %7 = arith.addf %4, %6 : vector<32x32xf32>
    %c0_5 = arith.constant 0 : index
    %c0_6 = arith.constant 0 : index
    %8 = vector.load %arg4[%c0_5, %c0_6] : memref<32x32xbf16, #tpu.memory_space<vmem>>, vector<32x32xbf16>
    %9 = arith.extf %8 : vector<32x32xbf16> to vector<32x32xf32>
    %10 = arith.addf %7, %9 : vector<32x32xf32>
    %11 = arith.truncf %10 : vector<32x32xf32> to vector<32x32xbf16>
    %c0_7 = arith.constant 0 : index
    %c0_8 = arith.constant 0 : index
    %12 = vector.load %arg5[%c0_7, %c0_8] : memref<32x32xbf16, #tpu.memory_space<vmem>>, vector<32x32xbf16>
    tpu.vector_store %arg5[%c0_7, %c0_8], %11 {strides = array<i32>} : memref<32x32xbf16, #tpu.memory_space<vmem>>, vector<32x32xbf16>,
    return
  }
  func.func @transform_0(%arg0: i32) -> (i32, i32) {
    %c0_i32 = arith.constant 0 : i32
    %c0_i32_0 = arith.constant 0 : i32
    return %arg0, %c0_i32 : i32, i32
  }
  func.func @transform_1(%arg0: i32) -> (i32, i32) {
    %c0_i32 = arith.constant 0 : i32
    %c0_i32_0 = arith.constant 0 : i32
    %c0_i32_1 = arith.constant 0 : i32
    return %c0_i32, %c0_i32_0 : i32, i32
  }
  func.func @transform_2(%arg0: i32) -> (i32, i32) {
    %c0_i32 = arith.constant 0 : i32
    %c0_i32_0 = arith.constant 0 : i32
    %c0_i32_1 = arith.constant 0 : i32
    return %c0_i32, %c0_i32_0 : i32, i32
  }
  func.func @transform_3(%arg0: i32) -> (i32, i32) {
    %c0_i32 = arith.constant 0 : i32
    %c0_i32_0 = arith.constant 0 : i32
    return %arg0, %c0_i32 : i32, i32
  }
  func.func @transform_4(%arg0: i32) -> (i32, i32) {
    %c0_i32 = arith.constant 0 : i32
    %c0_i32_0 = arith.constant 0 : i32
    return %arg0, %c0_i32 : i32, i32
  }
}

module attributes {stable_mosaic.version = 11 : i64} {
  func.func @_ffn_kernel(%arg0: i32, %arg1: memref<32x32xbf16, #tpu.memory_space<vmem>>, %arg2: memref<1x32xf32, #tpu.memory_space<vmem>>, %arg3: memref<1x32xf32, #tpu.memory_space<vmem>>, %arg4: memref<32x128xbf16, #tpu.memory_space<vmem>>, %arg5: memref<1x128xf32, #tpu.memory_space<vmem>>, %arg6: memref<128x32xbf16, #tpu.memory_space<vmem>>, %arg7: memref<1x32xf32, #tpu.memory_space<vmem>>, %arg8: memref<32x32xbf16, #tpu.memory_space<vmem>>) attributes {dimension_semantics = [#tpu.dimension_semantics<parallel>], iteration_bounds = array<i64: 1>, scalar_prefetch = 0 : i64, scratch_operands = 0 : i64, tpu.core_type = #tpu.core_type<tc>, window_params = [{transform_indices = @transform_0, window_bounds = array<i64: 32, 32>}, {pipeline_mode = #tpu.pipeline_mode<synchronous>, transform_indices = @transform_1, window_bounds = array<i64: 1, 32>}, {pipeline_mode = #tpu.pipeline_mode<synchronous>, transform_indices = @transform_2, window_bounds = array<i64: 1, 32>}, {pipeline_mode = #tpu.pipeline_mode<synchronous>, transform_indices = @transform_3, window_bounds = array<i64: 32, 128>}, {pipeline_mode = #tpu.pipeline_mode<synchronous>, transform_indices = @transform_4, window_bounds = array<i64: 1, 128>}, {pipeline_mode = #tpu.pipeline_mode<synchronous>, transform_indices = @transform_5, window_bounds = array<i64: 128, 32>}, {pipeline_mode = #tpu.pipeline_mode<synchronous>, transform_indices = @transform_6, window_bounds = array<i64: 1, 32>}, {transform_indices = @transform_7, window_bounds = array<i64: 32, 32>}]} {
    %c0 = arith.constant 0 : index
    %c0_0 = arith.constant 0 : index
    %0 = vector.load %arg1[%c0, %c0_0] : memref<32x32xbf16, #tpu.memory_space<vmem>>, vector<32x32xbf16>
    %1 = arith.extf %0 : vector<32x32xbf16> to vector<32x32xf32>
    %cst = arith.constant dense<0.000000e+00> : vector<32xf32>
    %2 = vector.multi_reduction <add>, %1, %cst [1] : vector<32x32xf32> to vector<32xf32>
    %3 = vector.shape_cast %2 : vector<32xf32> to vector<32x1xf32>
    %cst_1 = arith.constant 3.200000e+01 : f32
    %4 = vector.broadcast %cst_1 : f32 to vector<32x1xf32>
    %5 = arith.divf %3, %4 : vector<32x1xf32>
    %6 = vector.broadcast %5 : vector<32x1xf32> to vector<32x32xf32>
    %7 = arith.subf %1, %6 : vector<32x32xf32>
    %8 = arith.mulf %7, %7 : vector<32x32xf32>
    %cst_2 = arith.constant dense<0.000000e+00> : vector<32xf32>
    %9 = vector.multi_reduction <add>, %8, %cst_2 [1] : vector<32x32xf32> to vector<32xf32>
    %10 = vector.shape_cast %9 : vector<32xf32> to vector<32x1xf32>
    %cst_3 = arith.constant 3.200000e+01 : f32
    %11 = vector.broadcast %cst_3 : f32 to vector<32x1xf32>
    %12 = arith.divf %10, %11 : vector<32x1xf32>
    %cst_4 = arith.constant 9.99999974E-6 : f32
    %13 = vector.broadcast %cst_4 : f32 to vector<32x1xf32>
    %14 = arith.addf %12, %13 : vector<32x1xf32>
    %15 = math.rsqrt %14 : vector<32x1xf32>
    %16 = vector.broadcast %15 : vector<32x1xf32> to vector<32x32xf32>
    %17 = arith.mulf %7, %16 : vector<32x32xf32>
    %c0_5 = arith.constant 0 : index
    %c0_6 = arith.constant 0 : index
    %18 = vector.load %arg2[%c0_5, %c0_6] : memref<1x32xf32, #tpu.memory_space<vmem>>, vector<1x32xf32>
    %19 = vector.broadcast %18 : vector<1x32xf32> to vector<32x32xf32>
    %20 = arith.mulf %17, %19 : vector<32x32xf32>
    %c0_7 = arith.constant 0 : index
    %c0_8 = arith.constant 0 : index
    %21 = vector.load %arg3[%c0_7, %c0_8] : memref<1x32xf32, #tpu.memory_space<vmem>>, vector<1x32xf32>
    %22 = vector.broadcast %21 : vector<1x32xf32> to vector<32x32xf32>
    %23 = arith.addf %20, %22 : vector<32x32xf32>
    %c0_9 = arith.constant 0 : index
    %c0_10 = arith.constant 0 : index
    %24 = vector.load %arg4[%c0_9, %c0_10] : memref<32x128xbf16, #tpu.memory_space<vmem>>, vector<32x128xbf16>
    %25 = arith.extf %24 : vector<32x128xbf16> to vector<32x128xf32>
    %cst_11 = arith.constant dense<0.000000e+00> : vector<32x128xf32>
    %26 = tpu.matmul %23, %25, %cst_11 {dimension_numbers = #tpu.dot_dimension_numbers<[1], [0], [0], [1], [0, 0, 1, 1], [], []>} : vector<32x32xf32>, vector<32x128xf32>, vector<32x128xf32> -> vector<32x128xf32>
    %c0_12 = arith.constant 0 : index
    %c0_13 = arith.constant 0 : index
    %27 = vector.load %arg5[%c0_12, %c0_13] : memref<1x128xf32, #tpu.memory_space<vmem>>, vector<1x128xf32>
    %28 = vector.broadcast %27 : vector<1x128xf32> to vector<32x128xf32>
    %29 = arith.addf %26, %28 : vector<32x128xf32>
    %cst_14 = arith.constant 0.000000e+00 : f32
    %30 = vector.broadcast %cst_14 : f32 to vector<32x128xf32>
    %31 = arith.maximumf %29, %30 : vector<32x128xf32>
    %c0_15 = arith.constant 0 : index
    %c0_16 = arith.constant 0 : index
    %32 = vector.load %arg6[%c0_15, %c0_16] : memref<128x32xbf16, #tpu.memory_space<vmem>>, vector<128x32xbf16>
    %33 = arith.extf %32 : vector<128x32xbf16> to vector<128x32xf32>
    %cst_17 = arith.constant dense<0.000000e+00> : vector<32x32xf32>
    %34 = tpu.matmul %31, %33, %cst_17 {dimension_numbers = #tpu.dot_dimension_numbers<[1], [0], [0], [1], [0, 0, 1, 1], [], []>} : vector<32x128xf32>, vector<128x32xf32>, vector<32x32xf32> -> vector<32x32xf32>
    %c0_18 = arith.constant 0 : index
    %c0_19 = arith.constant 0 : index
    %35 = vector.load %arg7[%c0_18, %c0_19] : memref<1x32xf32, #tpu.memory_space<vmem>>, vector<1x32xf32>
    %36 = vector.broadcast %35 : vector<1x32xf32> to vector<32x32xf32>
    %37 = arith.addf %34, %36 : vector<32x32xf32>
    %38 = arith.addf %1, %37 : vector<32x32xf32>
    %39 = arith.truncf %38 : vector<32x32xf32> to vector<32x32xbf16>
    %c0_20 = arith.constant 0 : index
    %c0_21 = arith.constant 0 : index
    %40 = vector.load %arg8[%c0_20, %c0_21] : memref<32x32xbf16, #tpu.memory_space<vmem>>, vector<32x32xbf16>
    tpu.vector_store %arg8[%c0_20, %c0_21], %39 {strides = array<i32>} : memref<32x32xbf16, #tpu.memory_space<vmem>>, vector<32x32xbf16>,
    return
  }
  func.func @transform_0(%arg0: i32) -> (i32, i32) {
    %c0_i32 = arith.constant 0 : i32
    %c0_i32_0 = arith.constant 0 : i32
    return %arg0, %c0_i32 : i32, i32
  }
  func.func @transform_1(%arg0: i32) -> (i32, i32) {
    %c0_i32 = arith.constant 0 : i32
    %c0_i32_0 = arith.constant 0 : i32
    %c0_i32_1 = arith.constant 0 : i32
    return %c0_i32, %c0_i32_0 : i32, i32
  }
  func.func @transform_2(%arg0: i32) -> (i32, i32) {
    %c0_i32 = arith.constant 0 : i32
    %c0_i32_0 = arith.constant 0 : i32
    %c0_i32_1 = arith.constant 0 : i32
    return %c0_i32, %c0_i32_0 : i32, i32
  }
  func.func @transform_3(%arg0: i32) -> (i32, i32) {
    %c0_i32 = arith.constant 0 : i32
    %c0_i32_0 = arith.constant 0 : i32
    %c0_i32_1 = arith.constant 0 : i32
    return %c0_i32, %c0_i32_0 : i32, i32
  }
  func.func @transform_4(%arg0: i32) -> (i32, i32) {
    %c0_i32 = arith.constant 0 : i32
    %c0_i32_0 = arith.constant 0 : i32
    %c0_i32_1 = arith.constant 0 : i32
    return %c0_i32, %c0_i32_0 : i32, i32
  }
  func.func @transform_5(%arg0: i32) -> (i32, i32) {
    %c0_i32 = arith.constant 0 : i32
    %c0_i32_0 = arith.constant 0 : i32
    %c0_i32_1 = arith.constant 0 : i32
    return %c0_i32, %c0_i32_0 : i32, i32
  }
  func.func @transform_6(%arg0: i32) -> (i32, i32) {
    %c0_i32 = arith.constant 0 : i32
    %c0_i32_0 = arith.constant 0 : i32
    %c0_i32_1 = arith.constant 0 : i32
    return %c0_i32, %c0_i32_0 : i32, i32
  }
  func.func @transform_7(%arg0: i32) -> (i32, i32) {
    %c0_i32 = arith.constant 0 : i32
    %c0_i32_0 = arith.constant 0 : i32
    return %arg0, %c0_i32 : i32, i32
  }
}

module attributes {stable_mosaic.version = 11 : i64} {
  func.func @_dense_kernel(%arg0: i32, %arg1: memref<16x24xbf16, #tpu.memory_space<vmem>>, %arg2: memref<24x32xbf16, #tpu.memory_space<vmem>>, %arg3: memref<1x32xf32, #tpu.memory_space<vmem>>, %arg4: memref<16x32xbf16, #tpu.memory_space<vmem>>) attributes {dimension_semantics = [#tpu.dimension_semantics<parallel>], iteration_bounds = array<i64: 1>, scalar_prefetch = 0 : i64, scratch_operands = 0 : i64, tpu.core_type = #tpu.core_type<tc>, window_params = [{transform_indices = @transform_0, window_bounds = array<i64: 16, 24>}, {pipeline_mode = #tpu.pipeline_mode<synchronous>, transform_indices = @transform_1, window_bounds = array<i64: 24, 32>}, {pipeline_mode = #tpu.pipeline_mode<synchronous>, transform_indices = @transform_2, window_bounds = array<i64: 1, 32>}, {transform_indices = @transform_3, window_bounds = array<i64: 16, 32>}]} {
    %c0 = arith.constant 0 : index
    %c0_0 = arith.constant 0 : index
    %0 = vector.load %arg1[%c0, %c0_0] : memref<16x24xbf16, #tpu.memory_space<vmem>>, vector<16x24xbf16>
    %1 = arith.extf %0 : vector<16x24xbf16> to vector<16x24xf32>
    %c0_1 = arith.constant 0 : index
    %c0_2 = arith.constant 0 : index
    %2 = vector.load %arg2[%c0_1, %c0_2] : memref<24x32xbf16, #tpu.memory_space<vmem>>, vector<24x32xbf16>
    %3 = arith.extf %2 : vector<24x32xbf16> to vector<24x32xf32>
    %cst = arith.constant dense<0.000000e+00> : vector<16x32xf32>
    %4 = tpu.matmul %1, %3, %cst {dimension_numbers = #tpu.dot_dimension_numbers<[1], [0], [0], [1], [0, 0, 1, 1], [], []>} : vector<16x24xf32>, vector<24x32xf32>, vector<16x32xf32> -> vector<16x32xf32>
    %c0_3 = arith.constant 0 : index
    %c0_4 = arith.constant 0 : index
    %5 = vector.load %arg3[%c0_3, %c0_4] : memref<1x32xf32, #tpu.memory_space<vmem>>, vector<1x32xf32>
    %6 = vector.broadcast %5 : vector<1x32xf32> to vector<16x32xf32>
    %7 = arith.addf %4, %6 : vector<16x32xf32>
    %8 = arith.truncf %7 : vector<16x32xf32> to vector<16x32xbf16>
    %c0_5 = arith.constant 0 : index
    %c0_6 = arith.constant 0 : index
    %9 = vector.load %arg4[%c0_5, %c0_6] : memref<16x32xbf16, #tpu.memory_space<vmem>>, vector<16x32xbf16>
    tpu.vector_store %arg4[%c0_5, %c0_6], %8 {strides = array<i32>} : memref<16x32xbf16, #tpu.memory_space<vmem>>, vector<16x32xbf16>,
    return
  }
  func.func @transform_0(%arg0: i32) -> (i32, i32) {
    %c0_i32 = arith.constant 0 : i32
    %c0_i32_0 = arith.constant 0 : i32
    return %arg0, %c0_i32 : i32, i32
  }
  func.func @transform_1(%arg0: i32) -> (i32, i32) {
    %c0_i32 = arith.constant 0 : i32
    %c0_i32_0 = arith.constant 0 : i32
    %c0_i32_1 = arith.constant 0 : i32
    return %c0_i32, %c0_i32_0 : i32, i32
  }
  func.func @transform_2(%arg0: i32) -> (i32, i32) {
    %c0_i32 = arith.constant 0 : i32
    %c0_i32_0 = arith.constant 0 : i32
    %c0_i32_1 = arith.constant 0 : i32
    return %c0_i32, %c0_i32_0 : i32, i32
  }
  func.func @transform_3(%arg0: i32) -> (i32, i32) {
    %c0_i32 = arith.constant 0 : i32
    %c0_i32_0 = arith.constant 0 : i32
    return %arg0, %c0_i32 : i32, i32
  }
}

module attributes {stable_mosaic.version = 11 : i64} {
  func.func @_highway_kernel(%arg0: i32, %arg1: memref<16x24xbf16, #tpu.memory_space<vmem>>, %arg2: memref<24x48xbf16, #tpu.memory_space<vmem>>, %arg3: memref<1x48xf32, #tpu.memory_space<vmem>>, %arg4: memref<16x24xbf16, #tpu.memory_space<vmem>>) attributes {dimension_semantics = [#tpu.dimension_semantics<parallel>], iteration_bounds = array<i64: 1>, scalar_prefetch = 0 : i64, scratch_operands = 0 : i64, tpu.core_type = #tpu.core_type<tc>, window_params = [{transform_indices = @transform_0, window_bounds = array<i64: 16, 24>}, {pipeline_mode = #tpu.pipeline_mode<synchronous>, transform_indices = @transform_1, window_bounds = array<i64: 24, 48>}, {pipeline_mode = #tpu.pipeline_mode<synchronous>, transform_indices = @transform_2, window_bounds = array<i64: 1, 48>}, {transform_indices = @transform_3, window_bounds = array<i64: 16, 24>}]} {
    %c0 = arith.constant 0 : index
    %c0_0 = arith.constant 0 : index
    %0 = vector.load %arg1[%c0, %c0_0] : memref<16x24xbf16, #tpu.memory_space<vmem>>, vector<16x24xbf16>
    %1 = arith.extf %0 : vector<16x24xbf16> to vector<16x24xf32>
    %c0_1 = arith.constant 0 : index
    %c0_2 = arith.constant 0 : index
    %2 = vector.load %arg2[%c0_1, %c0_2] : memref<24x48xbf16, #tpu.memory_space<vmem>>, vector<24x48xbf16>
    %3 = arith.extf %2 : vector<24x48xbf16> to vector<24x48xf32>
    %cst = arith.constant dense<0.000000e+00> : vector<16x48xf32>
    %4 = tpu.matmul %1, %3, %cst {dimension_numbers = #tpu.dot_dimension_numbers<[1], [0], [0], [1], [0, 0, 1, 1], [], []>} : vector<16x24xf32>, vector<24x48xf32>, vector<16x48xf32> -> vector<16x48xf32>
    %c0_3 = arith.constant 0 : index
    %c0_4 = arith.constant 0 : index
    %5 = vector.load %arg3[%c0_3, %c0_4] : memref<1x48xf32, #tpu.memory_space<vmem>>, vector<1x48xf32>
    %6 = vector.broadcast %5 : vector<1x48xf32> to vector<16x48xf32>
    %7 = arith.addf %4, %6 : vector<16x48xf32>
    %8 = vector.extract_strided_slice %7 {offsets = [0, 0], sizes = [16, 24], strides = [1, 1]} : vector<16x48xf32> to vector<16x24xf32>
    %cst_5 = arith.constant 0.000000e+00 : f32
    %9 = vector.broadcast %cst_5 : f32 to vector<16x24xf32>
    %10 = arith.maximumf %8, %9 : vector<16x24xf32>
    %11 = vector.extract_strided_slice %7 {offsets = [0, 24], sizes = [16, 24], strides = [1, 1]} : vector<16x48xf32> to vector<16x24xf32>
    %12 = arith.negf %11 : vector<16x24xf32>
    %13 = math.exp %12 : vector<16x24xf32>
    %cst_6 = arith.constant 1.000000e+00 : f32
    %14 = vector.broadcast %cst_6 : f32 to vector<16x24xf32>
    %15 = arith.addf %14, %13 : vector<16x24xf32>
    %16 = arith.divf %14, %15 : vector<16x24xf32>
    %17 = arith.mulf %16, %10 : vector<16x24xf32>
    %cst_7 = arith.constant 1.000000e+00 : f32
    %18 = vector.broadcast %cst_7 : f32 to vector<16x24xf32>
    %19 = arith.subf %18, %16 : vector<16x24xf32>
    %20 = arith.mulf %19, %1 : vector<16x24xf32>
    %21 = arith.addf %17, %20 : vector<16x24xf32>
    %22 = arith.truncf %21 : vector<16x24xf32> to vector<16x24xbf16>
    %c0_8 = arith.constant 0 : index
    %c0_9 = arith.constant 0 : index
    %23 = vector.load %arg4[%c0_8, %c0_9] : memref<16x24xbf16, #tpu.memory_space<vmem>>, vector<16x24xbf16>
    tpu.vector_store %arg4[%c0_8, %c0_9], %22 {strides = array<i32>} : memref<16x24xbf16, #tpu.memory_space<vmem>>, vector<16x24xbf16>,
    return
  }
  func.func @transform_0(%arg0: i32) -> (i32, i32) {
    %c0_i32 = arith.constant 0 : i32
    %c0_i32_0 = arith.constant 0 : i32
    return %arg0, %c0_i32 : i32, i32
  }
  func.func @transform_1(%arg0: i32) -> (i32, i32) {
    %c0_i32 = arith.constant 0 : i32
    %c0_i32_0 = arith.constant 0 : i32
    %c0_i32_1 = arith.constant 0 : i32
    return %c0_i32, %c0_i32_0 : i32, i32
  }
  func.func @transform_2(%arg0: i32) -> (i32, i32) {
    %c0_i32 = arith.constant 0 : i32
    %c0_i32_0 = arith.constant 0 : i32
    %c0_i32_1 = arith.constant 0 : i32
    return %c0_i32, %c0_i32_0 : i32, i32
  }
  func.func @transform_3(%arg0: i32) -> (i32, i32) {
    %c0_i32 = arith.constant 0 : i32
    %c0_i32_0 = arith.constant 0 : i32
    return %arg0, %c0_i32 : i32, i32
  }
}

module attributes {stable_mosaic.version = 11 : i64} {
  func.func @_highway_kernel(%arg0: i32, %arg1: memref<16x24xf32, #tpu.memory_space<vmem>>, %arg2: memref<24x48xbf16, #tpu.memory_space<vmem>>, %arg3: memref<1x48xf32, #tpu.memory_space<vmem>>, %arg4: memref<16x24xbf16, #tpu.memory_space<vmem>>) attributes {dimension_semantics = [#tpu.dimension_semantics<parallel>], iteration_bounds = array<i64: 1>, scalar_prefetch = 0 : i64, scratch_operands = 0 : i64, tpu.core_type = #tpu.core_type<tc>, window_params = [{transform_indices = @transform_0, window_bounds = array<i64: 16, 24>}, {pipeline_mode = #tpu.pipeline_mode<synchronous>, transform_indices = @transform_1, window_bounds = array<i64: 24, 48>}, {pipeline_mode = #tpu.pipeline_mode<synchronous>, transform_indices = @transform_2, window_bounds = array<i64: 1, 48>}, {transform_indices = @transform_3, window_bounds = array<i64: 16, 24>}]} {
    %c0 = arith.constant 0 : index
    %c0_0 = arith.constant 0 : index
    %0 = vector.load %arg1[%c0, %c0_0] : memref<16x24xf32, #tpu.memory_space<vmem>>, vector<16x24xf32>
    %c0_1 = arith.constant 0 : index
    %c0_2 = arith.constant 0 : index
    %1 = vector.load %arg2[%c0_1, %c0_2] : memref<24x48xbf16, #tpu.memory_space<vmem>>, vector<24x48xbf16>
    %2 = arith.extf %1 : vector<24x48xbf16> to vector<24x48xf32>
    %cst = arith.constant dense<0.000000e+00> : vector<16x48xf32>
    %3 = tpu.matmul %0, %2, %cst {dimension_numbers = #tpu.dot_dimension_numbers<[1], [0], [0], [1], [0, 0, 1, 1], [], []>} : vector<16x24xf32>, vector<24x48xf32>, vector<16x48xf32> -> vector<16x48xf32>
    %c0_3 = arith.constant 0 : index
    %c0_4 = arith.constant 0 : index
    %4 = vector.load %arg3[%c0_3, %c0_4] : memref<1x48xf32, #tpu.memory_space<vmem>>, vector<1x48xf32>
    %5 = vector.broadcast %4 : vector<1x48xf32> to vector<16x48xf32>
    %6 = arith.addf %3, %5 : vector<16x48xf32>
    %7 = vector.extract_strided_slice %6 {offsets = [0, 0], sizes = [16, 24], strides = [1, 1]} : vector<16x48xf32> to vector<16x24xf32>
    %cst_5 = arith.constant 0.000000e+00 : f32
    %8 = vector.broadcast %cst_5 : f32 to vector<16x24xf32>
    %9 = arith.maximumf %7, %8 : vector<16x24xf32>
    %10 = vector.extract_strided_slice %6 {offsets = [0, 24], sizes = [16, 24], strides = [1, 1]} : vector<16x48xf32> to vector<16x24xf32>
    %11 = arith.negf %10 : vector<16x24xf32>
    %12 = math.exp %11 : vector<16x24xf32>
    %cst_6 = arith.constant 1.000000e+00 : f32
    %13 = vector.broadcast %cst_6 : f32 to vector<16x24xf32>
    %14 = arith.addf %13, %12 : vector<16x24xf32>
    %15 = arith.divf %13, %14 : vector<16x24xf32>
    %16 = arith.mulf %15, %9 : vector<16x24xf32>
    %cst_7 = arith.constant 1.000000e+00 : f32
    %17 = vector.broadcast %cst_7 : f32 to vector<16x24xf32>
    %18 = arith.subf %17, %15 : vector<16x24xf32>
    %19 = arith.mulf %18, %0 : vector<16x24xf32>
    %20 = arith.addf %16, %19 : vector<16x24xf32>
    %21 = arith.truncf %20 : vector<16x24xf32> to vector<16x24xbf16>
    %c0_8 = arith.constant 0 : index
    %c0_9 = arith.constant 0 : index
    %22 = vector.load %arg4[%c0_8, %c0_9] : memref<16x24xbf16, #tpu.memory_space<vmem>>, vector<16x24xbf16>
    tpu.vector_store %arg4[%c0_8, %c0_9], %21 {strides = array<i32>} : memref<16x24xbf16, #tpu.memory_space<vmem>>, vector<16x24xbf16>,
    return
  }
  func.func @transform_0(%arg0: i32) -> (i32, i32) {
    %c0_i32 = arith.constant 0 : i32
    %c0_i32_0 = arith.constant 0 : i32
    return %arg0, %c0_i32 : i32, i32
  }
  func.func @transform_1(%arg0: i32) -> (i32, i32) {
    %c0_i32 = arith.constant 0 : i32
    %c0_i32_0 = arith.constant 0 : i32
    %c0_i32_1 = arith.constant 0 : i32
    return %c0_i32, %c0_i32_0 : i32, i32
  }
  func.func @transform_2(%arg0: i32) -> (i32, i32) {
    %c0_i32 = arith.constant 0 : i32
    %c0_i32_0 = arith.constant 0 : i32
    %c0_i32_1 = arith.constant 0 : i32
    return %c0_i32, %c0_i32_0 : i32, i32
  }
  func.func @transform_3(%arg0: i32) -> (i32, i32) {
    %c0_i32 = arith.constant 0 : i32
    %c0_i32_0 = arith.constant 0 : i32
    return %arg0, %c0_i32 : i32, i32
  }
}

module attributes {stable_mosaic.version = 11 : i64} {
  func.func @_dsconv_kernel(%arg0: i32, %arg1: memref<1x14x32xbf16, #tpu.memory_space<vmem>>, %arg2: memref<14x32xf32, #tpu.memory_space<vmem>>, %arg3: memref<1x32xf32, #tpu.memory_space<vmem>>, %arg4: memref<1x32xf32, #tpu.memory_space<vmem>>, %arg5: memref<7x32xf32, #tpu.memory_space<vmem>>, %arg6: memref<32x32xbf16, #tpu.memory_space<vmem>>, %arg7: memref<1x32xf32, #tpu.memory_space<vmem>>, %arg8: memref<1x8x32xbf16, #tpu.memory_space<vmem>>) attributes {dimension_semantics = [#tpu.dimension_semantics<parallel>], iteration_bounds = array<i64: 2>, scalar_prefetch = 0 : i64, scratch_operands = 0 : i64, tpu.core_type = #tpu.core_type<tc>, window_params = [{transform_indices = @transform_0, window_bounds = array<i64: 1, 14, 32>}, {pipeline_mode = #tpu.pipeline_mode<synchronous>, transform_indices = @transform_1, window_bounds = array<i64: 14, 32>}, {pipeline_mode = #tpu.pipeline_mode<synchronous>, transform_indices = @transform_2, window_bounds = array<i64: 1, 32>}, {pipeline_mode = #tpu.pipeline_mode<synchronous>, transform_indices = @transform_3, window_bounds = array<i64: 1, 32>}, {pipeline_mode = #tpu.pipeline_mode<synchronous>, transform_indices = @transform_4, window_bounds = array<i64: 7, 32>}, {pipeline_mode = #tpu.pipeline_mode<synchronous>, transform_indices = @transform_5, window_bounds = array<i64: 32, 32>}, {pipeline_mode = #tpu.pipeline_mode<synchronous>, transform_indices = @transform_6, window_bounds = array<i64: 1, 32>}, {transform_indices = @transform_7, window_bounds = array<i64: 1, 8, 32>}]} {
    %c0 = arith.constant 0 : index
    %c0_0 = arith.constant 0 : index
    %c0_1 = arith.constant 0 : index
    %0 = vector.load %arg1[%c0, %c0_0, %c0_1] : memref<1x14x32xbf16, #tpu.memory_space<vmem>>, vector<1x14x32xbf16>
    %1 = vector.shape_cast %0 : vector<1x14x32xbf16> to vector<14x32xbf16>
    %2 = arith.extf %1 : vector<14x32xbf16> to vector<14x32xf32>
    %c0_2 = arith.constant 0 : index
    %c0_3 = arith.constant 0 : index
    %3 = vector.load %arg2[%c0_2, %c0_3] : memref<14x32xf32, #tpu.memory_space<vmem>>, vector<14x32xf32>
    %4 = arith.addf %2, %3 : vector<14x32xf32>
    %cst = arith.constant dense<0.000000e+00> : vector<14xf32>
    %5 = vector.multi_reduction <add>, %4, %cst [1] : vector<14x32xf32> to vector<14xf32>
    %6 = vector.shape_cast %5 : vector<14xf32> to vector<14x1xf32>
    %cst_4 = arith.constant 3.200000e+01 : f32
    %7 = vector.broadcast %cst_4 : f32 to vector<14x1xf32>
    %8 = arith.divf %6, %7 : vector<14x1xf32>
    %9 = vector.broadcast %8 : vector<14x1xf32> to vector<14x32xf32>
    %10 = arith.subf %4, %9 : vector<14x32xf32>
    %11 = arith.mulf %10, %10 : vector<14x32xf32>
    %cst_5 = arith.constant dense<0.000000e+00> : vector<14xf32>
    %12 = vector.multi_reduction <add>, %11, %cst_5 [1] : vector<14x32xf32> to vector<14xf32>
    %13 = vector.shape_cast %12 : vector<14xf32> to vector<14x1xf32>
    %cst_6 = arith.constant 3.200000e+01 : f32
    %14 = vector.broadcast %cst_6 : f32 to vector<14x1xf32>
    %15 = arith.divf %13, %14 : vector<14x1xf32>
    %cst_7 = arith.constant 9.99999974E-6 : f32
    %16 = vector.broadcast %cst_7 : f32 to vector<14x1xf32>
    %17 = arith.addf %15, %16 : vector<14x1xf32>
    %18 = math.rsqrt %17 : vector<14x1xf32>
    %19 = vector.broadcast %18 : vector<14x1xf32> to vector<14x32xf32>
    %20 = arith.mulf %10, %19 : vector<14x32xf32>
    %c0_8 = arith.constant 0 : index
    %c0_9 = arith.constant 0 : index
    %21 = vector.load %arg3[%c0_8, %c0_9] : memref<1x32xf32, #tpu.memory_space<vmem>>, vector<1x32xf32>
    %22 = vector.broadcast %21 : vector<1x32xf32> to vector<14x32xf32>
    %23 = arith.mulf %20, %22 : vector<14x32xf32>
    %c0_10 = arith.constant 0 : index
    %c0_11 = arith.constant 0 : index
    %24 = vector.load %arg4[%c0_10, %c0_11] : memref<1x32xf32, #tpu.memory_space<vmem>>, vector<1x32xf32>
    %25 = vector.broadcast %24 : vector<1x32xf32> to vector<14x32xf32>
    %26 = arith.addf %23, %25 : vector<14x32xf32>
    %27 = tpu.iota {dimensions = array<i32: 0>} : vector<14x1xi32>
    %c3_i32 = arith.constant 3 : i32
    %28 = vector.broadcast %c3_i32 : i32 to vector<14x1xi32>
    %29 = arith.cmpi sge, %27, %28 : vector<14x1xi32>
    %c11_i32 = arith.constant 11 : i32
    %30 = vector.broadcast %c11_i32 : i32 to vector<14x1xi32>
    %31 = arith.cmpi slt, %27, %30 : vector<14x1xi32>
    %32 = arith.andi %29, %31 : vector<14x1xi1>
    %33 = arith.extui %32 : vector<14x1xi1> to vector<14x1xi32>
    %34 = arith.sitofp %33 : vector<14x1xi32> to vector<14x1xf32>
    %35 = vector.broadcast %34 : vector<14x1xf32> to vector<14x32xf32>
    %36 = arith.mulf %26, %35 : vector<14x32xf32>
    %c0_12 = arith.constant 0 : index
    %c0_13 = arith.constant 0 : index
    %37 = vector.load %arg5[%c0_12, %c0_13] : memref<7x32xf32, #tpu.memory_space<vmem>>, vector<7x32xf32>
    %cst_14 = arith.constant 0.000000e+00 : f32
    %38 = vector.broadcast %cst_14 : f32 to vector<8x32xf32>
    %39 = vector.extract_strided_slice %36 {offsets = [0, 0], sizes = [8, 32], strides = [1, 1]} : vector<14x32xf32> to vector<8x32xf32>
    %40 = vector.extract_strided_slice %37 {offsets = [0, 0], sizes = [1, 32], strides = [1, 1]} : vector<7x32xf32> to vector<1x32xf32>
    %41 = vector.broadcast %40 : vector<1x32xf32> to vector<8x32xf32>
    %42 = arith.mulf %39, %41 : vector<8x32xf32>
    %43 = arith.addf %38, %42 : vector<8x32xf32>
    %44 = vector.extract_strided_slice %36 {offsets = [1, 0], sizes = [8, 32], strides = [1, 1]} : vector<14x32xf32> to vector<8x32xf32>
    %45 = vector.extract_strided_slice %37 {offsets = [1, 0], sizes = [1, 32], strides = [1, 1]} : vector<7x32xf32> to vector<1x32xf32>
    %46 = vector.broadcast %45 : vector<1x32xf32> to vector<8x32xf32>
    %47 = arith.mulf %44, %46 : vector<8x32xf32>
    %48 = arith.addf %43, %47 : vector<8x32xf32>
    %49 = vector.extract_strided_slice %36 {offsets = [2, 0], sizes = [8, 32], strides = [1, 1]} : vector<14x32xf32> to vector<8x32xf32>
    %50 = vector.extract_strided_slice %37 {offsets = [2, 0], sizes = [1, 32], strides = [1, 1]} : vector<7x32xf32> to vector<1x32xf32>
    %51 = vector.broadcast %50 : vector<1x32xf32> to vector<8x32xf32>
    %52 = arith.mulf %49, %51 : vector<8x32xf32>
    %53 = arith.addf %48, %52 : vector<8x32xf32>
    %54 = vector.extract_strided_slice %36 {offsets = [3, 0], sizes = [8, 32], strides = [1, 1]} : vector<14x32xf32> to vector<8x32xf32>
    %55 = vector.extract_strided_slice %37 {offsets = [3, 0], sizes = [1, 32], strides = [1, 1]} : vector<7x32xf32> to vector<1x32xf32>
    %56 = vector.broadcast %55 : vector<1x32xf32> to vector<8x32xf32>
    %57 = arith.mulf %54, %56 : vector<8x32xf32>
    %58 = arith.addf %53, %57 : vector<8x32xf32>
    %59 = vector.extract_strided_slice %36 {offsets = [4, 0], sizes = [8, 32], strides = [1, 1]} : vector<14x32xf32> to vector<8x32xf32>
    %60 = vector.extract_strided_slice %37 {offsets = [4, 0], sizes = [1, 32], strides = [1, 1]} : vector<7x32xf32> to vector<1x32xf32>
    %61 = vector.broadcast %60 : vector<1x32xf32> to vector<8x32xf32>
    %62 = arith.mulf %59, %61 : vector<8x32xf32>
    %63 = arith.addf %58, %62 : vector<8x32xf32>
    %64 = vector.extract_strided_slice %36 {offsets = [5, 0], sizes = [8, 32], strides = [1, 1]} : vector<14x32xf32> to vector<8x32xf32>
    %65 = vector.extract_strided_slice %37 {offsets = [5, 0], sizes = [1, 32], strides = [1, 1]} : vector<7x32xf32> to vector<1x32xf32>
    %66 = vector.broadcast %65 : vector<1x32xf32> to vector<8x32xf32>
    %67 = arith.mulf %64, %66 : vector<8x32xf32>
    %68 = arith.addf %63, %67 : vector<8x32xf32>
    %69 = vector.extract_strided_slice %36 {offsets = [6, 0], sizes = [8, 32], strides = [1, 1]} : vector<14x32xf32> to vector<8x32xf32>
    %70 = vector.extract_strided_slice %37 {offsets = [6, 0], sizes = [1, 32], strides = [1, 1]} : vector<7x32xf32> to vector<1x32xf32>
    %71 = vector.broadcast %70 : vector<1x32xf32> to vector<8x32xf32>
    %72 = arith.mulf %69, %71 : vector<8x32xf32>
    %73 = arith.addf %68, %72 : vector<8x32xf32>
    %c0_15 = arith.constant 0 : index
    %c0_16 = arith.constant 0 : index
    %74 = vector.load %arg6[%c0_15, %c0_16] : memref<32x32xbf16, #tpu.memory_space<vmem>>, vector<32x32xbf16>
    %75 = arith.extf %74 : vector<32x32xbf16> to vector<32x32xf32>
    %cst_17 = arith.constant dense<0.000000e+00> : vector<8x32xf32>
    %76 = tpu.matmul %73, %75, %cst_17 {dimension_numbers = #tpu.dot_dimension_numbers<[1], [0], [0], [1], [0, 0, 1, 1], [], []>} : vector<8x32xf32>, vector<32x32xf32>, vector<8x32xf32> -> vector<8x32xf32>
    %c0_18 = arith.constant 0 : index
    %c0_19 = arith.constant 0 : index
    %77 = vector.load %arg7[%c0_18, %c0_19] : memref<1x32xf32, #tpu.memory_space<vmem>>, vector<1x32xf32>
    %78 = vector.broadcast %77 : vector<1x32xf32> to vector<8x32xf32>
    %79 = arith.addf %76, %78 : vector<8x32xf32>
    %cst_20 = arith.constant 0.000000e+00 : f32
    %80 = vector.broadcast %cst_20 : f32 to vector<8x32xf32>
    %81 = arith.maximumf %79, %80 : vector<8x32xf32>
    %82 = vector.extract_strided_slice %4 {offsets = [3, 0], sizes = [8, 32], strides = [1, 1]} : vector<14x32xf32> to vector<8x32xf32>
    %83 = arith.addf %82, %81 : vector<8x32xf32>
    %84 = arith.truncf %83 : vector<8x32xf32> to vector<8x32xbf16>
    %c0_21 = arith.constant 0 : index
    %c0_22 = arith.constant 0 : index
    %c0_23 = arith.constant 0 : index
    %85 = vector.load %arg8[%c0_21, %c0_22, %c0_23] : memref<1x8x32xbf16, #tpu.memory_space<vmem>>, vector<1x8x32xbf16>
    %86 = vector.shape_cast %85 : vector<1x8x32xbf16> to vector<8x32xbf16>
    %87 = vector.shape_cast %84 : vector<8x32xbf16> to vector<1x8x32xbf16>
    tpu.vector_store %arg8[%c0_21, %c0_22, %c0_23], %87 {strides = array<i32>} : memref<1x8x32xbf16, #tpu.memory_space<vmem>>, vector<1x8x32xbf16>,
    return
  }
  func.func @transform_0(%arg0: i32) -> (i32, i32, i32) {
    %c0_i32 = arith.constant 0 : i32
    %c0_i32_0 = arith.constant 0 : i32
    %c0_i32_1 = arith.constant 0 : i32
    return %arg0, %c0_i32, %c0_i32_0 : i32, i32, i32
  }
  func.func @transform_1(%arg0: i32) -> (i32, i32) {
    %c0_i32 = arith.constant 0 : i32
    %c0_i32_0 = arith.constant 0 : i32
    %c0_i32_1 = arith.constant 0 : i32
    return %c0_i32, %c0_i32_0 : i32, i32
  }
  func.func @transform_2(%arg0: i32) -> (i32, i32) {
    %c0_i32 = arith.constant 0 : i32
    %c0_i32_0 = arith.constant 0 : i32
    %c0_i32_1 = arith.constant 0 : i32
    return %c0_i32, %c0_i32_0 : i32, i32
  }
  func.func @transform_3(%arg0: i32) -> (i32, i32) {
    %c0_i32 = arith.constant 0 : i32
    %c0_i32_0 = arith.constant 0 : i32
    %c0_i32_1 = arith.constant 0 : i32
    return %c0_i32, %c0_i32_0 : i32, i32
  }
  func.func @transform_4(%arg0: i32) -> (i32, i32) {
    %c0_i32 = arith.constant 0 : i32
    %c0_i32_0 = arith.constant 0 : i32
    %c0_i32_1 = arith.constant 0 : i32
    return %c0_i32, %c0_i32_0 : i32, i32
  }
  func.func @transform_5(%arg0: i32) -> (i32, i32) {
    %c0_i32 = arith.constant 0 : i32
    %c0_i32_0 = arith.constant 0 : i32
    %c0_i32_1 = arith.constant 0 : i32
    return %c0_i32, %c0_i32_0 : i32, i32
  }
  func.func @transform_6(%arg0: i32) -> (i32, i32) {
    %c0_i32 = arith.constant 0 : i32
    %c0_i32_0 = arith.constant 0 : i32
    %c0_i32_1 = arith.constant 0 : i32
    return %c0_i32, %c0_i32_0 : i32, i32
  }
  func.func @transform_7(%arg0: i32) -> (i32, i32, i32) {
    %c0_i32 = arith.constant 0 : i32
    %c0_i32_0 = arith.constant 0 : i32
    %c0_i32_1 = arith.constant 0 : i32
    return %arg0, %c0_i32, %c0_i32_0 : i32, i32, i32
  }
}

module attributes {stable_mosaic.version = 11 : i64} {
  func.func @_dsconv_kernel(%arg0: i32, %arg1: memref<1x14x32xbf16, #tpu.memory_space<vmem>>, %arg2: memref<1x32xf32, #tpu.memory_space<vmem>>, %arg3: memref<1x32xf32, #tpu.memory_space<vmem>>, %arg4: memref<7x32xf32, #tpu.memory_space<vmem>>, %arg5: memref<32x32xbf16, #tpu.memory_space<vmem>>, %arg6: memref<1x32xf32, #tpu.memory_space<vmem>>, %arg7: memref<1x8x32xbf16, #tpu.memory_space<vmem>>) attributes {dimension_semantics = [#tpu.dimension_semantics<parallel>], iteration_bounds = array<i64: 2>, scalar_prefetch = 0 : i64, scratch_operands = 0 : i64, tpu.core_type = #tpu.core_type<tc>, window_params = [{transform_indices = @transform_0, window_bounds = array<i64: 1, 14, 32>}, {pipeline_mode = #tpu.pipeline_mode<synchronous>, transform_indices = @transform_1, window_bounds = array<i64: 1, 32>}, {pipeline_mode = #tpu.pipeline_mode<synchronous>, transform_indices = @transform_2, window_bounds = array<i64: 1, 32>}, {pipeline_mode = #tpu.pipeline_mode<synchronous>, transform_indices = @transform_3, window_bounds = array<i64: 7, 32>}, {pipeline_mode = #tpu.pipeline_mode<synchronous>, transform_indices = @transform_4, window_bounds = array<i64: 32, 32>}, {pipeline_mode = #tpu.pipeline_mode<synchronous>, transform_indices = @transform_5, window_bounds = array<i64: 1, 32>}, {transform_indices = @transform_6, window_bounds = array<i64: 1, 8, 32>}]} {
    %c0 = arith.constant 0 : index
    %c0_0 = arith.constant 0 : index
    %c0_1 = arith.constant 0 : index
    %0 = vector.load %arg1[%c0, %c0_0, %c0_1] : memref<1x14x32xbf16, #tpu.memory_space<vmem>>, vector<1x14x32xbf16>
    %1 = vector.shape_cast %0 : vector<1x14x32xbf16> to vector<14x32xbf16>
    %2 = arith.extf %1 : vector<14x32xbf16> to vector<14x32xf32>
    %cst = arith.constant dense<0.000000e+00> : vector<14xf32>
    %3 = vector.multi_reduction <add>, %2, %cst [1] : vector<14x32xf32> to vector<14xf32>
    %4 = vector.shape_cast %3 : vector<14xf32> to vector<14x1xf32>
    %cst_2 = arith.constant 3.200000e+01 : f32
    %5 = vector.broadcast %cst_2 : f32 to vector<14x1xf32>
    %6 = arith.divf %4, %5 : vector<14x1xf32>
    %7 = vector.broadcast %6 : vector<14x1xf32> to vector<14x32xf32>
    %8 = arith.subf %2, %7 : vector<14x32xf32>
    %9 = arith.mulf %8, %8 : vector<14x32xf32>
    %cst_3 = arith.constant dense<0.000000e+00> : vector<14xf32>
    %10 = vector.multi_reduction <add>, %9, %cst_3 [1] : vector<14x32xf32> to vector<14xf32>
    %11 = vector.shape_cast %10 : vector<14xf32> to vector<14x1xf32>
    %cst_4 = arith.constant 3.200000e+01 : f32
    %12 = vector.broadcast %cst_4 : f32 to vector<14x1xf32>
    %13 = arith.divf %11, %12 : vector<14x1xf32>
    %cst_5 = arith.constant 9.99999974E-6 : f32
    %14 = vector.broadcast %cst_5 : f32 to vector<14x1xf32>
    %15 = arith.addf %13, %14 : vector<14x1xf32>
    %16 = math.rsqrt %15 : vector<14x1xf32>
    %17 = vector.broadcast %16 : vector<14x1xf32> to vector<14x32xf32>
    %18 = arith.mulf %8, %17 : vector<14x32xf32>
    %c0_6 = arith.constant 0 : index
    %c0_7 = arith.constant 0 : index
    %19 = vector.load %arg2[%c0_6, %c0_7] : memref<1x32xf32, #tpu.memory_space<vmem>>, vector<1x32xf32>
    %20 = vector.broadcast %19 : vector<1x32xf32> to vector<14x32xf32>
    %21 = arith.mulf %18, %20 : vector<14x32xf32>
    %c0_8 = arith.constant 0 : index
    %c0_9 = arith.constant 0 : index
    %22 = vector.load %arg3[%c0_8, %c0_9] : memref<1x32xf32, #tpu.memory_space<vmem>>, vector<1x32xf32>
    %23 = vector.broadcast %22 : vector<1x32xf32> to vector<14x32xf32>
    %24 = arith.addf %21, %23 : vector<14x32xf32>
    %25 = tpu.iota {dimensions = array<i32: 0>} : vector<14x1xi32>
    %c3_i32 = arith.constant 3 : i32
    %26 = vector.broadcast %c3_i32 : i32 to vector<14x1xi32>
    %27 = arith.cmpi sge, %25, %26 : vector<14x1xi32>
    %c11_i32 = arith.constant 11 : i32
    %28 = vector.broadcast %c11_i32 : i32 to vector<14x1xi32>
    %29 = arith.cmpi slt, %25, %28 : vector<14x1xi32>
    %30 = arith.andi %27, %29 : vector<14x1xi1>
    %31 = arith.extui %30 : vector<14x1xi1> to vector<14x1xi32>
    %32 = arith.sitofp %31 : vector<14x1xi32> to vector<14x1xf32>
    %33 = vector.broadcast %32 : vector<14x1xf32> to vector<14x32xf32>
    %34 = arith.mulf %24, %33 : vector<14x32xf32>
    %c0_10 = arith.constant 0 : index
    %c0_11 = arith.constant 0 : index
    %35 = vector.load %arg4[%c0_10, %c0_11] : memref<7x32xf32, #tpu.memory_space<vmem>>, vector<7x32xf32>
    %cst_12 = arith.constant 0.000000e+00 : f32
    %36 = vector.broadcast %cst_12 : f32 to vector<8x32xf32>
    %37 = vector.extract_strided_slice %34 {offsets = [0, 0], sizes = [8, 32], strides = [1, 1]} : vector<14x32xf32> to vector<8x32xf32>
    %38 = vector.extract_strided_slice %35 {offsets = [0, 0], sizes = [1, 32], strides = [1, 1]} : vector<7x32xf32> to vector<1x32xf32>
    %39 = vector.broadcast %38 : vector<1x32xf32> to vector<8x32xf32>
    %40 = arith.mulf %37, %39 : vector<8x32xf32>
    %41 = arith.addf %36, %40 : vector<8x32xf32>
    %42 = vector.extract_strided_slice %34 {offsets = [1, 0], sizes = [8, 32], strides = [1, 1]} : vector<14x32xf32> to vector<8x32xf32>
    %43 = vector.extract_strided_slice %35 {offsets = [1, 0], sizes = [1, 32], strides = [1, 1]} : vector<7x32xf32> to vector<1x32xf32>
    %44 = vector.broadcast %43 : vector<1x32xf32> to vector<8x32xf32>
    %45 = arith.mulf %42, %44 : vector<8x32xf32>
    %46 = arith.addf %41, %45 : vector<8x32xf32>
    %47 = vector.extract_strided_slice %34 {offsets = [2, 0], sizes = [8, 32], strides = [1, 1]} : vector<14x32xf32> to vector<8x32xf32>
    %48 = vector.extract_strided_slice %35 {offsets = [2, 0], sizes = [1, 32], strides = [1, 1]} : vector<7x32xf32> to vector<1x32xf32>
    %49 = vector.broadcast %48 : vector<1x32xf32> to vector<8x32xf32>
    %50 = arith.mulf %47, %49 : vector<8x32xf32>
    %51 = arith.addf %46, %50 : vector<8x32xf32>
    %52 = vector.extract_strided_slice %34 {offsets = [3, 0], sizes = [8, 32], strides = [1, 1]} : vector<14x32xf32> to vector<8x32xf32>
    %53 = vector.extract_strided_slice %35 {offsets = [3, 0], sizes = [1, 32], strides = [1, 1]} : vector<7x32xf32> to vector<1x32xf32>
    %54 = vector.broadcast %53 : vector<1x32xf32> to vector<8x32xf32>
    %55 = arith.mulf %52, %54 : vector<8x32xf32>
    %56 = arith.addf %51, %55 : vector<8x32xf32>
    %57 = vector.extract_strided_slice %34 {offsets = [4, 0], sizes = [8, 32], strides = [1, 1]} : vector<14x32xf32> to vector<8x32xf32>
    %58 = vector.extract_strided_slice %35 {offsets = [4, 0], sizes = [1, 32], strides = [1, 1]} : vector<7x32xf32> to vector<1x32xf32>
    %59 = vector.broadcast %58 : vector<1x32xf32> to vector<8x32xf32>
    %60 = arith.mulf %57, %59 : vector<8x32xf32>
    %61 = arith.addf %56, %60 : vector<8x32xf32>
    %62 = vector.extract_strided_slice %34 {offsets = [5, 0], sizes = [8, 32], strides = [1, 1]} : vector<14x32xf32> to vector<8x32xf32>
    %63 = vector.extract_strided_slice %35 {offsets = [5, 0], sizes = [1, 32], strides = [1, 1]} : vector<7x32xf32> to vector<1x32xf32>
    %64 = vector.broadcast %63 : vector<1x32xf32> to vector<8x32xf32>
    %65 = arith.mulf %62, %64 : vector<8x32xf32>
    %66 = arith.addf %61, %65 : vector<8x32xf32>
    %67 = vector.extract_strided_slice %34 {offsets = [6, 0], sizes = [8, 32], strides = [1, 1]} : vector<14x32xf32> to vector<8x32xf32>
    %68 = vector.extract_strided_slice %35 {offsets = [6, 0], sizes = [1, 32], strides = [1, 1]} : vector<7x32xf32> to vector<1x32xf32>
    %69 = vector.broadcast %68 : vector<1x32xf32> to vector<8x32xf32>
    %70 = arith.mulf %67, %69 : vector<8x32xf32>
    %71 = arith.addf %66, %70 : vector<8x32xf32>
    %c0_13 = arith.constant 0 : index
    %c0_14 = arith.constant 0 : index
    %72 = vector.load %arg5[%c0_13, %c0_14] : memref<32x32xbf16, #tpu.memory_space<vmem>>, vector<32x32xbf16>
    %73 = arith.extf %72 : vector<32x32xbf16> to vector<32x32xf32>
    %cst_15 = arith.constant dense<0.000000e+00> : vector<8x32xf32>
    %74 = tpu.matmul %71, %73, %cst_15 {dimension_numbers = #tpu.dot_dimension_numbers<[1], [0], [0], [1], [0, 0, 1, 1], [], []>} : vector<8x32xf32>, vector<32x32xf32>, vector<8x32xf32> -> vector<8x32xf32>
    %c0_16 = arith.constant 0 : index
    %c0_17 = arith.constant 0 : index
    %75 = vector.load %arg6[%c0_16, %c0_17] : memref<1x32xf32, #tpu.memory_space<vmem>>, vector<1x32xf32>
    %76 = vector.broadcast %75 : vector<1x32xf32> to vector<8x32xf32>
    %77 = arith.addf %74, %76 : vector<8x32xf32>
    %cst_18 = arith.constant 0.000000e+00 : f32
    %78 = vector.broadcast %cst_18 : f32 to vector<8x32xf32>
    %79 = arith.maximumf %77, %78 : vector<8x32xf32>
    %80 = vector.extract_strided_slice %2 {offsets = [3, 0], sizes = [8, 32], strides = [1, 1]} : vector<14x32xf32> to vector<8x32xf32>
    %81 = arith.addf %80, %79 : vector<8x32xf32>
    %82 = arith.truncf %81 : vector<8x32xf32> to vector<8x32xbf16>
    %c0_19 = arith.constant 0 : index
    %c0_20 = arith.constant 0 : index
    %c0_21 = arith.constant 0 : index
    %83 = vector.load %arg7[%c0_19, %c0_20, %c0_21] : memref<1x8x32xbf16, #tpu.memory_space<vmem>>, vector<1x8x32xbf16>
    %84 = vector.shape_cast %83 : vector<1x8x32xbf16> to vector<8x32xbf16>
    %85 = vector.shape_cast %82 : vector<8x32xbf16> to vector<1x8x32xbf16>
    tpu.vector_store %arg7[%c0_19, %c0_20, %c0_21], %85 {strides = array<i32>} : memref<1x8x32xbf16, #tpu.memory_space<vmem>>, vector<1x8x32xbf16>,
    return
  }
  func.func @transform_0(%arg0: i32) -> (i32, i32, i32) {
    %c0_i32 = arith.constant 0 : i32
    %c0_i32_0 = arith.constant 0 : i32
    %c0_i32_1 = arith.constant 0 : i32
    return %arg0, %c0_i32, %c0_i32_0 : i32, i32, i32
  }
  func.func @transform_1(%arg0: i32) -> (i32, i32) {
    %c0_i32 = arith.constant 0 : i32
    %c0_i32_0 = arith.constant 0 : i32
    %c0_i32_1 = arith.constant 0 : i32
    return %c0_i32, %c0_i32_0 : i32, i32
  }
  func.func @transform_2(%arg0: i32) -> (i32, i32) {
    %c0_i32 = arith.constant 0 : i32
    %c0_i32_0 = arith.constant 0 : i32
    %c0_i32_1 = arith.constant 0 : i32
    return %c0_i32, %c0_i32_0 : i32, i32
  }
  func.func @transform_3(%arg0: i32) -> (i32, i32) {
    %c0_i32 = arith.constant 0 : i32
    %c0_i32_0 = arith.constant 0 : i32
    %c0_i32_1 = arith.constant 0 : i32
    return %c0_i32, %c0_i32_0 : i32, i32
  }
  func.func @transform_4(%arg0: i32) -> (i32, i32) {
    %c0_i32 = arith.constant 0 : i32
    %c0_i32_0 = arith.constant 0 : i32
    %c0_i32_1 = arith.constant 0 : i32
    return %c0_i32, %c0_i32_0 : i32, i32
  }
  func.func @transform_5(%arg0: i32) -> (i32, i32) {
    %c0_i32 = arith.constant 0 : i32
    %c0_i32_0 = arith.constant 0 : i32
    %c0_i32_1 = arith.constant 0 : i32
    return %c0_i32, %c0_i32_0 : i32, i32
  }
  func.func @transform_6(%arg0: i32) -> (i32, i32, i32) {
    %c0_i32 = arith.constant 0 : i32
    %c0_i32_0 = arith.constant 0 : i32
    %c0_i32_1 = arith.constant 0 : i32
    return %arg0, %c0_i32, %c0_i32_0 : i32, i32, i32
  }
}

module attributes {stable_mosaic.version = 11 : i64} {
  func.func @_dense_kernel(%arg0: i32, %arg1: memref<16x32xbf16, #tpu.memory_space<vmem>>, %arg2: memref<1x32xf32, #tpu.memory_space<vmem>>, %arg3: memref<1x32xf32, #tpu.memory_space<vmem>>, %arg4: memref<32x96xbf16, #tpu.memory_space<vmem>>, %arg5: memref<1x96xf32, #tpu.memory_space<vmem>>, %arg6: memref<16x96xbf16, #tpu.memory_space<vmem>>) attributes {dimension_semantics = [#tpu.dimension_semantics<parallel>], iteration_bounds = array<i64: 1>, scalar_prefetch = 0 : i64, scratch_operands = 0 : i64, tpu.core_type = #tpu.core_type<tc>, window_params = [{transform_indices = @transform_0, window_bounds = array<i64: 16, 32>}, {pipeline_mode = #tpu.pipeline_mode<synchronous>, transform_indices = @transform_1, window_bounds = array<i64: 1, 32>}, {pipeline_mode = #tpu.pipeline_mode<synchronous>, transform_indices = @transform_2, window_bounds = array<i64: 1, 32>}, {pipeline_mode = #tpu.pipeline_mode<synchronous>, transform_indices = @transform_3, window_bounds = array<i64: 32, 96>}, {pipeline_mode = #tpu.pipeline_mode<synchronous>, transform_indices = @transform_4, window_bounds = array<i64: 1, 96>}, {transform_indices = @transform_5, window_bounds = array<i64: 16, 96>}]} {
    %c0 = arith.constant 0 : index
    %c0_0 = arith.constant 0 : index
    %0 = vector.load %arg1[%c0, %c0_0] : memref<16x32xbf16, #tpu.memory_space<vmem>>, vector<16x32xbf16>
    %1 = arith.extf %0 : vector<16x32xbf16> to vector<16x32xf32>
    %cst = arith.constant dense<0.000000e+00> : vector<16xf32>
    %2 = vector.multi_reduction <add>, %1, %cst [1] : vector<16x32xf32> to vector<16xf32>
    %3 = vector.shape_cast %2 : vector<16xf32> to vector<16x1xf32>
    %cst_1 = arith.constant 3.200000e+01 : f32
    %4 = vector.broadcast %cst_1 : f32 to vector<16x1xf32>
    %5 = arith.divf %3, %4 : vector<16x1xf32>
    %6 = vector.broadcast %5 : vector<16x1xf32> to vector<16x32xf32>
    %7 = arith.subf %1, %6 : vector<16x32xf32>
    %8 = arith.mulf %7, %7 : vector<16x32xf32>
    %cst_2 = arith.constant dense<0.000000e+00> : vector<16xf32>
    %9 = vector.multi_reduction <add>, %8, %cst_2 [1] : vector<16x32xf32> to vector<16xf32>
    %10 = vector.shape_cast %9 : vector<16xf32> to vector<16x1xf32>
    %cst_3 = arith.constant 3.200000e+01 : f32
    %11 = vector.broadcast %cst_3 : f32 to vector<16x1xf32>
    %12 = arith.divf %10, %11 : vector<16x1xf32>
    %cst_4 = arith.constant 9.99999974E-6 : f32
    %13 = vector.broadcast %cst_4 : f32 to vector<16x1xf32>
    %14 = arith.addf %12, %13 : vector<16x1xf32>
    %15 = math.rsqrt %14 : vector<16x1xf32>
    %16 = vector.broadcast %15 : vector<16x1xf32> to vector<16x32xf32>
    %17 = arith.mulf %7, %16 : vector<16x32xf32>
    %c0_5 = arith.constant 0 : index
    %c0_6 = arith.constant 0 : index
    %18 = vector.load %arg2[%c0_5, %c0_6] : memref<1x32xf32, #tpu.memory_space<vmem>>, vector<1x32xf32>
    %19 = vector.broadcast %18 : vector<1x32xf32> to vector<16x32xf32>
    %20 = arith.mulf %17, %19 : vector<16x32xf32>
    %c0_7 = arith.constant 0 : index
    %c0_8 = arith.constant 0 : index
    %21 = vector.load %arg3[%c0_7, %c0_8] : memref<1x32xf32, #tpu.memory_space<vmem>>, vector<1x32xf32>
    %22 = vector.broadcast %21 : vector<1x32xf32> to vector<16x32xf32>
    %23 = arith.addf %20, %22 : vector<16x32xf32>
    %c0_9 = arith.constant 0 : index
    %c0_10 = arith.constant 0 : index
    %24 = vector.load %arg4[%c0_9, %c0_10] : memref<32x96xbf16, #tpu.memory_space<vmem>>, vector<32x96xbf16>
    %25 = arith.extf %24 : vector<32x96xbf16> to vector<32x96xf32>
    %cst_11 = arith.constant dense<0.000000e+00> : vector<16x96xf32>
    %26 = tpu.matmul %23, %25, %cst_11 {dimension_numbers = #tpu.dot_dimension_numbers<[1], [0], [0], [1], [0, 0, 1, 1], [], []>} : vector<16x32xf32>, vector<32x96xf32>, vector<16x96xf32> -> vector<16x96xf32>
    %c0_12 = arith.constant 0 : index
    %c0_13 = arith.constant 0 : index
    %27 = vector.load %arg5[%c0_12, %c0_13] : memref<1x96xf32, #tpu.memory_space<vmem>>, vector<1x96xf32>
    %28 = vector.broadcast %27 : vector<1x96xf32> to vector<16x96xf32>
    %29 = arith.addf %26, %28 : vector<16x96xf32>
    %30 = arith.truncf %29 : vector<16x96xf32> to vector<16x96xbf16>
    %c0_14 = arith.constant 0 : index
    %c0_15 = arith.constant 0 : index
    %31 = vector.load %arg6[%c0_14, %c0_15] : memref<16x96xbf16, #tpu.memory_space<vmem>>, vector<16x96xbf16>
    tpu.vector_store %arg6[%c0_14, %c0_15], %30 {strides = array<i32>} : memref<16x96xbf16, #tpu.memory_space<vmem>>, vector<16x96xbf16>,
    return
  }
  func.func @transform_0(%arg0: i32) -> (i32, i32) {
    %c0_i32 = arith.constant 0 : i32
    %c0_i32_0 = arith.constant 0 : i32
    return %arg0, %c0_i32 : i32, i32
  }
  func.func @transform_1(%arg0: i32) -> (i32, i32) {
    %c0_i32 = arith.constant 0 : i32
    %c0_i32_0 = arith.constant 0 : i32
    %c0_i32_1 = arith.constant 0 : i32
    return %c0_i32, %c0_i32_0 : i32, i32
  }
  func.func @transform_2(%arg0: i32) -> (i32, i32) {
    %c0_i32 = arith.constant 0 : i32
    %c0_i32_0 = arith.constant 0 : i32
    %c0_i32_1 = arith.constant 0 : i32
    return %c0_i32, %c0_i32_0 : i32, i32
  }
  func.func @transform_3(%arg0: i32) -> (i32, i32) {
    %c0_i32 = arith.constant 0 : i32
    %c0_i32_0 = arith.constant 0 : i32
    %c0_i32_1 = arith.constant 0 : i32
    return %c0_i32, %c0_i32_0 : i32, i32
  }
  func.func @transform_4(%arg0: i32) -> (i32, i32) {
    %c0_i32 = arith.constant 0 : i32
    %c0_i32_0 = arith.constant 0 : i32
    %c0_i32_1 = arith.constant 0 : i32
    return %c0_i32, %c0_i32_0 : i32, i32
  }
  func.func @transform_5(%arg0: i32) -> (i32, i32) {
    %c0_i32 = arith.constant 0 : i32
    %c0_i32_0 = arith.constant 0 : i32
    return %arg0, %c0_i32 : i32, i32
  }
}

module attributes {stable_mosaic.version = 11 : i64} {
  func.func @_attn_kernel(%arg0: i32, %arg1: i32, %arg2: memref<1x8x96xbf16, #tpu.memory_space<vmem>>, %arg3: memref<1x8x96xbf16, #tpu.memory_space<vmem>>, %arg4: memref<1x1x8xf32, #tpu.memory_space<vmem>>, %arg5: memref<1x8x32xbf16, #tpu.memory_space<vmem>>) attributes {dimension_semantics = [#tpu.dimension_semantics<parallel>, #tpu.dimension_semantics<parallel>], iteration_bounds = array<i64: 2, 1>, scalar_prefetch = 0 : i64, scratch_operands = 0 : i64, tpu.core_type = #tpu.core_type<tc>, window_params = [{transform_indices = @transform_0, window_bounds = array<i64: 1, 8, 96>}, {transform_indices = @transform_1, window_bounds = array<i64: 1, 8, 96>}, {transform_indices = @transform_2, window_bounds = array<i64: 1, 1, 8>}, {transform_indices = @transform_3, window_bounds = array<i64: 1, 8, 32>}]} {
    %c0 = arith.constant 0 : index
    %c0_0 = arith.constant 0 : index
    %c0_1 = arith.constant 0 : index
    %0 = vector.load %arg2[%c0, %c0_0, %c0_1] : memref<1x8x96xbf16, #tpu.memory_space<vmem>>, vector<1x8x96xbf16>
    %1 = vector.shape_cast %0 : vector<1x8x96xbf16> to vector<8x96xbf16>
    %2 = arith.extf %1 : vector<8x96xbf16> to vector<8x96xf32>
    %c0_2 = arith.constant 0 : index
    %c0_3 = arith.constant 0 : index
    %c0_4 = arith.constant 0 : index
    %3 = vector.load %arg3[%c0_2, %c0_3, %c0_4] : memref<1x8x96xbf16, #tpu.memory_space<vmem>>, vector<1x8x96xbf16>
    %4 = vector.shape_cast %3 : vector<1x8x96xbf16> to vector<8x96xbf16>
    %5 = arith.extf %4 : vector<8x96xbf16> to vector<8x96xf32>
    %6 = vector.extract_strided_slice %2 {offsets = [0, 0], sizes = [8, 32], strides = [1, 1]} : vector<8x96xf32> to vector<8x32xf32>
    %7 = vector.shape_cast %6 : vector<8x32xf32> to vector<8x8x4xf32>
    %8 = vector.extract_strided_slice %5 {offsets = [0, 32], sizes = [8, 32], strides = [1, 1]} : vector<8x96xf32> to vector<8x32xf32>
    %9 = vector.shape_cast %8 : vector<8x32xf32> to vector<8x8x4xf32>
    %10 = vector.extract_strided_slice %5 {offsets = [0, 64], sizes = [8, 32], strides = [1, 1]} : vector<8x96xf32> to vector<8x32xf32>
    %11 = vector.shape_cast %10 : vector<8x32xf32> to vector<8x8x4xf32>
    "tpu.trace_start"() <{level = 10 : i32, message = "qhd,khd->hqk"}> : () -> ()
    %cst = arith.constant dense<0.000000e+00> : vector<8x8x8xf32>
    %12 = tpu.matmul %7, %9, %cst {dimension_numbers = #tpu.dot_dimension_numbers<[2], [2], [0], [0], [0, 1, 0, 0, 1, 0], [1], [1]>} : vector<8x8x4xf32>, vector<8x8x4xf32>, vector<8x8x8xf32> -> vector<8x8x8xf32>
    "tpu.trace_stop"() : () -> ()
    %cst_5 = arith.constant 5.000000e-01 : f32
    %13 = vector.broadcast %cst_5 : f32 to vector<8x8x8xf32>
    %14 = arith.mulf %12, %13 : vector<8x8x8xf32>
    %c0_6 = arith.constant 0 : index
    %c0_7 = arith.constant 0 : index
    %c0_8 = arith.constant 0 : index
    %15 = vector.load %arg4[%c0_6, %c0_7, %c0_8] : memref<1x1x8xf32, #tpu.memory_space<vmem>>, vector<1x1x8xf32>
    %16 = vector.shape_cast %15 : vector<1x1x8xf32> to vector<1x8xf32>
    %17 = vector.shape_cast %16 : vector<1x8xf32> to vector<1x1x8xf32>
    %18 = vector.broadcast %17 : vector<1x1x8xf32> to vector<8x8x8xf32>
    %19 = arith.addf %14, %18 : vector<8x8x8xf32>
    %cst_9 = arith.constant dense<0xFF800000> : vector<8x8xf32>
    %20 = vector.multi_reduction <maximumf>, %19, %cst_9 [2] : vector<8x8x8xf32> to vector<8x8xf32>
    %21 = vector.shape_cast %20 : vector<8x8xf32> to vector<8x8x1xf32>
    %22 = vector.broadcast %21 : vector<8x8x1xf32> to vector<8x8x8xf32>
    %23 = arith.subf %19, %22 : vector<8x8x8xf32>
    %24 = math.exp %23 : vector<8x8x8xf32>
    %cst_10 = arith.constant dense<0.000000e+00> : vector<8x8xf32>
    %25 = vector.multi_reduction <add>, %24, %cst_10 [2] : vector<8x8x8xf32> to vector<8x8xf32>
    %26 = vector.shape_cast %25 : vector<8x8xf32> to vector<8x8x1xf32>
    %27 = vector.broadcast %26 : vector<8x8x1xf32> to vector<8x8x8xf32>
    %28 = arith.divf %24, %27 : vector<8x8x8xf32>
    "tpu.trace_start"() <{level = 10 : i32, message = "hqk,khd->qhd"}> : () -> ()
    %cst_11 = arith.constant dense<0.000000e+00> : vector<8x4x8xf32>
    %29 = tpu.matmul %11, %28, %cst_11 {dimension_numbers = #tpu.dot_dimension_numbers<[0], [2], [2], [1], [0, 1, 0, 2, 1, 1], [1], [0]>} : vector<8x8x4xf32>, vector<8x8x8xf32>, vector<8x4x8xf32> -> vector<8x4x8xf32>
    %30 = tpu.transpose %29, [2, 0, 1] : vector<8x4x8xf32> -> vector<8x8x4xf32>
    "tpu.trace_stop"() : () -> ()
    %31 = vector.shape_cast %30 : vector<8x8x4xf32> to vector<8x32xf32>
    %32 = arith.truncf %31 : vector<8x32xf32> to vector<8x32xbf16>
    %c0_12 = arith.constant 0 : index
    %c0_13 = arith.constant 0 : index
    %c0_14 = arith.constant 0 : index
    %33 = vector.load %arg5[%c0_12, %c0_13, %c0_14] : memref<1x8x32xbf16, #tpu.memory_space<vmem>>, vector<1x8x32xbf16>
    %34 = vector.shape_cast %33 : vector<1x8x32xbf16> to vector<8x32xbf16>
    %35 = vector.shape_cast %32 : vector<8x32xbf16> to vector<1x8x32xbf16>
    tpu.vector_store %arg5[%c0_12, %c0_13, %c0_14], %35 {strides = array<i32>} : memref<1x8x32xbf16, #tpu.memory_space<vmem>>, vector<1x8x32xbf16>,
    return
  }
  func.func @transform_0(%arg0: i32, %arg1: i32) -> (i32, i32, i32) {
    %c0_i32 = arith.constant 0 : i32
    %c0_i32_0 = arith.constant 0 : i32
    return %arg0, %arg1, %c0_i32 : i32, i32, i32
  }
  func.func @transform_1(%arg0: i32, %arg1: i32) -> (i32, i32, i32) {
    %c0_i32 = arith.constant 0 : i32
    %c0_i32_0 = arith.constant 0 : i32
    %c0_i32_1 = arith.constant 0 : i32
    return %arg0, %c0_i32, %c0_i32_0 : i32, i32, i32
  }
  func.func @transform_2(%arg0: i32, %arg1: i32) -> (i32, i32, i32) {
    %c0_i32 = arith.constant 0 : i32
    %c0_i32_0 = arith.constant 0 : i32
    %c0_i32_1 = arith.constant 0 : i32
    return %arg0, %c0_i32, %c0_i32_0 : i32, i32, i32
  }
  func.func @transform_3(%arg0: i32, %arg1: i32) -> (i32, i32, i32) {
    %c0_i32 = arith.constant 0 : i32
    %c0_i32_0 = arith.constant 0 : i32
    return %arg0, %arg1, %c0_i32 : i32, i32, i32
  }
}

module attributes {stable_mosaic.version = 11 : i64} {
  func.func @_dense_kernel(%arg0: i32, %arg1: memref<16x32xbf16, #tpu.memory_space<vmem>>, %arg2: memref<32x32xbf16, #tpu.memory_space<vmem>>, %arg3: memref<1x32xf32, #tpu.memory_space<vmem>>, %arg4: memref<16x32xbf16, #tpu.memory_space<vmem>>, %arg5: memref<16x32xbf16, #tpu.memory_space<vmem>>) attributes {dimension_semantics = [#tpu.dimension_semantics<parallel>], iteration_bounds = array<i64: 1>, scalar_prefetch = 0 : i64, scratch_operands = 0 : i64, tpu.core_type = #tpu.core_type<tc>, window_params = [{transform_indices = @transform_0, window_bounds = array<i64: 16, 32>}, {pipeline_mode = #tpu.pipeline_mode<synchronous>, transform_indices = @transform_1, window_bounds = array<i64: 32, 32>}, {pipeline_mode = #tpu.pipeline_mode<synchronous>, transform_indices = @transform_2, window_bounds = array<i64: 1, 32>}, {transform_indices = @transform_3, window_bounds = array<i64: 16, 32>}, {transform_indices = @transform_4, window_bounds = array<i64: 16, 32>}]} {
    %c0 = arith.constant 0 : index
    %c0_0 = arith.constant 0 : index
    %0 = vector.load %arg1[%c0, %c0_0] : memref<16x32xbf16, #tpu.memory_space<vmem>>, vector<16x32xbf16>
    %1 = arith.extf %0 : vector<16x32xbf16> to vector<16x32xf32>
    %c0_1 = arith.constant 0 : index
    %c0_2 = arith.constant 0 : index
    %2 = vector.load %arg2[%c0_1, %c0_2] : memref<32x32xbf16, #tpu.memory_space<vmem>>, vector<32x32xbf16>
    %3 = arith.extf %2 : vector<32x32xbf16> to vector<32x32xf32>
    %cst = arith.constant dense<0.000000e+00> : vector<16x32xf32>
    %4 = tpu.matmul %1, %3, %cst {dimension_numbers = #tpu.dot_dimension_numbers<[1], [0], [0], [1], [0, 0, 1, 1], [], []>} : vector<16x32xf32>, vector<32x32xf32>, vector<16x32xf32> -> vector<16x32xf32>
    %c0_3 = arith.constant 0 : index
    %c0_4 = arith.constant 0 : index
    %5 = vector.load %arg3[%c0_3, %c0_4] : memref<1x32xf32, #tpu.memory_space<vmem>>, vector<1x32xf32>
    %6 = vector.broadcast %5 : vector<1x32xf32> to vector<16x32xf32>
    %7 = arith.addf %4, %6 : vector<16x32xf32>
    %c0_5 = arith.constant 0 : index
    %c0_6 = arith.constant 0 : index
    %8 = vector.load %arg4[%c0_5, %c0_6] : memref<16x32xbf16, #tpu.memory_space<vmem>>, vector<16x32xbf16>
    %9 = arith.extf %8 : vector<16x32xbf16> to vector<16x32xf32>
    %10 = arith.addf %7, %9 : vector<16x32xf32>
    %11 = arith.truncf %10 : vector<16x32xf32> to vector<16x32xbf16>
    %c0_7 = arith.constant 0 : index
    %c0_8 = arith.constant 0 : index
    %12 = vector.load %arg5[%c0_7, %c0_8] : memref<16x32xbf16, #tpu.memory_space<vmem>>, vector<16x32xbf16>
    tpu.vector_store %arg5[%c0_7, %c0_8], %11 {strides = array<i32>} : memref<16x32xbf16, #tpu.memory_space<vmem>>, vector<16x32xbf16>,
    return
  }
  func.func @transform_0(%arg0: i32) -> (i32, i32) {
    %c0_i32 = arith.constant 0 : i32
    %c0_i32_0 = arith.constant 0 : i32
    return %arg0, %c0_i32 : i32, i32
  }
  func.func @transform_1(%arg0: i32) -> (i32, i32) {
    %c0_i32 = arith.constant 0 : i32
    %c0_i32_0 = arith.constant 0 : i32
    %c0_i32_1 = arith.constant 0 : i32
    return %c0_i32, %c0_i32_0 : i32, i32
  }
  func.func @transform_2(%arg0: i32) -> (i32, i32) {
    %c0_i32 = arith.constant 0 : i32
    %c0_i32_0 = arith.constant 0 : i32
    %c0_i32_1 = arith.constant 0 : i32
    return %c0_i32, %c0_i32_0 : i32, i32
  }
  func.func @transform_3(%arg0: i32) -> (i32, i32) {
    %c0_i32 = arith.constant 0 : i32
    %c0_i32_0 = arith.constant 0 : i32
    return %arg0, %c0_i32 : i32, i32
  }
  func.func @transform_4(%arg0: i32) -> (i32, i32) {
    %c0_i32 = arith.constant 0 : i32
    %c0_i32_0 = arith.constant 0 : i32
    return %arg0, %c0_i32 : i32, i32
  }
}

module attributes {stable_mosaic.version = 11 : i64} {
  func.func @_ffn_kernel(%arg0: i32, %arg1: memref<16x32xbf16, #tpu.memory_space<vmem>>, %arg2: memref<1x32xf32, #tpu.memory_space<vmem>>, %arg3: memref<1x32xf32, #tpu.memory_space<vmem>>, %arg4: memref<32x128xbf16, #tpu.memory_space<vmem>>, %arg5: memref<1x128xf32, #tpu.memory_space<vmem>>, %arg6: memref<128x32xbf16, #tpu.memory_space<vmem>>, %arg7: memref<1x32xf32, #tpu.memory_space<vmem>>, %arg8: memref<16x32xbf16, #tpu.memory_space<vmem>>) attributes {dimension_semantics = [#tpu.dimension_semantics<parallel>], iteration_bounds = array<i64: 1>, scalar_prefetch = 0 : i64, scratch_operands = 0 : i64, tpu.core_type = #tpu.core_type<tc>, window_params = [{transform_indices = @transform_0, window_bounds = array<i64: 16, 32>}, {pipeline_mode = #tpu.pipeline_mode<synchronous>, transform_indices = @transform_1, window_bounds = array<i64: 1, 32>}, {pipeline_mode = #tpu.pipeline_mode<synchronous>, transform_indices = @transform_2, window_bounds = array<i64: 1, 32>}, {pipeline_mode = #tpu.pipeline_mode<synchronous>, transform_indices = @transform_3, window_bounds = array<i64: 32, 128>}, {pipeline_mode = #tpu.pipeline_mode<synchronous>, transform_indices = @transform_4, window_bounds = array<i64: 1, 128>}, {pipeline_mode = #tpu.pipeline_mode<synchronous>, transform_indices = @transform_5, window_bounds = array<i64: 128, 32>}, {pipeline_mode = #tpu.pipeline_mode<synchronous>, transform_indices = @transform_6, window_bounds = array<i64: 1, 32>}, {transform_indices = @transform_7, window_bounds = array<i64: 16, 32>}]} {
    %c0 = arith.constant 0 : index
    %c0_0 = arith.constant 0 : index
    %0 = vector.load %arg1[%c0, %c0_0] : memref<16x32xbf16, #tpu.memory_space<vmem>>, vector<16x32xbf16>
    %1 = arith.extf %0 : vector<16x32xbf16> to vector<16x32xf32>
    %cst = arith.constant dense<0.000000e+00> : vector<16xf32>
    %2 = vector.multi_reduction <add>, %1, %cst [1] : vector<16x32xf32> to vector<16xf32>
    %3 = vector.shape_cast %2 : vector<16xf32> to vector<16x1xf32>
    %cst_1 = arith.constant 3.200000e+01 : f32
    %4 = vector.broadcast %cst_1 : f32 to vector<16x1xf32>
    %5 = arith.divf %3, %4 : vector<16x1xf32>
    %6 = vector.broadcast %5 : vector<16x1xf32> to vector<16x32xf32>
    %7 = arith.subf %1, %6 : vector<16x32xf32>
    %8 = arith.mulf %7, %7 : vector<16x32xf32>
    %cst_2 = arith.constant dense<0.000000e+00> : vector<16xf32>
    %9 = vector.multi_reduction <add>, %8, %cst_2 [1] : vector<16x32xf32> to vector<16xf32>
    %10 = vector.shape_cast %9 : vector<16xf32> to vector<16x1xf32>
    %cst_3 = arith.constant 3.200000e+01 : f32
    %11 = vector.broadcast %cst_3 : f32 to vector<16x1xf32>
    %12 = arith.divf %10, %11 : vector<16x1xf32>
    %cst_4 = arith.constant 9.99999974E-6 : f32
    %13 = vector.broadcast %cst_4 : f32 to vector<16x1xf32>
    %14 = arith.addf %12, %13 : vector<16x1xf32>
    %15 = math.rsqrt %14 : vector<16x1xf32>
    %16 = vector.broadcast %15 : vector<16x1xf32> to vector<16x32xf32>
    %17 = arith.mulf %7, %16 : vector<16x32xf32>
    %c0_5 = arith.constant 0 : index
    %c0_6 = arith.constant 0 : index
    %18 = vector.load %arg2[%c0_5, %c0_6] : memref<1x32xf32, #tpu.memory_space<vmem>>, vector<1x32xf32>
    %19 = vector.broadcast %18 : vector<1x32xf32> to vector<16x32xf32>
    %20 = arith.mulf %17, %19 : vector<16x32xf32>
    %c0_7 = arith.constant 0 : index
    %c0_8 = arith.constant 0 : index
    %21 = vector.load %arg3[%c0_7, %c0_8] : memref<1x32xf32, #tpu.memory_space<vmem>>, vector<1x32xf32>
    %22 = vector.broadcast %21 : vector<1x32xf32> to vector<16x32xf32>
    %23 = arith.addf %20, %22 : vector<16x32xf32>
    %c0_9 = arith.constant 0 : index
    %c0_10 = arith.constant 0 : index
    %24 = vector.load %arg4[%c0_9, %c0_10] : memref<32x128xbf16, #tpu.memory_space<vmem>>, vector<32x128xbf16>
    %25 = arith.extf %24 : vector<32x128xbf16> to vector<32x128xf32>
    %cst_11 = arith.constant dense<0.000000e+00> : vector<16x128xf32>
    %26 = tpu.matmul %23, %25, %cst_11 {dimension_numbers = #tpu.dot_dimension_numbers<[1], [0], [0], [1], [0, 0, 1, 1], [], []>} : vector<16x32xf32>, vector<32x128xf32>, vector<16x128xf32> -> vector<16x128xf32>
    %c0_12 = arith.constant 0 : index
    %c0_13 = arith.constant 0 : index
    %27 = vector.load %arg5[%c0_12, %c0_13] : memref<1x128xf32, #tpu.memory_space<vmem>>, vector<1x128xf32>
    %28 = vector.broadcast %27 : vector<1x128xf32> to vector<16x128xf32>
    %29 = arith.addf %26, %28 : vector<16x128xf32>
    %cst_14 = arith.constant 0.000000e+00 : f32
    %30 = vector.broadcast %cst_14 : f32 to vector<16x128xf32>
    %31 = arith.maximumf %29, %30 : vector<16x128xf32>
    %c0_15 = arith.constant 0 : index
    %c0_16 = arith.constant 0 : index
    %32 = vector.load %arg6[%c0_15, %c0_16] : memref<128x32xbf16, #tpu.memory_space<vmem>>, vector<128x32xbf16>
    %33 = arith.extf %32 : vector<128x32xbf16> to vector<128x32xf32>
    %cst_17 = arith.constant dense<0.000000e+00> : vector<16x32xf32>
    %34 = tpu.matmul %31, %33, %cst_17 {dimension_numbers = #tpu.dot_dimension_numbers<[1], [0], [0], [1], [0, 0, 1, 1], [], []>} : vector<16x128xf32>, vector<128x32xf32>, vector<16x32xf32> -> vector<16x32xf32>
    %c0_18 = arith.constant 0 : index
    %c0_19 = arith.constant 0 : index
    %35 = vector.load %arg7[%c0_18, %c0_19] : memref<1x32xf32, #tpu.memory_space<vmem>>, vector<1x32xf32>
    %36 = vector.broadcast %35 : vector<1x32xf32> to vector<16x32xf32>
    %37 = arith.addf %34, %36 : vector<16x32xf32>
    %38 = arith.addf %1, %37 : vector<16x32xf32>
    %39 = arith.truncf %38 : vector<16x32xf32> to vector<16x32xbf16>
    %c0_20 = arith.constant 0 : index
    %c0_21 = arith.constant 0 : index
    %40 = vector.load %arg8[%c0_20, %c0_21] : memref<16x32xbf16, #tpu.memory_space<vmem>>, vector<16x32xbf16>
    tpu.vector_store %arg8[%c0_20, %c0_21], %39 {strides = array<i32>} : memref<16x32xbf16, #tpu.memory_space<vmem>>, vector<16x32xbf16>,
    return
  }
  func.func @transform_0(%arg0: i32) -> (i32, i32) {
    %c0_i32 = arith.constant 0 : i32
    %c0_i32_0 = arith.constant 0 : i32
    return %arg0, %c0_i32 : i32, i32
  }
  func.func @transform_1(%arg0: i32) -> (i32, i32) {
    %c0_i32 = arith.constant 0 : i32
    %c0_i32_0 = arith.constant 0 : i32
    %c0_i32_1 = arith.constant 0 : i32
    return %c0_i32, %c0_i32_0 : i32, i32
  }
  func.func @transform_2(%arg0: i32) -> (i32, i32) {
    %c0_i32 = arith.constant 0 : i32
    %c0_i32_0 = arith.constant 0 : i32
    %c0_i32_1 = arith.constant 0 : i32
    return %c0_i32, %c0_i32_0 : i32, i32
  }
  func.func @transform_3(%arg0: i32) -> (i32, i32) {
    %c0_i32 = arith.constant 0 : i32
    %c0_i32_0 = arith.constant 0 : i32
    %c0_i32_1 = arith.constant 0 : i32
    return %c0_i32, %c0_i32_0 : i32, i32
  }
  func.func @transform_4(%arg0: i32) -> (i32, i32) {
    %c0_i32 = arith.constant 0 : i32
    %c0_i32_0 = arith.constant 0 : i32
    %c0_i32_1 = arith.constant 0 : i32
    return %c0_i32, %c0_i32_0 : i32, i32
  }
  func.func @transform_5(%arg0: i32) -> (i32, i32) {
    %c0_i32 = arith.constant 0 : i32
    %c0_i32_0 = arith.constant 0 : i32
    %c0_i32_1 = arith.constant 0 : i32
    return %c0_i32, %c0_i32_0 : i32, i32
  }
  func.func @transform_6(%arg0: i32) -> (i32, i32) {
    %c0_i32 = arith.constant 0 : i32
    %c0_i32_0 = arith.constant 0 : i32
    %c0_i32_1 = arith.constant 0 : i32
    return %c0_i32, %c0_i32_0 : i32, i32
  }
  func.func @transform_7(%arg0: i32) -> (i32, i32) {
    %c0_i32 = arith.constant 0 : i32
    %c0_i32_0 = arith.constant 0 : i32
    return %arg0, %c0_i32 : i32, i32
  }
}

module attributes {stable_mosaic.version = 11 : i64} {
  func.func @_coattn_kernel(%arg0: i32, %arg1: memref<1x16x32xbf16, #tpu.memory_space<vmem>>, %arg2: memref<1x8x32xbf16, #tpu.memory_space<vmem>>, %arg3: memref<1x32xf32, #tpu.memory_space<vmem>>, %arg4: memref<1x32xf32, #tpu.memory_space<vmem>>, %arg5: memref<1x32xf32, #tpu.memory_space<vmem>>, %arg6: memref<1x1x16xf32, #tpu.memory_space<vmem>>, %arg7: memref<1x1x8xf32, #tpu.memory_space<vmem>>, %arg8: memref<128x32xbf16, #tpu.memory_space<vmem>>, %arg9: memref<1x32xf32, #tpu.memory_space<vmem>>, %arg10: memref<1x16x32xbf16, #tpu.memory_space<vmem>>) attributes {dimension_semantics = [#tpu.dimension_semantics<parallel>], iteration_bounds = array<i64: 2>, scalar_prefetch = 0 : i64, scratch_operands = 0 : i64, tpu.core_type = #tpu.core_type<tc>, window_params = [{transform_indices = @transform_0, window_bounds = array<i64: 1, 16, 32>}, {transform_indices = @transform_1, window_bounds = array<i64: 1, 8, 32>}, {pipeline_mode = #tpu.pipeline_mode<synchronous>, transform_indices = @transform_2, window_bounds = array<i64: 1, 32>}, {pipeline_mode = #tpu.pipeline_mode<synchronous>, transform_indices = @transform_3, window_bounds = array<i64: 1, 32>}, {pipeline_mode = #tpu.pipeline_mode<synchronous>, transform_indices = @transform_4, window_bounds = array<i64: 1, 32>}, {transform_indices = @transform_5, window_bounds = array<i64: 1, 1, 16>}, {transform_indices = @transform_6, window_bounds = array<i64: 1, 1, 8>}, {pipeline_mode = #tpu.pipeline_mode<synchronous>, transform_indices = @transform_7, window_bounds = array<i64: 128, 32>}, {pipeline_mode = #tpu.pipeline_mode<synchronous>, transform_indices = @transform_8, window_bounds = array<i64: 1, 32>}, {transform_indices = @transform_9, window_bounds = array<i64: 1, 16, 32>}]} {
    %c0 = arith.constant 0 : index
    %c0_0 = arith.constant 0 : index
    %c0_1 = arith.constant 0 : index
    %0 = vector.load %arg1[%c0, %c0_0, %c0_1] : memref<1x16x32xbf16, #tpu.memory_space<vmem>>, vector<1x16x32xbf16>
    %1 = vector.shape_cast %0 : vector<1x16x32xbf16> to vector<16x32xbf16>
    %2 = arith.extf %1 : vector<16x32xbf16> to vector<16x32xf32>
    %c0_2 = arith.constant 0 : index
    %c0_3 = arith.constant 0 : index
    %c0_4 = arith.constant 0 : index
    %3 = vector.load %arg2[%c0_2, %c0_3, %c0_4] : memref<1x8x32xbf16, #tpu.memory_space<vmem>>, vector<1x8x32xbf16>
    %4 = vector.shape_cast %3 : vector<1x8x32xbf16> to vector<8x32xbf16>
    %5 = arith.extf %4 : vector<8x32xbf16> to vector<8x32xf32>
    %c0_5 = arith.constant 0 : index
    %c0_6 = arith.constant 0 : index
    %6 = vector.load %arg3[%c0_5, %c0_6] : memref<1x32xf32, #tpu.memory_space<vmem>>, vector<1x32xf32>
    %c0_7 = arith.constant 0 : index
    %c0_8 = arith.constant 0 : index
    %7 = vector.load %arg4[%c0_7, %c0_8] : memref<1x32xf32, #tpu.memory_space<vmem>>, vector<1x32xf32>
    %c0_9 = arith.constant 0 : index
    %c0_10 = arith.constant 0 : index
    %8 = vector.load %arg5[%c0_9, %c0_10] : memref<1x32xf32, #tpu.memory_space<vmem>>, vector<1x32xf32>
    %c0_11 = arith.constant 0 : index
    %c0_12 = arith.constant 0 : index
    %c0_13 = arith.constant 0 : index
    %9 = vector.load %arg6[%c0_11, %c0_12, %c0_13] : memref<1x1x16xf32, #tpu.memory_space<vmem>>, vector<1x1x16xf32>
    %10 = vector.shape_cast %9 : vector<1x1x16xf32> to vector<1x16xf32>
    %c0_14 = arith.constant 0 : index
    %c0_15 = arith.constant 0 : index
    %c0_16 = arith.constant 0 : index
    %11 = vector.load %arg7[%c0_14, %c0_15, %c0_16] : memref<1x1x8xf32, #tpu.memory_space<vmem>>, vector<1x1x8xf32>
    %12 = vector.shape_cast %11 : vector<1x1x8xf32> to vector<1x8xf32>
    %13 = vector.broadcast %6 : vector<1x32xf32> to vector<16x32xf32>
    %14 = arith.mulf %2, %13 : vector<16x32xf32>
    %cst = arith.constant dense<0.000000e+00> : vector<16xf32>
    %15 = vector.multi_reduction <add>, %14, %cst [1] : vector<16x32xf32> to vector<16xf32>
    %16 = vector.shape_cast %15 : vector<16xf32> to vector<16x1xf32>
    %cst_17 = arith.constant dense<0.000000e+00> : vector<1x8xf32>
    %17 = tpu.matmul %7, %5, %cst_17 {dimension_numbers = #tpu.dot_dimension_numbers<[1], [1], [0], [0], [0, 0, 1, 0], [], []>} : vector<1x32xf32>, vector<8x32xf32>, vector<1x8xf32> -> vector<1x8xf32>
    %18 = vector.broadcast %8 : vector<1x32xf32> to vector<16x32xf32>
    %19 = arith.mulf %2, %18 : vector<16x32xf32>
    %cst_18 = arith.constant dense<0.000000e+00> : vector<16x8xf32>
    %20 = tpu.matmul %19, %5, %cst_18 {dimension_numbers = #tpu.dot_dimension_numbers<[1], [1], [0], [0], [0, 0, 1, 0], [], []>} : vector<16x32xf32>, vector<8x32xf32>, vector<16x8xf32> -> vector<16x8xf32>
    %21 = vector.broadcast %16 : vector<16x1xf32> to vector<16x8xf32>
    %22 = arith.addf %20, %21 : vector<16x8xf32>
    %23 = vector.broadcast %17 : vector<1x8xf32> to vector<16x8xf32>
    %24 = arith.addf %22, %23 : vector<16x8xf32>
    %25 = vector.broadcast %12 : vector<1x8xf32> to vector<16x8xf32>
    %26 = arith.mulf %25, %24 : vector<16x8xf32>
    %cst_19 = arith.constant 1.000000e+00 : f32
    %27 = vector.broadcast %cst_19 : f32 to vector<1x8xf32>
    %28 = arith.subf %27, %12 : vector<1x8xf32>
    %cst_20 = arith.constant -1.000000e+30 : f32
    %29 = vector.broadcast %cst_20 : f32 to vector<1x8xf32>
    %30 = arith.mulf %28, %29 : vector<1x8xf32>
    %31 = vector.broadcast %30 : vector<1x8xf32> to vector<16x8xf32>
    %32 = arith.addf %26, %31 : vector<16x8xf32>
    %cst_21 = arith.constant dense<0xFF800000> : vector<16xf32>
    %33 = vector.multi_reduction <maximumf>, %32, %cst_21 [1] : vector<16x8xf32> to vector<16xf32>
    %34 = vector.shape_cast %33 : vector<16xf32> to vector<16x1xf32>
    %35 = vector.broadcast %34 : vector<16x1xf32> to vector<16x8xf32>
    %36 = arith.subf %32, %35 : vector<16x8xf32>
    %37 = math.exp %36 : vector<16x8xf32>
    %cst_22 = arith.constant dense<0.000000e+00> : vector<16xf32>
    %38 = vector.multi_reduction <add>, %37, %cst_22 [1] : vector<16x8xf32> to vector<16xf32>
    %39 = vector.shape_cast %38 : vector<16xf32> to vector<16x1xf32>
    %40 = vector.broadcast %39 : vector<16x1xf32> to vector<16x8xf32>
    %41 = arith.divf %37, %40 : vector<16x8xf32>
    %42 = tpu.transpose %24, [1, 0] : vector<16x8xf32> -> vector<8x16xf32>
    %43 = vector.broadcast %10 : vector<1x16xf32> to vector<8x16xf32>
    %44 = arith.mulf %43, %42 : vector<8x16xf32>
    %cst_23 = arith.constant 1.000000e+00 : f32
    %45 = vector.broadcast %cst_23 : f32 to vector<1x16xf32>
    %46 = arith.subf %45, %10 : vector<1x16xf32>
    %cst_24 = arith.constant -1.000000e+30 : f32
    %47 = vector.broadcast %cst_24 : f32 to vector<1x16xf32>
    %48 = arith.mulf %46, %47 : vector<1x16xf32>
    %49 = vector.broadcast %48 : vector<1x16xf32> to vector<8x16xf32>
    %50 = arith.addf %44, %49 : vector<8x16xf32>
    %cst_25 = arith.constant dense<0xFF800000> : vector<8xf32>
    %51 = vector.multi_reduction <maximumf>, %50, %cst_25 [1] : vector<8x16xf32> to vector<8xf32>
    %52 = vector.shape_cast %51 : vector<8xf32> to vector<8x1xf32>
    %53 = vector.broadcast %52 : vector<8x1xf32> to vector<8x16xf32>
    %54 = arith.subf %50, %53 : vector<8x16xf32>
    %55 = math.exp %54 : vector<8x16xf32>
    %cst_26 = arith.constant dense<0.000000e+00> : vector<8xf32>
    %56 = vector.multi_reduction <add>, %55, %cst_26 [1] : vector<8x16xf32> to vector<8xf32>
    %57 = vector.shape_cast %56 : vector<8xf32> to vector<8x1xf32>
    %58 = vector.broadcast %57 : vector<8x1xf32> to vector<8x16xf32>
    %59 = arith.divf %55, %58 : vector<8x16xf32>
    %cst_27 = arith.constant dense<0.000000e+00> : vector<16x32xf32>
    %60 = tpu.matmul %41, %5, %cst_27 {dimension_numbers = #tpu.dot_dimension_numbers<[1], [0], [0], [1], [0, 0, 1, 1], [], []>} : vector<16x8xf32>, vector<8x32xf32>, vector<16x32xf32> -> vector<16x32xf32>
    %cst_28 = arith.constant dense<0.000000e+00> : vector<8x32xf32>
    %61 = tpu.matmul %59, %2, %cst_28 {dimension_numbers = #tpu.dot_dimension_numbers<[1], [0], [0], [1], [0, 0, 1, 1], [], []>} : vector<8x16xf32>, vector<16x32xf32>, vector<8x32xf32> -> vector<8x32xf32>
    %cst_29 = arith.constant dense<0.000000e+00> : vector<16x32xf32>
    %62 = tpu.matmul %41, %61, %cst_29 {dimension_numbers = #tpu.dot_dimension_numbers<[1], [0], [0], [1], [0, 0, 1, 1], [], []>} : vector<16x8xf32>, vector<8x32xf32>, vector<16x32xf32> -> vector<16x32xf32>
    %c0_30 = arith.constant 0 : index
    %c0_31 = arith.constant 0 : index
    %63 = vector.load %arg8[%c0_30, %c0_31] : memref<128x32xbf16, #tpu.memory_space<vmem>>, vector<128x32xbf16>
    %64 = arith.extf %63 : vector<128x32xbf16> to vector<128x32xf32>
    %65 = vector.extract_strided_slice %64 {offsets = [0, 0], sizes = [32, 32], strides = [1, 1]} : vector<128x32xf32> to vector<32x32xf32>
    %cst_32 = arith.constant dense<0.000000e+00> : vector<16x32xf32>
    %66 = tpu.matmul %2, %65, %cst_32 {dimension_numbers = #tpu.dot_dimension_numbers<[1], [0], [0], [1], [0, 0, 1, 1], [], []>} : vector<16x32xf32>, vector<32x32xf32>, vector<16x32xf32> -> vector<16x32xf32>
    %67 = vector.extract_strided_slice %64 {offsets = [32, 0], sizes = [32, 32], strides = [1, 1]} : vector<128x32xf32> to vector<32x32xf32>
    %cst_33 = arith.constant dense<0.000000e+00> : vector<16x32xf32>
    %68 = tpu.matmul %60, %67, %cst_33 {dimension_numbers = #tpu.dot_dimension_numbers<[1], [0], [0], [1], [0, 0, 1, 1], [], []>} : vector<16x32xf32>, vector<32x32xf32>, vector<16x32xf32> -> vector<16x32xf32>
    %69 = arith.addf %66, %68 : vector<16x32xf32>
    %70 = arith.mulf %2, %60 : vector<16x32xf32>
    %71 = vector.extract_strided_slice %64 {offsets = [64, 0], sizes = [32, 32], strides = [1, 1]} : vector<128x32xf32> to vector<32x32xf32>
    %cst_34 = arith.constant dense<0.000000e+00> : vector<16x32xf32>
    %72 = tpu.matmul %70, %71, %cst_34 {dimension_numbers = #tpu.dot_dimension_numbers<[1], [0], [0], [1], [0, 0, 1, 1], [], []>} : vector<16x32xf32>, vector<32x32xf32>, vector<16x32xf32> -> vector<16x32xf32>
    %73 = arith.addf %69, %72 : vector<16x32xf32>
    %74 = arith.mulf %2, %62 : vector<16x32xf32>
    %75 = vector.extract_strided_slice %64 {offsets = [96, 0], sizes = [32, 32], strides = [1, 1]} : vector<128x32xf32> to vector<32x32xf32>
    %cst_35 = arith.constant dense<0.000000e+00> : vector<16x32xf32>
    %76 = tpu.matmul %74, %75, %cst_35 {dimension_numbers = #tpu.dot_dimension_numbers<[1], [0], [0], [1], [0, 0, 1, 1], [], []>} : vector<16x32xf32>, vector<32x32xf32>, vector<16x32xf32> -> vector<16x32xf32>
    %77 = arith.addf %73, %76 : vector<16x32xf32>
    %c0_36 = arith.constant 0 : index
    %c0_37 = arith.constant 0 : index
    %78 = vector.load %arg9[%c0_36, %c0_37] : memref<1x32xf32, #tpu.memory_space<vmem>>, vector<1x32xf32>
    %79 = vector.broadcast %78 : vector<1x32xf32> to vector<16x32xf32>
    %80 = arith.addf %77, %79 : vector<16x32xf32>
    %81 = arith.truncf %80 : vector<16x32xf32> to vector<16x32xbf16>
    %c0_38 = arith.constant 0 : index
    %c0_39 = arith.constant 0 : index
    %c0_40 = arith.constant 0 : index
    %82 = vector.load %arg10[%c0_38, %c0_39, %c0_40] : memref<1x16x32xbf16, #tpu.memory_space<vmem>>, vector<1x16x32xbf16>
    %83 = vector.shape_cast %82 : vector<1x16x32xbf16> to vector<16x32xbf16>
    %84 = vector.shape_cast %81 : vector<16x32xbf16> to vector<1x16x32xbf16>
    tpu.vector_store %arg10[%c0_38, %c0_39, %c0_40], %84 {strides = array<i32>} : memref<1x16x32xbf16, #tpu.memory_space<vmem>>, vector<1x16x32xbf16>,
    return
  }
  func.func @transform_0(%arg0: i32) -> (i32, i32, i32) {
    %c0_i32 = arith.constant 0 : i32
    %c0_i32_0 = arith.constant 0 : i32
    %c0_i32_1 = arith.constant 0 : i32
    return %arg0, %c0_i32, %c0_i32_0 : i32, i32, i32
  }
  func.func @transform_1(%arg0: i32) -> (i32, i32, i32) {
    %c0_i32 = arith.constant 0 : i32
    %c0_i32_0 = arith.constant 0 : i32
    %c0_i32_1 = arith.constant 0 : i32
    return %arg0, %c0_i32, %c0_i32_0 : i32, i32, i32
  }
  func.func @transform_2(%arg0: i32) -> (i32, i32) {
    %c0_i32 = arith.constant 0 : i32
    %c0_i32_0 = arith.constant 0 : i32
    %c0_i32_1 = arith.constant 0 : i32
    return %c0_i32, %c0_i32_0 : i32, i32
  }
  func.func @transform_3(%arg0: i32) -> (i32, i32) {
    %c0_i32 = arith.constant 0 : i32
    %c0_i32_0 = arith.constant 0 : i32
    %c0_i32_1 = arith.constant 0 : i32
    return %c0_i32, %c0_i32_0 : i32, i32
  }
  func.func @transform_4(%arg0: i32) -> (i32, i32) {
    %c0_i32 = arith.constant 0 : i32
    %c0_i32_0 = arith.constant 0 : i32
    %c0_i32_1 = arith.constant 0 : i32
    return %c0_i32, %c0_i32_0 : i32, i32
  }
  func.func @transform_5(%arg0: i32) -> (i32, i32, i32) {
    %c0_i32 = arith.constant 0 : i32
    %c0_i32_0 = arith.constant 0 : i32
    %c0_i32_1 = arith.constant 0 : i32
    return %arg0, %c0_i32, %c0_i32_0 : i32, i32, i32
  }
  func.func @transform_6(%arg0: i32) -> (i32, i32, i32) {
    %c0_i32 = arith.constant 0 : i32
    %c0_i32_0 = arith.constant 0 : i32
    %c0_i32_1 = arith.constant 0 : i32
    return %arg0, %c0_i32, %c0_i32_0 : i32, i32, i32
  }
  func.func @transform_7(%arg0: i32) -> (i32, i32) {
    %c0_i32 = arith.constant 0 : i32
    %c0_i32_0 = arith.constant 0 : i32
    %c0_i32_1 = arith.constant 0 : i32
    return %c0_i32, %c0_i32_0 : i32, i32
  }
  func.func @transform_8(%arg0: i32) -> (i32, i32) {
    %c0_i32 = arith.constant 0 : i32
    %c0_i32_0 = arith.constant 0 : i32
    %c0_i32_1 = arith.constant 0 : i32
    return %c0_i32, %c0_i32_0 : i32, i32
  }
  func.func @transform_9(%arg0: i32) -> (i32, i32, i32) {
    %c0_i32 = arith.constant 0 : i32
    %c0_i32_0 = arith.constant 0 : i32
    %c0_i32_1 = arith.constant 0 : i32
    return %arg0, %c0_i32, %c0_i32_0 : i32, i32, i32
  }
}

module attributes {stable_mosaic.version = 11 : i64} {
  func.func @_dsconv_kernel(%arg0: i32, %arg1: memref<1x20x32xbf16, #tpu.memory_space<vmem>>, %arg2: memref<20x32xf32, #tpu.memory_space<vmem>>, %arg3: memref<1x32xf32, #tpu.memory_space<vmem>>, %arg4: memref<1x32xf32, #tpu.memory_space<vmem>>, %arg5: memref<5x32xf32, #tpu.memory_space<vmem>>, %arg6: memref<32x32xbf16, #tpu.memory_space<vmem>>, %arg7: memref<1x32xf32, #tpu.memory_space<vmem>>, %arg8: memref<1x16x32xbf16, #tpu.memory_space<vmem>>) attributes {dimension_semantics = [#tpu.dimension_semantics<parallel>], iteration_bounds = array<i64: 2>, scalar_prefetch = 0 : i64, scratch_operands = 0 : i64, tpu.core_type = #tpu.core_type<tc>, window_params = [{transform_indices = @transform_0, window_bounds = array<i64: 1, 20, 32>}, {pipeline_mode = #tpu.pipeline_mode<synchronous>, transform_indices = @transform_1, window_bounds = array<i64: 20, 32>}, {pipeline_mode = #tpu.pipeline_mode<synchronous>, transform_indices = @transform_2, window_bounds = array<i64: 1, 32>}, {pipeline_mode = #tpu.pipeline_mode<synchronous>, transform_indices = @transform_3, window_bounds = array<i64: 1, 32>}, {pipeline_mode = #tpu.pipeline_mode<synchronous>, transform_indices = @transform_4, window_bounds = array<i64: 5, 32>}, {pipeline_mode = #tpu.pipeline_mode<synchronous>, transform_indices = @transform_5, window_bounds = array<i64: 32, 32>}, {pipeline_mode = #tpu.pipeline_mode<synchronous>, transform_indices = @transform_6, window_bounds = array<i64: 1, 32>}, {transform_indices = @transform_7, window_bounds = array<i64: 1, 16, 32>}]} {
    %c0 = arith.constant 0 : index
    %c0_0 = arith.constant 0 : index
    %c0_1 = arith.constant 0 : index
    %0 = vector.load %arg1[%c0, %c0_0, %c0_1] : memref<1x20x32xbf16, #tpu.memory_space<vmem>>, vector<1x20x32xbf16>
    %1 = vector.shape_cast %0 : vector<1x20x32xbf16> to vector<20x32xbf16>
    %2 = arith.extf %1 : vector<20x32xbf16> to vector<20x32xf32>
    %c0_2 = arith.constant 0 : index
    %c0_3 = arith.constant 0 : index
    %3 = vector.load %arg2[%c0_2, %c0_3] : memref<20x32xf32, #tpu.memory_space<vmem>>, vector<20x32xf32>
    %4 = arith.addf %2, %3 : vector<20x32xf32>
    %cst = arith.constant dense<0.000000e+00> : vector<20xf32>
    %5 = vector.multi_reduction <add>, %4, %cst [1] : vector<20x32xf32> to vector<20xf32>
    %6 = vector.shape_cast %5 : vector<20xf32> to vector<20x1xf32>
    %cst_4 = arith.constant 3.200000e+01 : f32
    %7 = vector.broadcast %cst_4 : f32 to vector<20x1xf32>
    %8 = arith.divf %6, %7 : vector<20x1xf32>
    %9 = vector.broadcast %8 : vector<20x1xf32> to vector<20x32xf32>
    %10 = arith.subf %4, %9 : vector<20x32xf32>
    %11 = arith.mulf %10, %10 : vector<20x32xf32>
    %cst_5 = arith.constant dense<0.000000e+00> : vector<20xf32>
    %12 = vector.multi_reduction <add>, %11, %cst_5 [1] : vector<20x32xf32> to vector<20xf32>
    %13 = vector.shape_cast %12 : vector<20xf32> to vector<20x1xf32>
    %cst_6 = arith.constant 3.200000e+01 : f32
    %14 = vector.broadcast %cst_6 : f32 to vector<20x1xf32>
    %15 = arith.divf %13, %14 : vector<20x1xf32>
    %cst_7 = arith.constant 9.99999974E-6 : f32
    %16 = vector.broadcast %cst_7 : f32 to vector<20x1xf32>
    %17 = arith.addf %15, %16 : vector<20x1xf32>
    %18 = math.rsqrt %17 : vector<20x1xf32>
    %19 = vector.broadcast %18 : vector<20x1xf32> to vector<20x32xf32>
    %20 = arith.mulf %10, %19 : vector<20x32xf32>
    %c0_8 = arith.constant 0 : index
    %c0_9 = arith.constant 0 : index
    %21 = vector.load %arg3[%c0_8, %c0_9] : memref<1x32xf32, #tpu.memory_space<vmem>>, vector<1x32xf32>
    %22 = vector.broadcast %21 : vector<1x32xf32> to vector<20x32xf32>
    %23 = arith.mulf %20, %22 : vector<20x32xf32>
    %c0_10 = arith.constant 0 : index
    %c0_11 = arith.constant 0 : index
    %24 = vector.load %arg4[%c0_10, %c0_11] : memref<1x32xf32, #tpu.memory_space<vmem>>, vector<1x32xf32>
    %25 = vector.broadcast %24 : vector<1x32xf32> to vector<20x32xf32>
    %26 = arith.addf %23, %25 : vector<20x32xf32>
    %27 = tpu.iota {dimensions = array<i32: 0>} : vector<20x1xi32>
    %c2_i32 = arith.constant 2 : i32
    %28 = vector.broadcast %c2_i32 : i32 to vector<20x1xi32>
    %29 = arith.cmpi sge, %27, %28 : vector<20x1xi32>
    %c18_i32 = arith.constant 18 : i32
    %30 = vector.broadcast %c18_i32 : i32 to vector<20x1xi32>
    %31 = arith.cmpi slt, %27, %30 : vector<20x1xi32>
    %32 = arith.andi %29, %31 : vector<20x1xi1>
    %33 = arith.extui %32 : vector<20x1xi1> to vector<20x1xi32>
    %34 = arith.sitofp %33 : vector<20x1xi32> to vector<20x1xf32>
    %35 = vector.broadcast %34 : vector<20x1xf32> to vector<20x32xf32>
    %36 = arith.mulf %26, %35 : vector<20x32xf32>
    %c0_12 = arith.constant 0 : index
    %c0_13 = arith.constant 0 : index
    %37 = vector.load %arg5[%c0_12, %c0_13] : memref<5x32xf32, #tpu.memory_space<vmem>>, vector<5x32xf32>
    %cst_14 = arith.constant 0.000000e+00 : f32
    %38 = vector.broadcast %cst_14 : f32 to vector<16x32xf32>
    %39 = vector.extract_strided_slice %36 {offsets = [0, 0], sizes = [16, 32], strides = [1, 1]} : vector<20x32xf32> to vector<16x32xf32>
    %40 = vector.extract_strided_slice %37 {offsets = [0, 0], sizes = [1, 32], strides = [1, 1]} : vector<5x32xf32> to vector<1x32xf32>
    %41 = vector.broadcast %40 : vector<1x32xf32> to vector<16x32xf32>
    %42 = arith.mulf %39, %41 : vector<16x32xf32>
    %43 = arith.addf %38, %42 : vector<16x32xf32>
    %44 = vector.extract_strided_slice %36 {offsets = [1, 0], sizes = [16, 32], strides = [1, 1]} : vector<20x32xf32> to vector<16x32xf32>
    %45 = vector.extract_strided_slice %37 {offsets = [1, 0], sizes = [1, 32], strides = [1, 1]} : vector<5x32xf32> to vector<1x32xf32>
    %46 = vector.broadcast %45 : vector<1x32xf32> to vector<16x32xf32>
    %47 = arith.mulf %44, %46 : vector<16x32xf32>
    %48 = arith.addf %43, %47 : vector<16x32xf32>
    %49 = vector.extract_strided_slice %36 {offsets = [2, 0], sizes = [16, 32], strides = [1, 1]} : vector<20x32xf32> to vector<16x32xf32>
    %50 = vector.extract_strided_slice %37 {offsets = [2, 0], sizes = [1, 32], strides = [1, 1]} : vector<5x32xf32> to vector<1x32xf32>
    %51 = vector.broadcast %50 : vector<1x32xf32> to vector<16x32xf32>
    %52 = arith.mulf %49, %51 : vector<16x32xf32>
    %53 = arith.addf %48, %52 : vector<16x32xf32>
    %54 = vector.extract_strided_slice %36 {offsets = [3, 0], sizes = [16, 32], strides = [1, 1]} : vector<20x32xf32> to vector<16x32xf32>
    %55 = vector.extract_strided_slice %37 {offsets = [3, 0], sizes = [1, 32], strides = [1, 1]} : vector<5x32xf32> to vector<1x32xf32>
    %56 = vector.broadcast %55 : vector<1x32xf32> to vector<16x32xf32>
    %57 = arith.mulf %54, %56 : vector<16x32xf32>
    %58 = arith.addf %53, %57 : vector<16x32xf32>
    %59 = vector.extract_strided_slice %36 {offsets = [4, 0], sizes = [16, 32], strides = [1, 1]} : vector<20x32xf32> to vector<16x32xf32>
    %60 = vector.extract_strided_slice %37 {offsets = [4, 0], sizes = [1, 32], strides = [1, 1]} : vector<5x32xf32> to vector<1x32xf32>
    %61 = vector.broadcast %60 : vector<1x32xf32> to vector<16x32xf32>
    %62 = arith.mulf %59, %61 : vector<16x32xf32>
    %63 = arith.addf %58, %62 : vector<16x32xf32>
    %c0_15 = arith.constant 0 : index
    %c0_16 = arith.constant 0 : index
    %64 = vector.load %arg6[%c0_15, %c0_16] : memref<32x32xbf16, #tpu.memory_space<vmem>>, vector<32x32xbf16>
    %65 = arith.extf %64 : vector<32x32xbf16> to vector<32x32xf32>
    %cst_17 = arith.constant dense<0.000000e+00> : vector<16x32xf32>
    %66 = tpu.matmul %63, %65, %cst_17 {dimension_numbers = #tpu.dot_dimension_numbers<[1], [0], [0], [1], [0, 0, 1, 1], [], []>} : vector<16x32xf32>, vector<32x32xf32>, vector<16x32xf32> -> vector<16x32xf32>
    %c0_18 = arith.constant 0 : index
    %c0_19 = arith.constant 0 : index
    %67 = vector.load %arg7[%c0_18, %c0_19] : memref<1x32xf32, #tpu.memory_space<vmem>>, vector<1x32xf32>
    %68 = vector.broadcast %67 : vector<1x32xf32> to vector<16x32xf32>
    %69 = arith.addf %66, %68 : vector<16x32xf32>
    %cst_20 = arith.constant 0.000000e+00 : f32
    %70 = vector.broadcast %cst_20 : f32 to vector<16x32xf32>
    %71 = arith.maximumf %69, %70 : vector<16x32xf32>
    %72 = vector.extract_strided_slice %4 {offsets = [2, 0], sizes = [16, 32], strides = [1, 1]} : vector<20x32xf32> to vector<16x32xf32>
    %73 = arith.addf %72, %71 : vector<16x32xf32>
    %74 = arith.truncf %73 : vector<16x32xf32> to vector<16x32xbf16>
    %c0_21 = arith.constant 0 : index
    %c0_22 = arith.constant 0 : index
    %c0_23 = arith.constant 0 : index
    %75 = vector.load %arg8[%c0_21, %c0_22, %c0_23] : memref<1x16x32xbf16, #tpu.memory_space<vmem>>, vector<1x16x32xbf16>
    %76 = vector.shape_cast %75 : vector<1x16x32xbf16> to vector<16x32xbf16>
    %77 = vector.shape_cast %74 : vector<16x32xbf16> to vector<1x16x32xbf16>
    tpu.vector_store %arg8[%c0_21, %c0_22, %c0_23], %77 {strides = array<i32>} : memref<1x16x32xbf16, #tpu.memory_space<vmem>>, vector<1x16x32xbf16>,
    return
  }
  func.func @transform_0(%arg0: i32) -> (i32, i32, i32) {
    %c0_i32 = arith.constant 0 : i32
    %c0_i32_0 = arith.constant 0 : i32
    %c0_i32_1 = arith.constant 0 : i32
    return %arg0, %c0_i32, %c0_i32_0 : i32, i32, i32
  }
  func.func @transform_1(%arg0: i32) -> (i32, i32) {
    %c0_i32 = arith.constant 0 : i32
    %c0_i32_0 = arith.constant 0 : i32
    %c0_i32_1 = arith.constant 0 : i32
    return %c0_i32, %c0_i32_0 : i32, i32
  }
  func.func @transform_2(%arg0: i32) -> (i32, i32) {
    %c0_i32 = arith.constant 0 : i32
    %c0_i32_0 = arith.constant 0 : i32
    %c0_i32_1 = arith.constant 0 : i32
    return %c0_i32, %c0_i32_0 : i32, i32
  }
  func.func @transform_3(%arg0: i32) -> (i32, i32) {
    %c0_i32 = arith.constant 0 : i32
    %c0_i32_0 = arith.constant 0 : i32
    %c0_i32_1 = arith.constant 0 : i32
    return %c0_i32, %c0_i32_0 : i32, i32
  }
  func.func @transform_4(%arg0: i32) -> (i32, i32) {
    %c0_i32 = arith.constant 0 : i32
    %c0_i32_0 = arith.constant 0 : i32
    %c0_i32_1 = arith.constant 0 : i32
    return %c0_i32, %c0_i32_0 : i32, i32
  }
  func.func @transform_5(%arg0: i32) -> (i32, i32) {
    %c0_i32 = arith.constant 0 : i32
    %c0_i32_0 = arith.constant 0 : i32
    %c0_i32_1 = arith.constant 0 : i32
    return %c0_i32, %c0_i32_0 : i32, i32
  }
  func.func @transform_6(%arg0: i32) -> (i32, i32) {
    %c0_i32 = arith.constant 0 : i32
    %c0_i32_0 = arith.constant 0 : i32
    %c0_i32_1 = arith.constant 0 : i32
    return %c0_i32, %c0_i32_0 : i32, i32
  }
  func.func @transform_7(%arg0: i32) -> (i32, i32, i32) {
    %c0_i32 = arith.constant 0 : i32
    %c0_i32_0 = arith.constant 0 : i32
    %c0_i32_1 = arith.constant 0 : i32
    return %arg0, %c0_i32, %c0_i32_0 : i32, i32, i32
  }
}

module attributes {stable_mosaic.version = 11 : i64} {
  func.func @_dsconv_kernel(%arg0: i32, %arg1: memref<1x20x32xbf16, #tpu.memory_space<vmem>>, %arg2: memref<1x32xf32, #tpu.memory_space<vmem>>, %arg3: memref<1x32xf32, #tpu.memory_space<vmem>>, %arg4: memref<5x32xf32, #tpu.memory_space<vmem>>, %arg5: memref<32x32xbf16, #tpu.memory_space<vmem>>, %arg6: memref<1x32xf32, #tpu.memory_space<vmem>>, %arg7: memref<1x16x32xbf16, #tpu.memory_space<vmem>>) attributes {dimension_semantics = [#tpu.dimension_semantics<parallel>], iteration_bounds = array<i64: 2>, scalar_prefetch = 0 : i64, scratch_operands = 0 : i64, tpu.core_type = #tpu.core_type<tc>, window_params = [{transform_indices = @transform_0, window_bounds = array<i64: 1, 20, 32>}, {pipeline_mode = #tpu.pipeline_mode<synchronous>, transform_indices = @transform_1, window_bounds = array<i64: 1, 32>}, {pipeline_mode = #tpu.pipeline_mode<synchronous>, transform_indices = @transform_2, window_bounds = array<i64: 1, 32>}, {pipeline_mode = #tpu.pipeline_mode<synchronous>, transform_indices = @transform_3, window_bounds = array<i64: 5, 32>}, {pipeline_mode = #tpu.pipeline_mode<synchronous>, transform_indices = @transform_4, window_bounds = array<i64: 32, 32>}, {pipeline_mode = #tpu.pipeline_mode<synchronous>, transform_indices = @transform_5, window_bounds = array<i64: 1, 32>}, {transform_indices = @transform_6, window_bounds = array<i64: 1, 16, 32>}]} {
    %c0 = arith.constant 0 : index
    %c0_0 = arith.constant 0 : index
    %c0_1 = arith.constant 0 : index
    %0 = vector.load %arg1[%c0, %c0_0, %c0_1] : memref<1x20x32xbf16, #tpu.memory_space<vmem>>, vector<1x20x32xbf16>
    %1 = vector.shape_cast %0 : vector<1x20x32xbf16> to vector<20x32xbf16>
    %2 = arith.extf %1 : vector<20x32xbf16> to vector<20x32xf32>
    %cst = arith.constant dense<0.000000e+00> : vector<20xf32>
    %3 = vector.multi_reduction <add>, %2, %cst [1] : vector<20x32xf32> to vector<20xf32>
    %4 = vector.shape_cast %3 : vector<20xf32> to vector<20x1xf32>
    %cst_2 = arith.constant 3.200000e+01 : f32
    %5 = vector.broadcast %cst_2 : f32 to vector<20x1xf32>
    %6 = arith.divf %4, %5 : vector<20x1xf32>
    %7 = vector.broadcast %6 : vector<20x1xf32> to vector<20x32xf32>
    %8 = arith.subf %2, %7 : vector<20x32xf32>
    %9 = arith.mulf %8, %8 : vector<20x32xf32>
    %cst_3 = arith.constant dense<0.000000e+00> : vector<20xf32>
    %10 = vector.multi_reduction <add>, %9, %cst_3 [1] : vector<20x32xf32> to vector<20xf32>
    %11 = vector.shape_cast %10 : vector<20xf32> to vector<20x1xf32>
    %cst_4 = arith.constant 3.200000e+01 : f32
    %12 = vector.broadcast %cst_4 : f32 to vector<20x1xf32>
    %13 = arith.divf %11, %12 : vector<20x1xf32>
    %cst_5 = arith.constant 9.99999974E-6 : f32
    %14 = vector.broadcast %cst_5 : f32 to vector<20x1xf32>
    %15 = arith.addf %13, %14 : vector<20x1xf32>
    %16 = math.rsqrt %15 : vector<20x1xf32>
    %17 = vector.broadcast %16 : vector<20x1xf32> to vector<20x32xf32>
    %18 = arith.mulf %8, %17 : vector<20x32xf32>
    %c0_6 = arith.constant 0 : index
    %c0_7 = arith.constant 0 : index
    %19 = vector.load %arg2[%c0_6, %c0_7] : memref<1x32xf32, #tpu.memory_space<vmem>>, vector<1x32xf32>
    %20 = vector.broadcast %19 : vector<1x32xf32> to vector<20x32xf32>
    %21 = arith.mulf %18, %20 : vector<20x32xf32>
    %c0_8 = arith.constant 0 : index
    %c0_9 = arith.constant 0 : index
    %22 = vector.load %arg3[%c0_8, %c0_9] : memref<1x32xf32, #tpu.memory_space<vmem>>, vector<1x32xf32>
    %23 = vector.broadcast %22 : vector<1x32xf32> to vector<20x32xf32>
    %24 = arith.addf %21, %23 : vector<20x32xf32>
    %25 = tpu.iota {dimensions = array<i32: 0>} : vector<20x1xi32>
    %c2_i32 = arith.constant 2 : i32
    %26 = vector.broadcast %c2_i32 : i32 to vector<20x1xi32>
    %27 = arith.cmpi sge, %25, %26 : vector<20x1xi32>
    %c18_i32 = arith.constant 18 : i32
    %28 = vector.broadcast %c18_i32 : i32 to vector<20x1xi32>
    %29 = arith.cmpi slt, %25, %28 : vector<20x1xi32>
    %30 = arith.andi %27, %29 : vector<20x1xi1>
    %31 = arith.extui %30 : vector<20x1xi1> to vector<20x1xi32>
    %32 = arith.sitofp %31 : vector<20x1xi32> to vector<20x1xf32>
    %33 = vector.broadcast %32 : vector<20x1xf32> to vector<20x32xf32>
    %34 = arith.mulf %24, %33 : vector<20x32xf32>
    %c0_10 = arith.constant 0 : index
    %c0_11 = arith.constant 0 : index
    %35 = vector.load %arg4[%c0_10, %c0_11] : memref<5x32xf32, #tpu.memory_space<vmem>>, vector<5x32xf32>
    %cst_12 = arith.constant 0.000000e+00 : f32
    %36 = vector.broadcast %cst_12 : f32 to vector<16x32xf32>
    %37 = vector.extract_strided_slice %34 {offsets = [0, 0], sizes = [16, 32], strides = [1, 1]} : vector<20x32xf32> to vector<16x32xf32>
    %38 = vector.extract_strided_slice %35 {offsets = [0, 0], sizes = [1, 32], strides = [1, 1]} : vector<5x32xf32> to vector<1x32xf32>
    %39 = vector.broadcast %38 : vector<1x32xf32> to vector<16x32xf32>
    %40 = arith.mulf %37, %39 : vector<16x32xf32>
    %41 = arith.addf %36, %40 : vector<16x32xf32>
    %42 = vector.extract_strided_slice %34 {offsets = [1, 0], sizes = [16, 32], strides = [1, 1]} : vector<20x32xf32> to vector<16x32xf32>
    %43 = vector.extract_strided_slice %35 {offsets = [1, 0], sizes = [1, 32], strides = [1, 1]} : vector<5x32xf32> to vector<1x32xf32>
    %44 = vector.broadcast %43 : vector<1x32xf32> to vector<16x32xf32>
    %45 = arith.mulf %42, %44 : vector<16x32xf32>
    %46 = arith.addf %41, %45 : vector<16x32xf32>
    %47 = vector.extract_strided_slice %34 {offsets = [2, 0], sizes = [16, 32], strides = [1, 1]} : vector<20x32xf32> to vector<16x32xf32>
    %48 = vector.extract_strided_slice %35 {offsets = [2, 0], sizes = [1, 32], strides = [1, 1]} : vector<5x32xf32> to vector<1x32xf32>
    %49 = vector.broadcast %48 : vector<1x32xf32> to vector<16x32xf32>
    %50 = arith.mulf %47, %49 : vector<16x32xf32>
    %51 = arith.addf %46, %50 : vector<16x32xf32>
    %52 = vector.extract_strided_slice %34 {offsets = [3, 0], sizes = [16, 32], strides = [1, 1]} : vector<20x32xf32> to vector<16x32xf32>
    %53 = vector.extract_strided_slice %35 {offsets = [3, 0], sizes = [1, 32], strides = [1, 1]} : vector<5x32xf32> to vector<1x32xf32>
    %54 = vector.broadcast %53 : vector<1x32xf32> to vector<16x32xf32>
    %55 = arith.mulf %52, %54 : vector<16x32xf32>
    %56 = arith.addf %51, %55 : vector<16x32xf32>
    %57 = vector.extract_strided_slice %34 {offsets = [4, 0], sizes = [16, 32], strides = [1, 1]} : vector<20x32xf32> to vector<16x32xf32>
    %58 = vector.extract_strided_slice %35 {offsets = [4, 0], sizes = [1, 32], strides = [1, 1]} : vector<5x32xf32> to vector<1x32xf32>
    %59 = vector.broadcast %58 : vector<1x32xf32> to vector<16x32xf32>
    %60 = arith.mulf %57, %59 : vector<16x32xf32>
    %61 = arith.addf %56, %60 : vector<16x32xf32>
    %c0_13 = arith.constant 0 : index
    %c0_14 = arith.constant 0 : index
    %62 = vector.load %arg5[%c0_13, %c0_14] : memref<32x32xbf16, #tpu.memory_space<vmem>>, vector<32x32xbf16>
    %63 = arith.extf %62 : vector<32x32xbf16> to vector<32x32xf32>
    %cst_15 = arith.constant dense<0.000000e+00> : vector<16x32xf32>
    %64 = tpu.matmul %61, %63, %cst_15 {dimension_numbers = #tpu.dot_dimension_numbers<[1], [0], [0], [1], [0, 0, 1, 1], [], []>} : vector<16x32xf32>, vector<32x32xf32>, vector<16x32xf32> -> vector<16x32xf32>
    %c0_16 = arith.constant 0 : index
    %c0_17 = arith.constant 0 : index
    %65 = vector.load %arg6[%c0_16, %c0_17] : memref<1x32xf32, #tpu.memory_space<vmem>>, vector<1x32xf32>
    %66 = vector.broadcast %65 : vector<1x32xf32> to vector<16x32xf32>
    %67 = arith.addf %64, %66 : vector<16x32xf32>
    %cst_18 = arith.constant 0.000000e+00 : f32
    %68 = vector.broadcast %cst_18 : f32 to vector<16x32xf32>
    %69 = arith.maximumf %67, %68 : vector<16x32xf32>
    %70 = vector.extract_strided_slice %2 {offsets = [2, 0], sizes = [16, 32], strides = [1, 1]} : vector<20x32xf32> to vector<16x32xf32>
    %71 = arith.addf %70, %69 : vector<16x32xf32>
    %72 = arith.truncf %71 : vector<16x32xf32> to vector<16x32xbf16>
    %c0_19 = arith.constant 0 : index
    %c0_20 = arith.constant 0 : index
    %c0_21 = arith.constant 0 : index
    %73 = vector.load %arg7[%c0_19, %c0_20, %c0_21] : memref<1x16x32xbf16, #tpu.memory_space<vmem>>, vector<1x16x32xbf16>
    %74 = vector.shape_cast %73 : vector<1x16x32xbf16> to vector<16x32xbf16>
    %75 = vector.shape_cast %72 : vector<16x32xbf16> to vector<1x16x32xbf16>
    tpu.vector_store %arg7[%c0_19, %c0_20, %c0_21], %75 {strides = array<i32>} : memref<1x16x32xbf16, #tpu.memory_space<vmem>>, vector<1x16x32xbf16>,
    return
  }
  func.func @transform_0(%arg0: i32) -> (i32, i32, i32) {
    %c0_i32 = arith.constant 0 : i32
    %c0_i32_0 = arith.constant 0 : i32
    %c0_i32_1 = arith.constant 0 : i32
    return %arg0, %c0_i32, %c0_i32_0 : i32, i32, i32
  }
  func.func @transform_1(%arg0: i32) -> (i32, i32) {
    %c0_i32 = arith.constant 0 : i32
    %c0_i32_0 = arith.constant 0 : i32
    %c0_i32_1 = arith.constant 0 : i32
    return %c0_i32, %c0_i32_0 : i32, i32
  }
  func.func @transform_2(%arg0: i32) -> (i32, i32) {
    %c0_i32 = arith.constant 0 : i32
    %c0_i32_0 = arith.constant 0 : i32
    %c0_i32_1 = arith.constant 0 : i32
    return %c0_i32, %c0_i32_0 : i32, i32
  }
  func.func @transform_3(%arg0: i32) -> (i32, i32) {
    %c0_i32 = arith.constant 0 : i32
    %c0_i32_0 = arith.constant 0 : i32
    %c0_i32_1 = arith.constant 0 : i32
    return %c0_i32, %c0_i32_0 : i32, i32
  }
  func.func @transform_4(%arg0: i32) -> (i32, i32) {
    %c0_i32 = arith.constant 0 : i32
    %c0_i32_0 = arith.constant 0 : i32
    %c0_i32_1 = arith.constant 0 : i32
    return %c0_i32, %c0_i32_0 : i32, i32
  }
  func.func @transform_5(%arg0: i32) -> (i32, i32) {
    %c0_i32 = arith.constant 0 : i32
    %c0_i32_0 = arith.constant 0 : i32
    %c0_i32_1 = arith.constant 0 : i32
    return %c0_i32, %c0_i32_0 : i32, i32
  }
  func.func @transform_6(%arg0: i32) -> (i32, i32, i32) {
    %c0_i32 = arith.constant 0 : i32
    %c0_i32_0 = arith.constant 0 : i32
    %c0_i32_1 = arith.constant 0 : i32
    return %arg0, %c0_i32, %c0_i32_0 : i32, i32, i32
  }
}

module attributes {stable_mosaic.version = 11 : i64} {
  func.func @_pointer_kernel(%arg0: i32, %arg1: memref<1x16x32xbf16, #tpu.memory_space<vmem>>, %arg2: memref<1x16x32xbf16, #tpu.memory_space<vmem>>, %arg3: memref<1x16x32xbf16, #tpu.memory_space<vmem>>, %arg4: memref<2x32xf32, #tpu.memory_space<vmem>>, %arg5: memref<2x32xf32, #tpu.memory_space<vmem>>, %arg6: memref<1x1x16xf32, #tpu.memory_space<vmem>>, %arg7: memref<1x1x16xf32, #tpu.memory_space<vmem>>, %arg8: memref<1x1x16xf32, #tpu.memory_space<vmem>>) attributes {dimension_semantics = [#tpu.dimension_semantics<parallel>], iteration_bounds = array<i64: 2>, scalar_prefetch = 0 : i64, scratch_operands = 0 : i64, tpu.core_type = #tpu.core_type<tc>, window_params = [{transform_indices = @transform_0, window_bounds = array<i64: 1, 16, 32>}, {transform_indices = @transform_1, window_bounds = array<i64: 1, 16, 32>}, {transform_indices = @transform_2, window_bounds = array<i64: 1, 16, 32>}, {pipeline_mode = #tpu.pipeline_mode<synchronous>, transform_indices = @transform_3, window_bounds = array<i64: 2, 32>}, {pipeline_mode = #tpu.pipeline_mode<synchronous>, transform_indices = @transform_4, window_bounds = array<i64: 2, 32>}, {transform_indices = @transform_5, window_bounds = array<i64: 1, 1, 16>}, {transform_indices = @transform_6, window_bounds = array<i64: 1, 1, 16>}, {transform_indices = @transform_7, window_bounds = array<i64: 1, 1, 16>}]} {
    %c0 = arith.constant 0 : index
    %c0_0 = arith.constant 0 : index
    %c0_1 = arith.constant 0 : index
    %0 = vector.load %arg1[%c0, %c0_0, %c0_1] : memref<1x16x32xbf16, #tpu.memory_space<vmem>>, vector<1x16x32xbf16>
    %1 = vector.shape_cast %0 : vector<1x16x32xbf16> to vector<16x32xbf16>
    %2 = arith.extf %1 : vector<16x32xbf16> to vector<16x32xf32>
    %c0_2 = arith.constant 0 : index
    %c0_3 = arith.constant 0 : index
    %c0_4 = arith.constant 0 : index
    %3 = vector.load %arg2[%c0_2, %c0_3, %c0_4] : memref<1x16x32xbf16, #tpu.memory_space<vmem>>, vector<1x16x32xbf16>
    %4 = vector.shape_cast %3 : vector<1x16x32xbf16> to vector<16x32xbf16>
    %5 = arith.extf %4 : vector<16x32xbf16> to vector<16x32xf32>
    %c0_5 = arith.constant 0 : index
    %c0_6 = arith.constant 0 : index
    %c0_7 = arith.constant 0 : index
    %6 = vector.load %arg3[%c0_5, %c0_6, %c0_7] : memref<1x16x32xbf16, #tpu.memory_space<vmem>>, vector<1x16x32xbf16>
    %7 = vector.shape_cast %6 : vector<1x16x32xbf16> to vector<16x32xbf16>
    %8 = arith.extf %7 : vector<16x32xbf16> to vector<16x32xf32>
    %c0_8 = arith.constant 0 : index
    %c0_9 = arith.constant 0 : index
    %9 = vector.load %arg4[%c0_8, %c0_9] : memref<2x32xf32, #tpu.memory_space<vmem>>, vector<2x32xf32>
    %c0_10 = arith.constant 0 : index
    %c0_11 = arith.constant 0 : index
    %10 = vector.load %arg5[%c0_10, %c0_11] : memref<2x32xf32, #tpu.memory_space<vmem>>, vector<2x32xf32>
    %c0_12 = arith.constant 0 : index
    %c0_13 = arith.constant 0 : index
    %c0_14 = arith.constant 0 : index
    %11 = vector.load %arg6[%c0_12, %c0_13, %c0_14] : memref<1x1x16xf32, #tpu.memory_space<vmem>>, vector<1x1x16xf32>
    %12 = vector.shape_cast %11 : vector<1x1x16xf32> to vector<1x16xf32>
    %13 = vector.extract_strided_slice %9 {offsets = [0, 0], sizes = [1, 32], strides = [1, 1]} : vector<2x32xf32> to vector<1x32xf32>
    %cst = arith.constant dense<0.000000e+00> : vector<1x16xf32>
    %14 = tpu.matmul %13, %2, %cst {dimension_numbers = #tpu.dot_dimension_numbers<[1], [1], [0], [0], [0, 0, 1, 0], [], []>} : vector<1x32xf32>, vector<16x32xf32>, vector<1x16xf32> -> vector<1x16xf32>
    %15 = vector.extract_strided_slice %9 {offsets = [1, 0], sizes = [1, 32], strides = [1, 1]} : vector<2x32xf32> to vector<1x32xf32>
    %cst_15 = arith.constant dense<0.000000e+00> : vector<1x16xf32>
    %16 = tpu.matmul %15, %5, %cst_15 {dimension_numbers = #tpu.dot_dimension_numbers<[1], [1], [0], [0], [0, 0, 1, 0], [], []>} : vector<1x32xf32>, vector<16x32xf32>, vector<1x16xf32> -> vector<1x16xf32>
    %17 = arith.addf %14, %16 : vector<1x16xf32>
    %18 = vector.extract_strided_slice %10 {offsets = [0, 0], sizes = [1, 32], strides = [1, 1]} : vector<2x32xf32> to vector<1x32xf32>
    %cst_16 = arith.constant dense<0.000000e+00> : vector<1x16xf32>
    %19 = tpu.matmul %18, %2, %cst_16 {dimension_numbers = #tpu.dot_dimension_numbers<[1], [1], [0], [0], [0, 0, 1, 0], [], []>} : vector<1x32xf32>, vector<16x32xf32>, vector<1x16xf32> -> vector<1x16xf32>
    %20 = vector.extract_strided_slice %10 {offsets = [1, 0], sizes = [1, 32], strides = [1, 1]} : vector<2x32xf32> to vector<1x32xf32>
    %cst_17 = arith.constant dense<0.000000e+00> : vector<1x16xf32>
    %21 = tpu.matmul %20, %8, %cst_17 {dimension_numbers = #tpu.dot_dimension_numbers<[1], [1], [0], [0], [0, 0, 1, 0], [], []>} : vector<1x32xf32>, vector<16x32xf32>, vector<1x16xf32> -> vector<1x16xf32>
    %22 = arith.addf %19, %21 : vector<1x16xf32>
    %23 = arith.mulf %12, %17 : vector<1x16xf32>
    %cst_18 = arith.constant 1.000000e+00 : f32
    %24 = vector.broadcast %cst_18 : f32 to vector<1x16xf32>
    %25 = arith.subf %24, %12 : vector<1x16xf32>
    %cst_19 = arith.constant -1.000000e+30 : f32
    %26 = vector.broadcast %cst_19 : f32 to vector<1x16xf32>
    %27 = arith.mulf %25, %26 : vector<1x16xf32>
    %28 = arith.addf %23, %27 : vector<1x16xf32>
    %cst_20 = arith.constant dense<0xFF800000> : vector<1xf32>
    %29 = vector.multi_reduction <maximumf>, %28, %cst_20 [1] : vector<1x16xf32> to vector<1xf32>
    %30 = vector.shape_cast %29 : vector<1xf32> to vector<1x1xf32>
    %31 = vector.broadcast %30 : vector<1x1xf32> to vector<1x16xf32>
    %32 = arith.subf %28, %31 : vector<1x16xf32>
    %33 = math.exp %32 : vector<1x16xf32>
    %cst_21 = arith.constant dense<0.000000e+00> : vector<1xf32>
    %34 = vector.multi_reduction <add>, %33, %cst_21 [1] : vector<1x16xf32> to vector<1xf32>
    %35 = vector.shape_cast %34 : vector<1xf32> to vector<1x1xf32>
    %36 = math.log %35 : vector<1x1xf32>
    %37 = vector.broadcast %36 : vector<1x1xf32> to vector<1x16xf32>
    %38 = arith.subf %32, %37 : vector<1x16xf32>
    %c0_22 = arith.constant 0 : index
    %c0_23 = arith.constant 0 : index
    %c0_24 = arith.constant 0 : index
    %39 = vector.load %arg7[%c0_22, %c0_23, %c0_24] : memref<1x1x16xf32, #tpu.memory_space<vmem>>, vector<1x1x16xf32>
    %40 = vector.shape_cast %39 : vector<1x1x16xf32> to vector<1x16xf32>
    %41 = vector.shape_cast %38 : vector<1x16xf32> to vector<1x1x16xf32>
    tpu.vector_store %arg7[%c0_22, %c0_23, %c0_24], %41 {strides = array<i32>} : memref<1x1x16xf32, #tpu.memory_space<vmem>>, vector<1x1x16xf32>,
    %42 = arith.mulf %12, %22 : vector<1x16xf32>
    %cst_25 = arith.constant 1.000000e+00 : f32
    %43 = vector.broadcast %cst_25 : f32 to vector<1x16xf32>
    %44 = arith.subf %43, %12 : vector<1x16xf32>
    %cst_26 = arith.constant -1.000000e+30 : f32
    %45 = vector.broadcast %cst_26 : f32 to vector<1x16xf32>
    %46 = arith.mulf %44, %45 : vector<1x16xf32>
    %47 = arith.addf %42, %46 : vector<1x16xf32>
    %cst_27 = arith.constant dense<0xFF800000> : vector<1xf32>
    %48 = vector.multi_reduction <maximumf>, %47, %cst_27 [1] : vector<1x16xf32> to vector<1xf32>
    %49 = vector.shape_cast %48 : vector<1xf32> to vector<1x1xf32>
    %50 = vector.broadcast %49 : vector<1x1xf32> to vector<1x16xf32>
    %51 = arith.subf %47, %50 : vector<1x16xf32>
    %52 = math.exp %51 : vector<1x16xf32>
    %cst_28 = arith.constant dense<0.000000e+00> : vector<1xf32>
    %53 = vector.multi_reduction <add>, %52, %cst_28 [1] : vector<1x16xf32> to vector<1xf32>
    %54 = vector.shape_cast %53 : vector<1xf32> to vector<1x1xf32>
    %55 = math.log %54 : vector<1x1xf32>
    %56 = vector.broadcast %55 : vector<1x1xf32> to vector<1x16xf32>
    %57 = arith.subf %51, %56 : vector<1x16xf32>
    %c0_29 = arith.constant 0 : index
    %c0_30 = arith.constant 0 : index
    %c0_31 = arith.constant 0 : index
    %58 = vector.load %arg8[%c0_29, %c0_30, %c0_31] : memref<1x1x16xf32, #tpu.memory_space<vmem>>, vector<1x1x16xf32>
    %59 = vector.shape_cast %58 : vector<1x1x16xf32> to vector<1x16xf32>
    %60 = vector.shape_cast %57 : vector<1x16xf32> to vector<1x1x16xf32>
    tpu.vector_store %arg8[%c0_29, %c0_30, %c0_31], %60 {strides = array<i32>} : memref<1x1x16xf32, #tpu.memory_space<vmem>>, vector<1x1x16xf32>,
    return
  }
  func.func @transform_0(%arg0: i32) -> (i32, i32, i32) {
    %c0_i32 = arith.constant 0 : i32
    %c0_i32_0 = arith.constant 0 : i32
    %c0_i32_1 = arith.constant 0 : i32
    return %arg0, %c0_i32, %c0_i32_0 : i32, i32, i32
  }
  func.func @transform_1(%arg0: i32) -> (i32, i32, i32) {
    %c0_i32 = arith.constant 0 : i32
    %c0_i32_0 = arith.constant 0 : i32
    %c0_i32_1 = arith.constant 0 : i32
    return %arg0, %c0_i32, %c0_i32_0 : i32, i32, i32
  }
  func.func @transform_2(%arg0: i32) -> (i32, i32, i32) {
    %c0_i32 = arith.constant 0 : i32
    %c0_i32_0 = arith.constant 0 : i32
    %c0_i32_1 = arith.constant 0 : i32
    return %arg0, %c0_i32, %c0_i32_0 : i32, i32, i32
  }
  func.func @transform_3(%arg0: i32) -> (i32, i32) {
    %c0_i32 = arith.constant 0 : i32
    %c0_i32_0 = arith.constant 0 : i32
    %c0_i32_1 = arith.constant 0 : i32
    return %c0_i32, %c0_i32_0 : i32, i32
  }
  func.func @transform_4(%arg0: i32) -> (i32, i32) {
    %c0_i32 = arith.constant 0 : i32
    %c0_i32_0 = arith.constant 0 : i32
    %c0_i32_1 = arith.constant 0 : i32
    return %c0_i32, %c0_i32_0 : i32, i32
  }
  func.func @transform_5(%arg0: i32) -> (i32, i32, i32) {
    %c0_i32 = arith.constant 0 : i32
    %c0_i32_0 = arith.constant 0 : i32
    %c0_i32_1 = arith.constant 0 : i32
    return %arg0, %c0_i32, %c0_i32_0 : i32, i32, i32
  }
  func.func @transform_6(%arg0: i32) -> (i32, i32, i32) {
    %c0_i32 = arith.constant 0 : i32
    %c0_i32_0 = arith.constant 0 : i32
    %c0_i32_1 = arith.constant 0 : i32
    return %arg0, %c0_i32, %c0_i32_0 : i32, i32, i32
  }
  func.func @transform_7(%arg0: i32) -> (i32, i32, i32) {
    %c0_i32 = arith.constant 0 : i32
    %c0_i32_0 = arith.constant 0 : i32
    %c0_i32_1 = arith.constant 0 : i32
    return %arg0, %c0_i32, %c0_i32_0 : i32, i32, i32
  }
}

</mosaic_0001>

<bundles_post_ra>
// kernel: qanet_forward.56
= control target key start
LH: loop header
LB: loop body
LE: loop exit
PB: predicated region body
PF: predicated region fallthrough
CT: control target
= control target key end

     0   :  { %s263_s18 = smov 24   ;;  %vm28_vm0 = vcmask 195584   ;;  %s337_s1 = inlined_call_operand.vmem [shape: bf16[24,48], index: 1, kind: input, shape index: {}]   ;;  %s338_s0 = inlined_call_operand.vmem [shape: f32[32,24], index: 0, kind: input, shape index: {}]   ;;  %s339_s2 = inlined_call_operand.vmem [shape: f32[1,48], index: 2, kind: input, shape index: {}]   ;;  %s340_s3 = inlined_call_operand.vmem [shape: bf16[32,24], index: 3, kind: output, shape index: {}]  }
   0x1   :  { %v20_v0 = vld [vmem:[%s337_s1 + $0x8] sm:$0xf]  ;;  %v232_v1 = vld [vmem:[%s337_s1] sm:$0xff]   ;;  %v16_v7 = vld [vmem:[%s338_s0 + $0x10] sm:$0xff] }
   0x2   :  { %v14_v2 = vld [vmem:[%s338_s0] sm:$0xff]  ;;  %v23_v3 = vunpack.c.l.bf16 %v20_v0  ;;  %v234_v4 = vunpack.c.h.bf16 %v232_v1  ;;  %v233_v5 = vunpack.c.l.bf16 %v232_v1  ;;  %v15_v6 = vld [vmem:[%s338_s0 + $0x8] sm:$0xff]  ;;  %v17_v8 = vld [vmem:[%s338_s0 + $0x18] sm:$0xff]  ;;  %s264_s0 = smov 104  }
   0x3   :  { %174 = vrot.lane.b32.xlu2 %v14_v2, %s263_s18  ;;  %v246_v9 = vld [vmem:[%s339_s2] ss:$0 sm:$0xff] }
   0x4   :  { %54 = vmatpush.msra.mxu0 %v23_v3  ;;  %235 = vmatpush.msra.mxu1 %v23_v3 }
   0x5   :  { %236 = vmatpush.msra.mxu2 %v23_v3  ;;  %237 = vmatpush.msra.mxu3 %v23_v3 }
   0x6   :  { %55 = vmatpush.msra.mxu0 %v234_v4  ;;  %238 = vmatpush.msra.mxu1 %v234_v4 }
   0x7   :  { %239 = vmatpush.msra.mxu2 %v234_v4  ;;  %240 = vmatpush.msra.mxu3 %v234_v4 }
   0x8   :  { %56 = vmatpush.msra.mxu0 %v233_v5  ;;  %241 = vmatpush.msra.mxu1 %v233_v5 }
   0x9   :  { %242 = vmatpush.msra.mxu2 %v233_v5  ;;  %223 = vmatmul.msk.f32.vlgmr.msra.gmra.mxu0 %vm28_vm0, %v14_v2 }
   0xa   :  { %224 = vmatmul.msk.f32.vlgmr.msra.gmra.mxu1 %vm28_vm0, %v15_v6  ;;  %225 = vmatmul.msk.f32.vlgmr.msra.gmra.mxu2 %vm28_vm0, %v16_v7 }
   0xb   :  { %243 = vmatpush.msra.mxu3 %v233_v5  ;;  %176 = vrot.lane.b32.xlu2 %v15_v6, %s263_s18 }
   0xc   :  { %226 = vmatmul.msk.f32.vlgmr.msra.gmra.mxu3 %vm28_vm0, %v17_v8 }
  0x5d   :  { %v175_v51 = vpop.permute.xlu2 %174 }
  0x65   :  { %v177_v6 = vpop.permute.xlu2 %176 }
  0x86   :  { %v58_v10 = vpop.f32.mrf.mxu0 }
  0x87   :  { %v59_v11 = vadd.f32 %v246_v9, %v58_v10  ;;  %v61_v13 = vpop.f32.mrf.mxu1 }
  0x88   :  { %v62_v14 = vadd.f32 %v246_v9, %v61_v13 }
  0x89   :  { %v70_v12 = vmax.f32 %v59_v11, 0.0  ;;  %v227_v22 = vmul.f32 -1.442695, %v59_v11 }
  0x8a   :  { %v71_v17 = vmax.f32 %v62_v14, 0.0  ;;  %v228_v23 = vmul.f32 -1.442695, %v62_v14 }
  0x8b   :  { %154 = vrot.lane.b32.xlu0 %v70_v12, %s263_s18  ;;  %247 = vpow2.f32 %v227_v22 }
  0x8c   :  { %249 = vpow2.f32 %v228_v23 }
  0x8d   :  { %v64_v15 = vpop.f32.mrf.mxu2 }
  0x8e   :  { %v65_v16 = vadd.f32 %v246_v9, %v64_v15 }
  0x8f   :  { %v67_v18 = vpop.f32.mrf.mxu3 }
  0x90   :  { %v72_v19 = vmax.f32 %v65_v16, 0.0  ;;  %v68_v20 = vadd.f32 %v246_v9, %v67_v18  ;;  %v229_v27 = vmul.f32 -1.442695, %v65_v16 }
  0x91   :  { %v248_v24 = vpop.eup %247 }
  0x92   :  { %158 = vrot.lane.b32.xlu1 %v72_v19, %s263_s18  ;;  %v73_v21 = vmax.f32 %v68_v20, 0.0  ;;  %v86_v25 = vadd.f32 1.0, %v248_v24  ;;  %v250_v26 = vpop.eup %249  ;;  %v230_v30 = vmul.f32 -1.442695, %v68_v20 }
  0x93   :  { %156 = vrot.lane.b32.xlu0 %v71_v17, %s263_s18  ;;  %v87_v28 = vadd.f32 1.0, %v250_v26 }
  0x94   :  { %251 = vrcp.f32 %v86_v25  ;;  %v101_v42 = vand.u32 2147483648, %v86_v25  ;;  %vm95_vm2 = vweird.f32 %v86_v25  ;;  %v99_v43 = vand.u32 2147483647, %v86_v25 }
  0x95   :  { %253 = vpow2.f32 %v229_v27  ;;  %vm110_vm5 = vweird.f32 %v87_v28  ;;  %v116_v52 = vand.u32 2147483648, %v87_v28  ;;  %v114_v55 = vand.u32 2147483647, %v87_v28 }
  0x96   :  { %255 = vrcp.f32 %v87_v28  ;;  %v102_v47 = vor.u32 1.1754944e-38, %v101_v42  ;;  %vm100_vm4 = vcmp.eq.f32.partialorder %v99_v43, 8.507059e+37 }
  0x97   :  { %257 = vpow2.f32 %v230_v30  ;;  %v117_v58 = vor.u32 1.1754944e-38, %v116_v52  ;;  %vm115_vm8 = vcmp.eq.f32.partialorder %v114_v55, 8.507059e+37 }
  0x9a   :  { %160 = vrot.lane.b32.xlu1 %v73_v21, %s263_s18  ;;  %v252_v29 = vpop.eup %251 }
  0x9b   :  { %178 = vrot.lane.b32.xlu0 %v16_v7, %s263_s18  ;;  %v91_v31 = vmul.f32 %v252_v29, %v86_v25  ;;  %v254_v32 = vpop.eup %253  ;;  %vm96_vm1 = vweird.f32 %v252_v29 }
  0x9c   :  { %v256_v34 = vpop.eup %255  ;;  %v88_v35 = vadd.f32 1.0, %v254_v32  ;;  %vm97_vm3 = vmor %vm95_vm2, %vm96_vm1  ;;  %vm214_vm1 = vcmask 191488  }
  0x9d   :  { %v92_v33 = vsub.f32 1.0, %v91_v31  ;;  %v106_v37 = vmul.f32 %v256_v34, %v87_v28  ;;  %v258_v38 = vpop.eup %257  ;;  %vm111_vm6 = vweird.f32 %v256_v34 }
  0x9e   :  { %259 = vrcp.f32 %v88_v35  ;;  %v314_v39 = vadd.f32 1.0, %v258_v38  ;;  %vm112_vm7 = vmor %vm110_vm5, %vm111_vm6  ;;  %vm125_vm9 = vweird.f32 %v88_v35  ;;  %v131_v7 = vand.u32 2147483648, %v88_v35 }
  0x9f   :  { %v93_v36 = vmul.f32 %v252_v29, %v92_v33  ;;  %v107_v41 = vsub.f32 1.0, %v106_v37 }
  0xa0   :  { %261 = vrcp.f32 %v314_v39  ;;  %v132_v15 = vor.u32 1.1754944e-38, %v131_v7  ;;  %vm140_vm12 = vweird.f32 %v314_v39  ;;  %v146_v17 = vand.u32 2147483648, %v314_v39 }
  0xa1   :  { %v94_v40 = vadd.f32 %v252_v29, %v93_v36  ;;  %v108_v46 = vmul.f32 %v256_v34, %v107_v41  ;;  %v144_v20 = vand.u32 2147483647, %v314_v39 }
  0xa2   :  { %180 = vrot.lane.b32.xlu1 %v17_v8, %s263_s18  ;;  %v129_v8 = vand.u32 2147483647, %v88_v35  ;;  %v147_v22 = vor.u32 1.1754944e-38, %v146_v17 }
  0xa3   :  { %v98_v45 = vsel %vm97_vm3, %v252_v29, %v94_v40  ;;  %v109_v50 = vadd.f32 %v256_v34, %v108_v46  ;;  %vm145_vm0 = vcmp.eq.f32.partialorder %v144_v20, 8.507059e+37 }
  0xa4   :  { %v260_v44 = vpop.eup %259  ;;  %v103_v49 = vsel %vm100_vm4, %v102_v47, %v98_v45  ;;  %vm130_vm14 = vcmp.eq.f32.partialorder %v129_v8, 8.507059e+37 }
  0xa5   :  { %v121_v48 = vmul.f32 %v260_v44, %v88_v35  ;;  %v170_v54 = vsub.f32 1.0, %v103_v49  ;;  %v113_v57 = vsel %vm112_vm7, %v256_v34, %v109_v50  ;;  %vm126_vm10 = vweird.f32 %v260_v44 }
  0xa6   :  { %v262_v53 = vpop.eup %261  ;;  %v118_v0 = vsel %vm115_vm8, %v117_v58, %v113_v57  ;;  %vm127_vm11 = vmor %vm125_vm9, %vm126_vm10 }
  0xa7   :  { %v122_v56 = vsub.f32 1.0, %v121_v48  ;;  %v136_v60 = vmul.f32 %v262_v53, %v314_v39  ;;  %v186_v61 = vmul.f32 %v175_v51, %v170_v54  ;;  %v171_v3 = vsub.f32 1.0, %v118_v0 }
  0xa8   :  { %vm141_vm13 = vweird.f32 %v262_v53 }
  0xa9   :  { %v123_v63 = vmul.f32 %v260_v44, %v122_v56  ;;  %v137_v2 = vsub.f32 1.0, %v136_v60  ;;  %v187_v12 = vmul.f32 %v177_v6, %v171_v3  ;;  %vm142_vm15 = vmor %vm140_vm12, %vm141_vm13 }
  0xab   :  { %v124_v5 = vadd.f32 %v260_v44, %v123_v63  ;;  %v138_v11 = vmul.f32 %v262_v53, %v137_v2 }
  0xad   :  { %v128_v13 = vsel %vm127_vm11, %v260_v44, %v124_v5  ;;  %v139_v19 = vadd.f32 %v262_v53, %v138_v11 }
  0xae   :  { %v133_v18 = vsel %vm130_vm14, %v132_v15, %v128_v13 }
  0xaf   :  { %v172_v24 = vsub.f32 1.0, %v133_v18  ;;  %v143_v25 = vsel %vm142_vm15, %v262_v53, %v139_v19 }
  0xb0   :  { %v148_v29 = vsel %vm145_vm0, %v147_v22, %v143_v25 }
  0xb1   :  { %v173_v32 = vsub.f32 1.0, %v148_v29 }
  0xfd   :  { %v155_v59 = vpop.permute.xlu0 %154 }
  0xfe   :  { %v166_v62 = vmul.f32 %v155_v59, %v103_v49 }
 0x100   :  { %v190_v1 = vadd.f32 %v186_v61, %v166_v62 }
 0x102   :  { %v194_v4 = vpack.c.bf16 %v190_v1, %v190_v1 }
 0x104   :  { %v159_v9 = vpop.permute.xlu1 %158  ;;  %202 = vrot.lane.b32.xlu2 %v194_v4, %s264_s0 }
 0x105   :  { %v157_v10 = vpop.permute.xlu0 %156  ;;  %v168_v27 = vmul.f32 %v159_v9, %v133_v18 }
 0x106   :  { %v167_v14 = vmul.f32 %v157_v10, %v118_v0 }
 0x108   :  { %v191_v16 = vadd.f32 %v187_v12, %v167_v14 }
 0x10a   :  { %v195_v21 = vpack.c.bf16 %v191_v16, %v191_v16 }
 0x10c   :  { %v161_v23 = vpop.permute.xlu1 %160  ;;  %204 = vrot.lane.b32.xlu0 %v195_v21, %s264_s0 }
 0x10d   :  { %v179_v26 = vpop.permute.xlu0 %178  ;;  %v169_v34 = vmul.f32 %v161_v23, %v148_v29 }
 0x10e   :  { %v188_v28 = vmul.f32 %v179_v26, %v172_v24 }
 0x110   :  { %v192_v30 = vadd.f32 %v188_v28, %v168_v27 }
 0x112   :  { %v196_v31 = vpack.c.bf16 %v192_v30, %v192_v30 }
 0x114   :  { %v181_v33 = vpop.permute.xlu1 %180  ;;  %206 = vrot.lane.b32.xlu1 %v196_v31, %s264_s0 }
 0x115   :  { %v189_v35 = vmul.f32 %v181_v33, %v173_v32 }
 0x117   :  { %v193_v36 = vadd.f32 %v189_v35, %v169_v34 }
 0x119   :  { %v197_v37 = vpack.c.bf16 %v193_v36, %v193_v36 }
 0x11b   :  { %208 = vrot.lane.b32.xlu2 %v197_v37, %s264_s0 }
 0x15e   :  { %v203_v38 = vpop.permute.xlu2 %202 }
 0x15f   :  { %215 = vst.msk [vmem:[%s340_s3] sm:$0xf] %vm214_vm1, %v203_v38 }
 0x175   :  { %v209_v39 = vpop.permute.xlu2 %208 }
 0x176   :  { %218 = vst.msk [vmem:[%s340_s3 + $0xc] sm:$0xf] %vm214_vm1, %v209_v39 }
 0x17e   :  { %v205_v40 = vpop.permute.xlu0 %204 }
 0x17f   :  { %216 = vst.msk [vmem:[%s340_s3 + $0x4] sm:$0xf] %vm214_vm1, %v205_v40 }
 0x186   :  { %v207_v41 = vpop.permute.xlu1 %206 }
 0x187   :  { %217 = vst.msk [vmem:[%s340_s3 + $0x8] sm:$0xf] %vm214_vm1, %v207_v41 }

// kernel: qanet_forward.60
= control target key start
LH: loop header
LB: loop body
LE: loop exit
PB: predicated region body
PF: predicated region fallthrough
CT: control target
= control target key end

     0   :  { %vm32_vm0 = vcmask 195584   ;;  %vm78_vm1 = vcmask 257024   ;;  %s161_s1 = inlined_call_operand.vmem [shape: bf16[24,32], index: 1, kind: input, shape index: {}]   ;;  %s162_s0 = inlined_call_operand.vmem [shape: bf16[32,24], index: 0, kind: input, shape index: {}]   ;;  %s163_s2 = inlined_call_operand.vmem [shape: f32[1,32], index: 2, kind: input, shape index: {}]   ;;  %s164_s3 = inlined_call_operand.vmem [shape: bf16[32,32], index: 3, kind: output, shape index: {}]  }
   0x1   :  { %v24_v0 = vld [vmem:[%s161_s1 + $0x8] sm:$0xf]  ;;  %v100_v1 = vld [vmem:[%s161_s1] sm:$0xff]  }
   0x2   :  { %v27_v2 = vunpack.c.l.bf16 %v24_v0  ;;  %v102_v3 = vunpack.c.h.bf16 %v100_v1  ;;  %v103_v4 = vld [vmem:[%s162_s0 + $0x8] sm:$0xff]   ;;  %v101_v5 = vunpack.c.l.bf16 %v100_v1  ;;  %v92_v6 = vld [vmem:[%s162_s0] sm:$0xff]  }
   0x3   :  { %v97_v7 = vunpack.c.l.bf16 %v103_v4  ;;  %v98_v8 = vunpack.c.h.bf16 %v103_v4  ;;  %v93_v9 = vunpack.c.l.bf16 %v92_v6  ;;  %v94_v10 = vunpack.c.h.bf16 %v92_v6  ;;  %v113_v11 = vld [vmem:[%s163_s2] ss:$0 sm:$0xff] }
   0x4   :  { %105 = vmatpush.msra.mxu2 %v27_v2  ;;  %106 = vmatpush.msra.mxu3 %v27_v2 }
   0x5   :  { %58 = vmatpush.msra.mxu0 %v27_v2  ;;  %104 = vmatpush.msra.mxu1 %v27_v2 }
   0x6   :  { %108 = vmatpush.msra.mxu2 %v102_v3  ;;  %109 = vmatpush.msra.mxu3 %v102_v3 }
   0x7   :  { %59 = vmatpush.msra.mxu0 %v102_v3  ;;  %107 = vmatpush.msra.mxu1 %v102_v3 }
   0x8   :  { %111 = vmatpush.msra.mxu2 %v101_v5  ;;  %112 = vmatpush.msra.mxu3 %v101_v5 }
   0x9   :  { %89 = vmatmul.msk.f32.vlgmr.msra.gmra.mxu2 %vm32_vm0, %v97_v7  ;;  %90 = vmatmul.msk.f32.vlgmr.msra.gmra.mxu3 %vm32_vm0, %v98_v8 }
   0xa   :  { %60 = vmatpush.msra.mxu0 %v101_v5  ;;  %110 = vmatpush.msra.mxu1 %v101_v5 }
   0xb   :  { %87 = vmatmul.msk.f32.vlgmr.msra.gmra.mxu0 %vm32_vm0, %v93_v9  ;;  %88 = vmatmul.msk.f32.vlgmr.msra.gmra.mxu1 %vm32_vm0, %v94_v10 }
  0x88   :  { %v62_v12 = vpop.f32.mrf.mxu0  ;;  %v65_v13 = vpop.f32.mrf.mxu1 }
  0x89   :  { %v63_v14 = vadd.f32 %v113_v11, %v62_v12  ;;  %v66_v15 = vadd.f32 %v113_v11, %v65_v13 }
  0x8b   :  { %v74_v16 = vpack.c.bf16 %v63_v14, %v63_v14  ;;  %v75_v17 = vpack.c.bf16 %v66_v15, %v66_v15 }
  0x8c   :  { %v68_v18 = vpop.f32.mrf.mxu2  ;;  %v71_v19 = vpop.f32.mrf.mxu3 }
  0x8d   :  { %79 = vst.msk [vmem:[%s164_s3] sm:$0xf] %vm78_vm1, %v74_v16  ;;  %v69_v20 = vadd.f32 %v113_v11, %v68_v18  ;;  %v72_v21 = vadd.f32 %v113_v11, %v71_v19 }
  0x8e   :  { %80 = vst.msk [vmem:[%s164_s3 + $0x4] sm:$0xf] %vm78_vm1, %v75_v17 }
  0x8f   :  { %v76_v22 = vpack.c.bf16 %v69_v20, %v69_v20  ;;  %v77_v23 = vpack.c.bf16 %v72_v21, %v72_v21 }
  0x91   :  { %81 = vst.msk [vmem:[%s164_s3 + $0x8] sm:$0xf] %vm78_vm1, %v76_v22 }
  0x92   :  { %82 = vst.msk [vmem:[%s164_s3 + $0xc] sm:$0xf] %vm78_vm1, %v77_v23 }

// kernel: qanet_forward.57
= control target key start
LH: loop header
LB: loop body
LE: loop exit
PB: predicated region body
PF: predicated region fallthrough
CT: control target
= control target key end

     0   :  { %vm32_vm0 = vcmask 195584   ;;  %s355_s1 = inlined_call_operand.vmem [shape: bf16[24,48], index: 1, kind: input, shape index: {}]   ;;  %s356_s0 = inlined_call_operand.vmem [shape: bf16[32,24], index: 0, kind: input, shape index: {}]   ;;  %s357_s2 = inlined_call_operand.vmem [shape: f32[1,48], index: 2, kind: input, shape index: {}]   ;;  %s358_s3 = inlined_call_operand.vmem [shape: bf16[32,24], index: 3, kind: output, shape index: {}]  }
   0x1   :  { %v24_v0 = vld [vmem:[%s355_s1 + $0x8] sm:$0xf]  ;;  %v244_v1 = vld [vmem:[%s355_s1] sm:$0xff]  }
   0x2   :  { %v27_v2 = vunpack.c.l.bf16 %v24_v0  ;;  %v246_v3 = vunpack.c.h.bf16 %v244_v1  ;;  %v236_v4 = vld [vmem:[%s356_s0] sm:$0xff]   ;;  %v247_v5 = vld [vmem:[%s356_s0 + $0x8] sm:$0xff]   ;;  %v245_v6 = vunpack.c.l.bf16 %v244_v1  ;;  %s286_s0 = smov 24  }
   0x3   :  { %v237_v7 = vunpack.c.l.bf16 %v236_v4  ;;  %v241_v8 = vunpack.c.l.bf16 %v247_v5  ;;  %v238_v9 = vunpack.c.h.bf16 %v236_v4  ;;  %v242_v10 = vunpack.c.h.bf16 %v247_v5  ;;  %v269_v13 = vld [vmem:[%s357_s2] ss:$0 sm:$0xff]  ;;  %s287_s2 = smov 104  }
   0x4   :  { %58 = vmatpush.msra.mxu0 %v27_v2  ;;  %249 = vmatpush.msra.mxu2 %v27_v2 }
   0x5   :  { %250 = vmatpush.msra.mxu3 %v27_v2  ;;  %248 = vmatpush.msra.mxu1 %v27_v2  ;;  %v259_v11 = vpack.i.bf16 %v238_v9, %v237_v7  ;;  %v264_v12 = vpack.i.bf16 %v242_v10, %v241_v8 }
   0x6   :  { %59 = vmatpush.msra.mxu0 %v246_v3  ;;  %252 = vmatpush.msra.mxu2 %v246_v3 }
   0x7   :  { %253 = vmatpush.msra.mxu3 %v246_v3  ;;  %251 = vmatpush.msra.mxu1 %v246_v3 }
   0x8   :  { %60 = vmatpush.msra.mxu0 %v245_v6  ;;  %255 = vmatpush.msra.mxu2 %v245_v6 }
   0x9   :  { %256 = vmatpush.msra.mxu3 %v245_v6  ;;  %254 = vmatpush.msra.mxu1 %v245_v6 }
   0xa   :  { %227 = vmatmul.msk.f32.vlgmr.msra.gmra.mxu0 %vm32_vm0, %v237_v7  ;;  %229 = vmatmul.msk.f32.vlgmr.msra.gmra.mxu2 %vm32_vm0, %v241_v8 }
   0xb   :  { %230 = vmatmul.msk.f32.vlgmr.msra.gmra.mxu3 %vm32_vm0, %v242_v10  ;;  %228 = vmatmul.msk.f32.vlgmr.msra.gmra.mxu1 %vm32_vm0, %v238_v9 }
   0xc   :  { %260 = vrot.lane.b32.xlu2 %v259_v11, %s286_s0 }
  0x14   :  { %265 = vrot.lane.b32.xlu2 %v264_v12, %s286_s0 }
  0x66   :  { %v261_v54 = vpop.permute.xlu2 %260 }
  0x67   :  { %v262_v3 = vunpack.i.l.bf16 %v261_v54 }
  0x6e   :  { %v266_v10 = vpop.permute.xlu2 %265 }
  0x87   :  { %v62_v14 = vpop.f32.mrf.mxu0 }
  0x88   :  { %v63_v15 = vadd.f32 %v269_v13, %v62_v14  ;;  %v65_v17 = vpop.f32.mrf.mxu1 }
  0x89   :  { %v66_v19 = vadd.f32 %v269_v13, %v65_v17 }
  0x8a   :  { %v74_v16 = vmax.f32 %v63_v15, 0.0  ;;  %v231_v26 = vmul.f32 -1.442695, %v63_v15 }
  0x8b   :  { %v75_v21 = vmax.f32 %v66_v19, 0.0  ;;  %v232_v28 = vmul.f32 -1.442695, %v66_v19 }
  0x8c   :  { %158 = vrot.lane.b32.xlu0 %v74_v16, %s286_s0  ;;  %270 = vpow2.f32 %v231_v26 }
  0x8d   :  { %v68_v18 = vpop.f32.mrf.mxu2 }
  0x8e   :  { %v69_v20 = vadd.f32 %v269_v13, %v68_v18  ;;  %v71_v23 = vpop.f32.mrf.mxu3  ;;  %v267_v18 = vunpack.i.l.bf16 %v266_v10 }
  0x8f   :  { %v72_v24 = vadd.f32 %v269_v13, %v71_v23 }
  0x90   :  { %v76_v22 = vmax.f32 %v69_v20, 0.0  ;;  %v233_v27 = vmul.f32 -1.442695, %v69_v20 }
  0x91   :  { %v77_v25 = vmax.f32 %v72_v24, 0.0  ;;  %v234_v31 = vmul.f32 -1.442695, %v72_v24 }
  0x92   :  { %162 = vrot.lane.b32.xlu1 %v76_v22, %s286_s0  ;;  %v271_v29 = vpop.eup %270  ;;  %272 = vpow2.f32 %v233_v27  ;;  %v263_v22 = vunpack.i.h.bf16 %v261_v54 }
  0x93   :  { %274 = vpow2.f32 %v232_v28  ;;  %v90_v30 = vadd.f32 1.0, %v271_v29 }
  0x94   :  { %160 = vrot.lane.b32.xlu0 %v75_v21, %s286_s0 }
  0x95   :  { %276 = vrcp.f32 %v90_v30  ;;  %vm99_vm1 = vweird.f32 %v90_v30  ;;  %v105_v50 = vand.u32 2147483648, %v90_v30  ;;  %v103_v51 = vand.u32 2147483647, %v90_v30 }
  0x96   :  { %278 = vpow2.f32 %v234_v31 }
  0x97   :  { %v106_v57 = vor.u32 1.1754944e-38, %v105_v50  ;;  %vm104_vm6 = vcmp.eq.f32.partialorder %v103_v51, 8.507059e+37 }
  0x98   :  { %v273_v32 = vpop.eup %272 }
  0x99   :  { %v275_v33 = vpop.eup %274  ;;  %v92_v34 = vadd.f32 1.0, %v273_v32 }
  0x9a   :  { %164 = vrot.lane.b32.xlu1 %v77_v25, %s286_s0  ;;  %v91_v35 = vadd.f32 1.0, %v275_v33 }
  0x9b   :  { %v277_v36 = vpop.eup %276  ;;  %280 = vrcp.f32 %v92_v34  ;;  %v135_v61 = vand.u32 2147483648, %v92_v34  ;;  %vm129_vm8 = vweird.f32 %v92_v34  ;;  %v133_v63 = vand.u32 2147483647, %v92_v34 }
  0x9c   :  { %v279_v37 = vpop.eup %278  ;;  %282 = vrcp.f32 %v91_v35  ;;  %v95_v38 = vmul.f32 %v277_v36, %v90_v30  ;;  %vm100_vm2 = vweird.f32 %v277_v36  ;;  %vm114_vm4 = vweird.f32 %v91_v35 }
  0x9d   :  { %v323_v39 = vadd.f32 1.0, %v279_v37  ;;  %vm101_vm3 = vmor %vm99_vm1, %vm100_vm2  ;;  %v120_v62 = vand.u32 2147483648, %v91_v35  ;;  %v118_v2 = vand.u32 2147483647, %v91_v35  ;;  %v136_v7 = vor.u32 1.1754944e-38, %v135_v61 }
  0x9e   :  { %v96_v41 = vsub.f32 1.0, %v95_v38  ;;  %vm134_vm11 = vcmp.eq.f32.partialorder %v133_v63, 8.507059e+37  ;;  %vm218_vm1 = vcmask 191488  }
  0x9f   :  { %284 = vrcp.f32 %v323_v39  ;;  %v121_v8 = vor.u32 1.1754944e-38, %v120_v62  ;;  %vm119_vm12 = vcmp.eq.f32.partialorder %v118_v2, 8.507059e+37  ;;  %vm144_vm13 = vweird.f32 %v323_v39 }
  0xa0   :  { %v97_v44 = vmul.f32 %v277_v36, %v96_v41  ;;  %v150_v17 = vand.u32 2147483648, %v323_v39  ;;  %v148_v21 = vand.u32 2147483647, %v323_v39 }
  0xa1   :  { %v281_v40 = vpop.eup %280 }
  0xa2   :  { %v283_v42 = vpop.eup %282  ;;  %v125_v43 = vmul.f32 %v281_v40, %v92_v34  ;;  %v98_v48 = vadd.f32 %v277_v36, %v97_v44  ;;  %vm130_vm7 = vweird.f32 %v281_v40  ;;  %v151_v27 = vor.u32 1.1754944e-38, %v150_v17 }
  0xa3   :  { %v110_v45 = vmul.f32 %v283_v42, %v91_v35  ;;  %vm115_vm5 = vweird.f32 %v283_v42  ;;  %vm131_vm10 = vmor %vm129_vm8, %vm130_vm7  ;;  %vm149_vm0 = vcmp.eq.f32.partialorder %v148_v21, 8.507059e+37  ;;  %v268_v35 = vunpack.i.h.bf16 %v266_v10 }
  0xa4   :  { %v126_v46 = vsub.f32 1.0, %v125_v43  ;;  %v102_v55 = vsel %vm101_vm3, %v277_v36, %v98_v48  ;;  %vm330_vm9 = vmor %vm114_vm4, %vm115_vm5 }
  0xa5   :  { %v326_v47 = vpop.eup %284  ;;  %v111_v49 = vsub.f32 1.0, %v110_v45  ;;  %v107_v60 = vsel %vm104_vm6, %v106_v57, %v102_v55 }
  0xa6   :  { %v127_v52 = vmul.f32 %v281_v40, %v126_v46  ;;  %v140_v53 = vmul.f32 %v326_v47, %v323_v39  ;;  %v174_v4 = vsub.f32 1.0, %v107_v60  ;;  %vm145_vm14 = vweird.f32 %v326_v47 }
  0xa7   :  { %v112_v56 = vmul.f32 %v283_v42, %v111_v49  ;;  %vm146_vm15 = vmor %vm144_vm13, %vm145_vm14 }
  0xa8   :  { %v128_v58 = vadd.f32 %v281_v40, %v127_v52  ;;  %v141_v59 = vsub.f32 1.0, %v140_v53  ;;  %v190_v13 = vmul.f32 %v262_v3, %v174_v4 }
  0xa9   :  { %v113_v0 = vadd.f32 %v283_v42, %v112_v56 }
  0xaa   :  { %v132_v5 = vsel %vm131_vm10, %v281_v40, %v128_v58  ;;  %v142_v6 = vmul.f32 %v326_v47, %v141_v59 }
  0xab   :  { %v117_v9 = vsel %vm330_vm9, %v283_v42, %v113_v0  ;;  %v137_v12 = vsel %vm134_vm11, %v136_v7, %v132_v5 }
  0xac   :  { %v143_v15 = vadd.f32 %v326_v47, %v142_v6  ;;  %v122_v16 = vsel %vm119_vm12, %v121_v8, %v117_v9  ;;  %v176_v20 = vsub.f32 1.0, %v137_v12 }
  0xad   :  { %v175_v24 = vsub.f32 1.0, %v122_v16 }
  0xae   :  { %v147_v25 = vsel %vm146_vm15, %v326_v47, %v143_v15  ;;  %v192_v29 = vmul.f32 %v267_v18, %v176_v20 }
  0xaf   :  { %v152_v31 = vsel %vm149_vm0, %v151_v27, %v147_v25  ;;  %v191_v33 = vmul.f32 %v263_v22, %v175_v24 }
  0xb0   :  { %v177_v38 = vsub.f32 1.0, %v152_v31 }
  0xb2   :  { %v193_v42 = vmul.f32 %v268_v35, %v177_v38 }
  0xfe   :  { %v159_v11 = vpop.permute.xlu0 %158 }
  0xff   :  { %v170_v14 = vmul.f32 %v159_v11, %v107_v60 }
 0x101   :  { %v194_v19 = vadd.f32 %v190_v13, %v170_v14 }
 0x103   :  { %v198_v23 = vpack.c.bf16 %v194_v19, %v194_v19 }
 0x104   :  { %v163_v26 = vpop.permute.xlu1 %162 }
 0x105   :  { %v172_v28 = vmul.f32 %v163_v26, %v137_v12  ;;  %206 = vrot.lane.b32.xlu0 %v198_v23, %s287_s2 }
 0x106   :  { %v161_v30 = vpop.permute.xlu0 %160 }
 0x107   :  { %v196_v32 = vadd.f32 %v192_v29, %v172_v28  ;;  %v171_v34 = vmul.f32 %v161_v30, %v122_v16 }
 0x109   :  { %v200_v36 = vpack.c.bf16 %v196_v32, %v196_v32  ;;  %v195_v37 = vadd.f32 %v191_v33, %v171_v34 }
 0x10b   :  { %v199_v39 = vpack.c.bf16 %v195_v37, %v195_v37  ;;  %210 = vrot.lane.b32.xlu2 %v200_v36, %s287_s2 }
 0x10c   :  { %v165_v40 = vpop.permute.xlu1 %164 }
 0x10d   :  { %v173_v41 = vmul.f32 %v165_v40, %v152_v31  ;;  %208 = vrot.lane.b32.xlu1 %v199_v39, %s287_s2 }
 0x10f   :  { %v197_v43 = vadd.f32 %v193_v42, %v173_v41 }
 0x111   :  { %v201_v44 = vpack.c.bf16 %v197_v43, %v197_v43 }
 0x113   :  { %212 = vrot.lane.b32.xlu0 %v201_v44, %s287_s2 }
 0x165   :  { %v211_v45 = vpop.permute.xlu2 %210 }
 0x166   :  { %221 = vst.msk [vmem:[%s358_s3 + $0x8] sm:$0xf] %vm218_vm1, %v211_v45 }
 0x177   :  { %v207_v46 = vpop.permute.xlu0 %206 }
 0x178   :  { %219 = vst.msk [vmem:[%s358_s3] sm:$0xf] %vm218_vm1, %v207_v46 }
 0x17f   :  { %v209_v47 = vpop.permute.xlu1 %208 }
 0x180   :  { %220 = vst.msk [vmem:[%s358_s3 + $0x4] sm:$0xf] %vm218_vm1, %v209_v47 }
 0x185   :  { %v213_v48 = vpop.permute.xlu0 %212 }
 0x186   :  { %222 = vst.msk [vmem:[%s358_s3 + $0xc] sm:$0xf] %vm218_vm1, %v213_v48 }

// kernel: qanet_forward.62
= control target key start
LH: loop header
LB: loop body
LE: loop exit
PB: predicated region body
PF: predicated region fallthrough
CT: control target
= control target key end

     0   :  { %s762_s24 = smov 0   ;;  %s854_s0 = inlined_call_operand.vmem [shape: bf16[2,22,32], index: 0, kind: input, shape index: {}]   ;;  %s855_s1 = inlined_call_operand.vmem [shape: f32[22,32], index: 1, kind: input, shape index: {}]   ;;  %s856_s2 = inlined_call_operand.vmem [shape: f32[1,32], index: 2, kind: input, shape index: {}]   ;;  %s857_s3 = inlined_call_operand.vmem [shape: f32[1,32], index: 3, kind: input, shape index: {}]   ;;  %s858_s4 = inlined_call_operand.vmem [shape: f32[7,32], index: 4, kind: input, shape index: {}]   ;;  %s859_s5 = inlined_call_operand.vmem [shape: bf16[32,32], index: 5, kind: input, shape index: {}]   ;;  %s860_s6 = inlined_call_operand.vmem [shape: f32[1,32], index: 6, kind: input, shape index: {}]   ;;  %s861_s7 = inlined_call_operand.vmem [shape: bf16[2,16,32], index: 7, kind: output, shape index: {}]  }
   0x1 LB: > { %s658_s25 = sadd.s32 4294967295, %s718_s24   ;;  %p662_p0 = scmp.ge.s32.totalorder %s718_s24, 1  ;;  %s718_s24 = sphi %s762_s24, %s17_s24  }
   0x2   : > { %p237_p1 = scmp.lt.s32.totalorder %s718_s24, 3 }
   0x4   : > { %p238_p2 = pnand %p662_p0, %p237_p1 }
   0x5   : > { %p269_p3 = scmp.lt.s32.totalorder (!%p238_p2), %s658_s25, 1 }
   0x6   : > { %241 = sbr.rel (%p238_p2) target bundleno = 468 (0x1d4), region = 48 }
   0xb   : > { %s863_s25 = smov (!%p269_p3, %s658_s25), 1  ;;  %v285_v0 = vld [vmem:[%s855_s1] sm:$0xff]  ;;  %v286_v3 = vld [vmem:[%s855_s1 + $0x8] sm:$0xff]  ;;  %vm291_vm0 = vcmask 261120   ;;  %v287_v9 = vld [vmem:[%s855_s1 + $0x10] sm:$0x3f]  ;;  %v380_v61 = vlaneseq }
   0xc   : > { %s690_s26 = smul.u32 12, %s863_s25  ;;  %vm298_vm1 = vcmask 259072   ;;  %v720_v14 = vmov 32.0   ;;  %v685_v43 = vld [vmem:[%s859_s5 + $0x8] sm:$0xff]   ;;  %v678_v44 = vld [vmem:[%s859_s5] sm:$0xff]   ;;  %vm415_vm14 = vcmask 1046528  }
   0xd   : > { %704 = vrcp.f32 %v720_v14  ;;  %v684_v46 = vunpack.c.h.bf16 %v685_v43  ;;  %v683_v47 = vunpack.c.l.bf16 %v685_v43  ;;  %v680_v49 = vunpack.c.h.bf16 %v678_v44  ;;  %v701_v63 = vld [vmem:[%s856_s2] ss:$0 sm:$0xff]  ;;  %s672_s27 = sshll.u32 %s863_s25, 3 }
   0xe   : > { %s273_s29 = scalar_lea.vmem %s854_s0, %s690_s26  ;;  %v679_v52 = vunpack.c.l.bf16 %v678_v44  ;;  %vm432_vm15 = vcmask 1045504   ;;  %s278_s30 = scalar_lea.vmem %s861_s7, %s672_s27 }
   0xf   : > { %v674_v1 = vld [vmem:[%s273_s29] sm:$0xff]   ;;  %v281_v2 = vld [vmem:[%s273_s29 + $0x8] sm:$0x7]  ;;  %540 = vmatpush.msra.mxu0 %v684_v46  ;;  %686 = vmatpush.msra.mxu1 %v684_v46 }
  0x10   : > { %v675_v4 = vunpack.c.l.bf16 %v674_v1  ;;  %v676_v5 = vunpack.c.h.bf16 %v674_v1  ;;  %v284_v7 = vunpack.c.l.bf16 %v281_v2 }
  0x11   : > { %541 = vmatpush.msra.mxu0 %v683_v47  ;;  %687 = vmatpush.msra.mxu1 %v683_v47 }
  0x12   : > { %v782_v6 = vadd.f32 %v675_v4, %v285_v0  ;;  %v784_v8 = vadd.f32 %v676_v5, %v286_v3  ;;  %v793_v12 = vadd.f32 %v287_v9, %v284_v7  ;;  %v381_v3 = vshrl.u32 %v380_v61, 7  ;;  %v702_v7 = vld [vmem:[%s857_s3] ss:$0 sm:$0xff] }
  0x13   : > { %v705_v15 = vpop.eup %704  ;;  %542 = vmatpush.msra.mxu0 %v680_v49  ;;  %688 = vmatpush.msra.mxu1 %v680_v49 }
  0x14   : > { %v292_v10 = vsel %vm291_vm0, %v782_v6, 0.0  ;;  %v295_v11 = vsel %vm291_vm0, %v784_v8, 0.0  ;;  %v299_v13 = vsel %vm298_vm1, %v793_v12, 0.0  ;;  %v303_v16 = vmul.f32 32.0, %v705_v15 }
  0x15   : > { %293 = vadd.xlane.f32.xlu0 %v292_v10  ;;  %296 = vadd.xlane.f32.xlu1 %v295_v11  ;;  %vm307_vm2 = vweird.f32 %v705_v15  ;;  %v383_v10 = vadd.s32 16, %v381_v3  ;;  %vm384_vm9 = vcmp.ge.s32.totalorder %v381_v3, 3 }
  0x16   : > { %v304_v17 = vsub.f32 1.0, %v303_v16  ;;  %543 = vmatpush.msra.mxu0 %v679_v52  ;;  %689 = vmatpush.msra.mxu1 %v679_v52 }
  0x17   : > { %vm389_vm10 = vcmp.lt.s32.totalorder %v383_v10, 19 }
  0x18   : > { %v305_v18 = vmul.f32 %v705_v15, %v304_v17 }
  0x1a   : > { %v306_v19 = vadd.f32 %v705_v15, %v305_v18 }
  0x1c   : > { %v308_v20 = vsel %vm307_vm2, %v705_v15, %v306_v19  ;;  %v721_v19 = vmov 0.0   ;;  %vm466_vm2 = vcmask 1043456  }
  0x1d   : > { %300 = vadd.xlane.f32.xlu0 %v299_v13 }
  0x88   : > { %v294_v21 = vpop.xlane.xlu0 %293  ;;  %v297_v25 = vpop.xlane.xlu1 %296 }
  0x89   : > { %v309_v22 = vmul.f32 %v308_v20, %v294_v21  ;;  %v310_v29 = vmul.f32 %v308_v20, %v297_v25  ;;  %v402_v21 = vld [vmem:[%s858_s4] sm:$0x7f] }
  0x8b   : > { %v312_v23 = vsub.f32 %v782_v6, %v309_v22  ;;  %v803_v31 = vsub.f32 %v784_v8, %v310_v29  ;;  %v425_v29 = vperm.slane %v402_v21, 2 }
  0x8d   : > { %v315_v24 = vmul.f32 %v312_v23, %v312_v23  ;;  %v316_v34 = vmul.f32 %v803_v31, %v803_v31 }
  0x8f   : > { %v318_v26 = vsel %vm291_vm0, %v315_v24, 0.0  ;;  %v321_v35 = vsel %vm291_vm0, %v316_v34, 0.0  ;;  %v667_v24 = vsel %vm389_vm10, 1.0, %v721_v19  ;;  %v403_v34 = vperm.slane %v402_v21, 0 }
  0x90   : > { %319 = vadd.xlane.f32.xlu1 %v318_v26  ;;  %v301_v27 = vpop.xlane.xlu0 %300 }
  0x91   : > { %v311_v28 = vmul.f32 %v308_v20, %v301_v27  ;;  %v408_v27 = vperm.slane %v402_v21, 1 }
  0x93   : > { %v800_v30 = vsub.f32 %v793_v12, %v311_v28 }
  0x95   : > { %v317_v32 = vmul.f32 %v800_v30, %v800_v30 }
  0x97   : > { %v324_v33 = vsel %vm298_vm1, %v317_v32, 0.0  ;;  %v442_v32 = vperm.slane %v402_v21, 3  ;;  %vm449_vm1 = vcmask 1044480  }
  0x98   : > { %325 = vadd.xlane.f32.xlu2 %v324_v33 }
  0xa0   : > { %322 = vadd.xlane.f32.xlu2 %v321_v35 }
 0x103   : > { %v320_v36 = vpop.xlane.xlu1 %319 }
 0x104   : > { %v327_v37 = vmul.f32 %v320_v36, %v308_v20  ;;  %v459_v36 = vperm.slane %v402_v21, 4 }
 0x106   : > { %v330_v38 = vadd.f32 1e-05, %v327_v37  ;;  %v476_v37 = vperm.slane %v402_v21, 5 }
 0x108   : > { %706 = vrsqrt.f32 %v330_v38  ;;  %vm339_vm4 = vweird.f32 %v330_v38 }
 0x10b   : > { %v326_v39 = vpop.xlane.xlu2 %325 }
 0x10c   : > { %v329_v40 = vmul.f32 %v326_v39, %v308_v20 }
 0x10e   : > { %v707_v41 = vpop.eup %706  ;;  %v332_v42 = vadd.f32 1e-05, %v329_v40 }
 0x10f   : > { %v334_v45 = vmul.f32 %v707_v41, %v330_v38  ;;  %vm340_vm3 = vweird.f32 %v707_v41  ;;  %v493_v38 = vperm.slane %v402_v21, 6 }
 0x110   : > { %708 = vrsqrt.f32 %v332_v42  ;;  %vm341_vm5 = vmor %vm339_vm4, %vm340_vm3  ;;  %vm359_vm7 = vweird.f32 %v332_v42  ;;  %vm483_vm3 = vcmask 1042432   ;;  %vm500_vm4 = vcmask 1041408  }
 0x111   : > { %v335_v48 = vmul.f32 %v707_v41, %v334_v45 }
 0x113   : > { %v336_v50 = vmul.f32 0.5, %v335_v48  ;;  %v323_v51 = vpop.xlane.xlu2 %322 }
 0x114   : > { %v328_v53 = vmul.f32 %v323_v51, %v308_v20  ;;  %v666_v20 = vsel %vm384_vm9, 1.0, %v721_v19 }
 0x115   : > { %v337_v54 = vsub.f32 1.5, %v336_v50 }
 0x116   : > { %v709_v55 = vpop.eup %708  ;;  %v331_v56 = vadd.f32 1e-05, %v328_v53 }
 0x117   : > { %v338_v57 = vmul.f32 %v707_v41, %v337_v54  ;;  %v354_v58 = vmul.f32 %v709_v55, %v332_v42  ;;  %vm360_vm6 = vweird.f32 %v709_v55 }
 0x118   : > { %710 = vrsqrt.f32 %v331_v56  ;;  %vm361_vm8 = vmor %vm359_vm7, %vm360_vm6  ;;  %vm349_vm12 = vweird.f32 %v331_v56  ;;  %vm600_vm7 = vcmask 257024  }
 0x119   : > { %v355_v59 = vmul.f32 %v709_v55, %v354_v58  ;;  %v342_v60 = vsel %vm341_vm5, %v707_v41, %v338_v57  ;;  %vm568_vm5 = vsmask.f32 6416 }
 0x11a   : > { %v363_v0 = vmul.f32 %v342_v60, %v312_v23 }
 0x11b   : > { %v356_v62 = vmul.f32 0.5, %v355_v59 }
 0x11c   : > { %v370_v9 = vmul.f32 %v701_v63, %v363_v0 }
 0x11d   : > { %v357_v1 = vsub.f32 1.5, %v356_v62 }
 0x11e   : > { %v711_v2 = vpop.eup %710  ;;  %v377_v17 = vadd.f32 %v702_v7, %v370_v9 }
 0x11f   : > { %v358_v4 = vmul.f32 %v709_v55, %v357_v1  ;;  %v344_v5 = vmul.f32 %v711_v2, %v331_v56  ;;  %vm350_vm11 = vweird.f32 %v711_v2 }
 0x120   : > { %vm351_vm13 = vmor %vm349_vm12, %vm350_vm11  ;;  %v399_v25 = vmul.f32 %v666_v20, %v377_v17 }
 0x121   : > { %v362_v11 = vsel %vm361_vm8, %v709_v55, %v358_v4  ;;  %v345_v13 = vmul.f32 %v711_v2, %v344_v5 }
 0x122   : > { %v365_v14 = vmul.f32 %v362_v11, %v800_v30  ;;  %v409_v35 = vmul.f32 %v408_v27, %v399_v25  ;;  %v426_v40 = vmul.f32 %v425_v29, %v399_v25  ;;  %v443_v41 = vmul.f32 %v442_v32, %v399_v25 }
 0x123   : > { %v346_v15 = vmul.f32 0.5, %v345_v13  ;;  %v404_v43 = vmul.f32 %v403_v34, %v399_v25  ;;  %v460_v47 = vmul.f32 %v459_v36, %v399_v25  ;;  %v477_v48 = vmul.f32 %v476_v37, %v399_v25 }
 0x124   : > { %v372_v16 = vmul.f32 %v701_v63, %v365_v14  ;;  %v416_v46 = vrot.slane %v409_v35, 1  ;;  %v433_v51 = vrot.slane %v426_v40, 2  ;;  %v450_v54 = vrot.slane %v443_v41, 3  ;;  %v703_v40 = vld [vmem:[%s860_s6] ss:$0 sm:$0xff] }
 0x125   : > { %v347_v18 = vsub.f32 1.5, %v346_v15  ;;  %v494_v55 = vmul.f32 %v493_v38, %v399_v25  ;;  %v467_v14 = vrot.slane %v460_v47, 4 }
 0x126   : > { %v379_v22 = vadd.f32 %v702_v7, %v372_v16 }
 0x127   : > { %v348_v23 = vmul.f32 %v711_v2, %v347_v18 }
 0x128   : > { %v401_v30 = vmul.f32 %v667_v24, %v379_v22  ;;  %v484_v22 = vrot.slane %v477_v48, 5 }
 0x129   : > { %v352_v26 = vsel %vm351_vm13, %v711_v2, %v348_v23 }
 0x12a   : > { %v364_v28 = vmul.f32 %v352_v26, %v803_v31  ;;  %v411_v42 = vmul.f32 %v408_v27, %v401_v30  ;;  %v428_v49 = vmul.f32 %v425_v29, %v401_v30  ;;  %v445_v57 = vmul.f32 %v442_v32, %v401_v30 }
 0x12b   : > { %v462_v1 = vmul.f32 %v459_v36, %v401_v30  ;;  %v479_v11 = vmul.f32 %v476_v37, %v401_v30  ;;  %v496_v20 = vmul.f32 %v493_v38, %v401_v30 }
 0x12c   : > { %v371_v33 = vmul.f32 %v701_v63, %v364_v28  ;;  %v419_v56 = vrot.slane %v411_v42, 1  ;;  %v436_v0 = vrot.slane %v428_v49, 2  ;;  %v453_v10 = vrot.slane %v445_v57, 3 }
 0x12d   : > { %v470_v19 = vrot.slane %v462_v1, 4  ;;  %v504_v35 = vrot.slane %v496_v20, 6 }
 0x12e   : > { %v378_v39 = vadd.f32 %v702_v7, %v371_v33 }
 0x130   : > { %v410_v44 = vmul.f32 %v408_v27, %v378_v39  ;;  %v427_v31 = vmul.f32 %v425_v29, %v378_v39  ;;  %v444_v45 = vmul.f32 %v442_v32, %v378_v39  ;;  %v461_v53 = vmul.f32 %v459_v36, %v378_v39 }
 0x131   : > { %v478_v60 = vmul.f32 %v476_v37, %v378_v39  ;;  %v405_v61 = vmul.f32 %v403_v34, %v378_v39  ;;  %v495_v4 = vmul.f32 %v493_v38, %v378_v39  ;;  %v487_v27 = vrot.slane %v479_v11, 5 }
 0x132   : > { %v417_v50 = vrot.slane %v410_v44, 1  ;;  %v434_v52 = vrot.slane %v427_v31, 2  ;;  %v451_v59 = vrot.slane %v444_v45, 3  ;;  %v468_v3 = vrot.slane %v461_v53, 4 }
 0x133   : > { %v485_v15 = vrot.slane %v478_v60, 5  ;;  %v502_v23 = vrot.slane %v495_v4, 6  ;;  %v501_v29 = vrot.slane %v494_v55, 6 }
 0x134   : > { %v418_v58 = vsel %vm415_vm14, %v416_v46, %v417_v50  ;;  %v420_v63 = vsel %vm415_vm14, %v417_v50, %v419_v56  ;;  %v435_v2 = vsel %vm432_vm15, %v433_v51, %v434_v52  ;;  %v437_v9 = vsel %vm432_vm15, %v434_v52, %v436_v0 }
 0x135   : > { %v423_v62 = vadd.f32 %v418_v58, %v404_v43  ;;  %v424_v5 = vadd.f32 %v420_v63, %v405_v61  ;;  %v452_v13 = vsel %vm449_vm1, %v450_v54, %v451_v59  ;;  %v454_v18 = vsel %vm449_vm1, %v451_v59, %v453_v10 }
 0x136   : > { %v469_v21 = vsel %vm466_vm2, %v467_v14, %v468_v3  ;;  %v471_v26 = vsel %vm466_vm2, %v468_v3, %v470_v19  ;;  %v486_v28 = vsel %vm483_vm3, %v484_v22, %v485_v15  ;;  %v488_v34 = vsel %vm483_vm3, %v485_v15, %v487_v27 }
 0x137   : > { %v440_v7 = vadd.f32 %v435_v2, %v423_v62  ;;  %v441_v16 = vadd.f32 %v437_v9, %v424_v5  ;;  %v503_v36 = vsel %vm500_vm4, %v501_v29, %v502_v23  ;;  %v505_v38 = vsel %vm500_vm4, %v502_v23, %v504_v35 }
 0x139   : > { %v457_v17 = vadd.f32 %v452_v13, %v440_v7  ;;  %v458_v24 = vadd.f32 %v454_v18, %v441_v16 }
 0x13b   : > { %v474_v25 = vadd.f32 %v469_v21, %v457_v17  ;;  %v475_v32 = vadd.f32 %v471_v26, %v458_v24 }
 0x13d   : > { %v491_v33 = vadd.f32 %v486_v28, %v474_v25  ;;  %v492_v30 = vadd.f32 %v488_v34, %v475_v32 }
 0x13f   : > { %v508_v37 = vadd.f32 %v503_v36, %v491_v33  ;;  %v509_v39 = vadd.f32 %v505_v38, %v492_v30 }
 0x141   : > { %668 = vmatmul.msk.f32.vlgmr.msra.gmra.mxu0 %vm291_vm0, %v508_v37  ;;  %669 = vmatmul.msk.f32.vlgmr.msra.gmra.mxu1 %vm291_vm0, %v509_v39  ;;  %vm567_vm0 = vsmask.f32 2304 }
 0x142   : > { %vm569_vm6 = vmor %vm567_vm0, %vm568_vm5 }
 0x1be   : > { %v545_v41 = vpop.f32.mrf.mxu0  ;;  %v548_v43 = vpop.f32.mrf.mxu1 }
 0x1bf   : > { %v546_v42 = vadd.f32 %v703_v40, %v545_v41  ;;  %v549_v44 = vadd.f32 %v703_v40, %v548_v43 }
 0x1c1   : > { %v551_v31 = vmax.f32 %v546_v42, 0.0  ;;  %v552_v45 = vmax.f32 %v549_v44, 0.0 }
 0x1c3   : > { %v555_v46 = vrot.slane %v551_v31, 5  ;;  %v556_v47 = vrot.slane %v552_v45, 5 }
 0x1c5   : > { %v561_v48 = vadd.f32 %v555_v46, %v782_v6  ;;  %v557_v49 = vsel %vm483_vm3, %v555_v46, %v556_v47  ;;  %v563_v50 = vadd.f32 %v556_v47, %v793_v12 }
 0x1c6   : > { %v562_v52 = vadd.f32 %v557_v49, %v784_v8 }
 0x1c7   : > { %v564_v51 = vpack.c.bf16 %v561_v48, %v561_v48  ;;  %v566_v53 = vpack.c.bf16 %v563_v50, %v563_v50 }
 0x1c8   : > { %v565_v56 = vpack.c.bf16 %v562_v52, %v562_v52 }
 0x1c9   : > { %v571_v54 = vshrl.u32 %v564_v51, 16  ;;  %v574_v55 = vshll.u32 %v564_v51, 16  ;;  %v590_v57 = vshrl.u32 %v566_v53, 16  ;;  %v593_v58 = vshll.u32 %v566_v53, 16 }
 0x1ca   : > { %v580_v61 = vshrl.u32 %v565_v56, 16  ;;  %v583_v6 = vshll.u32 %v565_v56, 16 }
 0x1cb   : > { %v573_v59 = vrot.slane %v571_v54, 5  ;;  %v576_v60 = vrot.slane %v574_v55, 6  ;;  %v592_v62 = vrot.slane %v590_v57, 5  ;;  %v595_v1 = vrot.slane %v593_v58, 6 }
 0x1cc   : > { %v582_v0 = vrot.slane %v580_v61, 5  ;;  %v585_v12 = vrot.slane %v583_v6, 6 }
 0x1cd   : > { %v577_v63 = vor.u32 %v576_v60, %v573_v59  ;;  %v596_v5 = vor.u32 %v595_v1, %v592_v62 }
 0x1ce   : > { %v586_v2 = vor.u32 %v585_v12, %v582_v0 }
 0x1cf   : > { %v578_v8 = vrot.slane %v577_v63, 4 }
 0x1d0   : > { %v588_v4 = vrot.slane %v586_v2, 4 }
 0x1d1   : > { %v587_v3 = vsel %vm569_vm6, %v578_v8, %v586_v2 }
 0x1d2   : > { %601 = vst.msk [vmem:[%s278_s30] sm:$0xf] %vm600_vm7, %v587_v3  ;;  %v597_v7 = vsel %vm569_vm6, %v588_v4, %v596_v5 }
 0x1d3   : > { %602 = vst.msk [vmem:[%s278_s30 + $0x4] sm:$0xf] %vm600_vm7, %v597_v7 }
 0x1d4 PF: > { %s17_s24 = sadd.s32 1, %s718_s24  }
 0x1d5   : > { %p14_p4 = scmp.ge.s32.totalorder %s17_s24, 4  }
 0x1d7   :  { %16 = sbr.rel (!%p14_p4) target bundleno = 1 (0x1), region = 78 }

// kernel: qanet_forward.64
= control target key start
LH: loop header
LB: loop body
LE: loop exit
PB: predicated region body
PF: predicated region fallthrough
CT: control target
= control target key end

     0   :  { %vm28_vm0 = vcmask 261120   ;;  %v254_v10 = vmov 32.0   ;;  %vm197_vm14 = vcmask 781312   ;;  %s350_s0 = inlined_call_operand.vmem [shape: bf16[32,32], index: 0, kind: input, shape index: {}]   ;;  %s351_s1 = inlined_call_operand.vmem [shape: f32[1,32], index: 1, kind: input, shape index: {}]   ;;  %s352_s2 = inlined_call_operand.vmem [shape: f32[1,32], index: 2, kind: input, shape index: {}]   ;;  %s353_s4 = inlined_call_operand.vmem [shape: f32[1,96], index: 4, kind: input, shape index: {}]   ;;  %s354_s3 = inlined_call_operand.vmem [shape: bf16[32,96], index: 3, kind: input, shape index: {}]   ;;  %s355_s5 = inlined_call_operand.vmem [shape: bf16[32,96], index: 5, kind: output, shape index: {}]  }
   0x1   :  { %v226_v0 = vld [vmem:[%s350_s0 + $0x8] sm:$0xff]   ;;  %v211_v1 = vld [vmem:[%s350_s0] sm:$0xff]   ;;  %244 = vrcp.f32 %v254_v10 }
   0x2   :  { %v216_v2 = vunpack.c.l.bf16 %v226_v0  ;;  %v212_v3 = vunpack.c.l.bf16 %v211_v1  ;;  %v217_v6 = vunpack.c.h.bf16 %v226_v0  ;;  %v213_v7 = vunpack.c.h.bf16 %v211_v1  ;;  %v227_v37 = vld [vmem:[%s354_s3 + $0x8] sm:$0xff]   ;;  %v219_v40 = vld [vmem:[%s354_s3] sm:$0xff]  }
   0x3   :  { %v225_v38 = vunpack.c.h.bf16 %v227_v37  ;;  %v224_v39 = vunpack.c.l.bf16 %v227_v37  ;;  %v221_v41 = vunpack.c.h.bf16 %v219_v40  ;;  %v220_v42 = vunpack.c.l.bf16 %v219_v40 }
   0x4   :  { %v35_v4 = vsel %vm28_vm0, %v216_v2, 0.0  ;;  %v29_v5 = vsel %vm28_vm0, %v212_v3, 0.0  ;;  %v38_v8 = vsel %vm28_vm0, %v217_v6, 0.0  ;;  %v32_v9 = vsel %vm28_vm0, %v213_v7, 0.0 }
   0x5   :  { %36 = vadd.xlane.f32.xlu0 %v35_v4  ;;  %30 = vadd.xlane.f32.xlu1 %v29_v5 }
   0x6   :  { %176 = vmatpush.msra.mxu0 %v225_v38  ;;  %229 = vmatpush.msra.mxu2 %v225_v38 }
   0x7   :  { %v245_v11 = vpop.eup %244  ;;  %228 = vmatpush.msra.mxu1 %v225_v38  ;;  %230 = vmatpush.msra.mxu3 %v225_v38 }
   0x8   :  { %v42_v12 = vmul.f32 32.0, %v245_v11  ;;  %vm46_vm1 = vweird.f32 %v245_v11  ;;  %177 = vmatpush.msra.mxu0 %v224_v39  ;;  %232 = vmatpush.msra.mxu2 %v224_v39 }
   0x9   :  { %231 = vmatpush.msra.mxu1 %v224_v39  ;;  %233 = vmatpush.msra.mxu3 %v224_v39 }
   0xa   :  { %v43_v13 = vsub.f32 1.0, %v42_v12  ;;  %178 = vmatpush.msra.mxu0 %v221_v41  ;;  %235 = vmatpush.msra.mxu2 %v221_v41  ;;  %v242_v12 = vld [vmem:[%s352_s2] ss:$0 sm:$0xff] }
   0xb   :  { %234 = vmatpush.msra.mxu1 %v221_v41  ;;  %236 = vmatpush.msra.mxu3 %v221_v41 }
   0xc   :  { %v44_v14 = vmul.f32 %v245_v11, %v43_v13  ;;  %179 = vmatpush.msra.mxu0 %v220_v42  ;;  %238 = vmatpush.msra.mxu2 %v220_v42 }
   0xd   :  { %39 = vadd.xlane.f32.xlu0 %v38_v8  ;;  %33 = vadd.xlane.f32.xlu1 %v32_v9 }
   0xe   :  { %v45_v15 = vadd.f32 %v245_v11, %v44_v14  ;;  %237 = vmatpush.msra.mxu1 %v220_v42  ;;  %239 = vmatpush.msra.mxu3 %v220_v42 }
  0x10   :  { %v47_v16 = vsel %vm46_vm1, %v245_v11, %v45_v15 }
  0x78   :  { %v37_v17 = vpop.xlane.xlu0 %36  ;;  %v31_v18 = vpop.xlane.xlu1 %30 }
  0x79   :  { %v50_v19 = vmul.f32 %v47_v16, %v37_v17  ;;  %v48_v20 = vmul.f32 %v47_v16, %v31_v18 }
  0x7b   :  { %v295_v21 = vsub.f32 %v216_v2, %v50_v19  ;;  %v297_v22 = vsub.f32 %v212_v3, %v48_v20 }
  0x7d   :  { %v58_v23 = vmul.f32 %v295_v21, %v295_v21  ;;  %v56_v24 = vmul.f32 %v297_v22, %v297_v22 }
  0x7f   :  { %v66_v25 = vsel %vm28_vm0, %v58_v23, 0.0  ;;  %v60_v26 = vsel %vm28_vm0, %v56_v24, 0.0 }
  0x80   :  { %67 = vadd.xlane.f32.xlu2 %v66_v25  ;;  %v40_v27 = vpop.xlane.xlu0 %39  ;;  %61 = vadd.xlane.f32.xlu0 %v60_v26  ;;  %v34_v28 = vpop.xlane.xlu1 %33 }
  0x81   :  { %v51_v29 = vmul.f32 %v47_v16, %v40_v27  ;;  %v49_v30 = vmul.f32 %v47_v16, %v34_v28 }
  0x83   :  { %v305_v31 = vsub.f32 %v217_v6, %v51_v29  ;;  %v307_v32 = vsub.f32 %v213_v7, %v49_v30  ;;  %v241_v7 = vld [vmem:[%s351_s1] ss:$0 sm:$0xff] }
  0x85   :  { %v59_v33 = vmul.f32 %v305_v31, %v305_v31  ;;  %v57_v34 = vmul.f32 %v307_v32, %v307_v32 }
  0x87   :  { %v69_v35 = vsel %vm28_vm0, %v59_v33, 0.0  ;;  %v63_v36 = vsel %vm28_vm0, %v57_v34, 0.0 }
  0x88   :  { %70 = vadd.xlane.f32.xlu2 %v69_v35  ;;  %64 = vadd.xlane.f32.xlu1 %v63_v36  ;;  %v243_v35 = vld [vmem:[%s353_s4] ss:$0 sm:$0xff] }
  0xf3   :  { %v68_v43 = vpop.xlane.xlu2 %67  ;;  %v62_v44 = vpop.xlane.xlu0 %61 }
  0xf4   :  { %v74_v45 = vmul.f32 %v68_v43, %v47_v16  ;;  %v72_v46 = vmul.f32 %v62_v44, %v47_v16 }
  0xf6   :  { %v78_v47 = vadd.f32 1e-05, %v74_v45  ;;  %v76_v48 = vadd.f32 1e-05, %v72_v46 }
  0xf8   :  { %246 = vrsqrt.f32 %v78_v47  ;;  %vm86_vm3 = vweird.f32 %v76_v48  ;;  %vm106_vm5 = vweird.f32 %v78_v47 }
  0xf9   :  { %248 = vrsqrt.f32 %v76_v48 }
  0xfb   :  { %v71_v49 = vpop.xlane.xlu2 %70  ;;  %v65_v50 = vpop.xlane.xlu1 %64 }
  0xfc   :  { %v75_v51 = vmul.f32 %v71_v49, %v47_v16  ;;  %v73_v52 = vmul.f32 %v65_v50, %v47_v16 }
  0xfe   :  { %v247_v53 = vpop.eup %246  ;;  %v79_v54 = vadd.f32 1e-05, %v75_v51  ;;  %v77_v55 = vadd.f32 1e-05, %v73_v52 }
  0xff   :  { %v249_v56 = vpop.eup %248  ;;  %v101_v57 = vmul.f32 %v247_v53, %v78_v47  ;;  %vm107_vm2 = vweird.f32 %v247_v53 }
 0x100   :  { %v81_v58 = vmul.f32 %v249_v56, %v76_v48  ;;  %250 = vrsqrt.f32 %v79_v54  ;;  %vm87_vm4 = vweird.f32 %v249_v56  ;;  %vm108_vm6 = vmor %vm106_vm5, %vm107_vm2  ;;  %vm96_vm9 = vweird.f32 %v77_v55 }
 0x101   :  { %v102_v59 = vmul.f32 %v247_v53, %v101_v57  ;;  %252 = vrsqrt.f32 %v77_v55  ;;  %vm88_vm7 = vmor %vm86_vm3, %vm87_vm4  ;;  %vm116_vm11 = vweird.f32 %v79_v54 }
 0x102   :  { %v82_v60 = vmul.f32 %v249_v56, %v81_v58 }
 0x103   :  { %v103_v61 = vmul.f32 0.5, %v102_v59 }
 0x104   :  { %v83_v62 = vmul.f32 0.5, %v82_v60 }
 0x105   :  { %v104_v63 = vsub.f32 1.5, %v103_v61 }
 0x106   :  { %v251_v0 = vpop.eup %250  ;;  %v84_v1 = vsub.f32 1.5, %v83_v62 }
 0x107   :  { %v253_v2 = vpop.eup %252  ;;  %v105_v3 = vmul.f32 %v247_v53, %v104_v63  ;;  %v111_v4 = vmul.f32 %v251_v0, %v79_v54  ;;  %vm117_vm8 = vweird.f32 %v251_v0 }
 0x108   :  { %v85_v5 = vmul.f32 %v249_v56, %v84_v1  ;;  %v91_v6 = vmul.f32 %v253_v2, %v77_v55  ;;  %vm97_vm10 = vweird.f32 %v253_v2  ;;  %vm118_vm12 = vmor %vm116_vm11, %vm117_vm8 }
 0x109   :  { %v109_v8 = vsel %vm108_vm6, %v247_v53, %v105_v3  ;;  %v112_v9 = vmul.f32 %v251_v0, %v111_v4  ;;  %vm98_vm13 = vmor %vm96_vm9, %vm97_vm10 }
 0x10a   :  { %v89_v10 = vsel %vm88_vm7, %v249_v56, %v85_v5  ;;  %v92_v11 = vmul.f32 %v253_v2, %v91_v6  ;;  %v122_v13 = vmul.f32 %v109_v8, %v295_v21 }
 0x10b   :  { %v113_v14 = vmul.f32 0.5, %v112_v9  ;;  %v120_v15 = vmul.f32 %v89_v10, %v297_v22 }
 0x10c   :  { %v93_v16 = vmul.f32 0.5, %v92_v11  ;;  %v130_v17 = vmul.f32 %v241_v7, %v122_v13 }
 0x10d   :  { %v114_v18 = vsub.f32 1.5, %v113_v14  ;;  %v128_v19 = vmul.f32 %v241_v7, %v120_v15 }
 0x10e   :  { %v94_v20 = vsub.f32 1.5, %v93_v16  ;;  %v138_v23 = vadd.f32 %v242_v12, %v130_v17 }
 0x10f   :  { %v115_v24 = vmul.f32 %v251_v0, %v114_v18  ;;  %v136_v25 = vadd.f32 %v242_v12, %v128_v19 }
 0x110   :  { %v95_v26 = vmul.f32 %v253_v2, %v94_v20  ;;  %208 = vmatmul.msk.f32.vlgmr.msra.gmra.mxu2 %vm28_vm0, %v138_v23 }
 0x111   :  { %v119_v21 = vsel %vm118_vm12, %v251_v0, %v115_v24  ;;  %206 = vmatmul.msk.f32.vlgmr.msra.gmra.mxu0 %vm28_vm0, %v136_v25 }
 0x112   :  { %v99_v22 = vsel %vm98_vm13, %v253_v2, %v95_v26  ;;  %v123_v27 = vmul.f32 %v119_v21, %v305_v31 }
 0x113   :  { %v121_v28 = vmul.f32 %v99_v22, %v307_v32 }
 0x114   :  { %v131_v29 = vmul.f32 %v241_v7, %v123_v27 }
 0x115   :  { %v129_v30 = vmul.f32 %v241_v7, %v121_v28 }
 0x116   :  { %v139_v33 = vadd.f32 %v242_v12, %v131_v29 }
 0x117   :  { %v137_v34 = vadd.f32 %v242_v12, %v129_v30 }
 0x118   :  { %209 = vmatmul.msk.f32.vlgmr.msra.gmra.mxu3 %vm28_vm0, %v139_v33 }
 0x119   :  { %207 = vmatmul.msk.f32.vlgmr.msra.gmra.mxu1 %vm28_vm0, %v137_v34 }
 0x18e   :  { %v181_v36 = vpop.f32.mrf.mxu0 }
 0x18f   :  { %v182_v37 = vadd.f32 %v243_v35, %v181_v36 }
 0x191   :  { %v193_v38 = vpack.c.bf16 %v182_v37, %v182_v37 }
 0x193   :  { %198 = vst.msk [vmem:[%s355_s5] sm:$0xf] %vm197_vm14, %v193_v38  ;;  %v187_v31 = vpop.f32.mrf.mxu2 }
 0x194   :  { %v188_v32 = vadd.f32 %v243_v35, %v187_v31 }
 0x196   :  { %v195_v39 = vpack.c.bf16 %v188_v32, %v188_v32  ;;  %v184_v40 = vpop.f32.mrf.mxu1 }
 0x197   :  { %v185_v41 = vadd.f32 %v243_v35, %v184_v40 }
 0x198   :  { %200 = vst.msk [vmem:[%s355_s5 + $0x8] sm:$0xf] %vm197_vm14, %v195_v39 }
 0x199   :  { %v194_v42 = vpack.c.bf16 %v185_v41, %v185_v41 }
 0x19b   :  { %199 = vst.msk [vmem:[%s355_s5 + $0x4] sm:$0xf] %vm197_vm14, %v194_v42  ;;  %v190_v43 = vpop.f32.mrf.mxu3 }
 0x19c   :  { %v191_v44 = vadd.f32 %v243_v35, %v190_v43 }
 0x19e   :  { %v196_v45 = vpack.c.bf16 %v191_v44, %v191_v44 }
 0x1a0   :  { %201 = vst.msk [vmem:[%s355_s5 + $0xc] sm:$0xf] %vm197_vm14, %v196_v45 }

// kernel: qanet_forward.63
= control target key start
LH: loop header
LB: loop body
LE: loop exit
PB: predicated region body
PF: predicated region fallthrough
CT: control target
= control target key end

     0   :  { %s724_s21 = smov 0   ;;  %s807_s0 = inlined_call_operand.vmem [shape: bf16[2,22,32], index: 0, kind: input, shape index: {}]   ;;  %s808_s1 = inlined_call_operand.vmem [shape: f32[1,32], index: 1, kind: input, shape index: {}]   ;;  %s809_s2 = inlined_call_operand.vmem [shape: f32[1,32], index: 2, kind: input, shape index: {}]   ;;  %s810_s3 = inlined_call_operand.vmem [shape: f32[7,32], index: 3, kind: input, shape index: {}]   ;;  %s811_s4 = inlined_call_operand.vmem [shape: bf16[32,32], index: 4, kind: input, shape index: {}]   ;;  %s812_s5 = inlined_call_operand.vmem [shape: f32[1,32], index: 5, kind: input, shape index: {}]   ;;  %s813_s6 = inlined_call_operand.vmem [shape: bf16[2,16,32], index: 6, kind: output, shape index: {}]  }
   0x1 LB: > { %s625_s22 = sadd.s32 4294967295, %s685_s21   ;;  %p629_p0 = scmp.ge.s32.totalorder %s685_s21, 1  ;;  %s685_s21 = sphi %s724_s21, %s16_s21  }
   0x2   : > { %p212_p1 = scmp.lt.s32.totalorder %s685_s21, 3 }
   0x4   : > { %p213_p2 = pnand %p629_p0, %p212_p1 }
   0x5   : > { %p242_p3 = scmp.lt.s32.totalorder (!%p213_p2), %s625_s22, 1 }
   0x6   : > { %216 = sbr.rel (%p213_p2) target bundleno = 466 (0x1d2), region = 44 }
   0xb   : > { %s815_s22 = smov (!%p242_p3, %s625_s22), 1  ;;  %vm258_vm0 = vcmask 261120   ;;  %vm265_vm1 = vcmask 259072   ;;  %v687_v8 = vmov 32.0   ;;  %v652_v37 = vld [vmem:[%s811_s4 + $0x8] sm:$0xff]   ;;  %v645_v38 = vld [vmem:[%s811_s4] sm:$0xff]   ;;  %v347_v55 = vlaneseq }
   0xc   : > { %s657_s23 = smul.u32 12, %s815_s22  ;;  %671 = vrcp.f32 %v687_v8  ;;  %v651_v40 = vunpack.c.h.bf16 %v652_v37  ;;  %v650_v41 = vunpack.c.l.bf16 %v652_v37  ;;  %v647_v43 = vunpack.c.h.bf16 %v645_v38  ;;  %v668_v57 = vld [vmem:[%s808_s1] ss:$0 sm:$0xff]  ;;  %s639_s15 = sshll.u32 %s815_s22, 3 }
   0xd   : > { %v646_v46 = vunpack.c.l.bf16 %v645_v38  ;;  %v348_v61 = vshrl.u32 %v347_v55, 7  ;;  %vm382_vm14 = vcmask 1046528   ;;  %vm399_vm15 = vcmask 1045504   ;;  %s251_s18 = scalar_lea.vmem %s813_s6, %s639_s15 }
   0xe   : > { %s246_s26 = scalar_lea.vmem %s807_s0, %s657_s23  ;;  %507 = vmatpush.msra.mxu0 %v651_v40  ;;  %653 = vmatpush.msra.mxu1 %v651_v40 }
   0xf   : > { %v641_v0 = vld [vmem:[%s246_s26] sm:$0xff]   ;;  %v254_v3 = vld [vmem:[%s246_s26 + $0x8] sm:$0x7]  ;;  %vm351_vm9 = vcmp.ge.s32.totalorder %v348_v61, 3 }
  0x10   : > { %v738_v1 = vunpack.c.l.bf16 %v641_v0  ;;  %v740_v2 = vunpack.c.h.bf16 %v641_v0  ;;  %v746_v6 = vunpack.c.l.bf16 %v254_v3  ;;  %508 = vmatpush.msra.mxu0 %v650_v41  ;;  %654 = vmatpush.msra.mxu1 %v650_v41  ;;  %v669_v0 = vld [vmem:[%s809_s2] ss:$0 sm:$0xff] }
  0x12   : > { %v259_v4 = vsel %vm258_vm0, %v738_v1, 0.0  ;;  %v262_v5 = vsel %vm258_vm0, %v740_v2, 0.0  ;;  %v266_v7 = vsel %vm265_vm1, %v746_v6, 0.0  ;;  %v672_v9 = vpop.eup %671  ;;  %509 = vmatpush.msra.mxu0 %v647_v43  ;;  %655 = vmatpush.msra.mxu1 %v647_v43 }
  0x13   : > { %260 = vadd.xlane.f32.xlu0 %v259_v4  ;;  %263 = vadd.xlane.f32.xlu1 %v262_v5  ;;  %v270_v10 = vmul.f32 32.0, %v672_v9  ;;  %vm274_vm2 = vweird.f32 %v672_v9  ;;  %v350_v4 = vadd.s32 16, %v348_v61 }
  0x14   : > { %510 = vmatpush.msra.mxu0 %v646_v46  ;;  %656 = vmatpush.msra.mxu1 %v646_v46 }
  0x15   : > { %v271_v11 = vsub.f32 1.0, %v270_v10  ;;  %vm356_vm10 = vcmp.lt.s32.totalorder %v350_v4, 19 }
  0x17   : > { %v272_v12 = vmul.f32 %v672_v9, %v271_v11 }
  0x19   : > { %v273_v13 = vadd.f32 %v672_v9, %v272_v12 }
  0x1b   : > { %267 = vadd.xlane.f32.xlu0 %v266_v7  ;;  %v275_v14 = vsel %vm274_vm2, %v672_v9, %v273_v13  ;;  %v688_v13 = vmov 0.0   ;;  %vm433_vm2 = vcmask 1043456  }
  0x86   : > { %v261_v15 = vpop.xlane.xlu0 %260  ;;  %v264_v19 = vpop.xlane.xlu1 %263 }
  0x87   : > { %v276_v16 = vmul.f32 %v275_v14, %v261_v15  ;;  %v277_v23 = vmul.f32 %v275_v14, %v264_v19  ;;  %v369_v15 = vld [vmem:[%s810_s3] sm:$0x7f] }
  0x89   : > { %v279_v17 = vsub.f32 %v738_v1, %v276_v16  ;;  %v756_v25 = vsub.f32 %v740_v2, %v277_v23  ;;  %v392_v23 = vperm.slane %v369_v15, 2 }
  0x8b   : > { %v282_v18 = vmul.f32 %v279_v17, %v279_v17  ;;  %v283_v28 = vmul.f32 %v756_v25, %v756_v25 }
  0x8d   : > { %v285_v20 = vsel %vm258_vm0, %v282_v18, 0.0  ;;  %v288_v29 = vsel %vm258_vm0, %v283_v28, 0.0  ;;  %v634_v18 = vsel %vm356_vm10, 1.0, %v688_v13  ;;  %v370_v28 = vperm.slane %v369_v15, 0 }
  0x8e   : > { %286 = vadd.xlane.f32.xlu1 %v285_v20  ;;  %v268_v21 = vpop.xlane.xlu0 %267 }
  0x8f   : > { %v278_v22 = vmul.f32 %v275_v14, %v268_v21  ;;  %v375_v21 = vperm.slane %v369_v15, 1 }
  0x91   : > { %v753_v24 = vsub.f32 %v746_v6, %v278_v22 }
  0x93   : > { %v284_v26 = vmul.f32 %v753_v24, %v753_v24 }
  0x95   : > { %v291_v27 = vsel %vm265_vm1, %v284_v26, 0.0  ;;  %v409_v26 = vperm.slane %v369_v15, 3  ;;  %vm416_vm1 = vcmask 1044480  }
  0x96   : > { %292 = vadd.xlane.f32.xlu2 %v291_v27 }
  0x9e   : > { %289 = vadd.xlane.f32.xlu2 %v288_v29 }
 0x101   : > { %v287_v30 = vpop.xlane.xlu1 %286 }
 0x102   : > { %v294_v31 = vmul.f32 %v287_v30, %v275_v14  ;;  %v426_v30 = vperm.slane %v369_v15, 4 }
 0x104   : > { %v297_v32 = vadd.f32 1e-05, %v294_v31  ;;  %v443_v31 = vperm.slane %v369_v15, 5 }
 0x106   : > { %673 = vrsqrt.f32 %v297_v32  ;;  %vm306_vm4 = vweird.f32 %v297_v32 }
 0x109   : > { %v293_v33 = vpop.xlane.xlu2 %292 }
 0x10a   : > { %v296_v34 = vmul.f32 %v293_v33, %v275_v14 }
 0x10c   : > { %v674_v35 = vpop.eup %673  ;;  %v299_v36 = vadd.f32 1e-05, %v296_v34 }
 0x10d   : > { %v301_v39 = vmul.f32 %v674_v35, %v297_v32  ;;  %vm307_vm3 = vweird.f32 %v674_v35  ;;  %v460_v32 = vperm.slane %v369_v15, 6 }
 0x10e   : > { %675 = vrsqrt.f32 %v299_v36  ;;  %vm308_vm5 = vmor %vm306_vm4, %vm307_vm3  ;;  %vm326_vm7 = vweird.f32 %v299_v36  ;;  %vm450_vm3 = vcmask 1042432   ;;  %vm467_vm4 = vcmask 1041408  }
 0x10f   : > { %v302_v42 = vmul.f32 %v674_v35, %v301_v39 }
 0x111   : > { %v303_v44 = vmul.f32 0.5, %v302_v42  ;;  %v290_v45 = vpop.xlane.xlu2 %289 }
 0x112   : > { %v295_v47 = vmul.f32 %v290_v45, %v275_v14  ;;  %v633_v14 = vsel %vm351_vm9, 1.0, %v688_v13 }
 0x113   : > { %v304_v48 = vsub.f32 1.5, %v303_v44 }
 0x114   : > { %v676_v49 = vpop.eup %675  ;;  %v298_v50 = vadd.f32 1e-05, %v295_v47 }
 0x115   : > { %v305_v51 = vmul.f32 %v674_v35, %v304_v48  ;;  %v321_v52 = vmul.f32 %v676_v49, %v299_v36  ;;  %vm327_vm6 = vweird.f32 %v676_v49 }
 0x116   : > { %677 = vrsqrt.f32 %v298_v50  ;;  %vm328_vm8 = vmor %vm326_vm7, %vm327_vm6  ;;  %vm316_vm12 = vweird.f32 %v298_v50  ;;  %vm567_vm7 = vcmask 257024  }
 0x117   : > { %v322_v53 = vmul.f32 %v676_v49, %v321_v52  ;;  %v309_v54 = vsel %vm308_vm5, %v674_v35, %v305_v51  ;;  %vm535_vm5 = vsmask.f32 6416 }
 0x118   : > { %v330_v58 = vmul.f32 %v309_v54, %v279_v17 }
 0x119   : > { %v323_v56 = vmul.f32 0.5, %v322_v53 }
 0x11a   : > { %v337_v3 = vmul.f32 %v668_v57, %v330_v58 }
 0x11b   : > { %v324_v59 = vsub.f32 1.5, %v323_v56 }
 0x11c   : > { %v678_v60 = vpop.eup %677  ;;  %v344_v11 = vadd.f32 %v669_v0, %v337_v3 }
 0x11d   : > { %v325_v62 = vmul.f32 %v676_v49, %v324_v59  ;;  %v311_v63 = vmul.f32 %v678_v60, %v298_v50  ;;  %vm317_vm11 = vweird.f32 %v678_v60 }
 0x11e   : > { %vm318_vm13 = vmor %vm316_vm12, %vm317_vm11  ;;  %v366_v19 = vmul.f32 %v633_v14, %v344_v11 }
 0x11f   : > { %v329_v5 = vsel %vm328_vm8, %v676_v49, %v325_v62  ;;  %v312_v7 = vmul.f32 %v678_v60, %v311_v63 }
 0x120   : > { %v332_v8 = vmul.f32 %v329_v5, %v753_v24  ;;  %v376_v29 = vmul.f32 %v375_v21, %v366_v19  ;;  %v393_v34 = vmul.f32 %v392_v23, %v366_v19  ;;  %v410_v35 = vmul.f32 %v409_v26, %v366_v19 }
 0x121   : > { %v313_v9 = vmul.f32 0.5, %v312_v7  ;;  %v371_v37 = vmul.f32 %v370_v28, %v366_v19  ;;  %v427_v41 = vmul.f32 %v426_v30, %v366_v19  ;;  %v444_v42 = vmul.f32 %v443_v31, %v366_v19 }
 0x122   : > { %v339_v10 = vmul.f32 %v668_v57, %v332_v8  ;;  %v383_v40 = vrot.slane %v376_v29, 1  ;;  %v400_v45 = vrot.slane %v393_v34, 2  ;;  %v417_v48 = vrot.slane %v410_v35, 3  ;;  %v670_v34 = vld [vmem:[%s812_s5] ss:$0 sm:$0xff] }
 0x123   : > { %v314_v12 = vsub.f32 1.5, %v313_v9  ;;  %v461_v49 = vmul.f32 %v460_v32, %v366_v19  ;;  %v434_v8 = vrot.slane %v427_v41, 4 }
 0x124   : > { %v346_v16 = vadd.f32 %v669_v0, %v339_v10 }
 0x125   : > { %v315_v17 = vmul.f32 %v678_v60, %v314_v12 }
 0x126   : > { %v368_v24 = vmul.f32 %v634_v18, %v346_v16  ;;  %v451_v16 = vrot.slane %v444_v42, 5 }
 0x127   : > { %v319_v20 = vsel %vm318_vm13, %v678_v60, %v315_v17 }
 0x128   : > { %v331_v22 = vmul.f32 %v319_v20, %v756_v25  ;;  %v378_v36 = vmul.f32 %v375_v21, %v368_v24  ;;  %v395_v43 = vmul.f32 %v392_v23, %v368_v24  ;;  %v412_v51 = vmul.f32 %v409_v26, %v368_v24 }
 0x129   : > { %v429_v59 = vmul.f32 %v426_v30, %v368_v24  ;;  %v446_v5 = vmul.f32 %v443_v31, %v368_v24  ;;  %v463_v14 = vmul.f32 %v460_v32, %v368_v24 }
 0x12a   : > { %v338_v27 = vmul.f32 %v668_v57, %v331_v22  ;;  %v386_v50 = vrot.slane %v378_v36, 1  ;;  %v403_v58 = vrot.slane %v395_v43, 2  ;;  %v420_v4 = vrot.slane %v412_v51, 3 }
 0x12b   : > { %v437_v13 = vrot.slane %v429_v59, 4  ;;  %v471_v29 = vrot.slane %v463_v14, 6 }
 0x12c   : > { %v345_v33 = vadd.f32 %v669_v0, %v338_v27 }
 0x12e   : > { %v377_v38 = vmul.f32 %v375_v21, %v345_v33  ;;  %v394_v25 = vmul.f32 %v392_v23, %v345_v33  ;;  %v411_v39 = vmul.f32 %v409_v26, %v345_v33  ;;  %v428_v47 = vmul.f32 %v426_v30, %v345_v33 }
 0x12f   : > { %v445_v54 = vmul.f32 %v443_v31, %v345_v33  ;;  %v372_v55 = vmul.f32 %v370_v28, %v345_v33  ;;  %v462_v62 = vmul.f32 %v460_v32, %v345_v33  ;;  %v454_v21 = vrot.slane %v446_v5, 5 }
 0x130   : > { %v384_v44 = vrot.slane %v377_v38, 1  ;;  %v401_v46 = vrot.slane %v394_v25, 2  ;;  %v418_v53 = vrot.slane %v411_v39, 3  ;;  %v435_v61 = vrot.slane %v428_v47, 4 }
 0x131   : > { %v452_v9 = vrot.slane %v445_v54, 5  ;;  %v469_v17 = vrot.slane %v462_v62, 6  ;;  %v468_v23 = vrot.slane %v461_v49, 6 }
 0x132   : > { %v385_v52 = vsel %vm382_vm14, %v383_v40, %v384_v44  ;;  %v387_v57 = vsel %vm382_vm14, %v384_v44, %v386_v50  ;;  %v402_v60 = vsel %vm399_vm15, %v400_v45, %v401_v46  ;;  %v404_v3 = vsel %vm399_vm15, %v401_v46, %v403_v58 }
 0x133   : > { %v390_v56 = vadd.f32 %v385_v52, %v371_v37  ;;  %v391_v63 = vadd.f32 %v387_v57, %v372_v55  ;;  %v419_v7 = vsel %vm416_vm1, %v417_v48, %v418_v53  ;;  %v421_v12 = vsel %vm416_vm1, %v418_v53, %v420_v4 }
 0x134   : > { %v436_v15 = vsel %vm433_vm2, %v434_v8, %v435_v61  ;;  %v438_v20 = vsel %vm433_vm2, %v435_v61, %v437_v13  ;;  %v453_v22 = vsel %vm450_vm3, %v451_v16, %v452_v9  ;;  %v455_v28 = vsel %vm450_vm3, %v452_v9, %v454_v21 }
 0x135   : > { %v407_v0 = vadd.f32 %v402_v60, %v390_v56  ;;  %v408_v10 = vadd.f32 %v404_v3, %v391_v63  ;;  %v470_v30 = vsel %vm467_vm4, %v468_v23, %v469_v17  ;;  %v472_v32 = vsel %vm467_vm4, %v469_v17, %v471_v29 }
 0x137   : > { %v424_v11 = vadd.f32 %v419_v7, %v407_v0  ;;  %v425_v18 = vadd.f32 %v421_v12, %v408_v10 }
 0x139   : > { %v441_v19 = vadd.f32 %v436_v15, %v424_v11  ;;  %v442_v26 = vadd.f32 %v438_v20, %v425_v18 }
 0x13b   : > { %v458_v27 = vadd.f32 %v453_v22, %v441_v19  ;;  %v459_v24 = vadd.f32 %v455_v28, %v442_v26 }
 0x13d   : > { %v475_v31 = vadd.f32 %v470_v30, %v458_v27  ;;  %v476_v33 = vadd.f32 %v472_v32, %v459_v24 }
 0x13f   : > { %635 = vmatmul.msk.f32.vlgmr.msra.gmra.mxu0 %vm258_vm0, %v475_v31  ;;  %636 = vmatmul.msk.f32.vlgmr.msra.gmra.mxu1 %vm258_vm0, %v476_v33  ;;  %vm534_vm0 = vsmask.f32 2304 }
 0x140   : > { %vm536_vm6 = vmor %vm534_vm0, %vm535_vm5 }
 0x1bc   : > { %v512_v35 = vpop.f32.mrf.mxu0  ;;  %v515_v37 = vpop.f32.mrf.mxu1 }
 0x1bd   : > { %v513_v36 = vadd.f32 %v670_v34, %v512_v35  ;;  %v516_v38 = vadd.f32 %v670_v34, %v515_v37 }
 0x1bf   : > { %v518_v25 = vmax.f32 %v513_v36, 0.0  ;;  %v519_v39 = vmax.f32 %v516_v38, 0.0 }
 0x1c1   : > { %v522_v40 = vrot.slane %v518_v25, 5  ;;  %v523_v41 = vrot.slane %v519_v39, 5 }
 0x1c3   : > { %v528_v42 = vadd.f32 %v738_v1, %v522_v40  ;;  %v524_v43 = vsel %vm450_vm3, %v522_v40, %v523_v41  ;;  %v530_v44 = vadd.f32 %v523_v41, %v746_v6 }
 0x1c4   : > { %v529_v46 = vadd.f32 %v740_v2, %v524_v43 }
 0x1c5   : > { %v531_v45 = vpack.c.bf16 %v528_v42, %v528_v42  ;;  %v533_v47 = vpack.c.bf16 %v530_v44, %v530_v44 }
 0x1c6   : > { %v532_v50 = vpack.c.bf16 %v529_v46, %v529_v46 }
 0x1c7   : > { %v538_v48 = vshrl.u32 %v531_v45, 16  ;;  %v541_v49 = vshll.u32 %v531_v45, 16  ;;  %v557_v51 = vshrl.u32 %v533_v47, 16  ;;  %v560_v52 = vshll.u32 %v533_v47, 16 }
 0x1c8   : > { %v547_v55 = vshrl.u32 %v532_v50, 16  ;;  %v550_v1 = vshll.u32 %v532_v50, 16 }
 0x1c9   : > { %v540_v53 = vrot.slane %v538_v48, 5  ;;  %v543_v54 = vrot.slane %v541_v49, 6  ;;  %v559_v56 = vrot.slane %v557_v51, 5  ;;  %v562_v59 = vrot.slane %v560_v52, 6 }
 0x1ca   : > { %v549_v58 = vrot.slane %v547_v55, 5  ;;  %v552_v6 = vrot.slane %v550_v1, 6 }
 0x1cb   : > { %v544_v57 = vor.u32 %v543_v54, %v540_v53  ;;  %v563_v63 = vor.u32 %v562_v59, %v559_v56 }
 0x1cc   : > { %v553_v60 = vor.u32 %v552_v6, %v549_v58 }
 0x1cd   : > { %v545_v2 = vrot.slane %v544_v57, 4 }
 0x1ce   : > { %v555_v62 = vrot.slane %v553_v60, 4 }
 0x1cf   : > { %v554_v61 = vsel %vm536_vm6, %v545_v2, %v553_v60 }
 0x1d0   : > { %568 = vst.msk [vmem:[%s251_s18] sm:$0xf] %vm567_vm7, %v554_v61  ;;  %v564_v0 = vsel %vm536_vm6, %v555_v62, %v563_v63 }
 0x1d1   : > { %569 = vst.msk [vmem:[%s251_s18 + $0x4] sm:$0xf] %vm567_vm7, %v564_v0 }
 0x1d2 PF: > { %s16_s21 = sadd.s32 1, %s685_s21  }
 0x1d3   : > { %p13_p4 = scmp.ge.s32.totalorder %s16_s21, 4  }
 0x1d5   :  { %15 = sbr.rel (!%p13_p4) target bundleno = 1 (0x1), region = 74 }

// kernel: qanet_forward.66
= control target key start
LH: loop header
LB: loop body
LE: loop exit
PB: predicated region body
PF: predicated region fallthrough
CT: control target
= control target key end

     0   :  { %vm37_vm0 = vcmask 261120   ;;  %vm95_vm1 = vcmask 257024   ;;  %s206_s1 = inlined_call_operand.vmem [shape: bf16[32,32], index: 1, kind: input, shape index: {}]   ;;  %s207_s0 = inlined_call_operand.vmem [shape: bf16[32,32], index: 0, kind: input, shape index: {}]   ;;  %s208_s2 = inlined_call_operand.vmem [shape: f32[1,32], index: 2, kind: input, shape index: {}]   ;;  %s209_s3 = inlined_call_operand.vmem [shape: bf16[32,32], index: 3, kind: input, shape index: {}]   ;;  %s210_s4 = inlined_call_operand.vmem [shape: bf16[32,32], index: 4, kind: output, shape index: {}]  }
   0x1   :  { %v133_v0 = vld [vmem:[%s206_s1 + $0x8] sm:$0xff]   ;;  %v117_v1 = vld [vmem:[%s206_s1] sm:$0xff]  }
   0x2   :  { %v123_v2 = vunpack.c.h.bf16 %v133_v0  ;;  %v122_v3 = vunpack.c.l.bf16 %v133_v0  ;;  %v119_v4 = vunpack.c.h.bf16 %v117_v1  ;;  %v132_v5 = vld [vmem:[%s207_s0 + $0x8] sm:$0xff]   ;;  %v118_v6 = vunpack.c.l.bf16 %v117_v1  ;;  %v109_v7 = vld [vmem:[%s207_s0] sm:$0xff]  }
   0x3   :  { %v114_v8 = vunpack.c.l.bf16 %v132_v5  ;;  %v115_v9 = vunpack.c.h.bf16 %v132_v5  ;;  %v110_v10 = vunpack.c.l.bf16 %v109_v7  ;;  %v111_v11 = vunpack.c.h.bf16 %v109_v7  ;;  %v125_v12 = vld [vmem:[%s209_s3] sm:$0xff]   ;;  %v134_v18 = vld [vmem:[%s209_s3 + $0x8] sm:$0xff]  }
   0x4   :  { %136 = vmatpush.msra.mxu2 %v123_v2  ;;  %137 = vmatpush.msra.mxu3 %v123_v2  ;;  %v147_v13 = vld [vmem:[%s208_s2] ss:$0 sm:$0xff]  ;;  %v126_v14 = vunpack.c.l.bf16 %v125_v12  ;;  %v127_v15 = vunpack.c.h.bf16 %v125_v12  ;;  %v130_v23 = vunpack.c.l.bf16 %v134_v18  ;;  %v131_v24 = vunpack.c.h.bf16 %v134_v18 }
   0x5   :  { %62 = vmatpush.msra.mxu0 %v123_v2  ;;  %135 = vmatpush.msra.mxu1 %v123_v2 }
   0x6   :  { %139 = vmatpush.msra.mxu2 %v122_v3  ;;  %140 = vmatpush.msra.mxu3 %v122_v3 }
   0x7   :  { %63 = vmatpush.msra.mxu0 %v122_v3  ;;  %138 = vmatpush.msra.mxu1 %v122_v3 }
   0x8   :  { %142 = vmatpush.msra.mxu2 %v119_v4  ;;  %143 = vmatpush.msra.mxu3 %v119_v4 }
   0x9   :  { %64 = vmatpush.msra.mxu0 %v119_v4  ;;  %141 = vmatpush.msra.mxu1 %v119_v4 }
   0xa   :  { %145 = vmatpush.msra.mxu2 %v118_v6  ;;  %146 = vmatpush.msra.mxu3 %v118_v6 }
   0xb   :  { %106 = vmatmul.msk.f32.vlgmr.msra.gmra.mxu2 %vm37_vm0, %v114_v8  ;;  %107 = vmatmul.msk.f32.vlgmr.msra.gmra.mxu3 %vm37_vm0, %v115_v9 }
   0xc   :  { %65 = vmatpush.msra.mxu0 %v118_v6  ;;  %144 = vmatpush.msra.mxu1 %v118_v6 }
   0xd   :  { %104 = vmatmul.msk.f32.vlgmr.msra.gmra.mxu0 %vm37_vm0, %v110_v10  ;;  %105 = vmatmul.msk.f32.vlgmr.msra.gmra.mxu1 %vm37_vm0, %v111_v11 }
  0x8a   :  { %v67_v16 = vpop.f32.mrf.mxu0  ;;  %v70_v17 = vpop.f32.mrf.mxu1 }
  0x8b   :  { %v68_v19 = vadd.f32 %v147_v13, %v67_v16  ;;  %v71_v20 = vadd.f32 %v147_v13, %v70_v17 }
  0x8d   :  { %v87_v21 = vadd.f32 %v126_v14, %v68_v19  ;;  %v88_v22 = vadd.f32 %v127_v15, %v71_v20 }
  0x8e   :  { %v73_v25 = vpop.f32.mrf.mxu2  ;;  %v76_v26 = vpop.f32.mrf.mxu3 }
  0x8f   :  { %v91_v27 = vpack.c.bf16 %v87_v21, %v87_v21  ;;  %v92_v28 = vpack.c.bf16 %v88_v22, %v88_v22  ;;  %v74_v29 = vadd.f32 %v147_v13, %v73_v25  ;;  %v77_v30 = vadd.f32 %v147_v13, %v76_v26 }
  0x91   :  { %96 = vst.msk [vmem:[%s210_s4] sm:$0xf] %vm95_vm1, %v91_v27  ;;  %v89_v31 = vadd.f32 %v130_v23, %v74_v29  ;;  %v90_v32 = vadd.f32 %v131_v24, %v77_v30 }
  0x92   :  { %97 = vst.msk [vmem:[%s210_s4 + $0x4] sm:$0xf] %vm95_vm1, %v92_v28 }
  0x93   :  { %v93_v33 = vpack.c.bf16 %v89_v31, %v89_v31  ;;  %v94_v34 = vpack.c.bf16 %v90_v32, %v90_v32 }
  0x95   :  { %98 = vst.msk [vmem:[%s210_s4 + $0x8] sm:$0xf] %vm95_vm1, %v93_v33 }
  0x96   :  { %99 = vst.msk [vmem:[%s210_s4 + $0xc] sm:$0xf] %vm95_vm1, %v94_v34 }

// kernel: qanet_forward.65
= control target key start
LH: loop header
LB: loop body
LE: loop exit
PB: predicated region body
PF: predicated region fallthrough
CT: control target
= control target key end

     0   :  { %s3255_s12 = smov 0   ;;  %s3257_s13 = smov 0   ;;  %s3997_s0 = inlined_call_operand.vmem [shape: bf16[2,16,96], index: 0, kind: input, shape index: {}, may-alias: {0,1}]   ;;  %s3998_s1 = inlined_call_operand.vmem [shape: bf16[2,16,96], index: 1, kind: input, shape index: {}, may-alias: {0,1}]   ;;  %s3999_s2 = inlined_call_operand.vmem [shape: f32[2,1,16], index: 2, kind: input, shape index: {}]   ;;  %s4000_s3 = inlined_call_operand.vmem [shape: bf16[2,16,32], index: 3, kind: output, shape index: {}]  }
   0x1   :  { %s3259_s14 = smov 0  }
   0x2 LB: > { %s25_s15 = sadd.s32 1, %s3211_s13  ;;  %p2712_p0 = scmp.ge.s32.totalorder %s3215_s14, 1  ;;  %s3215_s14 = sphi %s3259_s14, %s13_s14   ;;  %s3211_s13 = sphi %s3257_s13, %s4010_s13   ;;  %s3207_s12 = sphi %s3255_s12, %s4009_s12  }
   0x3   : > { %p27_p1 = scmp.ge.s32.totalorder %s25_s15, 2  ;;  %p176_p2 = scmp.lt.s32.totalorder %s3215_s14, 3 }
   0x5   : > { %s4012_s15 = smov (%p27_p1, %s25_s15), 0  ;;  %p177_p3 = pnand %p2712_p0, %p176_p2 }
   0x6   : > { %p217_p4 = scmp.lt.s32.totalorder (!%p177_p3), %s3207_s12, 1  ;;  %s3217_s23 = smov (!%p177_p3), 124  }
   0x7   : > { %180 = sbr.rel (%p177_p3) target bundleno = 1677 (0x68d), region = 32  ;;  %s3218_s24 = smov (!%p177_p3), 120  }
   0x8   : > { %s3219_s25 = smov (!%p177_p3), 100   ;;  %s3220_s29 = smov (!%p177_p3), 104  }
   0x9   : > { %s3221_s30 = smov (!%p177_p3), 116   ;;  %s3222_s4 = smov (!%p177_p3), 112  }
   0xa   : > { %s3223_s5 = smov (!%p177_p3), 108   ;;  %s3224_s6 = smov (!%p177_p3), 96  }
   0xb   : > { %s3225_s7 = smov (!%p177_p3), 64   ;;  %s3228_s10 = smov (!%p177_p3), 4  }
   0xc   : > { %s4014_s12 = smov (!%p217_p4, %s3207_s12), 1  ;;  %vm621_vm0 = vcmask 1043456   ;;  %vm616_vm1 = vcmask 31744   ;;  %vm894_vm2 = vcmask 130048   ;;  %s3229_s11 = smov 12  }
   0xd   : > { %s3276_s16 = sshll.u32 %s4014_s12, 3  ;;  %s233_s19 = scalar_lea.vmem %s3999_s2, %s4014_s12 }
   0xe   : > { %s230_s22 = scalar_lea.vmem %s3998_s1, %s3276_s16  ;;  %s224_s28 = scalar_lea.vmem %s3997_s0, %s3276_s16 }
   0xf   : > { %v2777_v0 = vld [vmem:[%s230_s22] sm:$0xff]   ;;  %s3230_s12 = smov 8   ;;  %s3231_s17 = smov 24  }
  0x10   : > { %v3286_v1 = vunpack.c.l.bf16 %v2777_v0  ;;  %v3288_v2 = vunpack.c.h.bf16 %v2777_v0  ;;  %v3296_v4 = vld [vmem:[%s224_s28] sm:$0xff]   ;;  %s3232_s18 = smov 16   ;;  %s3234_s20 = smov 28  }
  0x11   : > { %v2774_v5 = vunpack.c.l.bf16 %v3296_v4  ;;  %v2775_v6 = vunpack.c.h.bf16 %v3296_v4 }
  0x12   : > { %v2833_v3 = vpack.i.bf16 %v3288_v2, %v3286_v1 }
  0x13   : > { %v2858_v7 = vpack.i.bf16 %v2775_v6, %v2774_v5 }
  0x14   : > { %2834 = vrot.lane.b32.xlu1 %v2833_v3, %s3217_s23  ;;  %2824 = vrot.lane.b32.xlu0 %v2833_v3, %s3218_s24 }
  0x15   : > { %2844 = vrot.lane.b32.xlu2 %v2833_v3, %s3219_s25 }
  0x1c   : > { %2839 = vrot.lane.b32.xlu1 %v2833_v3, %s3220_s29  ;;  %2829 = vrot.lane.b32.xlu0 %v2833_v3, %s3221_s30 }
  0x1d   : > { %2849 = vrot.lane.b32.xlu2 %v2833_v3, %s3222_s4 }
  0x24   : > { %2854 = vrot.lane.b32.xlu0 %v2833_v3, %s3223_s5  ;;  %2859 = vrot.lane.b32.xlu1 %v2858_v7, %s3218_s24 }
  0x25   : > { %2864 = vrot.lane.b32.xlu2 %v2858_v7, %s3221_s30 }
  0x2c   : > { %2874 = vrot.lane.b32.xlu0 %v2858_v7, %s3220_s29  ;;  %2879 = vrot.lane.b32.xlu1 %v2858_v7, %s3219_s25 }
  0x2d   : > { %2869 = vrot.lane.b32.xlu2 %v2858_v7, %s3217_s23  ;;  %s242_s23 = scalar_lea.vmem %s4000_s3, %s3276_s16 }
  0x34   : > { %2884 = vrot.lane.b32.xlu0 %v2858_v7, %s3222_s4  ;;  %2889 = vrot.lane.b32.xlu1 %v2858_v7, %s3223_s5 }
  0x6f   : > { %v2845_v8 = vpop.permute.xlu2 %2844 }
  0x70   : > { %v2846_v9 = vunpack.i.l.bf16 %v2845_v8  ;;  %v2847_v16 = vunpack.i.h.bf16 %v2845_v8 }
  0x77   : > { %v2850_v17 = vpop.permute.xlu2 %2849 }
  0x78   : > { %v2851_v25 = vunpack.i.l.bf16 %v2850_v17  ;;  %v2852_v32 = vunpack.i.h.bf16 %v2850_v17 }
  0x7f   : > { %v2865_v42 = vpop.permute.xlu2 %2864 }
  0x80   : > { %v2866_v62 = vunpack.i.l.bf16 %v2865_v42  ;;  %v2867_v8 = vunpack.i.h.bf16 %v2865_v42 }
  0x86   : > { %v2835_v10 = vpop.permute.xlu1 %2834  ;;  %v2825_v11 = vpop.permute.xlu0 %2824 }
  0x87   : > { %v2837_v12 = vunpack.i.h.bf16 %v2835_v10  ;;  %v2836_v13 = vunpack.i.l.bf16 %v2835_v10  ;;  %v2827_v23 = vunpack.i.h.bf16 %v2825_v11  ;;  %v2826_v24 = vunpack.i.l.bf16 %v2825_v11  ;;  %v3333_v43 = vpop.permute.xlu2 %2869 }
  0x89   : > { %v2903_v14 = vpack.i.bf16 %v2836_v13, %v3286_v1  ;;  %v3305_v15 = vpack.i.bf16 %v2846_v9, %v2837_v12  ;;  %v2908_v39 = vpack.i.bf16 %v2837_v12, %v3288_v2  ;;  %v2938_v41 = vpack.i.bf16 %v3286_v1, %v2827_v23 }
  0x8b   : > { %2904 = vrot.lane.b32.xlu0 %v2903_v14, %s3224_s6 }
  0x8e   : > { %v3308_v18 = vpop.permute.xlu1 %2839  ;;  %v2830_v19 = vpop.permute.xlu0 %2829 }
  0x8f   : > { %v2842_v20 = vunpack.i.h.bf16 %v3308_v18  ;;  %v2832_v21 = vunpack.i.h.bf16 %v2830_v19  ;;  %v2831_v22 = vunpack.i.l.bf16 %v2830_v19  ;;  %v2841_v30 = vunpack.i.l.bf16 %v3308_v18 }
  0x91   : > { %v2918_v26 = vpack.i.bf16 %v2847_v16, %v2842_v20  ;;  %v2898_v27 = vpack.i.bf16 %v2832_v21, %v2827_v23  ;;  %v2893_v28 = vpack.i.bf16 %v2831_v22, %v2826_v24  ;;  %v3311_v29 = vpack.i.bf16 %v2851_v25, %v2842_v20 }
  0x92   : > { %v2913_v35 = vpack.i.bf16 %v2846_v9, %v2841_v30  ;;  %v2943_v40 = vpack.i.bf16 %v2836_v13, %v2832_v21  ;;  %v2871_v13 = vunpack.i.l.bf16 %v3333_v43  ;;  %v2872_v21 = vunpack.i.h.bf16 %v3333_v43 }
  0x93   : > { %2919 = vrot.lane.b32.xlu0 %v2918_v26, %s3224_s6  ;;  %2899 = vrot.lane.b32.xlu2 %v2898_v27, %s3224_s6  ;;  %v3392_v27 = vld [vmem:[%s233_s19] ss:$0 sm:$0xff]  ;;  %s3233_s19 = smov 20  }
  0x94   : > { %2894 = vrot.lane.b32.xlu1 %v2893_v28, %s3224_s6 }
  0x96   : > { %v2855_v31 = vpop.permute.xlu0 %2854  ;;  %v2860_v44 = vpop.permute.xlu1 %2859 }
  0x97   : > { %v2857_v33 = vunpack.i.h.bf16 %v2855_v31  ;;  %v2856_v34 = vunpack.i.l.bf16 %v2855_v31  ;;  %v2861_v63 = vunpack.i.l.bf16 %v2860_v44  ;;  %v2862_v9 = vunpack.i.h.bf16 %v2860_v44 }
  0x99   : > { %v3319_v36 = vpack.i.bf16 %v2857_v33, %v2852_v32  ;;  %v3321_v37 = vpack.i.bf16 %v2856_v34, %v2847_v16  ;;  %v2923_v38 = vpack.i.bf16 %v2856_v34, %v2851_v25 }
  0x9b   : > { %2924 = vrot.lane.b32.xlu0 %v2923_v38, %s3224_s6  ;;  %2914 = vrot.lane.b32.xlu2 %v2913_v35, %s3224_s6 }
  0x9c   : > { %2909 = vrot.lane.b32.xlu1 %v2908_v39, %s3224_s6 }
  0x9e   : > { %v3335_v45 = vpop.permute.xlu0 %2874  ;;  %v3337_v47 = vpop.permute.xlu1 %2879 }
  0x9f   : > { %v2876_v19 = vunpack.i.l.bf16 %v3335_v45  ;;  %v2881_v20 = vunpack.i.l.bf16 %v3337_v47  ;;  %v2882_v22 = vunpack.i.h.bf16 %v3337_v47 }
  0xa3   : > { %2944 = vrot.lane.b32.xlu0 %v2943_v40, %s3225_s7  ;;  %2934 = vrot.lane.b32.xlu2 %v2893_v28, %s3225_s7 }
  0xa4   : > { %2929 = vrot.lane.b32.xlu1 %v3319_v36, %s3224_s6 }
  0xa6   : > { %v3339_v48 = vpop.permute.xlu0 %2884  ;;  %v3341_v50 = vpop.permute.xlu1 %2889 }
  0xa7   : > { %v2886_v23 = vunpack.i.l.bf16 %v3339_v48  ;;  %v2891_v24 = vunpack.i.l.bf16 %v3341_v50  ;;  %v2887_v4 = vunpack.i.h.bf16 %v3339_v48 }
  0xac   : > { %2939 = vrot.lane.b32.xlu1 %v2938_v41, %s3225_s7 }
  0xed   : > { %v2900_v46 = vpop.permute.xlu2 %2899 }
  0xf5   : > { %v2915_v49 = vpop.permute.xlu2 %2914 }
  0xf6   : > { %2967 = vxpose.xlu1.b32.start [1/2] (short) (narrow) %v2915_v49, 8 }
  0xfd   : > { %v2905_v51 = vpop.permute.xlu0 %2904  ;;  %v3343_v57 = vpop.permute.xlu2 %2934 }
  0xfe   : > { %2958 = vxpose.xlu0.b32.start [1/2] (short) (narrow) %v2905_v51, 8 }
 0x105   : > { %v2920_v52 = vpop.permute.xlu0 %2919 }
 0x106   : > { %v2895_v53 = vpop.permute.xlu1 %2894  ;;  %2969 = vxpose.xlu1.b32.end [2/2] (short) (narrow) %v2920_v52, 8 }
 0x107   : > { %2949 = vxpose.xlu2.b32.start [1/2] (short) (narrow) %v2895_v53, 8 }
 0x10d   : > { %v2925_v55 = vpop.permute.xlu0 %2924 }
 0x10e   : > { %v2910_v54 = vpop.permute.xlu1 %2909 }
 0x10f   : > { %2960 = vxpose.xlu0.b32.end [2/2] (short) (narrow) %v2910_v54, 8  ;;  %2951 = vxpose.xlu2.b32.end [2/2] (short) (narrow) %v2900_v46, 8 }
 0x115   : > { %v3347_v1 = vpop.permute.xlu0 %2944 }
 0x116   : > { %v2930_v56 = vpop.permute.xlu1 %2929 }
 0x117   : > { %2976 = vxpose.xlu2.b32.start [1/2] (short) (narrow) %v2925_v55, 8 }
 0x11e   : > { %v3345_v58 = vpop.permute.xlu1 %2939 }
 0x11f   : > { %2978 = vxpose.xlu2.b32.end [2/2] (short) (narrow) %v2930_v56, 8 }
 0x1a0   : > { %v2952_v59 = vpop.trf.xlu2 }
 0x1a1   : > { %v2953_v60 = vunpack.i.l.bf16 %v2952_v59  ;;  %v2956_v61 = vunpack.i.h.bf16 %v2952_v59 }
 0x1a2   : > { %v2970_v0 = vpop.trf.xlu1 }
 0x1a3   : > { %2725 = vmatpush.msk.msra.mxu2 %vm621_vm0, %v2953_v60  ;;  %2728 = vmatpush.msk.msra.mxu3 %vm621_vm0, %v2956_v61  ;;  %v2971_v3 = vunpack.i.l.bf16 %v2970_v0  ;;  %v2974_v7 = vunpack.i.h.bf16 %v2970_v0 }
 0x1a4   : > { %2726 = vmatmul.msk.f32.vlgmr.msra.gmra.mxu2 %vm616_vm1, %v2861_v63  ;;  %2729 = vmatmul.msk.f32.vlgmr.msra.gmra.mxu3 %vm616_vm1, %v2866_v62 }
 0x1a5   : > { %2737 = vmatpush.msk.msrb.mxu2 %vm621_vm0, %v2971_v3  ;;  %2740 = vmatpush.msk.msrb.mxu3 %vm621_vm0, %v2974_v7 }
 0x1ab   : > { %v2961_v10 = vpop.trf.xlu0 }
 0x1ac   : > { %2727 = vmatmul.msk.f32.gmra.mxu2 %vm616_vm1, %v2862_v9  ;;  %2730 = vmatmul.msk.f32.gmra.mxu3 %vm616_vm1, %v2867_v8  ;;  %v2962_v11 = vunpack.i.l.bf16 %v2961_v10  ;;  %v2965_v12 = vunpack.i.h.bf16 %v2961_v10 }
 0x1ae   : > { %2719 = vmatpush.msk.msra.mxu0 %vm621_vm0, %v2962_v11  ;;  %2722 = vmatpush.msk.msra.mxu1 %vm621_vm0, %v2965_v12 }
 0x1af   : > { %2720 = vmatmul.msk.f32.vlgmr.msra.gmra.mxu0 %vm616_vm1, %v2774_v5  ;;  %2723 = vmatmul.msk.f32.vlgmr.msra.gmra.mxu1 %vm616_vm1, %v2871_v13  ;;  %v2877_v5 = vunpack.i.h.bf16 %v3335_v45 }
 0x1b0   : > { %v2979_v14 = vpop.trf.xlu2 }
 0x1b1   : > { %v2980_v16 = vunpack.i.l.bf16 %v2979_v14  ;;  %v2983_v17 = vunpack.i.h.bf16 %v2979_v14 }
 0x1b3   : > { %2731 = vmatpush.msk.msrb.mxu0 %vm621_vm0, %v2980_v16  ;;  %2734 = vmatpush.msk.msrb.mxu1 %vm621_vm0, %v2983_v17  ;;  %v2984_v17 = vpack.i.bf16 %v2841_v30, %v3288_v2 }
 0x1b4   : > { %2738 = vmatmul.msk.f32.vlgmr.msrb.gmra.mxu2 %vm616_vm1, %v2876_v19  ;;  %2741 = vmatmul.msk.f32.vlgmr.msrb.gmra.mxu3 %vm616_vm1, %v2881_v20 }
 0x1b7   : > { %2721 = vmatmul.msk.f32.gmra.mxu0 %vm616_vm1, %v2775_v6  ;;  %2724 = vmatmul.msk.f32.gmra.mxu1 %vm616_vm1, %v2872_v21  ;;  %v2892_v6 = vunpack.i.h.bf16 %v3341_v50 }
 0x1bc   : > { %2739 = vmatmul.msk.f32.gmra.mxu2 %vm616_vm1, %v2877_v5  ;;  %2742 = vmatmul.msk.f32.gmra.mxu3 %vm616_vm1, %v2882_v22 }
 0x1bf   : > { %2732 = vmatmul.msk.f32.vlgmr.msrb.gmra.mxu0 %vm616_vm1, %v2886_v23  ;;  %2735 = vmatmul.msk.f32.vlgmr.msrb.gmra.mxu1 %vm616_vm1, %v2891_v24 }
 0x1c7   : > { %2733 = vmatmul.msk.f32.gmra.mxu0 %vm616_vm1, %v2887_v4  ;;  %2736 = vmatmul.msk.f32.gmra.mxu1 %vm616_vm1, %v2892_v6 }
 0x227   : > { %v732_v25 = vpop.f32.mrf.mxu3  ;;  %v702_v31 = vpop.f32.mrf.mxu2 }
 0x228   : > { %v862_v34 = vmul.f32 0.5, %v702_v31  ;;  %v864_v48 = vmul.f32 0.5, %v732_v25 }
 0x22a   : > { %v3397_v41 = vadd.f32 %v3392_v27, %v862_v34  ;;  %v884_v54 = vadd.f32 %v3392_v27, %v864_v48 }
 0x22c   : > { %v642_v26 = vpop.f32.mrf.mxu0  ;;  %v672_v38 = vpop.f32.mrf.mxu1  ;;  %v907_v47 = vsel %vm894_vm2, %v3397_v41, -inf  ;;  %v913_v61 = vsel %vm894_vm2, %v884_v54, -inf }
 0x22d   : > { %v858_v28 = vmul.f32 0.5, %v642_v26  ;;  %v860_v45 = vmul.f32 0.5, %v672_v38 }
 0x22f   : > { %v735_v32 = vpop.f32.mrf.mxu3  ;;  %v878_v33 = vadd.f32 %v3392_v27, %v858_v28  ;;  %v3407_v52 = vadd.f32 %v3392_v27, %v860_v45  ;;  %v705_v5 = vpop.f32.mrf.mxu2 }
 0x230   : > { %v865_v8 = vmul.f32 0.5, %v735_v32  ;;  %v863_v6 = vmul.f32 0.5, %v705_v5 }
 0x231   : > { %v895_v35 = vsel %vm894_vm2, %v878_v33, -inf  ;;  %v901_v59 = vsel %vm894_vm2, %v3407_v52, -inf }
 0x232   : > { %896 = vmax.xlane.f32.xlu1 %v895_v35  ;;  %v3426_v10 = vadd.f32 %v3392_v27, %v865_v8  ;;  %v3446_v18 = vadd.f32 %v3392_v27, %v863_v6 }
 0x234   : > { %v645_v39 = vpop.f32.mrf.mxu0  ;;  %v675_v53 = vpop.f32.mrf.mxu1  ;;  %v916_v13 = vsel %vm894_vm2, %v3426_v10, -inf  ;;  %v910_v34 = vsel %vm894_vm2, %v3446_v18, -inf }
 0x235   : > { %v859_v40 = vmul.f32 0.5, %v645_v39  ;;  %v861_v56 = vmul.f32 0.5, %v675_v53 }
 0x237   : > { %v852_v42 = vpop.f32.mrf.mxu3  ;;  %v879_v43 = vadd.f32 %v3392_v27, %v859_v40  ;;  %v3419_v62 = vadd.f32 %v3392_v27, %v861_v56  ;;  %v822_v28 = vpop.f32.mrf.mxu2 }
 0x238   : > { %v872_v44 = vmul.f32 0.5, %v852_v42  ;;  %v870_v35 = vmul.f32 0.5, %v822_v28 }
 0x239   : > { %v898_v46 = vsel %vm894_vm2, %v879_v43, -inf  ;;  %v904_v3 = vsel %vm894_vm2, %v3419_v62, -inf }
 0x23a   : > { %899 = vmax.xlane.f32.xlu0 %v898_v46  ;;  %908 = vmax.xlane.f32.xlu1 %v907_v47  ;;  %v3404_v49 = vadd.f32 %v3392_v27, %v872_v44  ;;  %v3460_v44 = vadd.f32 %v3392_v27, %v870_v35 }
 0x23c   : > { %v762_v50 = vpop.f32.mrf.mxu0  ;;  %v792_v2 = vpop.f32.mrf.mxu1  ;;  %v931_v48 = vsel %vm894_vm2, %v3460_v44, -inf }
 0x23d   : > { %v866_v51 = vmul.f32 0.5, %v762_v50  ;;  %v868_v38 = vmul.f32 0.5, %v792_v2 }
 0x23f   : > { %v3411_v55 = vadd.f32 %v3392_v27, %v866_v51  ;;  %v855_v11 = vpop.f32.mrf.mxu3  ;;  %v825_v56 = vpop.f32.mrf.mxu2 }
 0x240   : > { %v873_v12 = vmul.f32 0.5, %v855_v11 }
 0x241   : > { %v919_v60 = vsel %vm894_vm2, %v3411_v55, -inf }
 0x242   : > { %902 = vmax.xlane.f32.xlu0 %v901_v59  ;;  %920 = vmax.xlane.f32.xlu2 %v919_v60  ;;  %v3431_v14 = vadd.f32 %v3392_v27, %v873_v12 }
 0x243   : > { %914 = vmax.xlane.f32.xlu1 %v913_v61  ;;  %v871_v61 = vmul.f32 0.5, %v825_v56 }
 0x244   : > { %v765_v63 = vpop.f32.mrf.mxu0  ;;  %v940_v16 = vsel %vm894_vm2, %v3431_v14, -inf  ;;  %v795_v45 = vpop.f32.mrf.mxu1 }
 0x245   : > { %v867_v0 = vmul.f32 0.5, %v765_v63  ;;  %v869_v46 = vmul.f32 0.5, %v795_v45  ;;  %v937_v63 = vsel %vm894_vm2, %v3404_v49, -inf  ;;  %v3478_v8 = vadd.f32 %v3392_v27, %v871_v61 }
 0x247   : > { %v887_v7 = vadd.f32 %v3392_v27, %v867_v0 }
 0x249   : > { %v922_v9 = vsel %vm894_vm2, %v887_v7, -inf }
 0x24a   : > { %905 = vmax.xlane.f32.xlu2 %v904_v3 }
 0x252   : > { %923 = vmax.xlane.f32.xlu2 %v922_v9 }
 0x25a   : > { %917 = vmax.xlane.f32.xlu2 %v916_v13  ;;  %v934_v13 = vsel %vm894_vm2, %v3478_v8, -inf }
 0x262   : > { %941 = vmax.xlane.f32.xlu2 %v940_v16 }
 0x27a   : > { %2985 = vrot.lane.b32.xlu2 %v2984_v17, %s3225_s7  ;;  %v2946_v17 = vunpack.i.l.bf16 %v3347_v1 }
 0x2a5   : > { %v897_v19 = vpop.xlane.xlu1 %896 }
 0x2a6   : > { %v943_v20 = vsub.f32 %v878_v33, %v897_v19 }
 0x2a8   : > { %v959_v21 = vmul.f32 1.442695, %v943_v20 }
 0x2aa   : > { %3129 = vpow2.f32 %v959_v21 }
 0x2ad   : > { %v900_v22 = vpop.xlane.xlu0 %899  ;;  %v3439_v23 = vpop.xlane.xlu1 %908 }
 0x2ae   : > { %v944_v24 = vsub.f32 %v879_v43, %v900_v22  ;;  %v3457_v43 = vadd.f32 %v3392_v27, %v868_v38 }
 0x2b0   : > { %v3441_v4 = vpop.eup %3129  ;;  %v961_v25 = vmul.f32 1.442695, %v944_v24  ;;  %v925_v47 = vsel %vm894_vm2, %v3457_v43, -inf }
 0x2b1   : > { %v991_v26 = vsel %vm894_vm2, %v3441_v4, 0.0 }
 0x2b2   : > { %3131 = vpow2.f32 %v961_v25  ;;  %992 = vadd.xlane.f32.xlu0 %v991_v26 }
 0x2b5   : > { %v921_v30 = vpop.xlane.xlu2 %920  ;;  %v3503_v22 = vpop.xlane.xlu0 %902 }
 0x2b6   : > { %v915_v31 = vpop.xlane.xlu1 %914  ;;  %v951_v20 = vsub.f32 %v3411_v55, %v921_v30 }
 0x2b7   : > { %v949_v32 = vsub.f32 %v884_v54, %v915_v31  ;;  %v3471_v54 = vadd.f32 %v3392_v27, %v869_v46 }
 0x2b8   : > { %v3448_v33 = vpop.eup %3131  ;;  %v975_v21 = vmul.f32 1.442695, %v951_v20 }
 0x2b9   : > { %v971_v39 = vmul.f32 1.442695, %v949_v32  ;;  %v994_v40 = vsel %vm894_vm2, %v3448_v33, 0.0  ;;  %v928_v0 = vsel %vm894_vm2, %v3471_v54, -inf }
 0x2ba   : > { %995 = vadd.xlane.f32.xlu1 %v994_v40  ;;  %911 = vmax.xlane.f32.xlu0 %v910_v34 }
 0x2bb   : > { %3133 = vpow2.f32 %v971_v39 }
 0x2bd   : > { %v3454_v42 = vpop.xlane.xlu2 %905 }
 0x2c1   : > { %v3466_v50 = vpop.eup %3133 }
 0x2c2   : > { %926 = vmax.xlane.f32.xlu0 %v925_v47  ;;  %932 = vmax.xlane.f32.xlu1 %v931_v48  ;;  %v1009_v51 = vsel %vm894_vm2, %v3466_v50, 0.0 }
 0x2c3   : > { %1010 = vadd.xlane.f32.xlu2 %v1009_v51 }
 0x2c5   : > { %v924_v53 = vpop.xlane.xlu2 %923 }
 0x2c6   : > { %v952_v59 = vsub.f32 %v887_v7, %v924_v53 }
 0x2c8   : > { %v977_v60 = vmul.f32 1.442695, %v952_v59 }
 0x2ca   : > { %3135 = vpow2.f32 %v977_v60  ;;  %938 = vmax.xlane.f32.xlu0 %v937_v63  ;;  %929 = vmax.xlane.f32.xlu1 %v928_v0 }
 0x2cd   : > { %v918_v3 = vpop.xlane.xlu2 %917 }
 0x2ce   : > { %v950_v9 = vsub.f32 %v3426_v10, %v918_v3  ;;  %v2941_v10 = vunpack.i.l.bf16 %v3345_v58 }
 0x2d0   : > { %v3481_v11 = vpop.eup %3135  ;;  %v973_v7 = vmul.f32 1.442695, %v950_v9  ;;  %v3001_v19 = vpack.i.bf16 %v2946_v17, %v2941_v10 }
 0x2d1   : > { %v1018_v12 = vsel %vm894_vm2, %v3481_v11, 0.0 }
 0x2d2   : > { %3137 = vpow2.f32 %v973_v7  ;;  %1019 = vadd.xlane.f32.xlu2 %v1018_v12  ;;  %935 = vmax.xlane.f32.xlu0 %v934_v13 }
 0x2d3   : > { %3139 = vpow2.f32 %v975_v21 }
 0x2d8   : > { %v3487_v16 = vpop.eup %3137 }
 0x2d9   : > { %v1012_v27 = vsel %vm894_vm2, %v3487_v16, 0.0  ;;  %v3499_v5 = vpop.eup %3139 }
 0x2da   : > { %1013 = vadd.xlane.f32.xlu2 %v1012_v27 }
 0x2e3   : > { %2990 = vrot.lane.b32.xlu1 %v3305_v15, %s3225_s7  ;;  %v1015_v15 = vsel %vm894_vm2, %v3499_v5, 0.0 }
 0x2eb   : > { %2995 = vrot.lane.b32.xlu1 %v3319_v36, %s3225_s7 }
 0x2fb   : > { %3000 = vxpose.xlu0.b32.start [1/2] (short) (narrow) %v3343_v57, 8  ;;  %v3505_v57 = vpop.xlane.xlu2 %941 }
 0x303   : > { %3002 = vxpose.xlu0.b32.end [2/2] (short) (narrow) %v3001_v19, 8  ;;  %v3508_v31 = vpop.permute.xlu2 %2985 }
 0x315   : > { %1016 = vadd.xlane.f32.xlu1 %v1015_v15 }
 0x325   : > { %v993_v36 = vpop.xlane.xlu0 %992 }
 0x326   : > { %3141 = vrcp.f32 %v993_v36  ;;  %vm1044_vm5 = vweird.f32 %v993_v36  ;;  %v1050_v51 = vand.u32 2147483648, %v993_v36 }
 0x328   : > { %v1051_v9 = vor.u32 1.1754944e-38, %v1050_v51 }
 0x32c   : > { %v3142_v24 = vpop.eup %3141 }
 0x32d   : > { %v1040_v6 = vmul.f32 %v3142_v24, %v993_v36  ;;  %v996_v25 = vpop.xlane.xlu1 %995  ;;  %v912_v26 = vpop.xlane.xlu0 %911  ;;  %vm1045_vm3 = vweird.f32 %v3142_v24 }
 0x32e   : > { %3143 = vrcp.f32 %v996_v25  ;;  %v948_v55 = vsub.f32 %v3446_v18, %v912_v26  ;;  %v1063_v40 = vand.u32 2147483647, %v996_v25  ;;  %v1065_v45 = vand.u32 2147483648, %v996_v25  ;;  %vm3515_vm6 = vmor %vm1044_vm5, %vm1045_vm3 }
 0x32f   : > { %v1041_v2 = vsub.f32 1.0, %v1040_v6  ;;  %vm1059_vm7 = vweird.f32 %v996_v25 }
 0x330   : > { %v969_v30 = vmul.f32 1.442695, %v948_v55  ;;  %v1066_v60 = vor.u32 1.1754944e-38, %v1065_v45  ;;  %vm1064_vm9 = vcmp.eq.f32.partialorder %v1063_v40, 8.507059e+37 }
 0x331   : > { %v1042_v32 = vmul.f32 %v3142_v24, %v1041_v2 }
 0x332   : > { %3145 = vpow2.f32 %v969_v30 }
 0x333   : > { %v1043_v47 = vadd.f32 %v3142_v24, %v1042_v32 }
 0x334   : > { %v3144_v28 = vpop.eup %3143 }
 0x335   : > { %v1055_v34 = vmul.f32 %v3144_v28, %v996_v25  ;;  %v927_v35 = vpop.xlane.xlu0 %926  ;;  %vm1060_vm4 = vweird.f32 %v3144_v28  ;;  %v1047_v3 = vsel %vm3515_vm6, %v3142_v24, %v1043_v47 }
 0x336   : > { %v953_v38 = vsub.f32 %v3457_v43, %v927_v35  ;;  %v1048_v43 = vand.u32 2147483647, %v993_v36  ;;  %vm1061_vm8 = vmor %vm1059_vm7, %vm1060_vm4  ;;  %v3519_v63 = vpop.xlane.xlu2 %1010  ;;  %v958_v36 = vsub.f32 %v3431_v14, %v3505_v57  ;;  %v3543_v57 = vpop.xlane.xlu1 %932 }
 0x337   : > { %v1056_v39 = vsub.f32 1.0, %v1055_v34  ;;  %vm1134_vm3 = vweird.f32 %v3519_v63 }
 0x338   : > { %v3511_v46 = vpop.eup %3145  ;;  %v979_v18 = vmul.f32 1.442695, %v953_v38  ;;  %vm1049_vm10 = vcmp.eq.f32.partialorder %v1048_v43, 8.507059e+37  ;;  %v989_v26 = vmul.f32 1.442695, %v958_v36 }
 0x339   : > { %v1057_v48 = vmul.f32 %v3144_v28, %v1056_v39  ;;  %v1006_v53 = vsel %vm894_vm2, %v3511_v46, 0.0  ;;  %v1052_v10 = vsel %vm1049_vm10, %v1051_v9, %v1047_v3  ;;  %v1140_v3 = vand.u32 2147483648, %v3519_v63 }
 0x33a   : > { %3147 = vpow2.f32 %v979_v18  ;;  %1007 = vadd.xlane.f32.xlu1 %v1006_v53  ;;  %v1053_v20 = vmul.f32 %v3441_v4, %v1052_v10 }
 0x33b   : > { %v1058_v59 = vadd.f32 %v3144_v28, %v1057_v48 }
 0x33d   : > { %v1062_v61 = vsel %vm1061_vm8, %v3144_v28, %v1058_v59  ;;  %v939_v0 = vpop.xlane.xlu0 %938 }
 0x33e   : > { %v1067_v7 = vsel %vm1064_vm9, %v1066_v60, %v1062_v61  ;;  %v957_v12 = vsub.f32 %v3404_v49, %v939_v0 }
 0x33f   : > { %v1068_v13 = vmul.f32 %v3448_v33, %v1067_v7 }
 0x340   : > { %v987_v27 = vmul.f32 1.442695, %v957_v12  ;;  %v3525_v17 = vpop.eup %3147  ;;  %v3560_v12 = vpop.xlane.xlu1 %929 }
 0x341   : > { %2743 = vmatpush.xpose.msk.msra.mxu0 %vm894_vm2, %v1068_v13  ;;  %v1021_v19 = vsel %vm894_vm2, %v3525_v17, 0.0 }
 0x342   : > { %3149 = vpow2.f32 %v987_v27  ;;  %1022 = vadd.xlane.f32.xlu2 %v1021_v19 }
 0x343   : > { %3151 = vrcp.f32 %v3519_v63 }
 0x345   : > { %v1020_v21 = vpop.xlane.xlu2 %1019  ;;  %2744 = vmatpush.xpose.msk.msra.mxu0 %vm894_vm2, %v1053_v20  ;;  %v936_v49 = vpop.xlane.xlu0 %935  ;;  %v1141_v20 = vor.u32 1.1754944e-38, %v1140_v3 }
 0x346   : > { %3153 = vrcp.f32 %v1020_v21  ;;  %v956_v33 = vsub.f32 %v3478_v8, %v936_v49  ;;  %v1185_v28 = vand.u32 2147483648, %v1020_v21  ;;  %v1183_v35 = vand.u32 2147483647, %v1020_v21 }
 0x347   : > { %vm1179_vm12 = vweird.f32 %v1020_v21 }
 0x348   : > { %v3534_v15 = vpop.eup %3149  ;;  %v985_v24 = vmul.f32 1.442695, %v956_v33  ;;  %v1186_v45 = vor.u32 1.1754944e-38, %v1185_v28  ;;  %vm1184_vm14 = vcmp.eq.f32.partialorder %v1183_v35, 8.507059e+37 }
 0x349   : > { %v1033_v6 = vsel %vm894_vm2, %v3534_v15, 0.0  ;;  %v3152_v25 = vpop.eup %3151 }
 0x34a   : > { %1034 = vadd.xlane.f32.xlu1 %v1033_v6  ;;  %3155 = vpow2.f32 %v985_v24  ;;  %v1130_v55 = vmul.f32 %v3152_v25, %v3519_v63  ;;  %vm1135_vm15 = vweird.f32 %v3152_v25  ;;  %v2988_v6 = vunpack.i.h.bf16 %v3508_v31 }
 0x34b   : > { %vm3555_vm4 = vmor %vm1134_vm3, %vm1135_vm15 }
 0x34c   : > { %v3154_v4 = vpop.eup %3153  ;;  %v1131_v14 = vsub.f32 1.0, %v1130_v55 }
 0x34d   : > { %v1175_v2 = vmul.f32 %v3154_v4, %v1020_v21  ;;  %v1014_v30 = vpop.xlane.xlu2 %1013  ;;  %vm1180_vm11 = vweird.f32 %v3154_v4 }
 0x34e   : > { %3157 = vrcp.f32 %v1014_v30  ;;  %vm1181_vm13 = vmor %vm1179_vm12, %vm1180_vm11  ;;  %v1132_v47 = vmul.f32 %v3152_v25, %v1131_v14  ;;  %v1155_v59 = vand.u32 2147483648, %v1014_v30  ;;  %v1153_v0 = vand.u32 2147483647, %v1014_v30 }
 0x34f   : > { %v1176_v8 = vsub.f32 1.0, %v1175_v2  ;;  %3159 = vpow2.f32 %v989_v26  ;;  %vm1149_vm5 = vweird.f32 %v1014_v30  ;;  %v2947_v2 = vunpack.i.h.bf16 %v3347_v1 }
 0x350   : > { %v3541_v32 = vpop.eup %3155  ;;  %v1133_v60 = vadd.f32 %v3152_v25, %v1132_v47  ;;  %v1156_v27 = vor.u32 1.1754944e-38, %v1155_v59  ;;  %vm1154_vm7 = vcmp.eq.f32.partialorder %v1153_v0, 8.507059e+37  ;;  %v947_v1 = vsub.f32 %v3397_v41, %v3439_v23 }
 0x351   : > { %v1177_v34 = vmul.f32 %v3154_v4, %v1176_v8  ;;  %v1030_v38 = vsel %vm894_vm2, %v3541_v32, 0.0 }
 0x352   : > { %1031 = vadd.xlane.f32.xlu1 %v1030_v38  ;;  %v1137_v19 = vsel %vm3555_vm4, %v3152_v25, %v1133_v60  ;;  %v967_v47 = vmul.f32 1.442695, %v947_v1 }
 0x353   : > { %v1178_v39 = vadd.f32 %v3154_v4, %v1177_v34 }
 0x354   : > { %v3158_v40 = vpop.eup %3157 }
 0x355   : > { %v1182_v48 = vsel %vm1181_vm13, %v3154_v4, %v1178_v39  ;;  %v1145_v18 = vmul.f32 %v3158_v40, %v1014_v30  ;;  %v3547_v51 = vpop.eup %3159  ;;  %vm1150_vm0 = vweird.f32 %v3158_v40  ;;  %v945_v30 = vsub.f32 %v3407_v52, %v3503_v22 }
 0x356   : > { %v1187_v53 = vsel %vm1184_vm14, %v1186_v45, %v1182_v48  ;;  %v1036_v9 = vsel %vm894_vm2, %v3547_v51, 0.0  ;;  %vm1151_vm6 = vmor %vm1149_vm5, %vm1150_vm0  ;;  %v2987_v52 = vunpack.i.l.bf16 %v3508_v31 }
 0x357   : > { %v1146_v56 = vsub.f32 1.0, %v1145_v18  ;;  %v1188_v43 = vmul.f32 %v3481_v11, %v1187_v53  ;;  %v1138_v11 = vand.u32 2147483647, %v3519_v63  ;;  %v2991_v63 = vpop.permute.xlu1 %2990  ;;  %v946_v18 = vsub.f32 %v3419_v62, %v3454_v42 }
 0x358   : > { %v2993_v24 = vunpack.i.h.bf16 %v2991_v63  ;;  %v2992_v38 = vunpack.i.l.bf16 %v2991_v63  ;;  %v954_v62 = vsub.f32 %v3471_v54, %v3560_v12 }
 0x359   : > { %v1147_v61 = vmul.f32 %v3158_v40, %v1146_v56  ;;  %2755 = vmatpush.xpose.msk.msrb.mxu0 %vm894_vm2, %v1188_v43  ;;  %vm1139_vm8 = vcmp.eq.f32.partialorder %v1138_v11, 8.507059e+37  ;;  %v965_v23 = vmul.f32 1.442695, %v946_v18 }
 0x35a   : > { %1037 = vadd.xlane.f32.xlu1 %v1036_v9  ;;  %v1142_v33 = vsel %vm1139_vm8, %v1141_v20, %v1137_v19  ;;  %v3027_v4 = vpack.i.bf16 %v2993_v24, %v2988_v6  ;;  %v3020_v45 = vpack.i.bf16 %v2992_v38, %v2987_v52 }
 0x35b   : > { %v1148_v13 = vadd.f32 %v3158_v40, %v1147_v61  ;;  %v1143_v36 = vmul.f32 %v3466_v50, %v1142_v33  ;;  %v2942_v50 = vunpack.i.h.bf16 %v3345_v58  ;;  %v981_v61 = vmul.f32 1.442695, %v954_v62 }
 0x35d   : > { %v1152_v10 = vsel %vm1151_vm6, %v3158_v40, %v1148_v13  ;;  %v3018_v28 = vpack.i.bf16 %v2947_v2, %v2942_v50 }
 0x35e   : > { %v1157_v21 = vsel %vm1154_vm7, %v1156_v27, %v1152_v10 }
 0x35f   : > { %v1158_v49 = vmul.f32 %v3487_v16, %v1157_v21  ;;  %v3573_v16 = vpop.permute.xlu1 %2995 }
 0x361   : > { %2752 = vmatpush.xpose.msk.msra.mxu3 %vm894_vm2, %v1158_v49 }
 0x365   : > { %2753 = vmatpush.xpose.msk.msra.mxu3 %vm894_vm2, %v1143_v36 }
 0x36b   : > { %3028 = vxpose.xlu2.b32.start [1/2] (short) (narrow) %v3027_v4, 8 }
 0x371   : > { %3009 = vrot.lane.b32.xlu0 %v3311_v29, %s3225_s7 }
 0x379   : > { %3014 = vrot.lane.b32.xlu0 %v3321_v37, %s3225_s7  ;;  %v963_v37 = vmul.f32 1.442695, %v945_v30 }
 0x388   : > { %v1017_v25 = vpop.xlane.xlu1 %1016 }
 0x389   : > { %3161 = vrcp.f32 %v1017_v25  ;;  %v1170_v14 = vand.u32 2147483648, %v1017_v25  ;;  %v1168_v34 = vand.u32 2147483647, %v1017_v25  ;;  %vm1164_vm10 = vweird.f32 %v1017_v25 }
 0x38a   : > { %3163 = vpow2.f32 %v963_v37 }
 0x38b   : > { %v1171_v39 = vor.u32 1.1754944e-38, %v1170_v14  ;;  %vm1169_vm12 = vcmp.eq.f32.partialorder %v1168_v34, 8.507059e+37  ;;  %3165 = vpow2.f32 %v967_v47 }
 0x38c   : > { %3167 = vpow2.f32 %v965_v23 }
 0x38f   : > { %v3162_v26 = vpop.eup %3161 }
 0x390   : > { %v1160_v55 = vmul.f32 %v3162_v26, %v1017_v25  ;;  %vm1165_vm9 = vweird.f32 %v3162_v26  ;;  %v3584_v48 = vpop.eup %3163 }
 0x391   : > { %vm1166_vm11 = vmor %vm1164_vm10, %vm1165_vm9  ;;  %v997_v41 = vsel %vm894_vm2, %v3584_v48, 0.0  ;;  %v3590_v31 = vpop.eup %3165 }
 0x392   : > { %v1161_v8 = vsub.f32 1.0, %v1160_v55  ;;  %v1003_v53 = vsel %vm894_vm2, %v3590_v31, 0.0  ;;  %v3596_v59 = vpop.eup %3167 }
 0x393   : > { %v1000_v42 = vsel %vm894_vm2, %v3596_v59, 0.0 }
 0x394   : > { %v1162_v29 = vmul.f32 %v3162_v26, %v1161_v8  ;;  %3019 = vxpose.xlu1.b32.start [1/2] (short) (narrow) %v3018_v28, 8 }
 0x396   : > { %v1163_v35 = vadd.f32 %v3162_v26, %v1162_v29 }
 0x398   : > { %v1167_v58 = vsel %vm1166_vm11, %v3162_v26, %v1163_v35 }
 0x399   : > { %v1172_v22 = vsel %vm1169_vm12, %v1171_v39, %v1167_v58 }
 0x39a   : > { %v1173_v40 = vmul.f32 %v3499_v5, %v1172_v22  ;;  %v955_v5 = vsub.f32 %v3460_v44, %v3543_v57 }
 0x39c   : > { %2756 = vmatpush.xpose.msk.msrb.mxu0 %vm894_vm2, %v1173_v40  ;;  %3021 = vxpose.xlu1.b32.end [2/2] (short) (narrow) %v3020_v45, 8  ;;  %v983_v56 = vmul.f32 1.442695, %v955_v5 }
 0x39f   : > { %v3606_v27 = vpop.trf.xlu0 }
 0x3a0   : > { %v3007_v49 = vunpack.i.h.bf16 %v3606_v27 }
 0x3a2   : > { %2754 = vmatmul.msk.f32.vlgmr.msra.gmra.mxu3 %vm894_vm2, %v3007_v49 }
 0x3a3   : > { %998 = vadd.xlane.f32.xlu0 %v997_v41 }
 0x3ab   : > { %1004 = vadd.xlane.f32.xlu0 %v1003_v53 }
 0x3ad   : > { %v1008_v43 = vpop.xlane.xlu1 %1007 }
 0x3ae   : > { %3169 = vrcp.f32 %v1008_v43  ;;  %v1125_v3 = vand.u32 2147483648, %v1008_v43  ;;  %v1123_v7 = vand.u32 2147483647, %v1008_v43  ;;  %vm1119_vm14 = vweird.f32 %v1008_v43 }
 0x3af   : > { %3171 = vpow2.f32 %v983_v56 }
 0x3b0   : > { %3173 = vpow2.f32 %v981_v61  ;;  %v1126_v12 = vor.u32 1.1754944e-38, %v1125_v3  ;;  %vm1124_vm0 = vcmp.eq.f32.partialorder %v1123_v7, 8.507059e+37 }
 0x3b3   : > { %1001 = vadd.xlane.f32.xlu0 %v1000_v42 }
 0x3b4   : > { %v3170_v60 = vpop.eup %3169 }
 0x3b5   : > { %v1115_v44 = vmul.f32 %v3170_v60, %v1008_v43  ;;  %v3602_v57 = vpop.eup %3171  ;;  %vm1120_vm13 = vweird.f32 %v3170_v60 }
 0x3b6   : > { %v1027_v11 = vsel %vm894_vm2, %v3602_v57, 0.0  ;;  %vm1121_vm15 = vmor %vm1119_vm14, %vm1120_vm13  ;;  %v3608_v19 = vpop.eup %3173 }
 0x3b7   : > { %v1116_v0 = vsub.f32 1.0, %v1115_v44  ;;  %v1024_v33 = vsel %vm894_vm2, %v3608_v19, 0.0 }
 0x3b9   : > { %v1117_v9 = vmul.f32 %v3170_v60, %v1116_v0 }
 0x3bb   : > { %1028 = vadd.xlane.f32.xlu0 %v1027_v11  ;;  %v1118_v54 = vadd.f32 %v3170_v60, %v1117_v9 }
 0x3bd   : > { %v1035_v13 = vpop.xlane.xlu1 %1034  ;;  %v1122_v10 = vsel %vm1121_vm15, %v3170_v60, %v1118_v54  ;;  %v3639_v54 = vpop.xlane.xlu2 %1022 }
 0x3be   : > { %v1127_v20 = vsel %vm1124_vm0, %v1126_v12, %v1122_v10  ;;  %3175 = vrcp.f32 %v1035_v13  ;;  %vm1254_vm5 = vweird.f32 %v1035_v13  ;;  %v1260_v28 = vand.u32 2147483648, %v1035_v13 }
 0x3bf   : > { %v1128_v21 = vmul.f32 %v3511_v46, %v1127_v20  ;;  %v1258_v14 = vand.u32 2147483647, %v1035_v13 }
 0x3c0   : > { %v1261_v38 = vor.u32 1.1754944e-38, %v1260_v28 }
 0x3c1   : > { %2749 = vmatpush.xpose.msk.msra.mxu2 %vm894_vm2, %v1128_v21  ;;  %vm1259_vm10 = vcmp.eq.f32.partialorder %v1258_v14, 8.507059e+37 }
 0x3c3   : > { %1025 = vadd.xlane.f32.xlu0 %v1024_v33 }
 0x3c4   : > { %v3176_v36 = vpop.eup %3175 }
 0x3c5   : > { %v3616_v63 = vpop.xlane.xlu1 %1031  ;;  %v1250_v24 = vmul.f32 %v3176_v36, %v1035_v13  ;;  %vm1255_vm3 = vweird.f32 %v3176_v36 }
 0x3c6   : > { %vm1256_vm6 = vmor %vm1254_vm5, %vm1255_vm3  ;;  %vm1239_vm12 = vweird.f32 %v3616_v63  ;;  %v1245_v3 = vand.u32 2147483648, %v3616_v63  ;;  %v1243_v7 = vand.u32 2147483647, %v3616_v63 }
 0x3c7   : > { %v1251_v4 = vsub.f32 1.0, %v1250_v24 }
 0x3c8   : > { %v1246_v21 = vor.u32 1.1754944e-38, %v1245_v3  ;;  %vm1244_vm15 = vcmp.eq.f32.partialorder %v1243_v7, 8.507059e+37 }
 0x3c9   : > { %v1252_v46 = vmul.f32 %v3176_v36, %v1251_v4 }
 0x3cb   : > { %v1253_v2 = vadd.f32 %v3176_v36, %v1252_v46 }
 0x3cd   : > { %v1038_v6 = vpop.xlane.xlu1 %1037  ;;  %v1257_v35 = vsel %vm1256_vm6, %v3176_v36, %v1253_v2 }
 0x3ce   : > { %3177 = vrcp.f32 %v1038_v6  ;;  %v1275_v55 = vand.u32 2147483648, %v1038_v6  ;;  %v1273_v8 = vand.u32 2147483647, %v1038_v6  ;;  %vm1269_vm7 = vweird.f32 %v1038_v6 }
 0x3cf   : > { %v1262_v1 = vsel %vm1259_vm10, %v1261_v38, %v1257_v35  ;;  %3179 = vrcp.f32 %v3616_v63 }
 0x3d0   : > { %v1276_v34 = vor.u32 1.1754944e-38, %v1275_v55  ;;  %vm1274_vm9 = vcmp.eq.f32.partialorder %v1273_v8, 8.507059e+37  ;;  %v1263_v22 = vmul.f32 %v3534_v15, %v1262_v1 }
 0x3d4   : > { %v3178_v25 = vpop.eup %3177 }
 0x3d5   : > { %v1265_v26 = vmul.f32 %v3178_v25, %v1038_v6  ;;  %vm1270_vm4 = vweird.f32 %v3178_v25 }
 0x3d6   : > { %vm1271_vm8 = vmor %vm1269_vm7, %vm1270_vm4 }
 0x3d7   : > { %v1266_v50 = vsub.f32 1.0, %v1265_v26 }
 0x3d9   : > { %v1267_v30 = vmul.f32 %v3178_v25, %v1266_v50 }
 0x3db   : > { %v1268_v29 = vadd.f32 %v3178_v25, %v1267_v30 }
 0x3dd   : > { %v1272_v37 = vsel %vm1271_vm8, %v3178_v25, %v1268_v29 }
 0x3de   : > { %v1277_v39 = vsel %vm1274_vm9, %v1276_v34, %v1272_v37  ;;  %v3004_v37 = vunpack.i.l.bf16 %v3606_v27 }
 0x3df   : > { %v1278_v58 = vmul.f32 %v3547_v51, %v1277_v39  ;;  %v3180_v51 = vpop.eup %3179 }
 0x3e0   : > { %v1235_v15 = vmul.f32 %v3180_v51, %v3616_v63  ;;  %vm1240_vm11 = vweird.f32 %v3180_v51 }
 0x3e1   : > { %2764 = vmatpush.xpose.msk.msrb.mxu3 %vm894_vm2, %v1278_v58  ;;  %vm3634_vm13 = vmor %vm1239_vm12, %vm1240_vm11 }
 0x3e2   : > { %v1236_v56 = vsub.f32 1.0, %v1235_v15 }
 0x3e3   : > { %v3010_v52 = vpop.permute.xlu0 %3009 }
 0x3e4   : > { %v3012_v45 = vunpack.i.h.bf16 %v3010_v52  ;;  %v3011_v47 = vunpack.i.l.bf16 %v3010_v52  ;;  %v1237_v62 = vmul.f32 %v3180_v51, %v1236_v56 }
 0x3e5   : > { %2765 = vmatpush.xpose.msk.msrb.mxu3 %vm894_vm2, %v1263_v22 }
 0x3e6   : > { %v1238_v61 = vadd.f32 %v3180_v51, %v1237_v62 }
 0x3e8   : > { %v1242_v12 = vsel %vm3634_vm13, %v3180_v51, %v1238_v61 }
 0x3e9   : > { %v1247_v24 = vsel %vm1244_vm15, %v1246_v21, %v1242_v12 }
 0x3ea   : > { %v1248_v30 = vmul.f32 %v3541_v32, %v1247_v24 }
 0x3eb   : > { %v3015_v40 = vpop.permute.xlu0 %3014 }
 0x3ec   : > { %v3017_v18 = vunpack.i.h.bf16 %v3015_v40  ;;  %v3016_v41 = vunpack.i.l.bf16 %v3015_v40 }
 0x3ee   : > { %v3036_v23 = vpack.i.bf16 %v3017_v18, %v3012_v45  ;;  %v3029_v5 = vpack.i.bf16 %v3016_v41, %v3011_v47 }
 0x3f0   : > { %3037 = vxpose.xlu0.b32.start [1/2] (short) (narrow) %v3036_v23, 8  ;;  %3030 = vxpose.xlu2.b32.end [2/2] (short) (narrow) %v3029_v5, 8 }
 0x3f8   : > { %3039 = vxpose.xlu0.b32.end [2/2] (short) (narrow) %v3573_v16, 8 }
 0x416   : > { %v3624_v53 = vpop.xlane.xlu0 %998 }
 0x417   : > { %3181 = vrcp.f32 %v3624_v53  ;;  %vm1074_vm7 = vweird.f32 %v3624_v53  ;;  %v1080_v34 = vand.u32 2147483648, %v3624_v53  ;;  %v1078_v32 = vand.u32 2147483647, %v3624_v53 }
 0x419   : > { %v1081_v40 = vor.u32 1.1754944e-38, %v1080_v34  ;;  %vm1079_vm12 = vcmp.eq.f32.partialorder %v1078_v32, 8.507059e+37 }
 0x41d   : > { %v3628_v42 = vpop.eup %3181 }
 0x41e   : > { %v1005_v43 = vpop.xlane.xlu0 %1004  ;;  %v1070_v16 = vmul.f32 %v3628_v42, %v3624_v53  ;;  %vm1075_vm5 = vweird.f32 %v3628_v42 }
 0x41f   : > { %3183 = vrcp.f32 %v1005_v43  ;;  %v1110_v20 = vand.u32 2147483648, %v1005_v43  ;;  %v1108_v49 = vand.u32 2147483647, %v1005_v43  ;;  %vm1104_vm0 = vweird.f32 %v1005_v43  ;;  %vm3655_vm8 = vmor %vm1074_vm7, %vm1075_vm5 }
 0x420   : > { %v1071_v13 = vsub.f32 1.0, %v1070_v16  ;;  %vm1194_vm5 = vweird.f32 %v3639_v54 }
 0x421   : > { %v1111_v6 = vor.u32 1.1754944e-38, %v1110_v20  ;;  %vm1109_vm4 = vcmp.eq.f32.partialorder %v1108_v49, 8.507059e+37 }
 0x422   : > { %v1072_v63 = vmul.f32 %v3628_v42, %v1071_v13  ;;  %v1200_v13 = vand.u32 2147483648, %v3639_v54 }
 0x424   : > { %v1073_v28 = vadd.f32 %v3628_v42, %v1072_v63 }
 0x425   : > { %v3184_v60 = vpop.eup %3183 }
 0x426   : > { %v1100_v44 = vmul.f32 %v3184_v60, %v1005_v43  ;;  %v1002_v0 = vpop.xlane.xlu0 %1001  ;;  %vm1105_vm14 = vweird.f32 %v3184_v60  ;;  %v1077_v22 = vsel %vm3655_vm8, %v3628_v42, %v1073_v28 }
 0x427   : > { %3185 = vrcp.f32 %v1002_v0  ;;  %vm1106_vm3 = vmor %vm1104_vm0, %vm1105_vm14  ;;  %v1095_v55 = vand.u32 2147483648, %v1002_v0  ;;  %v1093_v29 = vand.u32 2147483647, %v1002_v0  ;;  %vm1089_vm9 = vweird.f32 %v1002_v0 }
 0x428   : > { %v1101_v11 = vsub.f32 1.0, %v1100_v44  ;;  %3187 = vrcp.f32 %v3639_v54  ;;  %v1082_v51 = vsel %vm1079_vm12, %v1081_v40, %v1077_v22  ;;  %vm2578_vm12 = vcmask 64512  }
 0x429   : > { %v1096_v58 = vor.u32 1.1754944e-38, %v1095_v55  ;;  %vm1094_vm11 = vcmp.eq.f32.partialorder %v1093_v29, 8.507059e+37  ;;  %v1083_v62 = vmul.f32 %v3584_v48, %v1082_v51 }
 0x42a   : > { %v1102_v10 = vmul.f32 %v3184_v60, %v1101_v11 }
 0x42c   : > { %v1103_v33 = vadd.f32 %v3184_v60, %v1102_v10  ;;  %v1198_v10 = vand.u32 2147483647, %v3639_v54 }
 0x42d   : > { %v3186_v36 = vpop.eup %3185 }
 0x42e   : > { %v1085_v4 = vmul.f32 %v3186_v36, %v1002_v0  ;;  %v1029_v25 = vpop.xlane.xlu0 %1028  ;;  %v1107_v46 = vsel %vm1106_vm3, %v3184_v60, %v1103_v33  ;;  %v3648_v8 = vpop.eup %3187  ;;  %vm1090_vm6 = vweird.f32 %v3186_v36  ;;  %v1201_v33 = vor.u32 1.1754944e-38, %v1200_v13 }
 0x42f   : > { %3189 = vrcp.f32 %v1029_v25  ;;  %v1112_v50 = vsel %vm1109_vm4, %v1111_v6, %v1107_v46  ;;  %v1190_v39 = vmul.f32 %v3648_v8, %v3639_v54  ;;  %vm1091_vm10 = vmor %vm1089_vm9, %vm1090_vm6  ;;  %v1230_v23 = vand.u32 2147483648, %v1029_v25 }
 0x430   : > { %v1086_v26 = vsub.f32 1.0, %v1085_v4  ;;  %v1113_v2 = vmul.f32 %v3590_v31, %v1112_v50  ;;  %v1228_v15 = vand.u32 2147483647, %v1029_v25  ;;  %vm1224_vm14 = vweird.f32 %v1029_v25 }
 0x431   : > { %v1191_v41 = vsub.f32 1.0, %v1190_v39  ;;  %v1231_v60 = vor.u32 1.1754944e-38, %v1230_v23  ;;  %vm1195_vm3 = vweird.f32 %v3648_v8 }
 0x432   : > { %v1087_v14 = vmul.f32 %v3186_v36, %v1086_v26  ;;  %2750 = vmatpush.xpose.msk.msra.mxu2 %vm894_vm2, %v1113_v2  ;;  %vm1229_vm0 = vcmp.eq.f32.partialorder %v1228_v15, 8.507059e+37  ;;  %vm1196_vm6 = vmor %vm1194_vm5, %vm1195_vm3 }
 0x434   : > { %v1088_v31 = vadd.f32 %v3186_v36, %v1087_v14 }
 0x435   : > { %v3190_v38 = vpop.eup %3189  ;;  %2751 = vmatmul.msk.f32.vlgmr.msra.gmra.mxu2 %vm894_vm2, %v3004_v37 }
 0x436   : > { %2761 = vmatpush.xpose.msk.msrb.mxu2 %vm894_vm2, %v1248_v30  ;;  %v1092_v1 = vsel %vm1091_vm10, %v3186_v36, %v1088_v31  ;;  %v1220_v52 = vmul.f32 %v3190_v38, %v1029_v25  ;;  %v1026_v27 = vpop.xlane.xlu0 %1025  ;;  %vm1225_vm13 = vweird.f32 %v3190_v38  ;;  %vm1199_vm10 = vcmp.eq.f32.partialorder %v1198_v10, 8.507059e+37 }
 0x437   : > { %v1097_v45 = vsel %vm1094_vm11, %v1096_v58, %v1092_v1  ;;  %3191 = vrcp.f32 %v1026_v27  ;;  %vm1226_vm15 = vmor %vm1224_vm14, %vm1225_vm13  ;;  %v1215_v48 = vand.u32 2147483648, %v1026_v27  ;;  %v1213_v12 = vand.u32 2147483647, %v1026_v27 }
 0x438   : > { %v1221_v47 = vsub.f32 1.0, %v1220_v52  ;;  %v1098_v18 = vmul.f32 %v3596_v59, %v1097_v45  ;;  %v3022_v5 = vpop.trf.xlu1  ;;  %v1192_v59 = vmul.f32 %v3648_v8, %v1191_v41  ;;  %vm1209_vm7 = vweird.f32 %v1026_v27 }
 0x439   : > { %v3023_v56 = vunpack.i.l.bf16 %v3022_v5  ;;  %v3026_v61 = vunpack.i.h.bf16 %v3022_v5  ;;  %v1216_v20 = vor.u32 1.1754944e-38, %v1215_v48  ;;  %vm1214_vm9 = vcmp.eq.f32.partialorder %v1213_v12, 8.507059e+37 }
 0x43a   : > { %v1222_v53 = vmul.f32 %v3190_v38, %v1221_v47  ;;  %2746 = vmatpush.xpose.msk.msra.mxu1 %vm894_vm2, %v1098_v18  ;;  %v1193_v7 = vadd.f32 %v3648_v8, %v1192_v59  ;;  %v3226_v1 = vmov 1983009808   ;;  %vm2072_vm11 = vcmask 1047556  }
 0x43b   : > { %2745 = vmatmul.msk.f32.vlgmr.msra.gmra.mxu0 %vm894_vm2, %v3023_v56  ;;  %v2077_v52 = vunpack.c.l.s4 %v3226_v1  ;;  %vm2581_vm13 = vcmask 97280   ;;  %vm2586_vm14 = vcmask 162816  }
 0x43c   : > { %v1223_v43 = vadd.f32 %v3190_v38, %v1222_v53  ;;  %v1197_v49 = vsel %vm1196_vm6, %v3648_v8, %v1193_v7 }
 0x43d   : > { %v3192_v42 = vpop.eup %3191  ;;  %v1202_v63 = vsel %vm1199_vm10, %v1201_v33, %v1197_v49  ;;  %v3696_v23 = vunpack.c.0.s8 %v2077_v52 }
 0x43e   : > { %v1205_v16 = vmul.f32 %v3192_v42, %v1026_v27  ;;  %2747 = vmatpush.xpose.msk.msra.mxu1 %vm894_vm2, %v1083_v62  ;;  %v1227_v44 = vsel %vm1226_vm15, %v3190_v38, %v1223_v43  ;;  %vm1210_vm4 = vweird.f32 %v3192_v42  ;;  %v1203_v6 = vmul.f32 %v3525_v17, %v1202_v63 }
 0x43f   : > { %v1232_v0 = vsel %vm1229_vm0, %v1231_v60, %v1227_v44  ;;  %vm1211_vm8 = vmor %vm1209_vm7, %vm1210_vm4  ;;  %vm2592_vm15 = vcmask 228352   ;;  %vm2597_vm0 = vcmask 257024  }
 0x440   : > { %v1206_v3 = vsub.f32 1.0, %v1205_v16  ;;  %v1233_v9 = vmul.f32 %v3602_v57, %v1232_v0  ;;  %v3227_v0 = vmov 1934713408  }
 0x441   : > { %2748 = vmatmul.msk.f32.vlgmr.msra.gmra.mxu1 %vm894_vm2, %v3026_v61 }
 0x442   : > { %v1207_v11 = vmul.f32 %v3192_v42, %v1206_v3  ;;  %2762 = vmatpush.xpose.msk.msrb.mxu2 %vm894_vm2, %v1233_v9  ;;  %v2125_v3 = vunpack.c.l.s4 %v3227_v0 }
 0x444   : > { %v1208_v57 = vadd.f32 %v3192_v42, %v1207_v11  ;;  %v3711_v33 = vunpack.c.0.s8 %v2125_v3 }
 0x446   : > { %v1212_v21 = vsel %vm1211_vm8, %v3192_v42, %v1208_v57 }
 0x447   : > { %v1217_v36 = vsel %vm1214_vm9, %v1216_v20, %v1212_v21 }
 0x448   : > { %v1218_v24 = vmul.f32 %v3608_v19, %v1217_v36  ;;  %v1696_v19 = vpop.f32.mrf.mxu3 }
 0x44a   : > { %2758 = vmatpush.xpose.msk.msrb.mxu1 %vm894_vm2, %v1218_v24 }
 0x44e   : > { %2759 = vmatpush.xpose.msk.msrb.mxu1 %vm894_vm2, %v1203_v6 }
 0x481   : > { %v3031_v54 = vpop.trf.xlu2 }
 0x482   : > { %v3035_v4 = vunpack.i.h.bf16 %v3031_v54  ;;  %v3032_v25 = vunpack.i.l.bf16 %v3031_v54 }
 0x484   : > { %2763 = vmatmul.msk.f32.vlgmr.msrb.gmra.mxu2 %vm894_vm2, %v3032_v25  ;;  %2766 = vmatmul.msk.f32.vlgmr.msrb.gmra.mxu3 %vm894_vm2, %v3035_v4 }
 0x494   : > { %v3040_v46 = vpop.trf.xlu0 }
 0x495   : > { %v3044_v26 = vunpack.i.h.bf16 %v3040_v46  ;;  %v3041_v50 = vunpack.i.l.bf16 %v3040_v46 }
 0x497   : > { %2757 = vmatmul.msk.f32.vlgmr.msrb.gmra.mxu0 %vm894_vm2, %v3041_v50  ;;  %2760 = vmatmul.msk.f32.vlgmr.msrb.gmra.mxu1 %vm894_vm2, %v3044_v26 }
 0x4b8   : > { %v1609_v55 = vpop.f32.mrf.mxu0  ;;  %v1667_v17 = vpop.f32.mrf.mxu2 }
 0x4b9   : > { %v3057_v2 = vpack.i.bf16 %v1696_v19, %v1609_v55 }
 0x4bb   : > { %3058 = vxpose.xlu2.b32.start.end [1/1] (short) (narrow) %v3057_v2, 16 }
 0x4be   : > { %v1638_v30 = vpop.f32.mrf.mxu1 }
 0x507   : > { %v1783_v8 = vpop.f32.mrf.mxu2  ;;  %v1812_v37 = vpop.f32.mrf.mxu3 }
 0x508   : > { %v3069_v28 = vpack.i.bf16 %v1638_v30, %v1783_v8 }
 0x50a   : > { %3070 = vxpose.xlu1.b32.start.end [1/1] (short) (narrow) %v3069_v28, 16 }
 0x514   : > { %v1725_v14 = vpop.f32.mrf.mxu0  ;;  %v1754_v34 = vpop.f32.mrf.mxu1 }
 0x515   : > { %v3045_v29 = vpack.i.bf16 %v1725_v14, %v1667_v17  ;;  %v3081_v35 = vpack.i.bf16 %v1812_v37, %v1754_v34 }
 0x517   : > { %3046 = vxpose.xlu0.b32.start.end [1/1] (short) (narrow) %v3045_v29, 16 }
 0x527   : > { %3082 = vxpose.xlu0.b32.start.end [1/1] (short) (narrow) %v3081_v35, 16 }
 0x554   : > { %v3059_v32 = vpop.trf.xlu2 }
 0x555   : > { %v3063_v39 = vunpack.i.h.bf16 %v3059_v32  ;;  %v3060_v22 = vunpack.i.l.bf16 %v3059_v32 }
 0x557   : > { %v2084_v27 = vrot.slane %v3063_v39, 4  ;;  %v2074_v5 = vrot.slane %v3060_v22, 4 }
 0x55c   : > { %v3690_v31 = vpop.trf.xlu2 }
 0x55d   : > { %v3068_v41 = vunpack.i.h.bf16 %v3690_v31  ;;  %v3065_v9 = vunpack.i.l.bf16 %v3690_v31 }
 0x55f   : > { %v2196_v60 = vrot.slane %v3068_v41, 4  ;;  %v2186_v36 = vrot.slane %v3065_v9, 4 }
 0x5ae   : > { %v3071_v38 = vpop.trf.xlu1 }
 0x5af   : > { %v3075_v58 = vunpack.i.h.bf16 %v3071_v38  ;;  %v3072_v18 = vunpack.i.l.bf16 %v3071_v38 }
 0x5b1   : > { %v2086_v45 = vrot.slane %v3075_v58, 4  ;;  %v2085_v51 = vsel %vm2072_vm11, %v2084_v27, %v3075_v58  ;;  %v2096_v42 = vrot.slane %v3072_v18, 4 }
 0x5b2   : > { %v2091_v44 = vperm.slane %v2085_v51, %v3696_v23 }
 0x5b3   : > { %v2087_v53 = vsel %vm2072_vm11, %v3063_v39, %v2086_v45 }
 0x5b4   : > { %v2095_v61 = vperm.slane %v2087_v53, %v3696_v23  ;;  %v2120_v49 = vrot.slane %v2091_v44, 4 }
 0x5b6   : > { %v3692_v40 = vpop.trf.xlu1  ;;  %v2132_v57 = vrot.slane %v2095_v61, 4 }
 0x5b7   : > { %v3080_v47 = vunpack.i.h.bf16 %v3692_v40  ;;  %v3077_v21 = vunpack.i.l.bf16 %v3692_v40 }
 0x5b9   : > { %v2198_v56 = vrot.slane %v3080_v47, 4  ;;  %v2197_v10 = vsel %vm2072_vm11, %v2196_v60, %v3080_v47  ;;  %v2208_v55 = vrot.slane %v3077_v21, 4 }
 0x5ba   : > { %v2203_v4 = vperm.slane %v2197_v10, %v3696_v23 }
 0x5bb   : > { %v3047_v15 = vpop.trf.xlu0  ;;  %v2199_v11 = vsel %vm2072_vm11, %v3068_v41, %v2198_v56 }
 0x5bc   : > { %v3051_v43 = vunpack.i.h.bf16 %v3047_v15  ;;  %v3048_v62 = vunpack.i.l.bf16 %v3047_v15  ;;  %v2207_v24 = vperm.slane %v2199_v11, %v3696_v23  ;;  %v2232_v29 = vrot.slane %v2203_v4, 4 }
 0x5be   : > { %v2071_v59 = vrot.slane %v3048_v62, 4  ;;  %v2075_v16 = vsel %vm2072_vm11, %v3048_v62, %v2074_v5  ;;  %v2098_v48 = vrot.slane %v3051_v43, 4  ;;  %v2097_v13 = vsel %vm2072_vm11, %v2096_v42, %v3051_v43 }
 0x5bf   : > { %v2083_v12 = vperm.slane %v2075_v16, %v3696_v23  ;;  %v3716_v54 = vperm.slane %v2097_v13, %v3696_v23  ;;  %v2244_v30 = vrot.slane %v2207_v24, 4 }
 0x5c0   : > { %v2073_v7 = vsel %vm2072_vm11, %v2071_v59, %v3060_v22  ;;  %v2099_v6 = vsel %vm2072_vm11, %v3072_v18, %v2098_v48 }
 0x5c1   : > { %v2079_v20 = vperm.slane %v2073_v7, %v3696_v23  ;;  %v2134_v46 = vrot.slane %v2083_v12, 4  ;;  %v2133_v19 = vsel %vm2072_vm11, %v2132_v57, %v2083_v12  ;;  %v2107_v17 = vperm.slane %v2099_v6, %v3696_v23 }
 0x5c2   : > { %v3726_v35 = vperm.slane %v2133_v19, %v3711_v33  ;;  %v2146_v32 = vrot.slane %v3716_v54, 4 }
 0x5c3   : > { %v3052_v63 = vpop.trf.xlu0  ;;  %v2122_v50 = vrot.slane %v2079_v20, 4  ;;  %v2121_v14 = vsel %vm2072_vm11, %v2120_v49, %v2079_v20  ;;  %v2135_v37 = vsel %vm2072_vm11, %v2095_v61, %v2134_v46  ;;  %v2158_v27 = vrot.slane %v2107_v17, 4 }
 0x5c4   : > { %v3056_v25 = vunpack.i.h.bf16 %v3052_v63  ;;  %v3053_v26 = vunpack.i.l.bf16 %v3052_v63  ;;  %v3735_v52 = vperm.slane %v2121_v14, %v3711_v33  ;;  %v3739_v47 = vperm.slane %v2135_v37, %v3711_v33 }
 0x5c5   : > { %v2123_v38 = vsel %vm2072_vm11, %v2091_v44, %v2122_v50  ;;  %v2178_v42 = vrot.slane %v3726_v35, 4 }
 0x5c6   : > { %v2210_v2 = vrot.slane %v3056_v25, 4  ;;  %v2184_v8 = vrot.slane %v3053_v26, 4  ;;  %v2187_v28 = vsel %vm2072_vm11, %v3053_v26, %v2186_v36  ;;  %v2209_v58 = vsel %vm2072_vm11, %v2208_v55, %v3056_v25 }
 0x5c7   : > { %v2195_v34 = vperm.slane %v2187_v28, %v3696_v23  ;;  %v2131_v51 = vperm.slane %v2123_v38, %v3711_v33  ;;  %v3744_v53 = vperm.slane %v2209_v58, %v3696_v23  ;;  %v2170_v16 = vrot.slane %v3735_v52, 4 }
 0x5c8   : > { %v2185_v31 = vsel %vm2072_vm11, %v2184_v8, %v3065_v9  ;;  %v2211_v1 = vsel %vm2072_vm11, %v3077_v21, %v2210_v2  ;;  %v2182_v44 = vrot.slane %v3739_v47, 4 }
 0x5c9   : > { %v2191_v39 = vperm.slane %v2185_v31, %v3696_v23  ;;  %v2245_v22 = vsel %vm2072_vm11, %v2244_v30, %v2195_v34  ;;  %v2246_v40 = vrot.slane %v2195_v34, 4  ;;  %v3747_v15 = vperm.slane %v2211_v1, %v3696_v23 }
 0x5ca   : > { %v3750_v56 = vperm.slane %v2245_v22, %v3711_v33  ;;  %v2174_v9 = vrot.slane %v2131_v51, 4  ;;  %v2258_v48 = vrot.slane %v3744_v53, 4 }
 0x5cb   : > { %v3083_v45 = vpop.trf.xlu0  ;;  %v2233_v18 = vsel %vm2072_vm11, %v2232_v29, %v2191_v39  ;;  %v2234_v41 = vrot.slane %v2191_v39, 4  ;;  %v2247_v59 = vsel %vm2072_vm11, %v2207_v24, %v2246_v40  ;;  %v2270_v7 = vrot.slane %v3747_v15, 4 }
 0x5cc   : > { %v3087_v5 = vunpack.i.h.bf16 %v3083_v45  ;;  %v3084_v62 = vunpack.i.l.bf16 %v3083_v45  ;;  %v3755_v61 = vperm.slane %v2233_v18, %v3711_v33  ;;  %v3766_v13 = vperm.slane %v2247_v59, %v3711_v33 }
 0x5cd   : > { %v2235_v60 = vsel %vm2072_vm11, %v2203_v4, %v2234_v41  ;;  %v2290_v10 = vrot.slane %v3750_v56, 4 }
 0x5ce   : > { %v2108_v43 = vrot.slane %v3087_v5, 4  ;;  %v2110_v3 = vrot.slane %v3084_v62, 4  ;;  %v2243_v12 = vperm.slane %v2235_v60, %v3711_v33  ;;  %v2282_v20 = vrot.slane %v3755_v61, 4 }
 0x5cf   : > { %v2294_v50 = vrot.slane %v3766_v13, 4 }
 0x5d0   : > { %v2109_v0 = vsel %vm2072_vm11, %v2108_v43, %v3084_v62  ;;  %v2111_v57 = vsel %vm2072_vm11, %v3087_v5, %v2110_v3  ;;  %v2286_v29 = vrot.slane %v2243_v12, 4 }
 0x5d1   : > { %v2115_v11 = vperm.slane %v2109_v0, %v3696_v23  ;;  %v2119_v21 = vperm.slane %v2111_v57, %v3696_v23 }
 0x5d3   : > { %v2144_v49 = vrot.slane %v2115_v11, 4  ;;  %v2147_v36 = vsel %vm2072_vm11, %v2115_v11, %v2146_v32  ;;  %v3088_v24 = vpop.trf.xlu0  ;;  %v2156_v25 = vrot.slane %v2119_v21, 4  ;;  %v2159_v46 = vsel %vm2072_vm11, %v2119_v21, %v2158_v27 }
 0x5d4   : > { %v2155_v63 = vperm.slane %v2147_v36, %v3711_v33  ;;  %v3092_v6 = vunpack.i.h.bf16 %v3088_v24  ;;  %v3089_v26 = vunpack.i.l.bf16 %v3088_v24  ;;  %v2167_v55 = vperm.slane %v2159_v46, %v3711_v33 }
 0x5d5   : > { %v2145_v4 = vsel %vm2072_vm11, %v2144_v49, %v3716_v54  ;;  %v2157_v30 = vsel %vm2072_vm11, %v2156_v25, %v2107_v17 }
 0x5d6   : > { %v2151_v19 = vperm.slane %v2145_v4, %v3711_v33  ;;  %v2172_v2 = vrot.slane %v2155_v63, 4  ;;  %v3782_v8 = vsel %vm2072_vm11, %v2155_v63, %v2174_v9  ;;  %v2220_v28 = vrot.slane %v3092_v6, 4 }
 0x5d7   : > { %v2222_v14 = vrot.slane %v3089_v26, 4  ;;  %v2163_v54 = vperm.slane %v2157_v30, %v3711_v33  ;;  %v2180_v32 = vrot.slane %v2167_v55, 4  ;;  %v3789_v31 = vsel %vm2072_vm11, %v2167_v55, %v2182_v44 }
 0x5d8   : > { %v2168_v34 = vrot.slane %v2151_v19, 4  ;;  %v3786_v37 = vsel %vm2072_vm11, %v2172_v2, %v2131_v51  ;;  %v2221_v38 = vsel %vm2072_vm11, %v2220_v28, %v3089_v26  ;;  %v2308_v58 = vrot.slane %v3782_v8, 4 }
 0x5d9   : > { %v2223_v17 = vsel %vm2072_vm11, %v3092_v6, %v2222_v14  ;;  %v2176_v39 = vrot.slane %v2163_v54, 4  ;;  %v2227_v1 = vperm.slane %v2221_v38, %v3696_v23  ;;  %v2332_v22 = vrot.slane %v3789_v31, 4 }
 0x5da   : > { %v2231_v27 = vperm.slane %v2223_v17, %v3696_v23  ;;  %v3799_v40 = vsel %vm2072_vm11, %v2168_v34, %v3735_v52  ;;  %v3802_v45 = vsel %vm2072_vm11, %v2151_v19, %v2170_v16  ;;  %v2296_v18 = vrot.slane %v3786_v37, 4 }
 0x5db   : > { %v2256_v41 = vrot.slane %v2227_v1, 4  ;;  %v2259_v5 = vsel %vm2072_vm11, %v2227_v1, %v2258_v48  ;;  %v3810_v59 = vsel %vm2072_vm11, %v2163_v54, %v2178_v42  ;;  %v3814_v52 = vsel %vm2072_vm11, %v2180_v32, %v3739_v47 }
 0x5dc   : > { %v2268_v51 = vrot.slane %v2231_v27, 4  ;;  %v2271_v43 = vsel %vm2072_vm11, %v2231_v27, %v2270_v7  ;;  %v2267_v62 = vperm.slane %v2259_v5, %v3711_v33  ;;  %v3822_v0 = vsel %vm2072_vm11, %v2176_v39, %v3726_v35 }
 0x5dd   : > { %v2279_v60 = vperm.slane %v2271_v43, %v3711_v33  ;;  %v2257_v16 = vsel %vm2072_vm11, %v2256_v41, %v3744_v53  ;;  %v2297_v3 = vsel %vm2072_vm11, %v2296_v18, %v3799_v40  ;;  %v2309_v35 = vsel %vm2072_vm11, %v2308_v58, %v3802_v45 }
 0x5de   : > { %v2269_v44 = vsel %vm2072_vm11, %v2268_v51, %v3747_v15  ;;  %v2263_v42 = vperm.slane %v2257_v16, %v3711_v33  ;;  %v2284_v48 = vrot.slane %v2267_v62, 4  ;;  %v3829_v47 = vsel %vm2072_vm11, %v2267_v62, %v2286_v29 }
 0x5df   : > { %v2275_v9 = vperm.slane %v2269_v44, %v3711_v33  ;;  %v2292_v7 = vrot.slane %v2279_v60, 4  ;;  %v3832_v53 = vsel %vm2072_vm11, %v2279_v60, %v2294_v50  ;;  %v2298_v15 = vrot.slane %v3799_v40, 4 }
 0x5e0   : > { %v2280_v11 = vrot.slane %v2263_v42, 4  ;;  %v3838_v57 = vsel %vm2072_vm11, %v2284_v48, %v2243_v12  ;;  %v2420_v49 = vrot.slane %v3829_v47, 4  ;;  %v2444_v36 = vrot.slane %v3832_v53, 4 }
 0x5e1   : > { %v2288_v21 = vrot.slane %v2275_v9, 4  ;;  %v3843_v24 = vsel %vm2072_vm11, %v2263_v42, %v2282_v20  ;;  %v2303_v63 = vperm.slane %v2297_v3, %v3696_v23  ;;  %v2315_v6 = vperm.slane %v2309_v35, %v3696_v23 }
 0x5e2   : > { %v3849_v4 = vsel %vm2072_vm11, %v2280_v11, %v3755_v61  ;;  %v3854_v12 = vsel %vm2072_vm11, %v2275_v9, %v2290_v10  ;;  %v3858_v25 = vsel %vm2072_vm11, %v2292_v7, %v3766_v13  ;;  %v2320_v20 = vrot.slane %v3814_v52, 4 }
 0x5e3   : > { %v3863_v46 = vsel %vm2072_vm11, %v2288_v21, %v3750_v56  ;;  %v2333_v26 = vsel %vm2072_vm11, %v2332_v22, %v3810_v59  ;;  %v2344_v61 = vrot.slane %v2315_v6, 4  ;;  %v2408_v50 = vrot.slane %v3838_v57, 4 }
 0x5e4   : > { %v2321_v10 = vsel %vm2072_vm11, %v2320_v20, %v3822_v0  ;;  %v2322_v19 = vrot.slane %v3822_v0, 4  ;;  %v2339_v13 = vperm.slane %v2333_v26, %v3696_v23  ;;  %v2421_v55 = vsel %vm2072_vm11, %v2420_v49, %v3843_v24 }
 0x5e5   : > { %v2327_v2 = vperm.slane %v2321_v10, %v3696_v23  ;;  %v2345_v56 = vsel %vm2072_vm11, %v2344_v61, %v2303_v63  ;;  %v2409_v30 = vsel %vm2072_vm11, %v2408_v50, %v3849_v4  ;;  %v2427_v28 = vperm.slane %v2421_v55, %v3696_v23 }
 0x5e6   : > { %v2334_v14 = vrot.slane %v3810_v59, 4  ;;  %v2368_v29 = vrot.slane %v2339_v13, 4  ;;  %v2415_v54 = vperm.slane %v2409_v30, %v3696_v23  ;;  %v2432_v34 = vrot.slane %v3858_v25, 4 }
 0x5e7   : > { %v3883_v32 = vperm.slane %v2345_v56, %v3711_v33  ;;  %v2410_v38 = vrot.slane %v3849_v4, 4  ;;  %v2445_v17 = vsel %vm2072_vm11, %v2444_v36, %v3854_v12  ;;  %v2456_v39 = vrot.slane %v2427_v28, 4 }
 0x5e8   : > { %v2369_v58 = vsel %vm2072_vm11, %v2368_v29, %v2327_v2  ;;  %v2433_v1 = vsel %vm2072_vm11, %v2432_v34, %v3863_v46  ;;  %v2434_v27 = vrot.slane %v3863_v46, 4  ;;  %v2451_v22 = vperm.slane %v2445_v17, %v3696_v23 }
 0x5e9   : > { %v2439_v40 = vperm.slane %v2433_v1, %v3696_v23  ;;  %v2446_v18 = vrot.slane %v3854_v12, 4  ;;  %v2457_v41 = vsel %vm2072_vm11, %v2456_v39, %v2415_v54  ;;  %v2346_v5 = vrot.slane %v2303_v63, 4 }
 0x5ea   : > { %v3897_v51 = vperm.slane %v2457_v41, %v3711_v33  ;;  %v2480_v43 = vrot.slane %v2451_v22, 4  ;;  %v2370_v62 = vrot.slane %v2327_v2, 4  ;;  %v2458_v60 = vrot.slane %v2415_v54, 4 }
 0x5eb   : > { %v3900_v59 = vperm.slane %v2369_v58, %v3711_v33  ;;  %v2394_v16 = vrot.slane %v3883_v32, 4  ;;  %v2347_v44 = vsel %vm2072_vm11, %v2315_v6, %v2346_v5  ;;  %v2482_v0 = vrot.slane %v2439_v40, 4 }
 0x5ec   : > { %v2481_v3 = vsel %vm2072_vm11, %v2480_v43, %v2439_v40  ;;  %v2506_v42 = vrot.slane %v3897_v51, 4  ;;  %v2355_v9 = vperm.slane %v2347_v44, %v3711_v33  ;;  %v2371_v48 = vsel %vm2072_vm11, %v2339_v13, %v2370_v62 }
 0x5ed   : > { %v3909_v7 = vperm.slane %v2481_v3, %v3711_v33  ;;  %v2379_v35 = vperm.slane %v2371_v48, %v3711_v33  ;;  %v2459_v11 = vsel %vm2072_vm11, %v2427_v28, %v2458_v60  ;;  %v2483_v21 = vsel %vm2072_vm11, %v2451_v22, %v2482_v0 }
 0x5ee   : > { %v2398_v49 = vrot.slane %v2355_v9, 4  ;;  %v2467_v36 = vperm.slane %v2459_v11, %v3711_v33  ;;  %v2491_v63 = vperm.slane %v2483_v21, %v3711_v33  ;;  %v2299_v6 = vsel %vm2072_vm11, %v3786_v37, %v2298_v15 }
 0x5ef   : > { %v2395_v4 = vsel %vm2072_vm11, %v3900_v59, %v2394_v16  ;;  %v2507_v12 = vsel %vm2072_vm11, %v3909_v7, %v2506_v42  ;;  %v2396_v20 = vrot.slane %v2379_v35, 4  ;;  %v2307_v46 = vperm.slane %v2299_v6, %v3696_v23 }
 0x5f0   : > { %v3093_v26 = vpack.i.bf16 %v2507_v12, %v2395_v4  ;;  %v2399_v61 = vsel %vm2072_vm11, %v2379_v35, %v2398_v49  ;;  %v2510_v50 = vrot.slane %v2467_v36, 4  ;;  %v2508_v10 = vrot.slane %v2491_v63, 4 }
 0x5f1   : > { %v2397_v13 = vsel %vm2072_vm11, %v2396_v20, %v2355_v9  ;;  %v2310_v55 = vrot.slane %v3802_v45, 4  ;;  %v2323_v37 = vsel %vm2072_vm11, %v3814_v52, %v2322_v19  ;;  %v2335_v15 = vsel %vm2072_vm11, %v3789_v31, %v2334_v14 }
 0x5f2   : > { %3094 = vrot.lane.b32.xlu2 %v3093_v26, %s3228_s10  ;;  %v2511_v2 = vsel %vm2072_vm11, %v2491_v63, %v2510_v50  ;;  %v2509_v56 = vsel %vm2072_vm11, %v2508_v10, %v2467_v36  ;;  %v2331_v30 = vperm.slane %v2323_v37, %v3696_v23  ;;  %v2343_v28 = vperm.slane %v2335_v15, %v3696_v23 }
 0x5f3   : > { %v3103_v29 = vpack.i.bf16 %v2511_v2, %v2399_v61  ;;  %v3098_v54 = vpack.i.bf16 %v2509_v56, %v2397_v13  ;;  %v2311_v45 = vsel %vm2072_vm11, %v3782_v8, %v2310_v55  ;;  %v2358_v34 = vrot.slane %v2307_v46, 4 }
 0x5f4   : > { %v2319_v52 = vperm.slane %v2311_v45, %v3696_v23  ;;  %v2382_v19 = vrot.slane %v2331_v30, 4  ;;  %v2411_v31 = vsel %vm2072_vm11, %v3838_v57, %v2410_v38  ;;  %v2422_v14 = vrot.slane %v3843_v24, 4 }
 0x5f5   : > { %3104 = vrot.lane.b32.xlu0 %v3103_v29, %s3229_s11  ;;  %3099 = vrot.lane.b32.xlu1 %v3098_v54, %s3230_s12  ;;  %v2419_v17 = vperm.slane %v2411_v31, %v3696_v23  ;;  %v2435_v39 = vsel %vm2072_vm11, %v3858_v25, %v2434_v27  ;;  %v2447_v8 = vsel %vm2072_vm11, %v3832_v53, %v2446_v18  ;;  %v2380_v58 = vrot.slane %v2343_v28, 4 }
 0x5f6   : > { %v2383_v1 = vsel %vm2072_vm11, %v2343_v28, %v2382_v19  ;;  %v2423_v57 = vsel %vm2072_vm11, %v3829_v47, %v2422_v14  ;;  %v2443_v24 = vperm.slane %v2435_v39, %v3696_v23  ;;  %v2392_v38 = vrot.slane %v3900_v59, 4 }
 0x5f7   : > { %v2391_v22 = vperm.slane %v2383_v1, %v3711_v33  ;;  %v2431_v40 = vperm.slane %v2423_v57, %v3696_v23  ;;  %v2455_v41 = vperm.slane %v2447_v8, %v3696_v23  ;;  %v2470_v25 = vrot.slane %v2419_v17, 4 }
 0x5f8   : > { %v2494_v27 = vrot.slane %v2443_v24, 4  ;;  %v2356_v5 = vrot.slane %v2319_v52, 4  ;;  %v2381_v53 = vsel %vm2072_vm11, %v2380_v58, %v2331_v30  ;;  %v2359_v18 = vsel %vm2072_vm11, %v2319_v52, %v2358_v34 }
 0x5f9   : > { %v2387_v43 = vperm.slane %v2381_v53, %v3711_v33  ;;  %v2468_v47 = vrot.slane %v2431_v40, 4  ;;  %v2492_v62 = vrot.slane %v2455_v41, 4  ;;  %v2504_v60 = vrot.slane %v3909_v7, 4 }
 0x5fa   : > { %v2404_v59 = vrot.slane %v2391_v22, 4  ;;  %v2471_v16 = vsel %vm2072_vm11, %v2431_v40, %v2470_v25  ;;  %v2495_v44 = vsel %vm2072_vm11, %v2455_v41, %v2494_v27  ;;  %v2367_v0 = vperm.slane %v2359_v18, %v3711_v33 }
 0x5fb   : > { %v2503_v23 = vperm.slane %v2495_v44, %v3711_v33  ;;  %v2357_v3 = vsel %vm2072_vm11, %v2356_v5, %v2307_v46  ;;  %v2469_v42 = vsel %vm2072_vm11, %v2468_v47, %v2419_v17  ;;  %v2493_v9 = vsel %vm2072_vm11, %v2492_v62, %v2443_v24 }
 0x5fc   : > { %v2479_v48 = vperm.slane %v2471_v16, %v3711_v33  ;;  %v2400_v11 = vrot.slane %v2387_v43, 4  ;;  %v2499_v7 = vperm.slane %v2493_v9, %v3711_v33  ;;  %v2405_v21 = vsel %vm2072_vm11, %v2404_v59, %v2367_v0 }
 0x5fd   : > { %v2516_v35 = vrot.slane %v2503_v23, 4  ;;  %v2505_v49 = vsel %vm2072_vm11, %v2504_v60, %v3897_v51  ;;  %v2393_v36 = vsel %vm2072_vm11, %v2392_v38, %v3883_v32  ;;  %v2363_v6 = vperm.slane %v2357_v3, %v3711_v33 }
 0x5fe   : > { %v2475_v4 = vperm.slane %v2469_v42, %v3711_v33  ;;  %v2512_v12 = vrot.slane %v2499_v7, 4  ;;  %v2518_v55 = vrot.slane %v2479_v48, 4  ;;  %v2406_v33 = vrot.slane %v2367_v0, 4 }
 0x5ff   : > { %v2517_v63 = vsel %vm2072_vm11, %v2516_v35, %v2479_v48  ;;  %v2401_v46 = vsel %vm2072_vm11, %v2400_v11, %v2363_v6  ;;  %v2402_v51 = vrot.slane %v2363_v6, 4 }
 0x600   : > { %v3118_v20 = vpack.i.bf16 %v2517_v63, %v2405_v21  ;;  %v2513_v26 = vsel %vm2072_vm11, %v2512_v12, %v2475_v4  ;;  %v2514_v50 = vrot.slane %v2475_v4, 4  ;;  %v2519_v37 = vsel %vm2072_vm11, %v2503_v23, %v2518_v55 }
 0x601   : > { %v3108_v61 = vpack.i.bf16 %v2513_v26, %v2401_v46  ;;  %v2403_v10 = vsel %vm2072_vm11, %v2387_v43, %v2402_v51  ;;  %v2407_v15 = vsel %vm2072_vm11, %v2391_v22, %v2406_v33 }
 0x602   : > { %3119 = vrot.lane.b32.xlu2 %v3118_v20, %s3231_s17  ;;  %v2515_v32 = vsel %vm2072_vm11, %v2499_v7, %v2514_v50  ;;  %v3123_v2 = vpack.i.bf16 %v2519_v37, %v2407_v15 }
 0x603   : > { %3109 = vrot.lane.b32.xlu1 %v3108_v61, %s3232_s18  ;;  %v3113_v13 = vpack.i.bf16 %v2515_v32, %v2403_v10 }
 0x60b   : > { %3114 = vrot.lane.b32.xlu1 %v3113_v13, %s3233_s19 }
 0x613   : > { %3124 = vrot.lane.b32.xlu1 %v3123_v2, %s3234_s20 }
 0x64c   : > { %v3095_v28 = vpop.permute.xlu2 %3094 }
 0x64d   : > { %v3097_v29 = vunpack.i.h.bf16 %v3095_v28  ;;  %v3096_v54 = vunpack.i.l.bf16 %v3095_v28 }
 0x64f   : > { %v2577_v31 = vsel %vm616_vm1, %v2505_v49, %v3097_v29  ;;  %v2576_v14 = vsel %vm616_vm1, %v2393_v36, %v3096_v54  ;;  %vm2589_vm1 = vcmask 195584  }
 0x65c   : > { %v3120_v22 = vpop.permute.xlu2 %3119 }
 0x65d   : > { %v3122_v18 = vunpack.i.h.bf16 %v3120_v22  ;;  %v3121_v43 = vunpack.i.l.bf16 %v3120_v22 }
 0x667   : > { %v3100_v56 = vpop.permute.xlu1 %3099  ;;  %v3105_v45 = vpop.permute.xlu0 %3104 }
 0x668   : > { %v3102_v34 = vunpack.i.h.bf16 %v3100_v56  ;;  %v3101_v52 = vunpack.i.l.bf16 %v3100_v56  ;;  %v3107_v17 = vunpack.i.h.bf16 %v3105_v45  ;;  %v3106_v39 = vunpack.i.l.bf16 %v3105_v45 }
 0x66a   : > { %v2579_v8 = vsel %vm2578_vm12, %v2576_v14, %v3101_v52  ;;  %v2580_v58 = vsel %vm2578_vm12, %v2577_v31, %v3102_v34 }
 0x66b   : > { %v2582_v40 = vsel %vm2581_vm13, %v2579_v8, %v3106_v39  ;;  %v2583_v41 = vsel %vm2581_vm13, %v2580_v58, %v3107_v17 }
 0x675   : > { %v3110_v30 = vpop.permute.xlu1 %3109 }
 0x676   : > { %v3112_v1 = vunpack.i.h.bf16 %v3110_v30  ;;  %v3111_v57 = vunpack.i.l.bf16 %v3110_v30 }
 0x678   : > { %v2584_v25 = vsel %vm894_vm2, %v2582_v40, %v3111_v57  ;;  %v2585_v27 = vsel %vm894_vm2, %v2583_v41, %v3112_v1 }
 0x67d   : > { %v3115_v19 = vpop.permute.xlu1 %3114 }
 0x67e   : > { %v3117_v24 = vunpack.i.h.bf16 %v3115_v19  ;;  %v3116_v38 = vunpack.i.l.bf16 %v3115_v19 }
 0x680   : > { %v2587_v5 = vsel %vm2586_vm14, %v2584_v25, %v3116_v38  ;;  %v2588_v53 = vsel %vm2586_vm14, %v2585_v27, %v3117_v24 }
 0x681   : > { %v2590_v59 = vsel %vm2589_vm1, %v2587_v5, %v3121_v43  ;;  %v2591_v16 = vsel %vm2589_vm1, %v2588_v53, %v3122_v18 }
 0x685   : > { %v3125_v47 = vpop.permute.xlu1 %3124 }
 0x686   : > { %v3127_v62 = vunpack.i.h.bf16 %v3125_v47  ;;  %v3126_v60 = vunpack.i.l.bf16 %v3125_v47 }
 0x688   : > { %v2593_v44 = vsel %vm2592_vm15, %v2590_v59, %v3126_v60  ;;  %v2594_v23 = vsel %vm2592_vm15, %v2591_v16, %v3127_v62 }
 0x689   : > { %v2595_v0 = vpack.c.bf16 %v2593_v44, %v2593_v44  ;;  %v2596_v3 = vpack.c.bf16 %v2594_v23, %v2594_v23 }
 0x68b   : > { %2598 = vst.msk [vmem:[%s242_s23] sm:$0xf] %vm2597_vm0, %v2595_v0 }
 0x68c   : > { %2599 = vst.msk [vmem:[%s242_s23 + $0x4] sm:$0xf] %vm2597_vm0, %v2596_v3 }
 0x68d PF: > { %s13_s14 = sadd.s32 1, %s3215_s14   ;;  %s4009_s12 = smov %s3211_s13 }
 0x68e   : > { %p10_p5 = scmp.ge.s32.totalorder %s13_s14, 4   ;;  %s4010_s13 = smov %s4012_s15 }
 0x690   :  { %12 = sbr.rel (!%p10_p5) target bundleno = 2 (0x2), region = 68 }

// kernel: qanet_forward.67
= control target key start
LH: loop header
LB: loop body
LE: loop exit
PB: predicated region body
PF: predicated region fallthrough
CT: control target
= control target key end

     0   :  { %vm34_vm0 = vcmask 261120   ;;  %v393_v10 = vmov 32.0   ;;  %vm276_vm14 = vcmask 257024   ;;  %s593_s0 = inlined_call_operand.vmem [shape: bf16[32,32], index: 0, kind: input, shape index: {}]   ;;  %s594_s1 = inlined_call_operand.vmem [shape: f32[1,32], index: 1, kind: input, shape index: {}]   ;;  %s595_s2 = inlined_call_operand.vmem [shape: f32[1,32], index: 2, kind: input, shape index: {}]   ;;  %s596_s4 = inlined_call_operand.vmem [shape: f32[1,128], index: 4, kind: input, shape index: {}]   ;;  %s597_s3 = inlined_call_operand.vmem [shape: bf16[32,128], index: 3, kind: input, shape index: {}]   ;;  %s598_s5 = inlined_call_operand.vmem [shape: bf16[128,32], index: 5, kind: input, shape index: {}]   ;;  %s599_s6 = inlined_call_operand.vmem [shape: f32[1,32], index: 6, kind: input, shape index: {}]   ;;  %s600_s7 = inlined_call_operand.vmem [shape: bf16[32,32], index: 7, kind: output, shape index: {}]  }
   0x1   :  { %v337_v0 = vld [vmem:[%s593_s0 + $0x8] sm:$0xff]   ;;  %v290_v1 = vld [vmem:[%s593_s0] sm:$0xff]   ;;  %383 = vrcp.f32 %v393_v10 }
   0x2   :  { %v440_v2 = vunpack.c.l.bf16 %v337_v0  ;;  %v442_v3 = vunpack.c.l.bf16 %v290_v1  ;;  %v448_v6 = vunpack.c.h.bf16 %v337_v0  ;;  %v450_v7 = vunpack.c.h.bf16 %v290_v1  ;;  %v338_v37 = vld [vmem:[%s597_s3 + $0x8] sm:$0xff]   ;;  %v298_v40 = vld [vmem:[%s597_s3] sm:$0xff]  }
   0x3   :  { %v304_v38 = vunpack.c.h.bf16 %v338_v37  ;;  %v303_v39 = vunpack.c.l.bf16 %v338_v37  ;;  %v300_v41 = vunpack.c.h.bf16 %v298_v40  ;;  %v299_v42 = vunpack.c.l.bf16 %v298_v40 }
   0x4   :  { %v41_v4 = vsel %vm34_vm0, %v440_v2, 0.0  ;;  %v35_v5 = vsel %vm34_vm0, %v442_v3, 0.0  ;;  %v44_v8 = vsel %vm34_vm0, %v448_v6, 0.0  ;;  %v38_v9 = vsel %vm34_vm0, %v450_v7, 0.0 }
   0x5   :  { %42 = vadd.xlane.f32.xlu1 %v41_v4  ;;  %36 = vadd.xlane.f32.xlu0 %v35_v5 }
   0x6   :  { %182 = vmatpush.msra.mxu0 %v304_v38 }
   0x7   :  { %v384_v11 = vpop.eup %383 }
   0x8   :  { %v48_v12 = vmul.f32 32.0, %v384_v11  ;;  %vm52_vm1 = vweird.f32 %v384_v11  ;;  %183 = vmatpush.msra.mxu0 %v303_v39 }
   0xa   :  { %v49_v13 = vsub.f32 1.0, %v48_v12  ;;  %184 = vmatpush.msra.mxu0 %v300_v41  ;;  %v344_v12 = vld [vmem:[%s598_s5 + $0x30] sm:$0xff]  }
   0xc   :  { %v50_v14 = vmul.f32 %v384_v11, %v49_v13  ;;  %185 = vmatpush.msra.mxu0 %v299_v42 }
   0xd   :  { %45 = vadd.xlane.f32.xlu1 %v44_v8  ;;  %39 = vadd.xlane.f32.xlu0 %v38_v9  ;;  %v500_v9 = vld [vmem:[%s594_s1] ss:$0 sm:$0xff] }
   0xe   :  { %v51_v15 = vadd.f32 %v384_v11, %v50_v14 }
  0x10   :  { %v53_v16 = vsel %vm52_vm1, %v384_v11, %v51_v15  ;;  %v345_v11 = vld [vmem:[%s598_s5 + $0x38] sm:$0xff]   ;;  %v512_v15 = vld [vmem:[%s595_s2] ss:$0 sm:$0xff] }
  0x78   :  { %v43_v17 = vpop.xlane.xlu1 %42  ;;  %v37_v18 = vpop.xlane.xlu0 %36 }
  0x79   :  { %v56_v19 = vmul.f32 %v53_v16, %v43_v17  ;;  %v54_v20 = vmul.f32 %v53_v16, %v37_v18  ;;  %v335_v18 = vunpack.c.l.bf16 %v345_v11 }
  0x7b   :  { %v457_v21 = vsub.f32 %v440_v2, %v56_v19  ;;  %v460_v22 = vsub.f32 %v442_v3, %v54_v20 }
  0x7d   :  { %v64_v23 = vmul.f32 %v457_v21, %v457_v21  ;;  %v62_v24 = vmul.f32 %v460_v22, %v460_v22 }
  0x7f   :  { %v72_v25 = vsel %vm34_vm0, %v64_v23, 0.0  ;;  %v66_v26 = vsel %vm34_vm0, %v62_v24, 0.0  ;;  %v332_v24 = vunpack.c.h.bf16 %v344_v12 }
  0x80   :  { %v46_v27 = vpop.xlane.xlu1 %45  ;;  %73 = vadd.xlane.f32.xlu0 %v72_v25  ;;  %67 = vadd.xlane.f32.xlu2 %v66_v26  ;;  %v40_v28 = vpop.xlane.xlu0 %39 }
  0x81   :  { %v57_v29 = vmul.f32 %v53_v16, %v46_v27  ;;  %v55_v30 = vmul.f32 %v53_v16, %v40_v28  ;;  %v331_v27 = vunpack.c.l.bf16 %v344_v12 }
  0x83   :  { %v469_v31 = vsub.f32 %v448_v6, %v57_v29  ;;  %v472_v32 = vsub.f32 %v450_v7, %v55_v30 }
  0x85   :  { %v65_v33 = vmul.f32 %v469_v31, %v469_v31  ;;  %v63_v34 = vmul.f32 %v472_v32, %v472_v32 }
  0x87   :  { %v75_v35 = vsel %vm34_vm0, %v65_v33, 0.0  ;;  %v69_v36 = vsel %vm34_vm0, %v63_v34, 0.0 }
  0x88   :  { %76 = vadd.xlane.f32.xlu1 %v75_v35  ;;  %70 = vadd.xlane.f32.xlu2 %v69_v36  ;;  %v342_v35 = vld [vmem:[%s598_s5 + $0x20] sm:$0xff]  }
  0x89   :  { %v324_v41 = vunpack.c.h.bf16 %v342_v35 }
  0xf3   :  { %v68_v43 = vpop.xlane.xlu2 %67  ;;  %v74_v44 = vpop.xlane.xlu0 %73 }
  0xf4   :  { %v78_v45 = vmul.f32 %v68_v43, %v53_v16  ;;  %v80_v46 = vmul.f32 %v74_v44, %v53_v16  ;;  %v341_v43 = vld [vmem:[%s598_s5 + $0x18] sm:$0xff]  }
  0xf6   :  { %v82_v47 = vadd.f32 1e-05, %v78_v45  ;;  %v84_v48 = vadd.f32 1e-05, %v80_v46 }
  0xf8   :  { %385 = vrsqrt.f32 %v82_v47  ;;  %vm92_vm3 = vweird.f32 %v82_v47  ;;  %vm112_vm5 = vweird.f32 %v84_v48 }
  0xf9   :  { %387 = vrsqrt.f32 %v84_v48 }
  0xfb   :  { %v77_v49 = vpop.xlane.xlu1 %76  ;;  %v71_v50 = vpop.xlane.xlu2 %70 }
  0xfc   :  { %v81_v51 = vmul.f32 %v77_v49, %v53_v16  ;;  %v79_v52 = vmul.f32 %v71_v50, %v53_v16  ;;  %v336_v16 = vunpack.c.h.bf16 %v345_v11  ;;  %v340_v49 = vld [vmem:[%s598_s5 + $0x10] sm:$0xff]   ;;  %v319_v50 = vunpack.c.l.bf16 %v341_v43 }
  0xfe   :  { %v386_v53 = vpop.eup %385  ;;  %v486_v54 = vadd.f32 1e-05, %v81_v51  ;;  %v83_v55 = vadd.f32 1e-05, %v79_v52  ;;  %239 = vmatpush.msra.mxu1 %v336_v16  ;;  %346 = vmatpush.msra.mxu2 %v336_v16  ;;  %v316_v52 = vunpack.c.h.bf16 %v340_v49 }
  0xff   :  { %v488_v56 = vpop.eup %387  ;;  %v87_v57 = vmul.f32 %v386_v53, %v82_v47  ;;  %vm93_vm2 = vweird.f32 %v386_v53  ;;  %347 = vmatpush.msra.mxu3 %v336_v16  ;;  %v320_v47 = vunpack.c.h.bf16 %v341_v43  ;;  %v382_v16 = vld [vmem:[%s599_s6] ss:$0 sm:$0xff] }
 0x100   :  { %v107_v58 = vmul.f32 %v488_v56, %v84_v48  ;;  %389 = vrsqrt.f32 %v486_v54  ;;  %vm94_vm4 = vmor %vm92_vm3, %vm93_vm2  ;;  %vm113_vm6 = vweird.f32 %v488_v56  ;;  %240 = vmatpush.msra.mxu1 %v335_v18  ;;  %348 = vmatpush.msra.mxu2 %v335_v18  ;;  %vm102_vm8 = vweird.f32 %v83_v55 }
 0x101   :  { %v88_v59 = vmul.f32 %v386_v53, %v87_v57  ;;  %391 = vrsqrt.f32 %v83_v55  ;;  %349 = vmatpush.msra.mxu3 %v335_v18  ;;  %vm522_vm9 = vmor %vm112_vm5, %vm113_vm6  ;;  %vm122_vm11 = vweird.f32 %v486_v54 }
 0x102   :  { %v108_v61 = vmul.f32 %v488_v56, %v107_v58  ;;  %241 = vmatpush.msra.mxu1 %v332_v24  ;;  %350 = vmatpush.msra.mxu2 %v332_v24 }
 0x103   :  { %v89_v60 = vmul.f32 0.5, %v88_v59  ;;  %351 = vmatpush.msra.mxu3 %v332_v24 }
 0x104   :  { %v109_v4 = vmul.f32 0.5, %v108_v61  ;;  %242 = vmatpush.msra.mxu1 %v331_v27  ;;  %352 = vmatpush.msra.mxu2 %v331_v27 }
 0x105   :  { %v90_v62 = vsub.f32 1.5, %v89_v60  ;;  %353 = vmatpush.msra.mxu3 %v331_v27  ;;  %v306_v60 = vld [vmem:[%s598_s5] sm:$0xff]  }
 0x106   :  { %v493_v63 = vpop.eup %389  ;;  %v110_v17 = vsub.f32 1.5, %v109_v4  ;;  %v308_v61 = vunpack.c.h.bf16 %v306_v60 }
 0x107   :  { %v392_v0 = vpop.eup %391  ;;  %v91_v1 = vmul.f32 %v386_v53, %v90_v62  ;;  %v117_v5 = vmul.f32 %v493_v63, %v486_v54  ;;  %vm123_vm12 = vweird.f32 %v493_v63  ;;  %v315_v54 = vunpack.c.l.bf16 %v340_v49 }
 0x108   :  { %v97_v8 = vmul.f32 %v392_v0, %v83_v55  ;;  %vm103_vm7 = vweird.f32 %v392_v0  ;;  %v111_v28 = vmul.f32 %v488_v56, %v110_v17  ;;  %vm543_vm13 = vmor %vm122_vm11, %vm123_vm12  ;;  %v307_v62 = vunpack.c.l.bf16 %v306_v60 }
 0x109   :  { %v95_v10 = vsel %vm94_vm4, %v386_v53, %v91_v1  ;;  %v118_v19 = vmul.f32 %v493_v63, %v117_v5  ;;  %vm104_vm10 = vmor %vm102_vm8, %vm103_vm7  ;;  %v339_v53 = vld [vmem:[%s598_s5 + $0x8] sm:$0xff]  }
 0x10a   :  { %v98_v13 = vmul.f32 %v392_v0, %v97_v8  ;;  %v126_v14 = vmul.f32 %v95_v10, %v460_v22  ;;  %v343_v22 = vld [vmem:[%s598_s5 + $0x28] sm:$0xff]   ;;  %v115_v39 = vsel %vm522_vm9, %v488_v56, %v111_v28  ;;  %v312_v57 = vunpack.c.h.bf16 %v339_v53 }
 0x10b   :  { %v119_v30 = vmul.f32 0.5, %v118_v19  ;;  %v328_v34 = vunpack.c.h.bf16 %v343_v22  ;;  %v327_v37 = vunpack.c.l.bf16 %v343_v22  ;;  %v128_v45 = vmul.f32 %v115_v39, %v457_v21 }
 0x10c   :  { %v99_v20 = vmul.f32 0.5, %v98_v13  ;;  %v134_v23 = vmul.f32 %v500_v9, %v126_v14 }
 0x10d   :  { %v120_v40 = vsub.f32 1.5, %v119_v30  ;;  %243 = vmatpush.msra.mxu1 %v328_v34  ;;  %354 = vmatpush.msra.mxu2 %v328_v34  ;;  %v136_v21 = vmul.f32 %v500_v9, %v128_v45 }
 0x10e   :  { %v100_v25 = vsub.f32 1.5, %v99_v20  ;;  %v142_v26 = vadd.f32 %v512_v15, %v134_v23  ;;  %355 = vmatpush.msra.mxu3 %v328_v34 }
 0x10f   :  { %244 = vmatpush.msra.mxu1 %v327_v37  ;;  %356 = vmatpush.msra.mxu2 %v327_v37  ;;  %v121_v46 = vmul.f32 %v493_v63, %v120_v40  ;;  %v144_v55 = vadd.f32 %v512_v15, %v136_v21 }
 0x110   :  { %v101_v33 = vmul.f32 %v392_v0, %v100_v25  ;;  %285 = vmatmul.msk.f32.vlgmr.msra.gmra.mxu0 %vm34_vm0, %v142_v26  ;;  %357 = vmatpush.msra.mxu3 %v327_v37 }
 0x111   :  { %245 = vmatpush.msra.mxu1 %v324_v41  ;;  %358 = vmatpush.msra.mxu2 %v324_v41  ;;  %v125_v51 = vsel %vm543_vm13, %v493_v63, %v121_v46  ;;  %v381_v63 = vld [vmem:[%s596_s4] ss:$0 sm:$0xff] }
 0x112   :  { %v105_v36 = vsel %vm104_vm10, %v392_v0, %v101_v33  ;;  %359 = vmatpush.msra.mxu3 %v324_v41  ;;  %v129_v56 = vmul.f32 %v125_v51, %v469_v31  ;;  %v311_v31 = vunpack.c.l.bf16 %v339_v53 }
 0x113   :  { %v127_v38 = vmul.f32 %v105_v36, %v472_v32  ;;  %v323_v32 = vunpack.c.l.bf16 %v342_v35 }
 0x114   :  { %v137_v58 = vmul.f32 %v500_v9, %v129_v56 }
 0x115   :  { %v135_v42 = vmul.f32 %v500_v9, %v127_v38  ;;  %246 = vmatpush.msra.mxu1 %v323_v32  ;;  %360 = vmatpush.msra.mxu2 %v323_v32 }
 0x116   :  { %361 = vmatpush.msra.mxu3 %v323_v32  ;;  %v145_v59 = vadd.f32 %v512_v15, %v137_v58 }
 0x117   :  { %v143_v44 = vadd.f32 %v512_v15, %v135_v42  ;;  %247 = vmatpush.msra.mxu1 %v320_v47  ;;  %362 = vmatpush.msra.mxu2 %v320_v47 }
 0x118   :  { %363 = vmatpush.msra.mxu3 %v320_v47 }
 0x119   :  { %286 = vmatmul.msk.f32.gmra.mxu0 %vm34_vm0, %v143_v44  ;;  %248 = vmatpush.msra.mxu1 %v319_v50 }
 0x11a   :  { %364 = vmatpush.msra.mxu2 %v319_v50  ;;  %365 = vmatpush.msra.mxu3 %v319_v50 }
 0x11b   :  { %249 = vmatpush.msra.mxu1 %v316_v52 }
 0x11c   :  { %366 = vmatpush.msra.mxu2 %v316_v52  ;;  %367 = vmatpush.msra.mxu3 %v316_v52 }
 0x11d   :  { %250 = vmatpush.msra.mxu1 %v315_v54 }
 0x11e   :  { %368 = vmatpush.msra.mxu2 %v315_v54  ;;  %369 = vmatpush.msra.mxu3 %v315_v54 }
 0x11f   :  { %251 = vmatpush.msra.mxu1 %v312_v57 }
 0x120   :  { %370 = vmatpush.msra.mxu2 %v312_v57  ;;  %371 = vmatpush.msra.mxu3 %v312_v57 }
 0x121   :  { %287 = vmatmul.msk.f32.gmra.mxu0 %vm34_vm0, %v144_v55  ;;  %252 = vmatpush.msra.mxu1 %v311_v31 }
 0x122   :  { %372 = vmatpush.msra.mxu2 %v311_v31  ;;  %373 = vmatpush.msra.mxu3 %v311_v31 }
 0x123   :  { %253 = vmatpush.msra.mxu1 %v308_v61 }
 0x124   :  { %374 = vmatpush.msra.mxu2 %v308_v61  ;;  %375 = vmatpush.msra.mxu3 %v308_v61 }
 0x125   :  { %254 = vmatpush.msra.mxu1 %v307_v62 }
 0x126   :  { %376 = vmatpush.msra.mxu2 %v307_v62  ;;  %377 = vmatpush.msra.mxu3 %v307_v62 }
 0x129   :  { %288 = vmatmul.msk.f32.gmra.mxu0 %vm34_vm0, %v145_v59 }
 0x18d   :  { %v187_v0 = vpop.f32.mrf.mxu0 }
 0x18e   :  { %v188_v1 = vadd.f32 %v381_v63, %v187_v0 }
 0x190   :  { %v199_v4 = vmax.f32 %v188_v1, 0.0 }
 0x192   :  { %255 = vmatmul.f32.vlgmr.msra.gmra.mxu1 %v199_v4 }
 0x196   :  { %v190_v5 = vpop.f32.mrf.mxu0 }
 0x197   :  { %v191_v8 = vadd.f32 %v381_v63, %v190_v5 }
 0x199   :  { %v200_v9 = vmax.f32 %v191_v8, 0.0 }
 0x19b   :  { %258 = vmatmul.f32.vlgmr.msra.gmra.mxu2 %v200_v9 }
 0x19e   :  { %v193_v10 = vpop.f32.mrf.mxu0 }
 0x19f   :  { %v194_v11 = vadd.f32 %v381_v63, %v193_v10 }
 0x1a1   :  { %v201_v12 = vmax.f32 %v194_v11, 0.0 }
 0x1a3   :  { %261 = vmatmul.f32.vlgmr.msra.gmra.mxu3 %v201_v12 }
 0x1a6   :  { %v196_v13 = vpop.f32.mrf.mxu0 }
 0x1a7   :  { %v197_v14 = vadd.f32 %v381_v63, %v196_v13 }
 0x1a9   :  { %v202_v15 = vmax.f32 %v197_v14, 0.0 }
 0x1ab   :  { %264 = vmatmul.f32.gmra.mxu3 %v202_v15 }
 0x20f   :  { %v256_v17 = vpop.f32.mrf.mxu1 }
 0x210   :  { %v257_v18 = vadd.f32 %v382_v16, %v256_v17 }
 0x212   :  { %v268_v19 = vadd.f32 %v442_v3, %v257_v18 }
 0x214   :  { %v272_v20 = vpack.c.bf16 %v268_v19, %v268_v19 }
 0x216   :  { %277 = vst.msk [vmem:[%s600_s7] sm:$0xf] %vm276_vm14, %v272_v20 }
 0x21e   :  { %v259_v23 = vpop.f32.mrf.mxu2 }
 0x21f   :  { %v260_v24 = vadd.f32 %v382_v16, %v259_v23 }
 0x221   :  { %v269_v22 = vadd.f32 %v450_v7, %v260_v24 }
 0x223   :  { %v273_v25 = vpack.c.bf16 %v269_v22, %v269_v22 }
 0x225   :  { %278 = vst.msk [vmem:[%s600_s7 + $0x4] sm:$0xf] %vm276_vm14, %v273_v25 }
 0x226   :  { %v262_v26 = vpop.f32.mrf.mxu3 }
 0x227   :  { %v263_v27 = vadd.f32 %v382_v16, %v262_v26 }
 0x229   :  { %v270_v3 = vadd.f32 %v440_v2, %v263_v27 }
 0x22b   :  { %v274_v28 = vpack.c.bf16 %v270_v3, %v270_v3 }
 0x22d   :  { %279 = vst.msk [vmem:[%s600_s7 + $0x8] sm:$0xf] %vm276_vm14, %v274_v28 }
 0x22e   :  { %v265_v29 = vpop.f32.mrf.mxu3 }
 0x22f   :  { %v266_v30 = vadd.f32 %v382_v16, %v265_v29 }
 0x231   :  { %v271_v7 = vadd.f32 %v448_v6, %v266_v30 }
 0x233   :  { %v275_v33 = vpack.c.bf16 %v271_v7, %v271_v7 }
 0x235   :  { %280 = vst.msk [vmem:[%s600_s7 + $0xc] sm:$0xf] %vm276_vm14, %v275_v33 }

// kernel: qanet_forward.61
= control target key start
LH: loop header
LB: loop body
LE: loop exit
PB: predicated region body
PF: predicated region fallthrough
CT: control target
= control target key end

     0   :  { %vm28_vm0 = vcmask 195584   ;;  %vm60_vm1 = vcmask 257024   ;;  %s119_s1 = inlined_call_operand.vmem [shape: bf16[24,32], index: 1, kind: input, shape index: {}]   ;;  %s120_s0 = inlined_call_operand.vmem [shape: bf16[16,24], index: 0, kind: input, shape index: {}]   ;;  %s121_s2 = inlined_call_operand.vmem [shape: f32[1,32], index: 2, kind: input, shape index: {}]   ;;  %s122_s3 = inlined_call_operand.vmem [shape: bf16[16,32], index: 3, kind: output, shape index: {}]  }
   0x1   :  { %v20_v0 = vld [vmem:[%s119_s1 + $0x8] sm:$0xf]  ;;  %v74_v1 = vld [vmem:[%s119_s1] sm:$0xff]  }
   0x2   :  { %v23_v2 = vunpack.c.l.bf16 %v20_v0  ;;  %v76_v3 = vunpack.c.h.bf16 %v74_v1  ;;  %v70_v4 = vld [vmem:[%s120_s0] sm:$0xff]   ;;  %v75_v5 = vunpack.c.l.bf16 %v74_v1 }
   0x3   :  { %v71_v6 = vunpack.c.l.bf16 %v70_v4  ;;  %v72_v7 = vunpack.c.h.bf16 %v70_v4  ;;  %v80_v8 = vld [vmem:[%s121_s2] ss:$0 sm:$0xff] }
   0x4   :  { %48 = vmatpush.msra.mxu0 %v23_v2  ;;  %77 = vmatpush.msra.mxu1 %v23_v2 }
   0x6   :  { %49 = vmatpush.msra.mxu0 %v76_v3  ;;  %78 = vmatpush.msra.mxu1 %v76_v3 }
   0x8   :  { %50 = vmatpush.msra.mxu0 %v75_v5  ;;  %79 = vmatpush.msra.mxu1 %v75_v5 }
   0x9   :  { %67 = vmatmul.msk.f32.vlgmr.msra.gmra.mxu0 %vm28_vm0, %v71_v6  ;;  %68 = vmatmul.msk.f32.vlgmr.msra.gmra.mxu1 %vm28_vm0, %v72_v7 }
  0x86   :  { %v52_v9 = vpop.f32.mrf.mxu0  ;;  %v55_v10 = vpop.f32.mrf.mxu1 }
  0x87   :  { %v53_v11 = vadd.f32 %v80_v8, %v52_v9  ;;  %v56_v12 = vadd.f32 %v80_v8, %v55_v10 }
  0x89   :  { %v58_v13 = vpack.c.bf16 %v53_v11, %v53_v11  ;;  %v59_v14 = vpack.c.bf16 %v56_v12, %v56_v12 }
  0x8b   :  { %61 = vst.msk [vmem:[%s122_s3] sm:$0xf] %vm60_vm1, %v58_v13 }
  0x8c   :  { %62 = vst.msk [vmem:[%s122_s3 + $0x4] sm:$0xf] %vm60_vm1, %v59_v14 }

// kernel: qanet_forward.59
= control target key start
LH: loop header
LB: loop body
LE: loop exit
PB: predicated region body
PF: predicated region fallthrough
CT: control target
= control target key end

     0   :  { %vm28_vm0 = vcmask 195584   ;;  %s168_s18 = smov 24   ;;  %vm130_vm9 = vcmask 191488   ;;  %s208_s1 = inlined_call_operand.vmem [shape: bf16[24,48], index: 1, kind: input, shape index: {}]   ;;  %s209_s0 = inlined_call_operand.vmem [shape: bf16[16,24], index: 0, kind: input, shape index: {}]   ;;  %s210_s2 = inlined_call_operand.vmem [shape: f32[1,48], index: 2, kind: input, shape index: {}]   ;;  %s211_s3 = inlined_call_operand.vmem [shape: bf16[16,24], index: 3, kind: output, shape index: {}]  }
   0x1   :  { %v20_v0 = vld [vmem:[%s208_s1 + $0x8] sm:$0xf]  ;;  %v146_v1 = vld [vmem:[%s208_s1] sm:$0xff]  }
   0x2   :  { %v142_v2 = vld [vmem:[%s209_s0] sm:$0xff]   ;;  %v23_v3 = vunpack.c.l.bf16 %v20_v0  ;;  %v148_v4 = vunpack.c.h.bf16 %v146_v1  ;;  %v147_v7 = vunpack.c.l.bf16 %v146_v1  ;;  %s169_s0 = smov 104  }
   0x3   :  { %v143_v5 = vunpack.c.l.bf16 %v142_v2  ;;  %v144_v6 = vunpack.c.h.bf16 %v142_v2  ;;  %v159_v9 = vld [vmem:[%s210_s2] ss:$0 sm:$0xff] }
   0x4   :  { %48 = vmatpush.msra.mxu0 %v23_v3  ;;  %149 = vmatpush.msra.mxu1 %v23_v3 }
   0x5   :  { %v154_v8 = vpack.i.bf16 %v144_v6, %v143_v5 }
   0x6   :  { %49 = vmatpush.msra.mxu0 %v148_v4  ;;  %150 = vmatpush.msra.mxu1 %v148_v4 }
   0x7   :  { %155 = vrot.lane.b32.xlu1 %v154_v8, %s168_s18 }
   0x8   :  { %50 = vmatpush.msra.mxu0 %v147_v7  ;;  %151 = vmatpush.msra.mxu1 %v147_v7 }
   0x9   :  { %137 = vmatmul.msk.f32.vlgmr.msra.gmra.mxu0 %vm28_vm0, %v143_v5  ;;  %138 = vmatmul.msk.f32.vlgmr.msra.gmra.mxu1 %vm28_vm0, %v144_v6 }
  0x79   :  { %v156_v35 = vpop.permute.xlu1 %155 }
  0x7a   :  { %v157_v40 = vunpack.i.l.bf16 %v156_v35  ;;  %v158_v49 = vunpack.i.h.bf16 %v156_v35 }
  0x86   :  { %v52_v10 = vpop.f32.mrf.mxu0  ;;  %v55_v12 = vpop.f32.mrf.mxu1 }
  0x87   :  { %v53_v11 = vadd.f32 %v159_v9, %v52_v10  ;;  %v56_v14 = vadd.f32 %v159_v9, %v55_v12 }
  0x89   :  { %v58_v13 = vmax.f32 %v53_v11, 0.0  ;;  %v59_v15 = vmax.f32 %v56_v14, 0.0  ;;  %v139_v16 = vmul.f32 -1.442695, %v53_v11  ;;  %v140_v17 = vmul.f32 -1.442695, %v56_v14 }
  0x8b   :  { %100 = vrot.lane.b32.xlu0 %v58_v13, %s168_s18  ;;  %160 = vpow2.f32 %v139_v16 }
  0x8c   :  { %162 = vpow2.f32 %v140_v17 }
  0x91   :  { %v161_v18 = vpop.eup %160 }
  0x92   :  { %v66_v19 = vadd.f32 1.0, %v161_v18  ;;  %v163_v20 = vpop.eup %162 }
  0x93   :  { %102 = vrot.lane.b32.xlu0 %v59_v15, %s168_s18  ;;  %v67_v21 = vadd.f32 1.0, %v163_v20 }
  0x94   :  { %164 = vrcp.f32 %v66_v19  ;;  %v79_v30 = vand.u32 2147483648, %v66_v19  ;;  %vm73_vm2 = vweird.f32 %v66_v19  ;;  %v77_v31 = vand.u32 2147483647, %v66_v19 }
  0x95   :  { %166 = vrcp.f32 %v67_v21  ;;  %vm88_vm5 = vweird.f32 %v67_v21  ;;  %v94_v37 = vand.u32 2147483648, %v67_v21  ;;  %v92_v39 = vand.u32 2147483647, %v67_v21 }
  0x96   :  { %v80_v34 = vor.u32 1.1754944e-38, %v79_v30  ;;  %vm78_vm4 = vcmp.eq.f32.partialorder %v77_v31, 8.507059e+37 }
  0x97   :  { %v95_v42 = vor.u32 1.1754944e-38, %v94_v37  ;;  %vm93_vm8 = vcmp.eq.f32.partialorder %v92_v39, 8.507059e+37 }
  0x9a   :  { %v165_v22 = vpop.eup %164 }
  0x9b   :  { %v69_v23 = vmul.f32 %v165_v22, %v66_v19  ;;  %v167_v25 = vpop.eup %166  ;;  %vm74_vm1 = vweird.f32 %v165_v22 }
  0x9c   :  { %v84_v27 = vmul.f32 %v167_v25, %v67_v21  ;;  %vm75_vm3 = vmor %vm73_vm2, %vm74_vm1  ;;  %vm89_vm6 = vweird.f32 %v167_v25 }
  0x9d   :  { %v70_v24 = vsub.f32 1.0, %v69_v23  ;;  %vm90_vm7 = vmor %vm88_vm5, %vm89_vm6 }
  0x9e   :  { %v85_v29 = vsub.f32 1.0, %v84_v27 }
  0x9f   :  { %v71_v26 = vmul.f32 %v165_v22, %v70_v24 }
  0xa0   :  { %v86_v33 = vmul.f32 %v167_v25, %v85_v29 }
  0xa1   :  { %v72_v28 = vadd.f32 %v165_v22, %v71_v26 }
  0xa2   :  { %v87_v38 = vadd.f32 %v167_v25, %v86_v33 }
  0xa3   :  { %v76_v32 = vsel %vm75_vm3, %v165_v22, %v72_v28 }
  0xa4   :  { %v81_v36 = vsel %vm78_vm4, %v80_v34, %v76_v32  ;;  %v91_v43 = vsel %vm90_vm7, %v167_v25, %v87_v38 }
  0xa5   :  { %v108_v41 = vsub.f32 1.0, %v81_v36  ;;  %v96_v47 = vsel %vm93_vm8, %v95_v42, %v91_v43 }
  0xa6   :  { %v109_v51 = vsub.f32 1.0, %v96_v47 }
  0xa7   :  { %v116_v45 = vmul.f32 %v157_v40, %v108_v41 }
  0xa8   :  { %v117_v54 = vmul.f32 %v158_v49, %v109_v51 }
  0xfd   :  { %v101_v44 = vpop.permute.xlu0 %100 }
  0xfe   :  { %v106_v46 = vmul.f32 %v101_v44, %v81_v36 }
 0x100   :  { %v118_v48 = vadd.f32 %v116_v45, %v106_v46 }
 0x102   :  { %v120_v50 = vpack.c.bf16 %v118_v48, %v118_v48 }
 0x104   :  { %124 = vrot.lane.b32.xlu1 %v120_v50, %s169_s0 }
 0x105   :  { %v103_v52 = vpop.permute.xlu0 %102 }
 0x106   :  { %v107_v53 = vmul.f32 %v103_v52, %v96_v47 }
 0x108   :  { %v119_v55 = vadd.f32 %v117_v54, %v107_v53 }
 0x10a   :  { %v121_v56 = vpack.c.bf16 %v119_v55, %v119_v55 }
 0x10c   :  { %126 = vrot.lane.b32.xlu2 %v121_v56, %s169_s0 }
 0x166   :  { %v127_v57 = vpop.permute.xlu2 %126 }
 0x167   :  { %132 = vst.msk [vmem:[%s211_s3 + $0x4] sm:$0xf] %vm130_vm9, %v127_v57 }
 0x176   :  { %v125_v58 = vpop.permute.xlu1 %124 }
 0x177   :  { %131 = vst.msk [vmem:[%s211_s3] sm:$0xf] %vm130_vm9, %v125_v58 }

// kernel: qanet_forward.58
= control target key start
LH: loop header
LB: loop body
LE: loop exit
PB: predicated region body
PF: predicated region fallthrough
CT: control target
= control target key end

     0   :  { %s157_s18 = smov 24   ;;  %vm26_vm0 = vcmask 195584   ;;  %vm128_vm9 = vcmask 191488   ;;  %s200_s1 = inlined_call_operand.vmem [shape: bf16[24,48], index: 1, kind: input, shape index: {}]   ;;  %s201_s0 = inlined_call_operand.vmem [shape: f32[16,24], index: 0, kind: input, shape index: {}]   ;;  %s202_s2 = inlined_call_operand.vmem [shape: f32[1,48], index: 2, kind: input, shape index: {}]   ;;  %s203_s3 = inlined_call_operand.vmem [shape: bf16[16,24], index: 3, kind: output, shape index: {}]  }
   0x1   :  { %v18_v0 = vld [vmem:[%s200_s1 + $0x8] sm:$0xf]  ;;  %v140_v1 = vld [vmem:[%s200_s1] sm:$0xff]  }
   0x2   :  { %v14_v2 = vld [vmem:[%s201_s0] sm:$0xff]  ;;  %v21_v3 = vunpack.c.l.bf16 %v18_v0  ;;  %v142_v4 = vunpack.c.h.bf16 %v140_v1  ;;  %v141_v5 = vunpack.c.l.bf16 %v140_v1  ;;  %v15_v6 = vld [vmem:[%s201_s0 + $0x8] sm:$0xff]  ;;  %s158_s0 = smov 104  }
   0x3   :  { %108 = vrot.lane.b32.xlu1 %v14_v2, %s157_s18  ;;  %v148_v7 = vld [vmem:[%s202_s2] ss:$0 sm:$0xff] }
   0x4   :  { %46 = vmatpush.msra.mxu0 %v21_v3  ;;  %143 = vmatpush.msra.mxu1 %v21_v3 }
   0x6   :  { %47 = vmatpush.msra.mxu0 %v142_v4  ;;  %144 = vmatpush.msra.mxu1 %v142_v4 }
   0x8   :  { %48 = vmatpush.msra.mxu0 %v141_v5  ;;  %145 = vmatpush.msra.mxu1 %v141_v5 }
   0x9   :  { %135 = vmatmul.msk.f32.vlgmr.msra.gmra.mxu0 %vm26_vm0, %v14_v2  ;;  %136 = vmatmul.msk.f32.vlgmr.msra.gmra.mxu1 %vm26_vm0, %v15_v6 }
   0xb   :  { %110 = vrot.lane.b32.xlu1 %v15_v6, %s157_s18 }
  0x75   :  { %v109_v35 = vpop.permute.xlu1 %108 }
  0x7d   :  { %v111_v48 = vpop.permute.xlu1 %110 }
  0x86   :  { %v50_v8 = vpop.f32.mrf.mxu0  ;;  %v53_v11 = vpop.f32.mrf.mxu1 }
  0x87   :  { %v51_v9 = vadd.f32 %v148_v7, %v50_v8  ;;  %v54_v12 = vadd.f32 %v148_v7, %v53_v11 }
  0x89   :  { %v56_v10 = vmax.f32 %v51_v9, 0.0  ;;  %v57_v13 = vmax.f32 %v54_v12, 0.0  ;;  %v137_v14 = vmul.f32 -1.442695, %v51_v9  ;;  %v138_v15 = vmul.f32 -1.442695, %v54_v12 }
  0x8b   :  { %98 = vrot.lane.b32.xlu0 %v56_v10, %s157_s18  ;;  %149 = vpow2.f32 %v137_v14 }
  0x8c   :  { %151 = vpow2.f32 %v138_v15 }
  0x91   :  { %v150_v16 = vpop.eup %149 }
  0x92   :  { %v64_v17 = vadd.f32 1.0, %v150_v16  ;;  %v152_v18 = vpop.eup %151 }
  0x93   :  { %100 = vrot.lane.b32.xlu0 %v57_v13, %s157_s18  ;;  %v65_v19 = vadd.f32 1.0, %v152_v18 }
  0x94   :  { %153 = vrcp.f32 %v64_v17  ;;  %v77_v28 = vand.u32 2147483648, %v64_v17  ;;  %vm71_vm2 = vweird.f32 %v64_v17  ;;  %v75_v29 = vand.u32 2147483647, %v64_v17 }
  0x95   :  { %155 = vrcp.f32 %v65_v19  ;;  %vm86_vm5 = vweird.f32 %v65_v19  ;;  %v92_v36 = vand.u32 2147483648, %v65_v19  ;;  %v90_v38 = vand.u32 2147483647, %v65_v19 }
  0x96   :  { %v78_v32 = vor.u32 1.1754944e-38, %v77_v28  ;;  %vm76_vm4 = vcmp.eq.f32.partialorder %v75_v29, 8.507059e+37 }
  0x97   :  { %v93_v40 = vor.u32 1.1754944e-38, %v92_v36  ;;  %vm91_vm8 = vcmp.eq.f32.partialorder %v90_v38, 8.507059e+37 }
  0x9a   :  { %v154_v20 = vpop.eup %153 }
  0x9b   :  { %v67_v21 = vmul.f32 %v154_v20, %v64_v17  ;;  %v156_v23 = vpop.eup %155  ;;  %vm72_vm1 = vweird.f32 %v154_v20 }
  0x9c   :  { %v82_v25 = vmul.f32 %v156_v23, %v65_v19  ;;  %vm73_vm3 = vmor %vm71_vm2, %vm72_vm1  ;;  %vm87_vm6 = vweird.f32 %v156_v23 }
  0x9d   :  { %v68_v22 = vsub.f32 1.0, %v67_v21  ;;  %vm88_vm7 = vmor %vm86_vm5, %vm87_vm6 }
  0x9e   :  { %v83_v27 = vsub.f32 1.0, %v82_v25 }
  0x9f   :  { %v69_v24 = vmul.f32 %v154_v20, %v68_v22 }
  0xa0   :  { %v84_v31 = vmul.f32 %v156_v23, %v83_v27 }
  0xa1   :  { %v70_v26 = vadd.f32 %v154_v20, %v69_v24 }
  0xa2   :  { %v85_v34 = vadd.f32 %v156_v23, %v84_v31 }
  0xa3   :  { %v74_v30 = vsel %vm73_vm3, %v154_v20, %v70_v26 }
  0xa4   :  { %v79_v33 = vsel %vm76_vm4, %v78_v32, %v74_v30  ;;  %v89_v39 = vsel %vm88_vm7, %v156_v23, %v85_v34 }
  0xa5   :  { %v106_v37 = vsub.f32 1.0, %v79_v33  ;;  %v94_v44 = vsel %vm91_vm8, %v93_v40, %v89_v39 }
  0xa6   :  { %v107_v46 = vsub.f32 1.0, %v94_v44 }
  0xa7   :  { %v114_v42 = vmul.f32 %v109_v35, %v106_v37 }
  0xa8   :  { %v115_v50 = vmul.f32 %v111_v48, %v107_v46 }
  0xfd   :  { %v99_v41 = vpop.permute.xlu0 %98 }
  0xfe   :  { %v104_v43 = vmul.f32 %v99_v41, %v79_v33 }
 0x100   :  { %v116_v45 = vadd.f32 %v114_v42, %v104_v43 }
 0x102   :  { %v118_v47 = vpack.c.bf16 %v116_v45, %v116_v45 }
 0x104   :  { %122 = vrot.lane.b32.xlu2 %v118_v47, %s158_s0 }
 0x105   :  { %v101_v49 = vpop.permute.xlu0 %100 }
 0x106   :  { %v105_v51 = vmul.f32 %v101_v49, %v94_v44 }
 0x108   :  { %v117_v52 = vadd.f32 %v115_v50, %v105_v51 }
 0x10a   :  { %v119_v53 = vpack.c.bf16 %v117_v52, %v117_v52 }
 0x10c   :  { %124 = vrot.lane.b32.xlu2 %v119_v53, %s158_s0 }
 0x15e   :  { %v123_v54 = vpop.permute.xlu2 %122 }
 0x15f   :  { %129 = vst.msk [vmem:[%s203_s3] sm:$0xf] %vm128_vm9, %v123_v54 }
 0x166   :  { %v125_v55 = vpop.permute.xlu2 %124 }
 0x167   :  { %130 = vst.msk [vmem:[%s203_s3 + $0x4] sm:$0xf] %vm128_vm9, %v125_v55 }

// kernel: qanet_forward.69
= control target key start
LH: loop header
LB: loop body
LE: loop exit
PB: predicated region body
PF: predicated region fallthrough
CT: control target
= control target key end

     0   :  { %s611_s21 = smov 0   ;;  %s665_s0 = inlined_call_operand.vmem [shape: bf16[2,14,32], index: 0, kind: input, shape index: {}]   ;;  %s666_s1 = inlined_call_operand.vmem [shape: f32[1,32], index: 1, kind: input, shape index: {}]   ;;  %s667_s2 = inlined_call_operand.vmem [shape: f32[1,32], index: 2, kind: input, shape index: {}]   ;;  %s668_s3 = inlined_call_operand.vmem [shape: f32[7,32], index: 3, kind: input, shape index: {}]   ;;  %s669_s4 = inlined_call_operand.vmem [shape: bf16[32,32], index: 4, kind: input, shape index: {}]   ;;  %s670_s5 = inlined_call_operand.vmem [shape: f32[1,32], index: 5, kind: input, shape index: {}]   ;;  %s671_s6 = inlined_call_operand.vmem [shape: bf16[2,8,32], index: 6, kind: output, shape index: {}]  }
   0x1 LB: > { %s524_s22 = sadd.s32 4294967295, %s572_s21   ;;  %p528_p0 = scmp.ge.s32.totalorder %s572_s21, 1  ;;  %s572_s21 = sphi %s611_s21, %s16_s21  }
   0x2   : > { %p212_p1 = scmp.lt.s32.totalorder %s572_s21, 3 }
   0x4   : > { %p213_p2 = pnand %p528_p0, %p212_p1 }
   0x5   : > { %p241_p3 = scmp.lt.s32.totalorder (!%p213_p2), %s524_s22, 1 }
   0x6   : > { %216 = sbr.rel (%p213_p2) target bundleno = 458 (0x1ca), region = 44 }
   0xb   : > { %s673_s22 = smov (!%p241_p3, %s524_s22), 1  ;;  %vm254_vm0 = vcmask 261120   ;;  %vm258_vm1 = vcmask 259072   ;;  %v574_v6 = vmov 32.0   ;;  %v546_v26 = vld [vmem:[%s669_s4 + $0x8] sm:$0xff]   ;;  %v539_v27 = vld [vmem:[%s669_s4] sm:$0xff]   ;;  %v319_v41 = vlaneseq }
   0xc   : > { %s537_s23 = sshll.u32 %s673_s22, 3  ;;  %560 = vrcp.f32 %v574_v6  ;;  %v545_v28 = vunpack.c.h.bf16 %v546_v26  ;;  %v544_v29 = vunpack.c.l.bf16 %v546_v26  ;;  %v541_v31 = vunpack.c.h.bf16 %v539_v27  ;;  %v557_v44 = vld [vmem:[%s666_s1] ss:$0 sm:$0xff]  ;;  %s531_s15 = sshll.u32 %s673_s22, 2 }
   0xd   : > { %s245_s26 = scalar_lea.vmem %s665_s0, %s537_s23  ;;  %v540_v33 = vunpack.c.l.bf16 %v539_v27  ;;  %v320_v47 = vshrl.u32 %v319_v41, 7  ;;  %v558_v50 = vld [vmem:[%s667_s2] ss:$0 sm:$0xff]  ;;  %v575_v56 = vmov 0.0   ;;  %vm343_vm11 = vcmask 1046528   ;;  %s249_s18 = scalar_lea.vmem %s671_s6, %s531_s15 }
   0xe   : > { %v250_v0 = vld [vmem:[%s245_s26] sm:$0xf]  ;;  %v251_v2 = vld [vmem:[%s245_s26 + $0x4] sm:$0x7]  ;;  %431 = vmatpush.msra.mxu0 %v545_v28  ;;  %vm354_vm12 = vcmask 1045504   ;;  %vm365_vm13 = vcmask 1044480  }
   0xf   : > { %v625_v1 = vunpack.c.l.bf16 %v250_v0  ;;  %v629_v4 = vunpack.c.l.bf16 %v251_v2  ;;  %vm322_vm7 = vcmp.ge.s32.totalorder %v320_v47, 3  ;;  %v321_v53 = vadd.s32 8, %v320_v47  ;;  %v334_v59 = vld [vmem:[%s668_s3] sm:$0x7f] }
  0x10   : > { %432 = vmatpush.msra.mxu0 %v544_v29  ;;  %v532_v57 = vsel %vm322_vm7, 1.0, %v575_v56  ;;  %v338_v63 = vperm.slane %v334_v59, 1  ;;  %vm376_vm14 = vcmask 1043456   ;;  %vm387_vm15 = vcmask 1042432  }
  0x11   : > { %v255_v3 = vsel %vm254_vm0, %v625_v1, 0.0  ;;  %v259_v5 = vsel %vm258_vm1, %v629_v4, 0.0  ;;  %vm325_vm10 = vcmp.lt.s32.totalorder %v321_v53, 11 }
  0x12   : > { %256 = vadd.xlane.f32.xlu0 %v255_v3  ;;  %v561_v7 = vpop.eup %560  ;;  %433 = vmatpush.msra.mxu0 %v541_v31  ;;  %v533_v0 = vsel %vm325_vm10, 1.0, %v575_v56  ;;  %v349_v3 = vperm.slane %v334_v59, 2 }
  0x13   : > { %v263_v8 = vmul.f32 32.0, %v561_v7  ;;  %vm267_vm2 = vweird.f32 %v561_v7 }
  0x14   : > { %434 = vmatpush.msra.mxu0 %v540_v33 }
  0x15   : > { %v264_v9 = vsub.f32 1.0, %v263_v8  ;;  %v335_v8 = vperm.slane %v334_v59, 0 }
  0x17   : > { %v265_v10 = vmul.f32 %v561_v7, %v264_v9  ;;  %v371_v9 = vperm.slane %v334_v59, 4 }
  0x19   : > { %v266_v11 = vadd.f32 %v561_v7, %v265_v10 }
  0x1a   : > { %260 = vadd.xlane.f32.xlu0 %v259_v5  ;;  %v360_v5 = vperm.slane %v334_v59, 3 }
  0x1b   : > { %v268_v12 = vsel %vm267_vm2, %v561_v7, %v266_v11  ;;  %vm448_vm2 = vsmask.f32 6416 }
  0x85   : > { %v257_v13 = vpop.xlane.xlu0 %256 }
  0x86   : > { %v269_v14 = vmul.f32 %v268_v12, %v257_v13 }
  0x88   : > { %v271_v15 = vsub.f32 %v625_v1, %v269_v14 }
  0x8a   : > { %v273_v16 = vmul.f32 %v271_v15, %v271_v15 }
  0x8c   : > { %v275_v17 = vsel %vm254_vm0, %v273_v16, 0.0 }
  0x8d   : > { %276 = vadd.xlane.f32.xlu1 %v275_v17  ;;  %v261_v18 = vpop.xlane.xlu0 %260 }
  0x8e   : > { %v270_v19 = vmul.f32 %v268_v12, %v261_v18 }
  0x90   : > { %v272_v20 = vsub.f32 %v629_v4, %v270_v19 }
  0x92   : > { %v274_v21 = vmul.f32 %v272_v20, %v272_v20 }
  0x94   : > { %v278_v22 = vsel %vm258_vm1, %v274_v21, 0.0  ;;  %vm398_vm1 = vcmask 1041408  }
  0x95   : > { %279 = vadd.xlane.f32.xlu1 %v278_v22  ;;  %v393_v22 = vperm.slane %v334_v59, 6 }
 0x100   : > { %v277_v23 = vpop.xlane.xlu1 %276 }
 0x101   : > { %v281_v24 = vmul.f32 %v277_v23, %v268_v12 }
 0x103   : > { %v283_v25 = vadd.f32 1e-05, %v281_v24 }
 0x105   : > { %562 = vrsqrt.f32 %v283_v25  ;;  %vm291_vm4 = vweird.f32 %v283_v25 }
 0x108   : > { %v280_v30 = vpop.xlane.xlu1 %279 }
 0x109   : > { %v282_v32 = vmul.f32 %v280_v30, %v268_v12 }
 0x10b   : > { %v563_v34 = vpop.eup %562  ;;  %v284_v35 = vadd.f32 1e-05, %v282_v32 }
 0x10c   : > { %v286_v36 = vmul.f32 %v563_v34, %v283_v25  ;;  %vm292_vm3 = vweird.f32 %v563_v34 }
 0x10d   : > { %564 = vrsqrt.f32 %v284_v35  ;;  %vm293_vm5 = vmor %vm291_vm4, %vm292_vm3  ;;  %vm301_vm8 = vweird.f32 %v284_v35  ;;  %vm469_vm4 = vcmask 257024  }
 0x10e   : > { %v287_v37 = vmul.f32 %v563_v34, %v286_v36 }
 0x110   : > { %v288_v38 = vmul.f32 0.5, %v287_v37 }
 0x112   : > { %v289_v39 = vsub.f32 1.5, %v288_v38 }
 0x113   : > { %v565_v40 = vpop.eup %564 }
 0x114   : > { %v290_v42 = vmul.f32 %v563_v34, %v289_v39  ;;  %v296_v43 = vmul.f32 %v565_v40, %v284_v35  ;;  %vm302_vm6 = vweird.f32 %v565_v40 }
 0x115   : > { %vm303_vm9 = vmor %vm301_vm8, %vm302_vm6 }
 0x116   : > { %v294_v45 = vsel %vm293_vm5, %v563_v34, %v290_v42  ;;  %v297_v46 = vmul.f32 %v565_v40, %v296_v43 }
 0x117   : > { %v305_v48 = vmul.f32 %v294_v45, %v271_v15  ;;  %v382_v15 = vperm.slane %v334_v59, 5 }
 0x118   : > { %v298_v49 = vmul.f32 0.5, %v297_v46 }
 0x119   : > { %v311_v51 = vmul.f32 %v557_v44, %v305_v48  ;;  %v559_v48 = vld [vmem:[%s670_s5] ss:$0 sm:$0xff] }
 0x11a   : > { %v299_v52 = vsub.f32 1.5, %v298_v49 }
 0x11b   : > { %v317_v55 = vadd.f32 %v558_v50, %v311_v51 }
 0x11c   : > { %v300_v54 = vmul.f32 %v565_v40, %v299_v52 }
 0x11d   : > { %v332_v61 = vmul.f32 %v532_v57, %v317_v55 }
 0x11e   : > { %v304_v58 = vsel %vm303_vm9, %v565_v40, %v300_v54 }
 0x11f   : > { %v306_v60 = vmul.f32 %v304_v58, %v272_v20  ;;  %v339_v7 = vmul.f32 %v338_v63, %v332_v61  ;;  %v350_v11 = vmul.f32 %v349_v3, %v332_v61  ;;  %v361_v14 = vmul.f32 %v360_v5, %v332_v61 }
 0x120   : > { %v336_v20 = vmul.f32 %v335_v8, %v332_v61  ;;  %v372_v21 = vmul.f32 %v371_v9, %v332_v61  ;;  %v383_v28 = vmul.f32 %v382_v15, %v332_v61  ;;  %v394_v37 = vmul.f32 %v393_v22, %v332_v61 }
 0x121   : > { %v312_v62 = vmul.f32 %v557_v44, %v306_v60  ;;  %v344_v16 = vrot.slane %v339_v7, 1  ;;  %v355_v24 = vrot.slane %v350_v11, 2  ;;  %v366_v30 = vrot.slane %v361_v14, 3 }
 0x122   : > { %v377_v35 = vrot.slane %v372_v21, 4  ;;  %v388_v40 = vrot.slane %v383_v28, 5  ;;  %v399_v44 = vrot.slane %v394_v37, 6 }
 0x123   : > { %v318_v2 = vadd.f32 %v558_v50, %v312_v62 }
 0x125   : > { %v333_v6 = vmul.f32 %v533_v0, %v318_v2 }
 0x127   : > { %v340_v10 = vmul.f32 %v338_v63, %v333_v6  ;;  %v351_v12 = vmul.f32 %v349_v3, %v333_v6  ;;  %v362_v13 = vmul.f32 %v360_v5, %v333_v6  ;;  %v373_v19 = vmul.f32 %v371_v9, %v333_v6 }
 0x128   : > { %v384_v26 = vmul.f32 %v382_v15, %v333_v6  ;;  %v395_v32 = vmul.f32 %v393_v22, %v333_v6 }
 0x129   : > { %v345_v17 = vrot.slane %v340_v10, 1  ;;  %v356_v18 = vrot.slane %v351_v12, 2  ;;  %v367_v25 = vrot.slane %v362_v13, 3  ;;  %v378_v31 = vrot.slane %v373_v19, 4 }
 0x12a   : > { %v389_v36 = vrot.slane %v384_v26, 5  ;;  %v400_v41 = vrot.slane %v395_v32, 6 }
 0x12b   : > { %v346_v23 = vsel %vm343_vm11, %v344_v16, %v345_v17  ;;  %v357_v29 = vsel %vm354_vm12, %v355_v24, %v356_v18  ;;  %v368_v34 = vsel %vm365_vm13, %v366_v30, %v367_v25  ;;  %v379_v39 = vsel %vm376_vm14, %v377_v35, %v378_v31 }
 0x12c   : > { %v348_v27 = vadd.f32 %v346_v23, %v336_v20  ;;  %v390_v43 = vsel %vm387_vm15, %v388_v40, %v389_v36  ;;  %v401_v46 = vsel %vm398_vm1, %v399_v44, %v400_v41 }
 0x12e   : > { %v359_v33 = vadd.f32 %v357_v29, %v348_v27 }
 0x130   : > { %v370_v38 = vadd.f32 %v368_v34, %v359_v33 }
 0x132   : > { %v381_v42 = vadd.f32 %v379_v39, %v370_v38 }
 0x134   : > { %v392_v45 = vadd.f32 %v390_v43, %v381_v42 }
 0x136   : > { %v403_v47 = vadd.f32 %v401_v46, %v392_v45 }
 0x138   : > { %534 = vmatmul.msk.f32.vlgmr.msra.gmra.mxu0 %vm254_vm0, %v403_v47  ;;  %vm447_vm0 = vsmask.f32 2304 }
 0x139   : > { %vm449_vm3 = vmor %vm447_vm0, %vm448_vm2 }
 0x1b5   : > { %v436_v49 = vpop.f32.mrf.mxu0 }
 0x1b6   : > { %v437_v50 = vadd.f32 %v559_v48, %v436_v49 }
 0x1b8   : > { %v439_v51 = vmax.f32 %v437_v50, 0.0 }
 0x1ba   : > { %v441_v52 = vrot.slane %v439_v51, 5 }
 0x1bc   : > { %v443_v53 = vadd.f32 %v441_v52, %v625_v1  ;;  %v444_v54 = vadd.f32 %v441_v52, %v629_v4 }
 0x1be   : > { %v445_v55 = vpack.c.bf16 %v443_v53, %v443_v53  ;;  %v446_v56 = vpack.c.bf16 %v444_v54, %v444_v54 }
 0x1c0   : > { %v451_v57 = vshrl.u32 %v445_v55, 16  ;;  %v454_v58 = vshll.u32 %v445_v55, 16  ;;  %v460_v59 = vshrl.u32 %v446_v56, 16  ;;  %v463_v60 = vshll.u32 %v446_v56, 16 }
 0x1c2   : > { %v453_v61 = vrot.slane %v451_v57, 5  ;;  %v456_v62 = vrot.slane %v454_v58, 6  ;;  %v462_v63 = vrot.slane %v460_v59, 5  ;;  %v465_v0 = vrot.slane %v463_v60, 6 }
 0x1c4   : > { %v457_v2 = vor.u32 %v456_v62, %v453_v61  ;;  %v466_v4 = vor.u32 %v465_v0, %v462_v63 }
 0x1c6   : > { %v458_v1 = vrot.slane %v457_v2, 4 }
 0x1c8   : > { %v467_v3 = vsel %vm449_vm3, %v458_v1, %v466_v4 }
 0x1c9   : > { %470 = vst.msk [vmem:[%s249_s18] sm:$0xf] %vm469_vm4, %v467_v3 }
 0x1ca PF: > { %s16_s21 = sadd.s32 1, %s572_s21  }
 0x1cb   : > { %p13_p4 = scmp.ge.s32.totalorder %s16_s21, 4  }
 0x1cd   :  { %15 = sbr.rel (!%p13_p4) target bundleno = 1 (0x1), region = 74 }

// kernel: qanet_forward.68
= control target key start
LH: loop header
LB: loop body
LE: loop exit
PB: predicated region body
PF: predicated region fallthrough
CT: control target
= control target key end

     0   :  { %s647_s24 = smov 0   ;;  %s707_s0 = inlined_call_operand.vmem [shape: bf16[2,14,32], index: 0, kind: input, shape index: {}]   ;;  %s708_s1 = inlined_call_operand.vmem [shape: f32[14,32], index: 1, kind: input, shape index: {}]   ;;  %s709_s2 = inlined_call_operand.vmem [shape: f32[1,32], index: 2, kind: input, shape index: {}]   ;;  %s710_s3 = inlined_call_operand.vmem [shape: f32[1,32], index: 3, kind: input, shape index: {}]   ;;  %s711_s4 = inlined_call_operand.vmem [shape: f32[7,32], index: 4, kind: input, shape index: {}]   ;;  %s712_s5 = inlined_call_operand.vmem [shape: bf16[32,32], index: 5, kind: input, shape index: {}]   ;;  %s713_s6 = inlined_call_operand.vmem [shape: f32[1,32], index: 6, kind: input, shape index: {}]   ;;  %s714_s7 = inlined_call_operand.vmem [shape: bf16[2,8,32], index: 7, kind: output, shape index: {}]  }
   0x1 LB: > { %s555_s25 = sadd.s32 4294967295, %s603_s24   ;;  %p559_p0 = scmp.ge.s32.totalorder %s603_s24, 1  ;;  %s603_s24 = sphi %s647_s24, %s17_s24  }
   0x2   : > { %p237_p1 = scmp.lt.s32.totalorder %s603_s24, 3 }
   0x4   : > { %p238_p2 = pnand %p559_p0, %p237_p1 }
   0x5   : > { %p268_p3 = scmp.lt.s32.totalorder (!%p238_p2), %s555_s25, 1 }
   0x6   : > { %241 = sbr.rel (%p238_p2) target bundleno = 460 (0x1cc), region = 48 }
   0xb   : > { %s716_s25 = smov (!%p268_p3, %s555_s25), 1  ;;  %v281_v1 = vld [vmem:[%s708_s1] sm:$0xff]  ;;  %vm285_vm0 = vcmask 261120   ;;  %v282_v6 = vld [vmem:[%s708_s1 + $0x8] sm:$0x3f]  ;;  %vm289_vm1 = vcmask 259072   ;;  %v350_v45 = vlaneseq }
   0xc   : > { %s568_s26 = sshll.u32 %s716_s25, 3  ;;  %v605_v10 = vmov 32.0   ;;  %v577_v30 = vld [vmem:[%s712_s5 + $0x8] sm:$0xff]   ;;  %v570_v31 = vld [vmem:[%s712_s5] sm:$0xff]   ;;  %v606_v60 = vmov 0.0   ;;  %vm374_vm11 = vcmask 1046528  }
   0xd   : > { %s272_s29 = scalar_lea.vmem %s707_s0, %s568_s26  ;;  %591 = vrcp.f32 %v605_v10  ;;  %v576_v32 = vunpack.c.h.bf16 %v577_v30  ;;  %v575_v33 = vunpack.c.l.bf16 %v577_v30  ;;  %v572_v35 = vunpack.c.h.bf16 %v570_v31  ;;  %v588_v48 = vld [vmem:[%s709_s2] ss:$0 sm:$0xff]  ;;  %s562_s23 = sshll.u32 %s716_s25, 2 }
   0xe   : > { %v277_v0 = vld [vmem:[%s272_s29] sm:$0xf]  ;;  %v278_v2 = vld [vmem:[%s272_s29 + $0x4] sm:$0x7]  ;;  %v571_v37 = vunpack.c.l.bf16 %v570_v31  ;;  %v351_v51 = vshrl.u32 %v350_v45, 7  ;;  %vm385_vm12 = vcmask 1045504   ;;  %s276_s28 = scalar_lea.vmem %s714_s7, %s562_s23 }
   0xf   : > { %v279_v3 = vunpack.c.l.bf16 %v277_v0  ;;  %v280_v5 = vunpack.c.l.bf16 %v278_v2  ;;  %462 = vmatpush.msra.mxu0 %v576_v32  ;;  %v589_v54 = vld [vmem:[%s710_s3] ss:$0 sm:$0xff]  ;;  %vm396_vm13 = vcmask 1044480   ;;  %vm407_vm14 = vcmask 1043456  }
  0x10   : > { %vm353_vm7 = vcmp.ge.s32.totalorder %v351_v51, 3  ;;  %v352_v57 = vadd.s32 8, %v351_v51  ;;  %v365_v63 = vld [vmem:[%s711_s4] sm:$0x7f]  ;;  %vm418_vm15 = vcmask 1042432  }
  0x11   : > { %v664_v4 = vadd.f32 %v281_v1, %v279_v3  ;;  %v671_v8 = vadd.f32 %v282_v6, %v280_v5  ;;  %463 = vmatpush.msra.mxu0 %v575_v33  ;;  %v563_v61 = vsel %vm353_vm7, 1.0, %v606_v60  ;;  %v369_v3 = vperm.slane %v365_v63, 1 }
  0x12   : > { %vm356_vm10 = vcmp.lt.s32.totalorder %v352_v57, 11 }
  0x13   : > { %v286_v7 = vsel %vm285_vm0, %v664_v4, 0.0  ;;  %v290_v9 = vsel %vm289_vm1, %v671_v8, 0.0  ;;  %v592_v11 = vpop.eup %591  ;;  %464 = vmatpush.msra.mxu0 %v572_v35  ;;  %v564_v5 = vsel %vm356_vm10, 1.0, %v606_v60 }
  0x14   : > { %287 = vadd.xlane.f32.xlu0 %v286_v7  ;;  %v294_v12 = vmul.f32 32.0, %v592_v11  ;;  %vm298_vm2 = vweird.f32 %v592_v11  ;;  %v380_v7 = vperm.slane %v365_v63, 2 }
  0x15   : > { %465 = vmatpush.msra.mxu0 %v571_v37 }
  0x16   : > { %v295_v13 = vsub.f32 1.0, %v294_v12  ;;  %v366_v12 = vperm.slane %v365_v63, 0 }
  0x18   : > { %v296_v14 = vmul.f32 %v592_v11, %v295_v13  ;;  %v402_v13 = vperm.slane %v365_v63, 4 }
  0x1a   : > { %v297_v15 = vadd.f32 %v592_v11, %v296_v14 }
  0x1c   : > { %291 = vadd.xlane.f32.xlu0 %v290_v9  ;;  %v299_v16 = vsel %vm298_vm2, %v592_v11, %v297_v15  ;;  %v391_v9 = vperm.slane %v365_v63, 3  ;;  %vm479_vm2 = vsmask.f32 6416 }
  0x87   : > { %v288_v17 = vpop.xlane.xlu0 %287 }
  0x88   : > { %v300_v18 = vmul.f32 %v299_v16, %v288_v17 }
  0x8a   : > { %v302_v19 = vsub.f32 %v664_v4, %v300_v18 }
  0x8c   : > { %v304_v20 = vmul.f32 %v302_v19, %v302_v19 }
  0x8e   : > { %v306_v21 = vsel %vm285_vm0, %v304_v20, 0.0 }
  0x8f   : > { %307 = vadd.xlane.f32.xlu1 %v306_v21  ;;  %v292_v22 = vpop.xlane.xlu0 %291 }
  0x90   : > { %v301_v23 = vmul.f32 %v299_v16, %v292_v22 }
  0x92   : > { %v303_v24 = vsub.f32 %v671_v8, %v301_v23 }
  0x94   : > { %v305_v25 = vmul.f32 %v303_v24, %v303_v24 }
  0x96   : > { %v309_v26 = vsel %vm289_vm1, %v305_v25, 0.0  ;;  %vm429_vm1 = vcmask 1041408  }
  0x97   : > { %310 = vadd.xlane.f32.xlu1 %v309_v26  ;;  %v424_v26 = vperm.slane %v365_v63, 6 }
 0x102   : > { %v308_v27 = vpop.xlane.xlu1 %307 }
 0x103   : > { %v312_v28 = vmul.f32 %v308_v27, %v299_v16 }
 0x105   : > { %v314_v29 = vadd.f32 1e-05, %v312_v28 }
 0x107   : > { %593 = vrsqrt.f32 %v314_v29  ;;  %vm322_vm4 = vweird.f32 %v314_v29 }
 0x10a   : > { %v311_v34 = vpop.xlane.xlu1 %310 }
 0x10b   : > { %v313_v36 = vmul.f32 %v311_v34, %v299_v16 }
 0x10d   : > { %v594_v38 = vpop.eup %593  ;;  %v315_v39 = vadd.f32 1e-05, %v313_v36 }
 0x10e   : > { %v317_v40 = vmul.f32 %v594_v38, %v314_v29  ;;  %vm323_vm3 = vweird.f32 %v594_v38 }
 0x10f   : > { %595 = vrsqrt.f32 %v315_v39  ;;  %vm324_vm5 = vmor %vm322_vm4, %vm323_vm3  ;;  %vm332_vm8 = vweird.f32 %v315_v39  ;;  %vm500_vm4 = vcmask 257024  }
 0x110   : > { %v318_v41 = vmul.f32 %v594_v38, %v317_v40 }
 0x112   : > { %v319_v42 = vmul.f32 0.5, %v318_v41 }
 0x114   : > { %v320_v43 = vsub.f32 1.5, %v319_v42 }
 0x115   : > { %v596_v44 = vpop.eup %595 }
 0x116   : > { %v321_v46 = vmul.f32 %v594_v38, %v320_v43  ;;  %v327_v47 = vmul.f32 %v596_v44, %v315_v39  ;;  %vm333_vm6 = vweird.f32 %v596_v44 }
 0x117   : > { %vm334_vm9 = vmor %vm332_vm8, %vm333_vm6 }
 0x118   : > { %v325_v49 = vsel %vm324_vm5, %v594_v38, %v321_v46  ;;  %v328_v50 = vmul.f32 %v596_v44, %v327_v47 }
 0x119   : > { %v336_v52 = vmul.f32 %v325_v49, %v302_v19  ;;  %v413_v19 = vperm.slane %v365_v63, 5 }
 0x11a   : > { %v329_v53 = vmul.f32 0.5, %v328_v50 }
 0x11b   : > { %v342_v55 = vmul.f32 %v588_v48, %v336_v52  ;;  %v590_v52 = vld [vmem:[%s713_s6] ss:$0 sm:$0xff] }
 0x11c   : > { %v330_v56 = vsub.f32 1.5, %v329_v53 }
 0x11d   : > { %v348_v59 = vadd.f32 %v589_v54, %v342_v55 }
 0x11e   : > { %v331_v58 = vmul.f32 %v596_v44, %v330_v56 }
 0x11f   : > { %v363_v1 = vmul.f32 %v563_v61, %v348_v59 }
 0x120   : > { %v335_v62 = vsel %vm334_vm9, %v596_v44, %v331_v58 }
 0x121   : > { %v337_v0 = vmul.f32 %v335_v62, %v303_v24  ;;  %v370_v11 = vmul.f32 %v369_v3, %v363_v1  ;;  %v381_v15 = vmul.f32 %v380_v7, %v363_v1  ;;  %v392_v18 = vmul.f32 %v391_v9, %v363_v1 }
 0x122   : > { %v367_v24 = vmul.f32 %v366_v12, %v363_v1  ;;  %v403_v25 = vmul.f32 %v402_v13, %v363_v1  ;;  %v414_v32 = vmul.f32 %v413_v19, %v363_v1  ;;  %v425_v41 = vmul.f32 %v424_v26, %v363_v1 }
 0x123   : > { %v343_v2 = vmul.f32 %v588_v48, %v337_v0  ;;  %v375_v20 = vrot.slane %v370_v11, 1  ;;  %v386_v28 = vrot.slane %v381_v15, 2  ;;  %v397_v34 = vrot.slane %v392_v18, 3 }
 0x124   : > { %v408_v39 = vrot.slane %v403_v25, 4  ;;  %v419_v44 = vrot.slane %v414_v32, 5  ;;  %v430_v48 = vrot.slane %v425_v41, 6 }
 0x125   : > { %v349_v6 = vadd.f32 %v589_v54, %v343_v2 }
 0x127   : > { %v364_v10 = vmul.f32 %v564_v5, %v349_v6 }
 0x129   : > { %v371_v14 = vmul.f32 %v369_v3, %v364_v10  ;;  %v382_v16 = vmul.f32 %v380_v7, %v364_v10  ;;  %v393_v17 = vmul.f32 %v391_v9, %v364_v10  ;;  %v404_v23 = vmul.f32 %v402_v13, %v364_v10 }
 0x12a   : > { %v415_v30 = vmul.f32 %v413_v19, %v364_v10  ;;  %v426_v36 = vmul.f32 %v424_v26, %v364_v10 }
 0x12b   : > { %v376_v21 = vrot.slane %v371_v14, 1  ;;  %v387_v22 = vrot.slane %v382_v16, 2  ;;  %v398_v29 = vrot.slane %v393_v17, 3  ;;  %v409_v35 = vrot.slane %v404_v23, 4 }
 0x12c   : > { %v420_v40 = vrot.slane %v415_v30, 5  ;;  %v431_v45 = vrot.slane %v426_v36, 6 }
 0x12d   : > { %v377_v27 = vsel %vm374_vm11, %v375_v20, %v376_v21  ;;  %v388_v33 = vsel %vm385_vm12, %v386_v28, %v387_v22  ;;  %v399_v38 = vsel %vm396_vm13, %v397_v34, %v398_v29  ;;  %v410_v43 = vsel %vm407_vm14, %v408_v39, %v409_v35 }
 0x12e   : > { %v379_v31 = vadd.f32 %v377_v27, %v367_v24  ;;  %v421_v47 = vsel %vm418_vm15, %v419_v44, %v420_v40  ;;  %v432_v50 = vsel %vm429_vm1, %v430_v48, %v431_v45 }
 0x130   : > { %v390_v37 = vadd.f32 %v388_v33, %v379_v31 }
 0x132   : > { %v401_v42 = vadd.f32 %v399_v38, %v390_v37 }
 0x134   : > { %v412_v46 = vadd.f32 %v410_v43, %v401_v42 }
 0x136   : > { %v423_v49 = vadd.f32 %v421_v47, %v412_v46 }
 0x138   : > { %v434_v51 = vadd.f32 %v432_v50, %v423_v49 }
 0x13a   : > { %565 = vmatmul.msk.f32.vlgmr.msra.gmra.mxu0 %vm285_vm0, %v434_v51  ;;  %vm478_vm0 = vsmask.f32 2304 }
 0x13b   : > { %vm480_vm3 = vmor %vm478_vm0, %vm479_vm2 }
 0x1b7   : > { %v467_v53 = vpop.f32.mrf.mxu0 }
 0x1b8   : > { %v468_v54 = vadd.f32 %v590_v52, %v467_v53 }
 0x1ba   : > { %v470_v55 = vmax.f32 %v468_v54, 0.0 }
 0x1bc   : > { %v472_v56 = vrot.slane %v470_v55, 5 }
 0x1be   : > { %v474_v57 = vadd.f32 %v472_v56, %v664_v4  ;;  %v475_v58 = vadd.f32 %v472_v56, %v671_v8 }
 0x1c0   : > { %v476_v59 = vpack.c.bf16 %v474_v57, %v474_v57  ;;  %v477_v60 = vpack.c.bf16 %v475_v58, %v475_v58 }
 0x1c2   : > { %v482_v61 = vshrl.u32 %v476_v59, 16  ;;  %v485_v62 = vshll.u32 %v476_v59, 16  ;;  %v491_v63 = vshrl.u32 %v477_v60, 16  ;;  %v494_v0 = vshll.u32 %v477_v60, 16 }
 0x1c4   : > { %v484_v1 = vrot.slane %v482_v61, 5  ;;  %v487_v2 = vrot.slane %v485_v62, 6  ;;  %v493_v3 = vrot.slane %v491_v63, 5  ;;  %v496_v5 = vrot.slane %v494_v0, 6 }
 0x1c6   : > { %v488_v6 = vor.u32 %v487_v2, %v484_v1  ;;  %v497_v8 = vor.u32 %v496_v5, %v493_v3 }
 0x1c8   : > { %v489_v4 = vrot.slane %v488_v6, 4 }
 0x1ca   : > { %v498_v7 = vsel %vm480_vm3, %v489_v4, %v497_v8 }
 0x1cb   : > { %501 = vst.msk [vmem:[%s276_s28] sm:$0xf] %vm500_vm4, %v498_v7 }
 0x1cc PF: > { %s17_s24 = sadd.s32 1, %s603_s24  }
 0x1cd   : > { %p14_p4 = scmp.ge.s32.totalorder %s17_s24, 4  }
 0x1cf   :  { %16 = sbr.rel (!%p14_p4) target bundleno = 1 (0x1), region = 78 }

// kernel: qanet_forward.70
= control target key start
LH: loop header
LB: loop body
LE: loop exit
PB: predicated region body
PF: predicated region fallthrough
CT: control target
= control target key end

     0   :  { %vm24_vm0 = vcmask 261120   ;;  %v167_v5 = vmov 32.0   ;;  %vm131_vm8 = vcmask 781312   ;;  %s228_s0 = inlined_call_operand.vmem [shape: bf16[16,32], index: 0, kind: input, shape index: {}]   ;;  %s229_s1 = inlined_call_operand.vmem [shape: f32[1,32], index: 1, kind: input, shape index: {}]   ;;  %s230_s2 = inlined_call_operand.vmem [shape: f32[1,32], index: 2, kind: input, shape index: {}]   ;;  %s231_s4 = inlined_call_operand.vmem [shape: f32[1,96], index: 4, kind: input, shape index: {}]   ;;  %s232_s3 = inlined_call_operand.vmem [shape: bf16[32,96], index: 3, kind: input, shape index: {}]   ;;  %s233_s5 = inlined_call_operand.vmem [shape: bf16[16,96], index: 5, kind: output, shape index: {}]  }
   0x1   :  { %v141_v0 = vld [vmem:[%s228_s0] sm:$0xff]   ;;  %161 = vrcp.f32 %v167_v5  ;;  %v152_v22 = vld [vmem:[%s232_s3 + $0x8] sm:$0xff]  }
   0x2   :  { %v142_v1 = vunpack.c.l.bf16 %v141_v0  ;;  %v143_v3 = vunpack.c.h.bf16 %v141_v0  ;;  %v151_v23 = vunpack.c.h.bf16 %v152_v22  ;;  %v150_v24 = vunpack.c.l.bf16 %v152_v22  ;;  %v145_v25 = vld [vmem:[%s232_s3] sm:$0xff]  }
   0x3   :  { %v147_v26 = vunpack.c.h.bf16 %v145_v25  ;;  %v146_v27 = vunpack.c.l.bf16 %v145_v25  ;;  %v158_v42 = vld [vmem:[%s229_s1] ss:$0 sm:$0xff] }
   0x4   :  { %v25_v2 = vsel %vm24_vm0, %v142_v1, 0.0  ;;  %v28_v4 = vsel %vm24_vm0, %v143_v3, 0.0  ;;  %118 = vmatpush.msra.mxu0 %v151_v23  ;;  %153 = vmatpush.msra.mxu1 %v151_v23  ;;  %v159_v46 = vld [vmem:[%s230_s2] ss:$0 sm:$0xff] }
   0x5   :  { %26 = vadd.xlane.f32.xlu0 %v25_v2  ;;  %v160_v56 = vld [vmem:[%s231_s4] ss:$0 sm:$0xff] }
   0x6   :  { %119 = vmatpush.msra.mxu0 %v150_v24  ;;  %154 = vmatpush.msra.mxu1 %v150_v24 }
   0x7   :  { %v162_v6 = vpop.eup %161 }
   0x8   :  { %v32_v7 = vmul.f32 32.0, %v162_v6  ;;  %vm36_vm1 = vweird.f32 %v162_v6  ;;  %120 = vmatpush.msra.mxu0 %v147_v26  ;;  %155 = vmatpush.msra.mxu1 %v147_v26 }
   0xa   :  { %v33_v8 = vsub.f32 1.0, %v32_v7  ;;  %121 = vmatpush.msra.mxu0 %v146_v27  ;;  %156 = vmatpush.msra.mxu1 %v146_v27 }
   0xc   :  { %v34_v9 = vmul.f32 %v162_v6, %v33_v8 }
   0xd   :  { %29 = vadd.xlane.f32.xlu0 %v28_v4 }
   0xe   :  { %v35_v10 = vadd.f32 %v162_v6, %v34_v9 }
  0x10   :  { %v37_v11 = vsel %vm36_vm1, %v162_v6, %v35_v10 }
  0x78   :  { %v27_v12 = vpop.xlane.xlu0 %26 }
  0x79   :  { %v38_v13 = vmul.f32 %v37_v11, %v27_v12 }
  0x7b   :  { %v40_v14 = vsub.f32 %v142_v1, %v38_v13 }
  0x7d   :  { %v42_v15 = vmul.f32 %v40_v14, %v40_v14 }
  0x7f   :  { %v44_v16 = vsel %vm24_vm0, %v42_v15, 0.0 }
  0x80   :  { %45 = vadd.xlane.f32.xlu1 %v44_v16  ;;  %v30_v17 = vpop.xlane.xlu0 %29 }
  0x81   :  { %v39_v18 = vmul.f32 %v37_v11, %v30_v17 }
  0x83   :  { %v41_v19 = vsub.f32 %v143_v3, %v39_v18 }
  0x85   :  { %v43_v20 = vmul.f32 %v41_v19, %v41_v19 }
  0x87   :  { %v47_v21 = vsel %vm24_vm0, %v43_v20, 0.0 }
  0x88   :  { %48 = vadd.xlane.f32.xlu1 %v47_v21 }
  0xf3   :  { %v46_v28 = vpop.xlane.xlu1 %45 }
  0xf4   :  { %v50_v29 = vmul.f32 %v46_v28, %v37_v11 }
  0xf6   :  { %v52_v30 = vadd.f32 1e-05, %v50_v29 }
  0xf8   :  { %163 = vrsqrt.f32 %v52_v30  ;;  %vm60_vm3 = vweird.f32 %v52_v30 }
  0xfb   :  { %v49_v31 = vpop.xlane.xlu1 %48 }
  0xfc   :  { %v51_v32 = vmul.f32 %v49_v31, %v37_v11 }
  0xfe   :  { %v164_v33 = vpop.eup %163  ;;  %v53_v34 = vadd.f32 1e-05, %v51_v32 }
  0xff   :  { %v55_v35 = vmul.f32 %v164_v33, %v52_v30  ;;  %vm61_vm2 = vweird.f32 %v164_v33 }
 0x100   :  { %165 = vrsqrt.f32 %v53_v34  ;;  %vm62_vm4 = vmor %vm60_vm3, %vm61_vm2  ;;  %vm70_vm6 = vweird.f32 %v53_v34 }
 0x101   :  { %v56_v36 = vmul.f32 %v164_v33, %v55_v35 }
 0x103   :  { %v57_v37 = vmul.f32 0.5, %v56_v36 }
 0x105   :  { %v58_v38 = vsub.f32 1.5, %v57_v37 }
 0x106   :  { %v166_v39 = vpop.eup %165 }
 0x107   :  { %v59_v40 = vmul.f32 %v164_v33, %v58_v38  ;;  %v65_v41 = vmul.f32 %v166_v39, %v53_v34  ;;  %vm71_vm5 = vweird.f32 %v166_v39 }
 0x108   :  { %vm72_vm7 = vmor %vm70_vm6, %vm71_vm5 }
 0x109   :  { %v63_v43 = vsel %vm62_vm4, %v164_v33, %v59_v40  ;;  %v66_v44 = vmul.f32 %v166_v39, %v65_v41 }
 0x10a   :  { %v74_v45 = vmul.f32 %v63_v43, %v40_v14 }
 0x10b   :  { %v67_v47 = vmul.f32 0.5, %v66_v44 }
 0x10c   :  { %v80_v48 = vmul.f32 %v158_v42, %v74_v45 }
 0x10d   :  { %v68_v49 = vsub.f32 1.5, %v67_v47 }
 0x10e   :  { %v86_v50 = vadd.f32 %v159_v46, %v80_v48 }
 0x10f   :  { %v69_v51 = vmul.f32 %v166_v39, %v68_v49 }
 0x110   :  { %138 = vmatmul.msk.f32.vlgmr.msra.gmra.mxu0 %vm24_vm0, %v86_v50 }
 0x111   :  { %v73_v52 = vsel %vm72_vm7, %v166_v39, %v69_v51 }
 0x112   :  { %v75_v53 = vmul.f32 %v73_v52, %v41_v19 }
 0x114   :  { %v81_v54 = vmul.f32 %v158_v42, %v75_v53 }
 0x116   :  { %v87_v55 = vadd.f32 %v159_v46, %v81_v54 }
 0x118   :  { %139 = vmatmul.msk.f32.vlgmr.msra.gmra.mxu1 %vm24_vm0, %v87_v55 }
 0x18d   :  { %v123_v57 = vpop.f32.mrf.mxu0 }
 0x18e   :  { %v124_v58 = vadd.f32 %v160_v56, %v123_v57 }
 0x190   :  { %v129_v59 = vpack.c.bf16 %v124_v58, %v124_v58 }
 0x192   :  { %132 = vst.msk [vmem:[%s233_s5] sm:$0xf] %vm131_vm8, %v129_v59 }
 0x195   :  { %v126_v60 = vpop.f32.mrf.mxu1 }
 0x196   :  { %v127_v61 = vadd.f32 %v160_v56, %v126_v60 }
 0x198   :  { %v130_v62 = vpack.c.bf16 %v127_v61, %v127_v61 }
 0x19a   :  { %133 = vst.msk [vmem:[%s233_s5 + $0x4] sm:$0xf] %vm131_vm8, %v130_v62 }

// kernel: qanet_forward.72
= control target key start
LH: loop header
LB: loop body
LE: loop exit
PB: predicated region body
PF: predicated region fallthrough
CT: control target
= control target key end

     0   :  { %vm33_vm0 = vcmask 261120   ;;  %vm71_vm1 = vcmask 257024   ;;  %s148_s1 = inlined_call_operand.vmem [shape: bf16[32,32], index: 1, kind: input, shape index: {}]   ;;  %s149_s0 = inlined_call_operand.vmem [shape: bf16[16,32], index: 0, kind: input, shape index: {}]   ;;  %s150_s2 = inlined_call_operand.vmem [shape: f32[1,32], index: 2, kind: input, shape index: {}]   ;;  %s151_s3 = inlined_call_operand.vmem [shape: bf16[16,32], index: 3, kind: input, shape index: {}]   ;;  %s152_s4 = inlined_call_operand.vmem [shape: bf16[16,32], index: 4, kind: output, shape index: {}]  }
   0x1   :  { %v96_v0 = vld [vmem:[%s148_s1 + $0x8] sm:$0xff]   ;;  %v85_v1 = vld [vmem:[%s148_s1] sm:$0xff]  }
   0x2   :  { %v91_v2 = vunpack.c.h.bf16 %v96_v0  ;;  %v90_v3 = vunpack.c.l.bf16 %v96_v0  ;;  %v87_v4 = vunpack.c.h.bf16 %v85_v1  ;;  %v81_v5 = vld [vmem:[%s149_s0] sm:$0xff]   ;;  %v86_v6 = vunpack.c.l.bf16 %v85_v1 }
   0x3   :  { %v82_v7 = vunpack.c.l.bf16 %v81_v5  ;;  %v83_v8 = vunpack.c.h.bf16 %v81_v5  ;;  %v93_v9 = vld [vmem:[%s151_s3] sm:$0xff]  }
   0x4   :  { %52 = vmatpush.msra.mxu0 %v91_v2  ;;  %97 = vmatpush.msra.mxu1 %v91_v2  ;;  %v101_v10 = vld [vmem:[%s150_s2] ss:$0 sm:$0xff]  ;;  %v94_v11 = vunpack.c.l.bf16 %v93_v9  ;;  %v95_v12 = vunpack.c.h.bf16 %v93_v9 }
   0x6   :  { %53 = vmatpush.msra.mxu0 %v90_v3  ;;  %98 = vmatpush.msra.mxu1 %v90_v3 }
   0x8   :  { %54 = vmatpush.msra.mxu0 %v87_v4  ;;  %99 = vmatpush.msra.mxu1 %v87_v4 }
   0xa   :  { %55 = vmatpush.msra.mxu0 %v86_v6  ;;  %100 = vmatpush.msra.mxu1 %v86_v6 }
   0xb   :  { %78 = vmatmul.msk.f32.vlgmr.msra.gmra.mxu0 %vm33_vm0, %v82_v7  ;;  %79 = vmatmul.msk.f32.vlgmr.msra.gmra.mxu1 %vm33_vm0, %v83_v8 }
  0x88   :  { %v57_v13 = vpop.f32.mrf.mxu0  ;;  %v60_v14 = vpop.f32.mrf.mxu1 }
  0x89   :  { %v58_v15 = vadd.f32 %v101_v10, %v57_v13  ;;  %v61_v16 = vadd.f32 %v101_v10, %v60_v14 }
  0x8b   :  { %v67_v17 = vadd.f32 %v94_v11, %v58_v15  ;;  %v68_v18 = vadd.f32 %v95_v12, %v61_v16 }
  0x8d   :  { %v69_v19 = vpack.c.bf16 %v67_v17, %v67_v17  ;;  %v70_v20 = vpack.c.bf16 %v68_v18, %v68_v18 }
  0x8f   :  { %72 = vst.msk [vmem:[%s152_s4] sm:$0xf] %vm71_vm1, %v69_v19 }
  0x90   :  { %73 = vst.msk [vmem:[%s152_s4 + $0x4] sm:$0xf] %vm71_vm1, %v70_v20 }

// kernel: qanet_forward.73
= control target key start
LH: loop header
LB: loop body
LE: loop exit
PB: predicated region body
PF: predicated region fallthrough
CT: control target
= control target key end

     0   :  { %vm30_vm0 = vcmask 261120   ;;  %v288_v5 = vmov 32.0   ;;  %vm200_vm8 = vcmask 257024   ;;  %s406_s0 = inlined_call_operand.vmem [shape: bf16[16,32], index: 0, kind: input, shape index: {}]   ;;  %s407_s1 = inlined_call_operand.vmem [shape: f32[1,32], index: 1, kind: input, shape index: {}]   ;;  %s408_s2 = inlined_call_operand.vmem [shape: f32[1,32], index: 2, kind: input, shape index: {}]   ;;  %s409_s4 = inlined_call_operand.vmem [shape: f32[1,128], index: 4, kind: input, shape index: {}]   ;;  %s410_s3 = inlined_call_operand.vmem [shape: bf16[32,128], index: 3, kind: input, shape index: {}]   ;;  %s411_s5 = inlined_call_operand.vmem [shape: bf16[128,32], index: 5, kind: input, shape index: {}]   ;;  %s412_s6 = inlined_call_operand.vmem [shape: f32[1,32], index: 6, kind: input, shape index: {}]   ;;  %s413_s7 = inlined_call_operand.vmem [shape: bf16[16,32], index: 7, kind: output, shape index: {}]  }
   0x1   :  { %v210_v0 = vld [vmem:[%s406_s0] sm:$0xff]   ;;  %282 = vrcp.f32 %v288_v5  ;;  %v253_v22 = vld [vmem:[%s410_s3 + $0x8] sm:$0xff]   ;;  %v260_v31 = vld [vmem:[%s411_s5 + $0x38] sm:$0xff]  }
   0x2   :  { %v332_v1 = vunpack.c.l.bf16 %v210_v0  ;;  %v336_v3 = vunpack.c.h.bf16 %v210_v0  ;;  %v220_v23 = vunpack.c.h.bf16 %v253_v22  ;;  %v219_v24 = vunpack.c.l.bf16 %v253_v22  ;;  %v214_v25 = vld [vmem:[%s410_s3] sm:$0xff]   ;;  %v259_v32 = vld [vmem:[%s411_s5 + $0x30] sm:$0xff]   ;;  %v258_v38 = vld [vmem:[%s411_s5 + $0x28] sm:$0xff]  }
   0x3   :  { %v216_v26 = vunpack.c.h.bf16 %v214_v25  ;;  %v215_v27 = vunpack.c.l.bf16 %v214_v25  ;;  %v252_v33 = vunpack.c.h.bf16 %v260_v31  ;;  %v251_v34 = vunpack.c.l.bf16 %v260_v31  ;;  %v257_v44 = vld [vmem:[%s411_s5 + $0x20] sm:$0xff]   ;;  %v256_v49 = vld [vmem:[%s411_s5 + $0x18] sm:$0xff]   ;;  %v255_v57 = vld [vmem:[%s411_s5 + $0x10] sm:$0xff]  }
   0x4   :  { %v31_v2 = vsel %vm30_vm0, %v332_v1, 0.0  ;;  %v34_v4 = vsel %vm30_vm0, %v336_v3, 0.0  ;;  %124 = vmatpush.msra.mxu0 %v220_v23  ;;  %v248_v36 = vunpack.c.h.bf16 %v259_v32  ;;  %v247_v39 = vunpack.c.l.bf16 %v259_v32  ;;  %v278_v56 = vld [vmem:[%s407_s1] ss:$0 sm:$0xff] }
   0x5   :  { %32 = vadd.xlane.f32.xlu0 %v31_v2  ;;  %173 = vmatpush.msra.mxu1 %v252_v33  ;;  %v244_v43 = vunpack.c.h.bf16 %v258_v38  ;;  %v243_v46 = vunpack.c.l.bf16 %v258_v38  ;;  %v240_v48 = vunpack.c.h.bf16 %v257_v44  ;;  %v239_v51 = vunpack.c.l.bf16 %v257_v44  ;;  %v279_v62 = vld [vmem:[%s408_s2] ss:$0 sm:$0xff] }
   0x6   :  { %125 = vmatpush.msra.mxu0 %v219_v24  ;;  %261 = vmatpush.msra.mxu2 %v252_v33  ;;  %v236_v55 = vunpack.c.h.bf16 %v256_v49  ;;  %v235_v60 = vunpack.c.l.bf16 %v256_v49  ;;  %v232_v0 = vunpack.c.h.bf16 %v255_v57  ;;  %v281_v25 = vld [vmem:[%s412_s6] ss:$0 sm:$0xff] }
   0x7   :  { %v283_v6 = vpop.eup %282  ;;  %174 = vmatpush.msra.mxu1 %v251_v34 }
   0x8   :  { %v38_v7 = vmul.f32 32.0, %v283_v6  ;;  %vm42_vm1 = vweird.f32 %v283_v6  ;;  %126 = vmatpush.msra.mxu0 %v216_v26  ;;  %262 = vmatpush.msra.mxu2 %v251_v34 }
   0x9   :  { %175 = vmatpush.msra.mxu1 %v248_v36 }
   0xa   :  { %v39_v8 = vsub.f32 1.0, %v38_v7  ;;  %127 = vmatpush.msra.mxu0 %v215_v27  ;;  %263 = vmatpush.msra.mxu2 %v248_v36 }
   0xb   :  { %176 = vmatpush.msra.mxu1 %v247_v39 }
   0xc   :  { %v40_v9 = vmul.f32 %v283_v6, %v39_v8  ;;  %264 = vmatpush.msra.mxu2 %v247_v39 }
   0xd   :  { %35 = vadd.xlane.f32.xlu0 %v34_v4  ;;  %177 = vmatpush.msra.mxu1 %v244_v43  ;;  %v254_v4 = vld [vmem:[%s411_s5 + $0x8] sm:$0xff]  }
   0xe   :  { %v41_v10 = vadd.f32 %v283_v6, %v40_v9  ;;  %265 = vmatpush.msra.mxu2 %v244_v43  ;;  %v228_v9 = vunpack.c.h.bf16 %v254_v4 }
   0xf   :  { %178 = vmatpush.msra.mxu1 %v243_v46 }
  0x10   :  { %v43_v11 = vsel %vm42_vm1, %v283_v6, %v41_v10  ;;  %266 = vmatpush.msra.mxu2 %v243_v46  ;;  %v231_v6 = vunpack.c.l.bf16 %v255_v57 }
  0x11   :  { %179 = vmatpush.msra.mxu1 %v240_v48 }
  0x12   :  { %267 = vmatpush.msra.mxu2 %v240_v48 }
  0x13   :  { %180 = vmatpush.msra.mxu1 %v239_v51 }
  0x14   :  { %268 = vmatpush.msra.mxu2 %v239_v51 }
  0x15   :  { %181 = vmatpush.msra.mxu1 %v236_v55 }
  0x16   :  { %269 = vmatpush.msra.mxu2 %v236_v55 }
  0x17   :  { %182 = vmatpush.msra.mxu1 %v235_v60 }
  0x18   :  { %270 = vmatpush.msra.mxu2 %v235_v60 }
  0x19   :  { %183 = vmatpush.msra.mxu1 %v232_v0 }
  0x1a   :  { %271 = vmatpush.msra.mxu2 %v232_v0 }
  0x1b   :  { %184 = vmatpush.msra.mxu1 %v231_v6 }
  0x1c   :  { %272 = vmatpush.msra.mxu2 %v231_v6 }
  0x1d   :  { %185 = vmatpush.msra.mxu1 %v228_v9 }
  0x1e   :  { %273 = vmatpush.msra.mxu2 %v228_v9 }
  0x78   :  { %v33_v12 = vpop.xlane.xlu0 %32 }
  0x79   :  { %v44_v13 = vmul.f32 %v43_v11, %v33_v12 }
  0x7b   :  { %v341_v14 = vsub.f32 %v332_v1, %v44_v13 }
  0x7d   :  { %v48_v15 = vmul.f32 %v341_v14, %v341_v14 }
  0x7f   :  { %v50_v16 = vsel %vm30_vm0, %v48_v15, 0.0  ;;  %v222_v15 = vld [vmem:[%s411_s5] sm:$0xff]  }
  0x80   :  { %51 = vadd.xlane.f32.xlu1 %v50_v16  ;;  %v36_v17 = vpop.xlane.xlu0 %35  ;;  %v224_v16 = vunpack.c.h.bf16 %v222_v15 }
  0x81   :  { %v45_v18 = vmul.f32 %v43_v11, %v36_v17  ;;  %v223_v17 = vunpack.c.l.bf16 %v222_v15 }
  0x83   :  { %v347_v19 = vsub.f32 %v336_v3, %v45_v18  ;;  %v280_v18 = vld [vmem:[%s409_s4] ss:$0 sm:$0xff] }
  0x85   :  { %v49_v20 = vmul.f32 %v347_v19, %v347_v19 }
  0x87   :  { %v53_v21 = vsel %vm30_vm0, %v49_v20, 0.0 }
  0x88   :  { %54 = vadd.xlane.f32.xlu1 %v53_v21 }
  0xf3   :  { %v52_v28 = vpop.xlane.xlu1 %51 }
  0xf4   :  { %v56_v29 = vmul.f32 %v52_v28, %v43_v11 }
  0xf6   :  { %v58_v30 = vadd.f32 1e-05, %v56_v29 }
  0xf8   :  { %284 = vrsqrt.f32 %v58_v30  ;;  %vm66_vm3 = vweird.f32 %v58_v30 }
  0xfb   :  { %v55_v35 = vpop.xlane.xlu1 %54 }
  0xfc   :  { %v57_v37 = vmul.f32 %v55_v35, %v43_v11 }
  0xfe   :  { %v285_v40 = vpop.eup %284  ;;  %v59_v41 = vadd.f32 1e-05, %v57_v37 }
  0xff   :  { %v61_v42 = vmul.f32 %v285_v40, %v58_v30  ;;  %vm67_vm2 = vweird.f32 %v285_v40 }
 0x100   :  { %286 = vrsqrt.f32 %v59_v41  ;;  %vm68_vm4 = vmor %vm66_vm3, %vm67_vm2  ;;  %vm76_vm6 = vweird.f32 %v59_v41 }
 0x101   :  { %v62_v45 = vmul.f32 %v285_v40, %v61_v42 }
 0x103   :  { %v63_v47 = vmul.f32 0.5, %v62_v45 }
 0x105   :  { %v64_v50 = vsub.f32 1.5, %v63_v47 }
 0x106   :  { %v287_v52 = vpop.eup %286 }
 0x107   :  { %v65_v53 = vmul.f32 %v285_v40, %v64_v50  ;;  %v71_v54 = vmul.f32 %v287_v52, %v59_v41  ;;  %vm77_vm5 = vweird.f32 %v287_v52 }
 0x108   :  { %vm78_vm7 = vmor %vm76_vm6, %vm77_vm5 }
 0x109   :  { %v69_v58 = vsel %vm68_vm4, %v285_v40, %v65_v53  ;;  %v72_v59 = vmul.f32 %v287_v52, %v71_v54 }
 0x10a   :  { %v80_v61 = vmul.f32 %v69_v58, %v341_v14  ;;  %v227_v14 = vunpack.c.l.bf16 %v254_v4 }
 0x10b   :  { %v73_v63 = vmul.f32 0.5, %v72_v59 }
 0x10c   :  { %v86_v2 = vmul.f32 %v278_v56, %v80_v61  ;;  %186 = vmatpush.msra.mxu1 %v227_v14  ;;  %274 = vmatpush.msra.mxu2 %v227_v14 }
 0x10d   :  { %v74_v5 = vsub.f32 1.5, %v73_v63 }
 0x10e   :  { %v92_v7 = vadd.f32 %v279_v62, %v86_v2  ;;  %187 = vmatpush.msra.mxu1 %v224_v16  ;;  %275 = vmatpush.msra.mxu2 %v224_v16 }
 0x10f   :  { %v75_v8 = vmul.f32 %v287_v52, %v74_v5 }
 0x110   :  { %207 = vmatmul.msk.f32.vlgmr.msra.gmra.mxu0 %vm30_vm0, %v92_v7  ;;  %188 = vmatpush.msra.mxu1 %v223_v17 }
 0x111   :  { %v79_v10 = vsel %vm78_vm7, %v287_v52, %v75_v8  ;;  %276 = vmatpush.msra.mxu2 %v223_v17 }
 0x112   :  { %v81_v11 = vmul.f32 %v79_v10, %v347_v19 }
 0x114   :  { %v87_v12 = vmul.f32 %v278_v56, %v81_v11 }
 0x116   :  { %v93_v13 = vadd.f32 %v279_v62, %v87_v12 }
 0x118   :  { %208 = vmatmul.msk.f32.gmra.mxu0 %vm30_vm0, %v93_v13 }
 0x18d   :  { %v129_v19 = vpop.f32.mrf.mxu0 }
 0x18e   :  { %v130_v20 = vadd.f32 %v280_v18, %v129_v19 }
 0x190   :  { %v135_v21 = vmax.f32 %v130_v20, 0.0 }
 0x192   :  { %189 = vmatmul.f32.vlgmr.msra.gmra.mxu1 %v135_v21 }
 0x195   :  { %v132_v22 = vpop.f32.mrf.mxu0 }
 0x196   :  { %v133_v23 = vadd.f32 %v280_v18, %v132_v22 }
 0x198   :  { %v136_v24 = vmax.f32 %v133_v23, 0.0 }
 0x19a   :  { %192 = vmatmul.f32.vlgmr.msra.gmra.mxu2 %v136_v24 }
 0x20f   :  { %v190_v26 = vpop.f32.mrf.mxu1 }
 0x210   :  { %v191_v27 = vadd.f32 %v281_v25, %v190_v26 }
 0x212   :  { %v196_v28 = vadd.f32 %v332_v1, %v191_v27 }
 0x214   :  { %v198_v29 = vpack.c.bf16 %v196_v28, %v196_v28 }
 0x216   :  { %201 = vst.msk [vmem:[%s413_s7] sm:$0xf] %vm200_vm8, %v198_v29 }
 0x21d   :  { %v193_v30 = vpop.f32.mrf.mxu2 }
 0x21e   :  { %v194_v31 = vadd.f32 %v281_v25, %v193_v30 }
 0x220   :  { %v197_v32 = vadd.f32 %v336_v3, %v194_v31 }
 0x222   :  { %v199_v33 = vpack.c.bf16 %v197_v32, %v197_v32 }
 0x224   :  { %202 = vst.msk [vmem:[%s413_s7 + $0x4] sm:$0xf] %vm200_vm8, %v199_v33 }

// kernel: qanet_forward.71
= control target key start
LH: loop header
LB: loop body
LE: loop exit
PB: predicated region body
PF: predicated region fallthrough
CT: control target
= control target key end

     0   :  { %s2368_s12 = smov 0   ;;  %s2370_s13 = smov 0   ;;  %s2602_s0 = inlined_call_operand.vmem [shape: bf16[2,8,96], index: 0, kind: input, shape index: {}, may-alias: {0,1}]   ;;  %s2603_s1 = inlined_call_operand.vmem [shape: bf16[2,8,96], index: 1, kind: input, shape index: {}, may-alias: {0,1}]   ;;  %s2604_s2 = inlined_call_operand.vmem [shape: f32[2,1,8], index: 2, kind: input, shape index: {}]   ;;  %s2605_s3 = inlined_call_operand.vmem [shape: bf16[2,8,32], index: 3, kind: output, shape index: {}]  }
   0x1   :  { %s2372_s14 = smov 0  }
   0x2 LB: > { %s25_s15 = sadd.s32 1, %s2324_s13  ;;  %p2068_p0 = scmp.ge.s32.totalorder %s2328_s14, 1  ;;  %s2328_s14 = sphi %s2372_s14, %s13_s14   ;;  %s2324_s13 = sphi %s2370_s13, %s2607_s13   ;;  %s2320_s12 = sphi %s2368_s12, %s2606_s12  }
   0x3   : > { %p27_p1 = scmp.ge.s32.totalorder %s25_s15, 2  ;;  %p172_p2 = scmp.lt.s32.totalorder %s2328_s14, 3 }
   0x5   : > { %s2609_s15 = smov (%p27_p1, %s25_s15), 0  ;;  %p173_p3 = pnand %p2068_p0, %p172_p2 }
   0x6   : > { %p207_p4 = scmp.lt.s32.totalorder (!%p173_p3), %s2320_s12, 1  ;;  %s2330_s20 = smov (!%p173_p3), 124  }
   0x7   : > { %176 = sbr.rel (%p173_p3) target bundleno = 1473 (0x5c1), region = 32  ;;  %s2331_s21 = smov (!%p173_p3), 120  }
   0x8   : > { %s2332_s22 = smov (!%p173_p3), 104   ;;  %s2333_s23 = smov (!%p173_p3), 116  }
   0x9   : > { %s2334_s24 = smov (!%p173_p3), 112   ;;  %s2335_s28 = smov (!%p173_p3), 100  }
   0xa   : > { %s2336_s29 = smov (!%p173_p3), 108   ;;  %s2337_s30 = smov (!%p173_p3), 96  }
   0xb   : > { %s2338_s7 = smov (!%p173_p3), 64   ;;  %s2341_s8 = smov (!%p173_p3), 4  }
   0xc   : > { %s2611_s12 = smov (!%p207_p4, %s2320_s12), 1  ;;  %vm545_vm0 = vcmask 1043456   ;;  %vm542_vm1 = vcmask 31744   ;;  %vm764_vm2 = vcmask 64512   ;;  %s2342_s9 = smov 12  }
   0xd   : > { %s2389_s16 = sshll.u32 %s2611_s12, 2  ;;  %s220_s6 = scalar_lea.vmem %s2604_s2, %s2611_s12 }
   0xe   : > { %s217_s19 = scalar_lea.vmem %s2603_s1, %s2389_s16  ;;  %s213_s27 = scalar_lea.vmem %s2602_s0, %s2389_s16  ;;  %v2273_v38 = vld [vmem:[%s220_s6] ss:$0 sm:$0xff] }
   0xf   : > { %v230_v0 = vld [vmem:[%s217_s19] sm:$0xf]  ;;  %s2343_s10 = smov 16   ;;  %s2344_s11 = smov 28  }
  0x10   : > { %v231_v1 = vunpack.c.l.bf16 %v230_v0  ;;  %v228_v2 = vld [vmem:[%s213_s27] sm:$0xf]  ;;  %s2345_s12 = smov 8   ;;  %s2346_s17 = smov 20  }
  0x11   : > { %v229_v3 = vunpack.c.l.bf16 %v228_v2  ;;  %s2347_s18 = smov 24  }
  0x12   : > { %248 = vrot.lane.b32.xlu2 %v231_v1, %s2330_s20  ;;  %250 = vrot.lane.b32.xlu0 %v231_v1, %s2331_s21 }
  0x13   : > { %258 = vrot.lane.b32.xlu1 %v231_v1, %s2332_s22 }
  0x1a   : > { %252 = vrot.lane.b32.xlu0 %v231_v1, %s2333_s23  ;;  %254 = vrot.lane.b32.xlu2 %v231_v1, %s2334_s24 }
  0x1b   : > { %260 = vrot.lane.b32.xlu1 %v231_v1, %s2335_s28 }
  0x22   : > { %256 = vrot.lane.b32.xlu0 %v231_v1, %s2336_s29  ;;  %237 = vrot.lane.b32.xlu2 %v229_v3, %s2333_s23 }
  0x23   : > { %235 = vrot.lane.b32.xlu1 %v229_v3, %s2331_s21  ;;  %s227_s21 = scalar_lea.vmem %s2605_s3, %s2389_s16 }
  0x2a   : > { %233 = vrot.lane.b32.xlu0 %v229_v3, %s2330_s20  ;;  %245 = vrot.lane.b32.xlu2 %v229_v3, %s2335_s28 }
  0x2b   : > { %243 = vrot.lane.b32.xlu1 %v229_v3, %s2332_s22 }
  0x33   : > { %239 = vrot.lane.b32.xlu1 %v229_v3, %s2334_s24 }
  0x6c   : > { %v249_v4 = vpop.permute.xlu2 %248 }
  0x6d   : > { %v2399_v5 = vpack.i.bf16 %v249_v4, %v231_v1 }
  0x6f   : > { %2160 = vrot.lane.b32.xlu0 %v2399_v5, %s2337_s30 }
  0x74   : > { %v255_v12 = vpop.permute.xlu2 %254 }
  0x7c   : > { %v238_v15 = vpop.permute.xlu2 %237 }
  0x84   : > { %v251_v6 = vpop.permute.xlu0 %250  ;;  %v246_v17 = vpop.permute.xlu2 %245 }
  0x85   : > { %v259_v7 = vpop.permute.xlu1 %258 }
  0x8c   : > { %v253_v8 = vpop.permute.xlu0 %252 }
  0x8d   : > { %v2402_v9 = vpack.i.bf16 %v253_v8, %v251_v6  ;;  %v261_v10 = vpop.permute.xlu1 %260 }
  0x8e   : > { %v2404_v11 = vpack.i.bf16 %v261_v10, %v259_v7 }
  0x8f   : > { %2150 = vrot.lane.b32.xlu1 %v2402_v9, %s2337_s30 }
  0x90   : > { %2155 = vrot.lane.b32.xlu2 %v2404_v11, %s2337_s30 }
  0x94   : > { %v257_v13 = vpop.permute.xlu0 %256 }
  0x95   : > { %v2408_v14 = vpack.i.bf16 %v257_v13, %v255_v12  ;;  %v236_v19 = vpop.permute.xlu1 %235 }
  0x97   : > { %2165 = vrot.lane.b32.xlu0 %v2408_v14, %s2337_s30 }
  0x98   : > { %241 = vrot.lane.b32.xlu2 %v229_v3, %s2336_s29 }
  0x9c   : > { %v234_v16 = vpop.permute.xlu0 %233 }
  0x9d   : > { %v244_v21 = vpop.permute.xlu1 %243 }
  0xa5   : > { %v240_v22 = vpop.permute.xlu1 %239 }
  0xe1   : > { %v2161_v18 = vpop.permute.xlu0 %2160 }
  0xe2   : > { %2184 = vxpose.xlu2.b32.start.end [1/1] (short) (narrow) %v2161_v18, 8 }
  0xea   : > { %v2156_v20 = vpop.permute.xlu2 %2155 }
  0xeb   : > { %2177 = vxpose.xlu1.b32.start.end [1/1] (short) (narrow) %v2156_v20, 8 }
  0xf2   : > { %v242_v25 = vpop.permute.xlu2 %241 }
 0x101   : > { %v2151_v23 = vpop.permute.xlu1 %2150 }
 0x102   : > { %2170 = vxpose.xlu0.b32.start.end [1/1] (short) (narrow) %v2151_v23, 8 }
 0x109   : > { %v2166_v24 = vpop.permute.xlu0 %2165 }
 0x10a   : > { %2191 = vxpose.xlu0.b32.start.end [1/1] (short) (narrow) %v2166_v24, 8 }
 0x17b   : > { %v2185_v26 = vpop.trf.xlu2 }
 0x17c   : > { %v2186_v27 = vunpack.i.l.bf16 %v2185_v26  ;;  %v2189_v28 = vunpack.i.h.bf16 %v2185_v26 }
 0x17e   : > { %2072 = vmatpush.msk.msra.mxu0 %vm545_vm0, %v2186_v27  ;;  %2074 = vmatpush.msk.msra.mxu1 %vm545_vm0, %v2189_v28 }
 0x17f   : > { %2073 = vmatmul.msk.f32.vlgmr.msra.gmra.mxu0 %vm542_vm1, %v229_v3  ;;  %2075 = vmatmul.msk.f32.vlgmr.msra.gmra.mxu1 %vm542_vm1, %v234_v16 }
 0x18f   : > { %v2178_v29 = vpop.trf.xlu1 }
 0x190   : > { %v2179_v31 = vunpack.i.l.bf16 %v2178_v29  ;;  %v2182_v32 = vunpack.i.h.bf16 %v2178_v29 }
 0x1a6   : > { %v2171_v30 = vpop.trf.xlu0 }
 0x1a7   : > { %v2172_v33 = vunpack.i.l.bf16 %v2171_v30  ;;  %v2175_v34 = vunpack.i.h.bf16 %v2171_v30 }
 0x1a9   : > { %2076 = vmatpush.msk.msra.mxu2 %vm545_vm0, %v2172_v33  ;;  %2078 = vmatpush.msk.msra.mxu3 %vm545_vm0, %v2175_v34 }
 0x1aa   : > { %2077 = vmatmul.msk.f32.vlgmr.msra.gmra.mxu2 %vm542_vm1, %v236_v19  ;;  %2079 = vmatmul.msk.f32.vlgmr.msra.gmra.mxu3 %vm542_vm1, %v238_v15 }
 0x1ab   : > { %2084 = vmatpush.msk.msrb.mxu2 %vm545_vm0, %v2179_v31  ;;  %2086 = vmatpush.msk.msrb.mxu3 %vm545_vm0, %v2182_v32 }
 0x1ae   : > { %v2192_v35 = vpop.trf.xlu0 }
 0x1af   : > { %v2193_v36 = vunpack.i.l.bf16 %v2192_v35  ;;  %v2196_v37 = vunpack.i.h.bf16 %v2192_v35 }
 0x1b1   : > { %2080 = vmatpush.msk.msrb.mxu0 %vm545_vm0, %v2193_v36  ;;  %2082 = vmatpush.msk.msrb.mxu1 %vm545_vm0, %v2196_v37 }
 0x1b2   : > { %2081 = vmatmul.msk.f32.vlgmr.msrb.gmra.mxu0 %vm542_vm1, %v240_v22  ;;  %2083 = vmatmul.msk.f32.vlgmr.msrb.gmra.mxu1 %vm542_vm1, %v242_v25 }
 0x1b3   : > { %2085 = vmatmul.msk.f32.vlgmr.msrb.gmra.mxu2 %vm542_vm1, %v244_v21  ;;  %2087 = vmatmul.msk.f32.vlgmr.msrb.gmra.mxu3 %vm542_vm1, %v246_v17 }
 0x1fc   : > { %v566_v39 = vpop.f32.mrf.mxu0  ;;  %v591_v41 = vpop.f32.mrf.mxu1 }
 0x1fd   : > { %v744_v40 = vmul.f32 0.5, %v566_v39  ;;  %v745_v43 = vmul.f32 0.5, %v591_v41 }
 0x1ff   : > { %v756_v42 = vadd.f32 %v2273_v38, %v744_v40  ;;  %v757_v45 = vadd.f32 %v2273_v38, %v745_v43 }
 0x201   : > { %v765_v44 = vsel %vm764_vm2, %v756_v42, -inf  ;;  %v768_v46 = vsel %vm764_vm2, %v757_v45, -inf }
 0x202   : > { %766 = vmax.xlane.f32.xlu1 %v765_v44 }
 0x20a   : > { %769 = vmax.xlane.f32.xlu1 %v768_v46 }
 0x22d   : > { %v616_v47 = vpop.f32.mrf.mxu2  ;;  %v641_v48 = vpop.f32.mrf.mxu3 }
 0x22e   : > { %v746_v49 = vmul.f32 0.5, %v616_v47  ;;  %v747_v50 = vmul.f32 0.5, %v641_v48 }
 0x22f   : > { %v666_v51 = vpop.f32.mrf.mxu0  ;;  %v691_v52 = vpop.f32.mrf.mxu1 }
 0x230   : > { %v748_v53 = vmul.f32 0.5, %v666_v51  ;;  %v759_v54 = vadd.f32 %v2273_v38, %v747_v50  ;;  %v758_v55 = vadd.f32 %v2273_v38, %v746_v49  ;;  %v749_v56 = vmul.f32 0.5, %v691_v52 }
 0x232   : > { %v774_v57 = vsel %vm764_vm2, %v759_v54, -inf  ;;  %v771_v58 = vsel %vm764_vm2, %v758_v55, -inf  ;;  %v760_v59 = vadd.f32 %v2273_v38, %v748_v53  ;;  %v761_v62 = vadd.f32 %v2273_v38, %v749_v56 }
 0x233   : > { %775 = vmax.xlane.f32.xlu0 %v774_v57  ;;  %772 = vmax.xlane.f32.xlu2 %v771_v58 }
 0x234   : > { %v777_v60 = vsel %vm764_vm2, %v760_v59, -inf  ;;  %v780_v3 = vsel %vm764_vm2, %v761_v62, -inf }
 0x235   : > { %778 = vmax.xlane.f32.xlu1 %v777_v60 }
 0x236   : > { %v741_v61 = vpop.f32.mrf.mxu3  ;;  %v716_v63 = vpop.f32.mrf.mxu2 }
 0x237   : > { %v751_v0 = vmul.f32 0.5, %v741_v61  ;;  %v750_v2 = vmul.f32 0.5, %v716_v63 }
 0x239   : > { %v763_v1 = vadd.f32 %v2273_v38, %v751_v0  ;;  %v762_v6 = vadd.f32 %v2273_v38, %v750_v2 }
 0x23b   : > { %v786_v4 = vsel %vm764_vm2, %v763_v1, -inf  ;;  %781 = vmax.xlane.f32.xlu2 %v780_v3  ;;  %v783_v7 = vsel %vm764_vm2, %v762_v6, -inf }
 0x23c   : > { %787 = vmax.xlane.f32.xlu0 %v786_v4 }
 0x243   : > { %784 = vmax.xlane.f32.xlu2 %v783_v7 }
 0x24e   : > { %2198 = vrot.lane.b32.xlu1 %v2402_v9, %s2338_s7 }
 0x275   : > { %v767_v8 = vpop.xlane.xlu1 %766 }
 0x276   : > { %v789_v10 = vsub.f32 %v756_v42, %v767_v8 }
 0x278   : > { %v797_v12 = vmul.f32 1.442695, %v789_v10 }
 0x27a   : > { %2274 = vpow2.f32 %v797_v12 }
 0x27d   : > { %v770_v13 = vpop.xlane.xlu1 %769 }
 0x27e   : > { %v790_v15 = vsub.f32 %v757_v45, %v770_v13 }
 0x280   : > { %v2441_v16 = vpop.eup %2274  ;;  %v799_v17 = vmul.f32 1.442695, %v790_v15 }
 0x281   : > { %v813_v18 = vsel %vm764_vm2, %v2441_v16, 0.0 }
 0x282   : > { %2276 = vpow2.f32 %v799_v17  ;;  %814 = vadd.xlane.f32.xlu2 %v813_v18 }
 0x288   : > { %v2445_v19 = vpop.eup %2276 }
 0x289   : > { %v816_v20 = vsel %vm764_vm2, %v2445_v19, 0.0 }
 0x28a   : > { %817 = vadd.xlane.f32.xlu0 %v816_v20 }
 0x2a6   : > { %v776_v9 = vpop.xlane.xlu0 %775  ;;  %v773_v21 = vpop.xlane.xlu2 %772 }
 0x2a7   : > { %v792_v22 = vsub.f32 %v759_v54, %v776_v9  ;;  %v791_v23 = vsub.f32 %v758_v55, %v773_v21 }
 0x2a8   : > { %v779_v24 = vpop.xlane.xlu1 %778 }
 0x2a9   : > { %v803_v25 = vmul.f32 1.442695, %v792_v22  ;;  %v801_v26 = vmul.f32 1.442695, %v791_v23  ;;  %v793_v27 = vsub.f32 %v760_v59, %v779_v24 }
 0x2ab   : > { %2278 = vpow2.f32 %v803_v25  ;;  %v805_v28 = vmul.f32 1.442695, %v793_v27 }
 0x2ac   : > { %2280 = vpow2.f32 %v801_v26 }
 0x2ad   : > { %2282 = vpow2.f32 %v805_v28 }
 0x2ae   : > { %v782_v29 = vpop.xlane.xlu2 %781 }
 0x2af   : > { %v794_v32 = vsub.f32 %v761_v62, %v782_v29  ;;  %v788_v37 = vpop.xlane.xlu0 %787 }
 0x2b0   : > { %v796_v41 = vsub.f32 %v763_v1, %v788_v37 }
 0x2b1   : > { %v2449_v30 = vpop.eup %2278  ;;  %v807_v35 = vmul.f32 1.442695, %v794_v32 }
 0x2b2   : > { %v2451_v31 = vpop.eup %2280  ;;  %v822_v33 = vsel %vm764_vm2, %v2449_v30, 0.0  ;;  %v811_v43 = vmul.f32 1.442695, %v796_v41 }
 0x2b3   : > { %823 = vadd.xlane.f32.xlu1 %v822_v33  ;;  %v819_v34 = vsel %vm764_vm2, %v2451_v31, 0.0  ;;  %v2457_v39 = vpop.eup %2282  ;;  %2284 = vpow2.f32 %v807_v35 }
 0x2b4   : > { %820 = vadd.xlane.f32.xlu0 %v819_v34  ;;  %v825_v42 = vsel %vm764_vm2, %v2457_v39, 0.0 }
 0x2b6   : > { %v785_v36 = vpop.xlane.xlu2 %784 }
 0x2b7   : > { %v795_v38 = vsub.f32 %v762_v6, %v785_v36 }
 0x2b9   : > { %v809_v40 = vmul.f32 1.442695, %v795_v38  ;;  %v2461_v44 = vpop.eup %2284 }
 0x2ba   : > { %v828_v47 = vsel %vm764_vm2, %v2461_v44, 0.0 }
 0x2bb   : > { %2286 = vpow2.f32 %v809_v40 }
 0x2bc   : > { %826 = vadd.xlane.f32.xlu0 %v825_v42  ;;  %2288 = vpow2.f32 %v811_v43 }
 0x2c0   : > { %v2199_v51 = vpop.permute.xlu1 %2198 }
 0x2c1   : > { %v2463_v45 = vpop.eup %2286 }
 0x2c2   : > { %v831_v46 = vsel %vm764_vm2, %v2463_v45, 0.0  ;;  %v2469_v48 = vpop.eup %2288 }
 0x2c3   : > { %832 = vadd.xlane.f32.xlu2 %v831_v46  ;;  %v834_v49 = vsel %vm764_vm2, %v2469_v48, 0.0 }
 0x2c4   : > { %829 = vadd.xlane.f32.xlu0 %v828_v47 }
 0x2cc   : > { %835 = vadd.xlane.f32.xlu0 %v834_v49  ;;  %2208 = vrot.lane.b32.xlu1 %v2404_v11, %s2338_s7 }
 0x2db   : > { %2203 = vrot.lane.b32.xlu2 %v2399_v5, %s2338_s7 }
 0x2e0   : > { %2213 = vrot.lane.b32.xlu0 %v2408_v14, %s2338_s7 }
 0x2f5   : > { %v815_v50 = vpop.xlane.xlu2 %814 }
 0x2f6   : > { %2290 = vrcp.f32 %v815_v50  ;;  %v848_v56 = vand.u32 2147483648, %v815_v50  ;;  %v846_v58 = vand.u32 2147483647, %v815_v50  ;;  %vm842_vm4 = vweird.f32 %v815_v50 }
 0x2f8   : > { %v849_v5 = vor.u32 1.1754944e-38, %v848_v56  ;;  %vm847_vm6 = vcmp.eq.f32.partialorder %v846_v58, 8.507059e+37 }
 0x2fc   : > { %v2291_v52 = vpop.eup %2290 }
 0x2fd   : > { %v838_v53 = vmul.f32 %v2291_v52, %v815_v50  ;;  %v818_v54 = vpop.xlane.xlu0 %817  ;;  %vm843_vm3 = vweird.f32 %v2291_v52 }
 0x2fe   : > { %2292 = vrcp.f32 %v818_v54  ;;  %vm844_vm5 = vmor %vm842_vm4, %vm843_vm3  ;;  %v863_v0 = vand.u32 2147483648, %v818_v54  ;;  %v861_v2 = vand.u32 2147483647, %v818_v54  ;;  %vm857_vm8 = vweird.f32 %v818_v54 }
 0x2ff   : > { %v839_v55 = vsub.f32 1.0, %v838_v53 }
 0x300   : > { %v864_v4 = vor.u32 1.1754944e-38, %v863_v0  ;;  %vm862_vm10 = vcmp.eq.f32.partialorder %v861_v2, 8.507059e+37 }
 0x301   : > { %v840_v57 = vmul.f32 %v2291_v52, %v839_v55  ;;  %2218 = vxpose.xlu1.b32.start.end [1/1] (short) (narrow) %v2199_v51, 8 }
 0x303   : > { %v841_v11 = vadd.f32 %v2291_v52, %v840_v57 }
 0x304   : > { %v2293_v59 = vpop.eup %2292 }
 0x305   : > { %v845_v60 = vsel %vm844_vm5, %v2291_v52, %v841_v11  ;;  %v853_v14 = vmul.f32 %v2293_v59, %v818_v54  ;;  %vm858_vm7 = vweird.f32 %v2293_v59 }
 0x306   : > { %v850_v61 = vsel %vm847_vm6, %v849_v5, %v845_v60  ;;  %vm859_vm9 = vmor %vm857_vm8, %vm858_vm7 }
 0x307   : > { %v854_v62 = vsub.f32 1.0, %v853_v14  ;;  %v851_v63 = vmul.f32 %v2441_v16, %v850_v61 }
 0x309   : > { %v855_v1 = vmul.f32 %v2293_v59, %v854_v62  ;;  %2088 = vmatpush.xpose.msk.msra.mxu0 %vm764_vm2, %v851_v63 }
 0x30b   : > { %v856_v3 = vadd.f32 %v2293_v59, %v855_v1 }
 0x30d   : > { %v860_v6 = vsel %vm859_vm9, %v2293_v59, %v856_v3 }
 0x30e   : > { %v865_v7 = vsel %vm862_vm10, %v864_v4, %v860_v6 }
 0x30f   : > { %v866_v8 = vmul.f32 %v2445_v19, %v865_v7 }
 0x311   : > { %2090 = vmatpush.xpose.msk.msra.mxu1 %vm764_vm2, %v866_v8 }
 0x326   : > { %v824_v10 = vpop.xlane.xlu1 %823 }
 0x327   : > { %2294 = vrcp.f32 %v824_v10  ;;  %v821_v12 = vpop.xlane.xlu0 %820  ;;  %v893_v22 = vand.u32 2147483648, %v824_v10  ;;  %v891_v24 = vand.u32 2147483647, %v824_v10  ;;  %vm887_vm13 = vweird.f32 %v824_v10 }
 0x328   : > { %2296 = vrcp.f32 %v821_v12  ;;  %v878_v23 = vand.u32 2147483648, %v821_v12  ;;  %v876_v25 = vand.u32 2147483647, %v821_v12  ;;  %vm872_vm15 = vweird.f32 %v821_v12 }
 0x329   : > { %v894_v32 = vor.u32 1.1754944e-38, %v893_v22  ;;  %vm892_vm3 = vcmp.eq.f32.partialorder %v891_v24, 8.507059e+37 }
 0x32a   : > { %v879_v33 = vor.u32 1.1754944e-38, %v878_v23  ;;  %vm877_vm4 = vcmp.eq.f32.partialorder %v876_v25, 8.507059e+37 }
 0x32d   : > { %v2295_v13 = vpop.eup %2294 }
 0x32e   : > { %v2297_v15 = vpop.eup %2296  ;;  %v883_v16 = vmul.f32 %v2295_v13, %v824_v10  ;;  %vm888_vm11 = vweird.f32 %v2295_v13 }
 0x32f   : > { %v868_v17 = vmul.f32 %v2297_v15, %v821_v12  ;;  %v827_v18 = vpop.xlane.xlu0 %826  ;;  %vm873_vm12 = vweird.f32 %v2297_v15  ;;  %vm889_vm14 = vmor %vm887_vm13, %vm888_vm11 }
 0x330   : > { %v884_v20 = vsub.f32 1.0, %v883_v16  ;;  %2298 = vrcp.f32 %v827_v18  ;;  %vm874_vm0 = vmor %vm872_vm15, %vm873_vm12  ;;  %v908_v42 = vand.u32 2147483648, %v827_v18  ;;  %v906_v47 = vand.u32 2147483647, %v827_v18 }
 0x331   : > { %v869_v9 = vsub.f32 1.0, %v868_v17  ;;  %vm902_vm6 = vweird.f32 %v827_v18 }
 0x332   : > { %v885_v21 = vmul.f32 %v2295_v13, %v884_v20  ;;  %v909_v52 = vor.u32 1.1754944e-38, %v908_v42  ;;  %vm907_vm8 = vcmp.eq.f32.partialorder %v906_v47, 8.507059e+37 }
 0x333   : > { %v870_v19 = vmul.f32 %v2297_v15, %v869_v9 }
 0x334   : > { %v886_v26 = vadd.f32 %v2295_v13, %v885_v21 }
 0x335   : > { %v871_v27 = vadd.f32 %v2297_v15, %v870_v19 }
 0x336   : > { %v2299_v28 = vpop.eup %2298  ;;  %v890_v29 = vsel %vm889_vm14, %v2295_v13, %v886_v26  ;;  %v833_v34 = vpop.xlane.xlu2 %832 }
 0x337   : > { %v875_v35 = vsel %vm874_vm0, %v2297_v15, %v871_v27  ;;  %v898_v36 = vmul.f32 %v2299_v28, %v827_v18  ;;  %v830_v37 = vpop.xlane.xlu0 %829  ;;  %v895_v38 = vsel %vm892_vm3, %v894_v32, %v890_v29  ;;  %vm903_vm5 = vweird.f32 %v2299_v28 }
 0x338   : > { %v880_v40 = vsel %vm877_vm4, %v879_v33, %v875_v35  ;;  %2300 = vrcp.f32 %v830_v37  ;;  %v896_v49 = vmul.f32 %v2449_v30, %v895_v38  ;;  %vm904_vm7 = vmor %vm902_vm6, %vm903_vm5  ;;  %v921_v30 = vand.u32 2147483647, %v830_v37 }
 0x339   : > { %v899_v41 = vsub.f32 1.0, %v898_v36  ;;  %2302 = vrcp.f32 %v833_v34  ;;  %v881_v43 = vmul.f32 %v2451_v31, %v880_v40  ;;  %v923_v5 = vand.u32 2147483648, %v830_v37 }
 0x33a   : > { %2094 = vmatpush.xpose.msk.msra.mxu3 %vm764_vm2, %v896_v49  ;;  %v938_v14 = vand.u32 2147483648, %v833_v34  ;;  %v936_v0 = vand.u32 2147483647, %v833_v34  ;;  %vm917_vm11 = vweird.f32 %v830_v37  ;;  %vm932_vm13 = vweird.f32 %v833_v34 }
 0x33b   : > { %v900_v46 = vmul.f32 %v2299_v28, %v899_v41  ;;  %2092 = vmatpush.xpose.msk.msra.mxu2 %vm764_vm2, %v881_v43  ;;  %v924_v2 = vor.u32 1.1754944e-38, %v923_v5  ;;  %vm922_vm14 = vcmp.eq.f32.partialorder %v921_v30, 8.507059e+37 }
 0x33c   : > { %v939_v7 = vor.u32 1.1754944e-38, %v938_v14  ;;  %vm937_vm0 = vcmp.eq.f32.partialorder %v936_v0, 8.507059e+37 }
 0x33d   : > { %v901_v50 = vadd.f32 %v2299_v28, %v900_v46 }
 0x33e   : > { %v2301_v51 = vpop.eup %2300  ;;  %v2209_v53 = vpop.permute.xlu1 %2208 }
 0x33f   : > { %v2303_v54 = vpop.eup %2302  ;;  %v905_v55 = vsel %vm904_vm7, %v2299_v28, %v901_v50  ;;  %v913_v56 = vmul.f32 %v2301_v51, %v830_v37  ;;  %v836_v31 = vpop.xlane.xlu0 %835  ;;  %vm918_vm9 = vweird.f32 %v2301_v51  ;;  %2232 = vxpose.xlu0.b32.start.end [1/1] (short) (narrow) %v2209_v53, 8  ;;  %vm1702_vm7 = vcmask 1047556  }
 0x340   : > { %v2204_v57 = vpop.permute.xlu2 %2203  ;;  %v910_v58 = vsel %vm907_vm8, %v909_v52, %v905_v55  ;;  %v928_v11 = vmul.f32 %v2303_v54, %v833_v34  ;;  %2304 = vrcp.f32 %v836_v31  ;;  %vm933_vm10 = vweird.f32 %v2303_v54  ;;  %vm919_vm12 = vmor %vm917_vm11, %vm918_vm9 }
 0x341   : > { %v914_v59 = vsub.f32 1.0, %v913_v56  ;;  %v911_v62 = vmul.f32 %v2457_v39, %v910_v58  ;;  %vm934_vm15 = vmor %vm932_vm13, %vm933_vm10  ;;  %2225 = vxpose.xlu2.b32.start.end [1/1] (short) (narrow) %v2204_v57, 8  ;;  %v953_v17 = vand.u32 2147483648, %v836_v31  ;;  %v951_v20 = vand.u32 2147483647, %v836_v31 }
 0x342   : > { %v929_v60 = vsub.f32 1.0, %v928_v11  ;;  %vm947_vm4 = vweird.f32 %v836_v31  ;;  %vm1956_vm8 = vcmask 97280   ;;  %vm1958_vm9 = vcmask 130048  }
 0x343   : > { %v915_v61 = vmul.f32 %v2301_v51, %v914_v59  ;;  %2096 = vmatpush.xpose.msk.msrb.mxu0 %vm764_vm2, %v911_v62  ;;  %v954_v21 = vor.u32 1.1754944e-38, %v953_v17  ;;  %vm952_vm6 = vcmp.eq.f32.partialorder %v951_v20, 8.507059e+37  ;;  %vm1960_vm10 = vcmask 162816  }
 0x344   : > { %v930_v63 = vmul.f32 %v2303_v54, %v929_v60  ;;  %v2340_v60 = vmov 1934713408   ;;  %vm1962_vm11 = vcmask 195584   ;;  %vm1967_vm13 = vcmask 257024  }
 0x345   : > { %v916_v1 = vadd.f32 %v2301_v51, %v915_v61  ;;  %v1755_v14 = vunpack.c.l.s4 %v2340_v60 }
 0x346   : > { %v931_v3 = vadd.f32 %v2303_v54, %v930_v63  ;;  %v2305_v4 = vpop.eup %2304 }
 0x347   : > { %v920_v6 = vsel %vm919_vm12, %v2301_v51, %v916_v1  ;;  %v943_v10 = vmul.f32 %v2305_v4, %v836_v31  ;;  %vm948_vm3 = vweird.f32 %v2305_v4  ;;  %vm1964_vm12 = vcmask 228352  }
 0x348   : > { %v925_v8 = vsel %vm922_vm14, %v924_v2, %v920_v6  ;;  %v935_v39 = vsel %vm934_vm15, %v2303_v54, %v931_v3  ;;  %vm949_vm5 = vmor %vm947_vm4, %vm948_vm3  ;;  %v2339_v54 = vmov 1983009808   ;;  %v2509_v3 = vunpack.c.0.s8 %v1755_v14 }
 0x349   : > { %v940_v12 = vsel %vm937_vm0, %v939_v7, %v935_v39  ;;  %v926_v13 = vmul.f32 %v2461_v44, %v925_v8  ;;  %v944_v15 = vsub.f32 1.0, %v943_v10  ;;  %v1707_v55 = vunpack.c.l.s4 %v2339_v54 }
 0x34a   : > { %v941_v16 = vmul.f32 %v2463_v45, %v940_v12 }
 0x34b   : > { %2098 = vmatpush.xpose.msk.msrb.mxu1 %vm764_vm2, %v926_v13  ;;  %v945_v18 = vmul.f32 %v2305_v4, %v944_v15  ;;  %v2503_v11 = vunpack.c.0.s8 %v1707_v55 }
 0x34c   : > { %2100 = vmatpush.xpose.msk.msrb.mxu2 %vm764_vm2, %v941_v16 }
 0x34d   : > { %v946_v9 = vadd.f32 %v2305_v4, %v945_v18 }
 0x34f   : > { %v950_v22 = vsel %vm949_vm5, %v2305_v4, %v946_v9 }
 0x350   : > { %v955_v23 = vsel %vm952_vm6, %v954_v21, %v950_v22 }
 0x351   : > { %v956_v44 = vmul.f32 %v2469_v48, %v955_v23 }
 0x352   : > { %v2214_v24 = vpop.permute.xlu0 %2213 }
 0x353   : > { %2102 = vmatpush.xpose.msk.msrb.mxu3 %vm764_vm2, %v956_v44  ;;  %2239 = vxpose.xlu2.b32.start.end [1/1] (short) (narrow) %v2214_v24, 8 }
 0x3a5   : > { %v2219_v45 = vpop.trf.xlu1 }
 0x3a6   : > { %v2223_v19 = vunpack.i.h.bf16 %v2219_v45  ;;  %v2220_v25 = vunpack.i.l.bf16 %v2219_v45 }
 0x3a8   : > { %2093 = vmatmul.msk.f32.vlgmr.msra.gmra.mxu2 %vm764_vm2, %v2220_v25  ;;  %2095 = vmatmul.msk.f32.vlgmr.msra.gmra.mxu3 %vm764_vm2, %v2223_v19 }
 0x3da   : > { %v2226_v26 = vpop.trf.xlu2 }
 0x3db   : > { %v2230_v27 = vunpack.i.h.bf16 %v2226_v26  ;;  %v2227_v28 = vunpack.i.l.bf16 %v2226_v26 }
 0x3dd   : > { %2089 = vmatmul.msk.f32.vlgmr.msra.gmra.mxu0 %vm764_vm2, %v2227_v28  ;;  %2091 = vmatmul.msk.f32.vlgmr.msra.gmra.mxu1 %vm764_vm2, %v2230_v27 }
 0x3e3   : > { %v2233_v29 = vpop.trf.xlu0 }
 0x3e4   : > { %v2237_v32 = vunpack.i.h.bf16 %v2233_v29  ;;  %v2234_v48 = vunpack.i.l.bf16 %v2233_v29 }
 0x3e6   : > { %2101 = vmatmul.msk.f32.vlgmr.msrb.gmra.mxu2 %vm764_vm2, %v2234_v48  ;;  %2103 = vmatmul.msk.f32.vlgmr.msrb.gmra.mxu3 %vm764_vm2, %v2237_v32 }
 0x3ec   : > { %v2240_v33 = vpop.trf.xlu2 }
 0x3ed   : > { %v2244_v34 = vunpack.i.h.bf16 %v2240_v33  ;;  %v2241_v35 = vunpack.i.l.bf16 %v2240_v33 }
 0x3ef   : > { %2097 = vmatmul.msk.f32.vlgmr.msrb.gmra.mxu0 %vm764_vm2, %v2241_v35  ;;  %2099 = vmatmul.msk.f32.vlgmr.msrb.gmra.mxu1 %vm764_vm2, %v2244_v34 }
 0x42b   : > { %v1338_v36 = vpop.f32.mrf.mxu3  ;;  %v1312_v40 = vpop.f32.mrf.mxu2 }
 0x45a   : > { %v1260_v37 = vpop.f32.mrf.mxu0  ;;  %v1286_v41 = vpop.f32.mrf.mxu1 }
 0x45b   : > { %v2252_v38 = vpack.i.bf16 %v1338_v36, %v1260_v37 }
 0x45d   : > { %2253 = vxpose.xlu0.b32.start.end [1/1] (short) (narrow) %v2252_v38, 8 }
 0x469   : > { %v1416_v42 = vpop.f32.mrf.mxu2  ;;  %v1442_v50 = vpop.f32.mrf.mxu3 }
 0x46a   : > { %v2259_v43 = vpack.i.bf16 %v1286_v41, %v1416_v42 }
 0x46c   : > { %v1364_v46 = vpop.f32.mrf.mxu0  ;;  %2260 = vxpose.xlu1.b32.start.end [1/1] (short) (narrow) %v2259_v43, 8  ;;  %v1390_v49 = vpop.f32.mrf.mxu1 }
 0x46d   : > { %v2245_v47 = vpack.i.bf16 %v1364_v46, %v1312_v40  ;;  %v2266_v51 = vpack.i.bf16 %v1442_v50, %v1390_v49 }
 0x46f   : > { %2246 = vxpose.xlu2.b32.start.end [1/1] (short) (narrow) %v2245_v47, 8 }
 0x477   : > { %2267 = vxpose.xlu2.b32.start.end [1/1] (short) (narrow) %v2266_v51, 8 }
 0x501   : > { %v2254_v52 = vpop.trf.xlu0 }
 0x502   : > { %v2255_v53 = vunpack.i.l.bf16 %v2254_v52  ;;  %v2258_v30 = vunpack.i.h.bf16 %v2254_v52 }
 0x504   : > { %v1704_v31 = vrot.slane %v2255_v53, 4  ;;  %v1714_v1 = vrot.slane %v2258_v30, 4 }
 0x508   : > { %v2247_v56 = vpop.trf.xlu2 }
 0x509   : > { %v2248_v57 = vunpack.i.l.bf16 %v2247_v56  ;;  %v2251_v59 = vunpack.i.h.bf16 %v2247_v56 }
 0x50b   : > { %v1701_v58 = vrot.slane %v2248_v57, 4  ;;  %v1705_v5 = vsel %vm1702_vm7, %v2248_v57, %v1704_v31  ;;  %v1728_v0 = vrot.slane %v2251_v59, 4 }
 0x50c   : > { %v1713_v63 = vperm.slane %v1705_v5, %v2503_v11 }
 0x50d   : > { %v1703_v61 = vsel %vm1702_vm7, %v1701_v58, %v2255_v53 }
 0x50e   : > { %v1709_v62 = vperm.slane %v1703_v61, %v2503_v11  ;;  %v1764_v12 = vrot.slane %v1713_v63, 4 }
 0x510   : > { %v2268_v2 = vpop.trf.xlu2  ;;  %v2261_v7 = vpop.trf.xlu1  ;;  %v1752_v10 = vrot.slane %v1709_v62, 4 }
 0x511   : > { %v2272_v4 = vunpack.i.h.bf16 %v2268_v2  ;;  %v2269_v6 = vunpack.i.l.bf16 %v2268_v2  ;;  %v2265_v8 = vunpack.i.h.bf16 %v2261_v7  ;;  %v2262_v39 = vunpack.i.l.bf16 %v2261_v7 }
 0x513   : > { %v1738_v13 = vrot.slane %v2272_v4, 4  ;;  %v1740_v15 = vrot.slane %v2269_v6, 4  ;;  %v1716_v16 = vrot.slane %v2265_v8, 4  ;;  %v1715_v17 = vsel %vm1702_vm7, %v1714_v1, %v2265_v8 }
 0x514   : > { %v1726_v18 = vrot.slane %v2262_v39, 4  ;;  %v1729_v20 = vsel %vm1702_vm7, %v2262_v39, %v1728_v0  ;;  %v1721_v22 = vperm.slane %v1715_v17, %v2503_v11 }
 0x515   : > { %v1739_v9 = vsel %vm1702_vm7, %v1738_v13, %v2269_v6  ;;  %v1741_v21 = vsel %vm1702_vm7, %v2272_v4, %v1740_v15  ;;  %v1737_v23 = vperm.slane %v1729_v20, %v2503_v11  ;;  %v1717_v45 = vsel %vm1702_vm7, %v2258_v30, %v1716_v16 }
 0x516   : > { %v1745_v24 = vperm.slane %v1739_v9, %v2503_v11  ;;  %v1749_v44 = vperm.slane %v1741_v21, %v2503_v11  ;;  %v1727_v19 = vsel %vm1702_vm7, %v1726_v18, %v2251_v59  ;;  %v1725_v25 = vperm.slane %v1717_v45, %v2503_v11 }
 0x517   : > { %v1733_v26 = vperm.slane %v1727_v19, %v2503_v11  ;;  %v1750_v27 = vrot.slane %v1721_v22, 4  ;;  %v1753_v28 = vsel %vm1702_vm7, %v1721_v22, %v1752_v10  ;;  %v1788_v33 = vrot.slane %v1737_v23, 4 }
 0x518   : > { %v1774_v29 = vrot.slane %v1745_v24, 4  ;;  %v1786_v32 = vrot.slane %v1749_v44, 4  ;;  %v1761_v48 = vperm.slane %v1753_v28, %v2509_v3  ;;  %v1762_v35 = vrot.slane %v1725_v25, 4 }
 0x519   : > { %v1751_v34 = vsel %vm1702_vm7, %v1750_v27, %v1709_v62  ;;  %v1765_v36 = vsel %vm1702_vm7, %v1725_v25, %v1764_v12  ;;  %v1776_v37 = vrot.slane %v1733_v26, 4  ;;  %v1789_v49 = vsel %vm1702_vm7, %v1749_v44, %v1788_v33 }
 0x51a   : > { %v1757_v38 = vperm.slane %v1751_v34, %v2509_v3  ;;  %v1773_v40 = vperm.slane %v1765_v36, %v2509_v3  ;;  %v1775_v41 = vsel %vm1702_vm7, %v1774_v29, %v1733_v26  ;;  %v1787_v42 = vsel %vm1702_vm7, %v1786_v32, %v1737_v23 }
 0x51b   : > { %v1763_v43 = vsel %vm1702_vm7, %v1762_v35, %v1713_v63  ;;  %v1777_v46 = vsel %vm1702_vm7, %v1745_v24, %v1776_v37  ;;  %v1781_v47 = vperm.slane %v1775_v41, %v2509_v3  ;;  %v1793_v51 = vperm.slane %v1787_v42, %v2509_v3 }
 0x51c   : > { %v1785_v50 = vperm.slane %v1777_v46, %v2509_v3  ;;  %v1797_v52 = vperm.slane %v1789_v49, %v2509_v3  ;;  %v1800_v53 = vrot.slane %v1757_v38, 4  ;;  %v1804_v55 = vrot.slane %v1761_v48, 4 }
 0x51d   : > { %v1798_v54 = vrot.slane %v1781_v47, 4  ;;  %v1812_v56 = vrot.slane %v1773_v40, 4  ;;  %v1769_v31 = vperm.slane %v1763_v43, %v2509_v3  ;;  %v1806_v58 = vrot.slane %v1793_v51, 4 }
 0x51e   : > { %v1802_v57 = vrot.slane %v1785_v50, 4  ;;  %v1810_v59 = vrot.slane %v1797_v52, 4  ;;  %v1801_v30 = vsel %vm1702_vm7, %v1781_v47, %v1800_v53  ;;  %v1805_v60 = vsel %vm1702_vm7, %v1785_v50, %v1804_v55 }
 0x51f   : > { %v1799_v5 = vsel %vm1702_vm7, %v1798_v54, %v1757_v38  ;;  %v1808_v14 = vrot.slane %v1769_v31, 4  ;;  %v1813_v61 = vsel %vm1702_vm7, %v1797_v52, %v1812_v56  ;;  %v1807_v63 = vsel %vm1702_vm7, %v1806_v58, %v1769_v31 }
 0x520   : > { %v1803_v62 = vsel %vm1702_vm7, %v1802_v57, %v1761_v48  ;;  %v1811_v0 = vsel %vm1702_vm7, %v1810_v59, %v1773_v40  ;;  %v1826_v1 = vrot.slane %v1805_v60, 4  ;;  %v1840_v7 = vrot.slane %v1807_v63, 4 }
 0x521   : > { %v1809_v2 = vsel %vm1702_vm7, %v1793_v51, %v1808_v14  ;;  %v1814_v4 = vrot.slane %v1803_v62, 4  ;;  %v1838_v6 = vrot.slane %v1811_v0, 4  ;;  %v1850_v39 = vrot.slane %v1813_v61, 4 }
 0x522   : > { %v1827_v8 = vsel %vm1702_vm7, %v1826_v1, %v1801_v30  ;;  %v1852_v10 = vrot.slane %v1809_v2, 4  ;;  %v1816_v12 = vrot.slane %v1799_v5, 4  ;;  %v1828_v17 = vrot.slane %v1801_v30, 4 }
 0x523   : > { %v1815_v13 = vsel %vm1702_vm7, %v1814_v4, %v1799_v5  ;;  %v1833_v15 = vperm.slane %v1827_v8, %v2503_v11  ;;  %v1839_v16 = vsel %vm1702_vm7, %v1838_v6, %v1807_v63  ;;  %v1851_v9 = vsel %vm1702_vm7, %v1850_v39, %v1809_v2 }
 0x524   : > { %v1821_v18 = vperm.slane %v1815_v13, %v2503_v11  ;;  %v1845_v20 = vperm.slane %v1839_v16, %v2503_v11  ;;  %v1817_v21 = vsel %vm1702_vm7, %v1803_v62, %v1816_v12  ;;  %v1857_v22 = vperm.slane %v1851_v9, %v2503_v11 }
 0x525   : > { %v1862_v23 = vrot.slane %v1833_v15, 4  ;;  %v1825_v24 = vperm.slane %v1817_v21, %v2503_v11  ;;  %v1829_v44 = vsel %vm1702_vm7, %v1805_v60, %v1828_v17  ;;  %v1841_v19 = vsel %vm1702_vm7, %v1811_v0, %v1840_v7 }
 0x526   : > { %v1837_v45 = vperm.slane %v1829_v44, %v2503_v11  ;;  %v1853_v25 = vsel %vm1702_vm7, %v1813_v61, %v1852_v10  ;;  %v1864_v26 = vrot.slane %v1821_v18, 4  ;;  %v1886_v28 = vrot.slane %v1857_v22, 4 }
 0x527   : > { %v1863_v27 = vsel %vm1702_vm7, %v1862_v23, %v1821_v18  ;;  %v1849_v29 = vperm.slane %v1841_v19, %v2503_v11  ;;  %v1861_v32 = vperm.slane %v1853_v25, %v2503_v11  ;;  %v1888_v35 = vrot.slane %v1845_v20, 4 }
 0x528   : > { %v1869_v48 = vperm.slane %v1863_v27, %v2509_v3  ;;  %v1874_v33 = vrot.slane %v1837_v45, 4  ;;  %v1865_v34 = vsel %vm1702_vm7, %v1833_v15, %v1864_v26  ;;  %v1887_v36 = vsel %vm1702_vm7, %v1886_v28, %v1845_v20 }
 0x529   : > { %v1898_v37 = vrot.slane %v1861_v32, 4  ;;  %v1873_v38 = vperm.slane %v1865_v34, %v2509_v3  ;;  %v1876_v40 = vrot.slane %v1825_v24, 4  ;;  %v1893_v41 = vperm.slane %v1887_v36, %v2509_v3 }
 0x52a   : > { %v1912_v42 = vrot.slane %v1869_v48, 4  ;;  %v1889_v43 = vsel %vm1702_vm7, %v1857_v22, %v1888_v35  ;;  %v1875_v46 = vsel %vm1702_vm7, %v1874_v33, %v1825_v24  ;;  %v1900_v56 = vrot.slane %v1849_v29, 4 }
 0x52b   : > { %v1899_v11 = vsel %vm1702_vm7, %v1898_v37, %v1849_v29  ;;  %v1897_v47 = vperm.slane %v1889_v43, %v2509_v3  ;;  %v1916_v49 = vrot.slane %v1873_v38, 4  ;;  %v1910_v50 = vrot.slane %v1893_v41, 4 }
 0x52c   : > { %v1913_v51 = vsel %vm1702_vm7, %v1893_v41, %v1912_v42  ;;  %v1905_v52 = vperm.slane %v1899_v11, %v2509_v3  ;;  %v1877_v53 = vsel %vm1702_vm7, %v1837_v45, %v1876_v40  ;;  %v1881_v31 = vperm.slane %v1875_v46, %v2509_v3 }
 0x52d   : > { %1927 = vrot.lane.b32.xlu0 %v1913_v51, %s2341_s8  ;;  %v1917_v54 = vsel %vm1702_vm7, %v1897_v47, %v1916_v49  ;;  %v1885_v55 = vperm.slane %v1877_v53, %v2509_v3  ;;  %v1911_v58 = vsel %vm1702_vm7, %v1910_v50, %v1869_v48  ;;  %v1901_v30 = vsel %vm1702_vm7, %v1861_v32, %v1900_v56 }
 0x52e   : > { %v1918_v57 = vrot.slane %v1905_v52, 4  ;;  %1935 = vrot.lane.b32.xlu2 %v1917_v54, %s2342_s9  ;;  %v1909_v60 = vperm.slane %v1901_v30, %v2509_v3  ;;  %v1914_v14 = vrot.slane %v1897_v47, 4  ;;  %v1920_v63 = vrot.slane %v1881_v31, 4 }
 0x52f   : > { %v1924_v5 = vrot.slane %v1885_v55, 4 }
 0x530   : > { %v1919_v59 = vsel %vm1702_vm7, %v1918_v57, %v1881_v31  ;;  %v1915_v62 = vsel %vm1702_vm7, %v1914_v14, %v1873_v38  ;;  %v1921_v0 = vsel %vm1702_vm7, %v1905_v52, %v1920_v63  ;;  %v1922_v1 = vrot.slane %v1909_v60, 4 }
 0x531   : > { %1939 = vrot.lane.b32.xlu1 %v1919_v59, %s2343_s10  ;;  %v1925_v61 = vsel %vm1702_vm7, %v1909_v60, %v1924_v5 }
 0x532   : > { %v1923_v2 = vsel %vm1702_vm7, %v1922_v1, %v1885_v55 }
 0x536   : > { %1951 = vrot.lane.b32.xlu2 %v1925_v61, %s2344_s11 }
 0x539   : > { %1931 = vrot.lane.b32.xlu1 %v1915_v62, %s2345_s12 }
 0x541   : > { %1943 = vrot.lane.b32.xlu1 %v1921_v0, %s2346_s17 }
 0x549   : > { %1947 = vrot.lane.b32.xlu1 %v1923_v2, %s2347_s18 }
 0x588   : > { %v1936_v7 = vpop.permute.xlu2 %1935 }
 0x590   : > { %v1952_v17 = vpop.permute.xlu2 %1951 }
 0x59f   : > { %v1928_v6 = vpop.permute.xlu0 %1927 }
 0x5a0   : > { %v1954_v8 = vsel %vm542_vm1, %v1911_v58, %v1928_v6 }
 0x5a3   : > { %v1940_v3 = vpop.permute.xlu1 %1939 }
 0x5ab   : > { %v1932_v4 = vpop.permute.xlu1 %1931 }
 0x5ac   : > { %v1955_v10 = vsel %vm764_vm2, %v1954_v8, %v1932_v4 }
 0x5ad   : > { %v1957_v12 = vsel %vm1956_vm8, %v1955_v10, %v1936_v7 }
 0x5ae   : > { %v1959_v13 = vsel %vm1958_vm9, %v1957_v12, %v1940_v3 }
 0x5b3   : > { %v1944_v39 = vpop.permute.xlu1 %1943 }
 0x5b4   : > { %v1961_v15 = vsel %vm1960_vm10, %v1959_v13, %v1944_v39 }
 0x5bb   : > { %v1948_v16 = vpop.permute.xlu1 %1947 }
 0x5bc   : > { %v1963_v18 = vsel %vm1962_vm11, %v1961_v15, %v1948_v16 }
 0x5bd   : > { %v1965_v20 = vsel %vm1964_vm12, %v1963_v18, %v1952_v17 }
 0x5be   : > { %v1966_v9 = vpack.c.bf16 %v1965_v20, %v1965_v20 }
 0x5c0   : > { %1968 = vst.msk [vmem:[%s227_s21] sm:$0xf] %vm1967_vm13, %v1966_v9 }
 0x5c1 PF: > { %s13_s14 = sadd.s32 1, %s2328_s14   ;;  %s2606_s12 = smov %s2324_s13 }
 0x5c2   : > { %p10_p5 = scmp.ge.s32.totalorder %s13_s14, 4   ;;  %s2607_s13 = smov %s2609_s15 }
 0x5c4   :  { %12 = sbr.rel (!%p10_p5) target bundleno = 2 (0x2), region = 68 }

// kernel: qanet_forward.75
= control target key start
LH: loop header
LB: loop body
LE: loop exit
PB: predicated region body
PF: predicated region fallthrough
CT: control target
= control target key end

     0   :  { %s711_s24 = smov 0   ;;  %s800_s0 = inlined_call_operand.vmem [shape: bf16[2,20,32], index: 0, kind: input, shape index: {}]   ;;  %s801_s1 = inlined_call_operand.vmem [shape: f32[20,32], index: 1, kind: input, shape index: {}]   ;;  %s802_s2 = inlined_call_operand.vmem [shape: f32[1,32], index: 2, kind: input, shape index: {}]   ;;  %s803_s3 = inlined_call_operand.vmem [shape: f32[1,32], index: 3, kind: input, shape index: {}]   ;;  %s804_s4 = inlined_call_operand.vmem [shape: f32[5,32], index: 4, kind: input, shape index: {}]   ;;  %s805_s5 = inlined_call_operand.vmem [shape: bf16[32,32], index: 5, kind: input, shape index: {}]   ;;  %s806_s6 = inlined_call_operand.vmem [shape: f32[1,32], index: 6, kind: input, shape index: {}]   ;;  %s807_s7 = inlined_call_operand.vmem [shape: bf16[2,16,32], index: 7, kind: output, shape index: {}]  }
   0x1 LB: > { %s606_s25 = sadd.s32 4294967295, %s667_s24   ;;  %p610_p0 = scmp.ge.s32.totalorder %s667_s24, 1  ;;  %s667_s24 = sphi %s711_s24, %s17_s24  }
   0x2   : > { %p237_p1 = scmp.lt.s32.totalorder %s667_s24, 3 }
   0x4   : > { %p238_p2 = pnand %p610_p0, %p237_p1 }
   0x5   : > { %p269_p3 = scmp.lt.s32.totalorder (!%p238_p2), %s606_s25, 1 }
   0x6   : > { %241 = sbr.rel (%p238_p2) target bundleno = 460 (0x1cc), region = 48 }
   0xb   : > { %s809_s25 = smov (!%p269_p3, %s606_s25), 1  ;;  %v285_v0 = vld [vmem:[%s801_s1] sm:$0xff]  ;;  %v286_v3 = vld [vmem:[%s801_s1 + $0x8] sm:$0xff]  ;;  %vm291_vm0 = vcmask 261120   ;;  %v287_v9 = vld [vmem:[%s801_s1 + $0x10] sm:$0xf]  ;;  %v380_v60 = vlaneseq }
   0xc   : > { %s639_s26 = smul.u32 12, %s809_s25  ;;  %vm298_vm1 = vcmask 257024   ;;  %v669_v14 = vmov 32.0   ;;  %v634_v43 = vld [vmem:[%s805_s5 + $0x8] sm:$0xff]   ;;  %v627_v44 = vld [vmem:[%s805_s5] sm:$0xff]   ;;  %vm415_vm14 = vcmask 1046528  }
   0xd   : > { %653 = vrcp.f32 %v669_v14  ;;  %v633_v46 = vunpack.c.h.bf16 %v634_v43  ;;  %v632_v47 = vunpack.c.l.bf16 %v634_v43  ;;  %v629_v49 = vunpack.c.h.bf16 %v627_v44  ;;  %s621_s27 = sshll.u32 %s809_s25, 3 }
   0xe   : > { %s273_s29 = scalar_lea.vmem %s800_s0, %s639_s26  ;;  %v628_v52 = vunpack.c.l.bf16 %v627_v44  ;;  %vm432_vm15 = vcmask 1045504   ;;  %s278_s30 = scalar_lea.vmem %s807_s7, %s621_s27 }
   0xf   : > { %v623_v1 = vld [vmem:[%s273_s29] sm:$0xff]   ;;  %v281_v2 = vld [vmem:[%s273_s29 + $0x8] sm:$0x3]  ;;  %506 = vmatpush.msra.mxu0 %v633_v46  ;;  %635 = vmatpush.msra.mxu1 %v633_v46 }
  0x10   : > { %v624_v4 = vunpack.c.l.bf16 %v623_v1  ;;  %v625_v5 = vunpack.c.h.bf16 %v623_v1  ;;  %v284_v7 = vunpack.c.l.bf16 %v281_v2  ;;  %v650_v1 = vld [vmem:[%s802_s2] ss:$0 sm:$0xff] }
  0x11   : > { %507 = vmatpush.msra.mxu0 %v632_v47  ;;  %636 = vmatpush.msra.mxu1 %v632_v47 }
  0x12   : > { %v731_v6 = vadd.f32 %v624_v4, %v285_v0  ;;  %v733_v8 = vadd.f32 %v625_v5, %v286_v3  ;;  %v742_v12 = vadd.f32 %v287_v9, %v284_v7  ;;  %v381_v3 = vshrl.u32 %v380_v60, 7 }
  0x13   : > { %v654_v15 = vpop.eup %653  ;;  %508 = vmatpush.msra.mxu0 %v629_v49  ;;  %637 = vmatpush.msra.mxu1 %v629_v49 }
  0x14   : > { %v292_v10 = vsel %vm291_vm0, %v731_v6, 0.0  ;;  %v295_v11 = vsel %vm291_vm0, %v733_v8, 0.0  ;;  %v299_v13 = vsel %vm298_vm1, %v742_v12, 0.0  ;;  %v303_v16 = vmul.f32 32.0, %v654_v15 }
  0x15   : > { %293 = vadd.xlane.f32.xlu0 %v292_v10  ;;  %296 = vadd.xlane.f32.xlu1 %v295_v11  ;;  %vm307_vm2 = vweird.f32 %v654_v15  ;;  %v383_v7 = vadd.s32 16, %v381_v3  ;;  %v651_v11 = vld [vmem:[%s803_s3] ss:$0 sm:$0xff]  ;;  %vm384_vm9 = vcmp.ge.s32.totalorder %v381_v3, 2 }
  0x16   : > { %v304_v17 = vsub.f32 1.0, %v303_v16  ;;  %509 = vmatpush.msra.mxu0 %v628_v52  ;;  %638 = vmatpush.msra.mxu1 %v628_v52 }
  0x17   : > { %vm389_vm10 = vcmp.lt.s32.totalorder %v383_v7, 18 }
  0x18   : > { %v305_v18 = vmul.f32 %v654_v15, %v304_v17 }
  0x1a   : > { %v306_v19 = vadd.f32 %v654_v15, %v305_v18 }
  0x1c   : > { %v308_v20 = vsel %vm307_vm2, %v654_v15, %v306_v19  ;;  %v670_v19 = vmov 0.0   ;;  %vm449_vm2 = vcmask 1044480  }
  0x1d   : > { %300 = vadd.xlane.f32.xlu0 %v299_v13 }
  0x88   : > { %v294_v21 = vpop.xlane.xlu0 %293  ;;  %v297_v25 = vpop.xlane.xlu1 %296 }
  0x89   : > { %v309_v22 = vmul.f32 %v308_v20, %v294_v21  ;;  %v310_v29 = vmul.f32 %v308_v20, %v297_v25 }
  0x8b   : > { %v312_v23 = vsub.f32 %v731_v6, %v309_v22  ;;  %v752_v31 = vsub.f32 %v733_v8, %v310_v29 }
  0x8d   : > { %v315_v24 = vmul.f32 %v312_v23, %v312_v23  ;;  %v316_v34 = vmul.f32 %v752_v31, %v752_v31 }
  0x8f   : > { %v318_v26 = vsel %vm291_vm0, %v315_v24, 0.0  ;;  %v321_v35 = vsel %vm291_vm0, %v316_v34, 0.0  ;;  %v615_v24 = vsel %vm389_vm10, 1.0, %v670_v19 }
  0x90   : > { %319 = vadd.xlane.f32.xlu1 %v318_v26  ;;  %v301_v27 = vpop.xlane.xlu0 %300 }
  0x91   : > { %v311_v28 = vmul.f32 %v308_v20, %v301_v27 }
  0x93   : > { %v749_v30 = vsub.f32 %v742_v12, %v311_v28 }
  0x95   : > { %v317_v32 = vmul.f32 %v749_v30, %v749_v30 }
  0x97   : > { %v324_v33 = vsel %vm298_vm1, %v317_v32, 0.0 }
  0x98   : > { %325 = vadd.xlane.f32.xlu2 %v324_v33 }
  0xa0   : > { %322 = vadd.xlane.f32.xlu2 %v321_v35 }
 0x103   : > { %v320_v36 = vpop.xlane.xlu1 %319 }
 0x104   : > { %v327_v37 = vmul.f32 %v320_v36, %v308_v20 }
 0x106   : > { %v330_v38 = vadd.f32 1e-05, %v327_v37 }
 0x108   : > { %655 = vrsqrt.f32 %v330_v38  ;;  %vm339_vm4 = vweird.f32 %v330_v38 }
 0x10b   : > { %v326_v39 = vpop.xlane.xlu2 %325 }
 0x10c   : > { %v329_v40 = vmul.f32 %v326_v39, %v308_v20 }
 0x10e   : > { %v656_v41 = vpop.eup %655  ;;  %v332_v42 = vadd.f32 1e-05, %v329_v40 }
 0x10f   : > { %v334_v45 = vmul.f32 %v656_v41, %v330_v38  ;;  %vm340_vm3 = vweird.f32 %v656_v41 }
 0x110   : > { %657 = vrsqrt.f32 %v332_v42  ;;  %vm341_vm5 = vmor %vm339_vm4, %vm340_vm3  ;;  %vm359_vm7 = vweird.f32 %v332_v42  ;;  %vm466_vm3 = vcmask 1043456   ;;  %vm521_vm4 = vcmask 1041408  }
 0x111   : > { %v335_v48 = vmul.f32 %v656_v41, %v334_v45 }
 0x113   : > { %v336_v50 = vmul.f32 0.5, %v335_v48  ;;  %v323_v51 = vpop.xlane.xlu2 %322 }
 0x114   : > { %v328_v53 = vmul.f32 %v323_v51, %v308_v20  ;;  %v614_v20 = vsel %vm384_vm9, 1.0, %v670_v19 }
 0x115   : > { %v337_v54 = vsub.f32 1.5, %v336_v50 }
 0x116   : > { %v658_v55 = vpop.eup %657  ;;  %v331_v56 = vadd.f32 1e-05, %v328_v53 }
 0x117   : > { %v338_v57 = vmul.f32 %v656_v41, %v337_v54  ;;  %v354_v58 = vmul.f32 %v658_v55, %v332_v42  ;;  %vm360_vm6 = vweird.f32 %v658_v55 }
 0x118   : > { %659 = vrsqrt.f32 %v331_v56  ;;  %vm361_vm8 = vmor %vm359_vm7, %vm360_vm6  ;;  %vm349_vm12 = vweird.f32 %v331_v56 }
 0x119   : > { %v355_v59 = vmul.f32 %v658_v55, %v354_v58  ;;  %v342_v61 = vsel %vm341_vm5, %v656_v41, %v338_v57  ;;  %vm538_vm5 = vcmask 1046532  }
 0x11a   : > { %v363_v2 = vmul.f32 %v342_v61, %v312_v23  ;;  %v402_v23 = vld [vmem:[%s804_s4] sm:$0x1f] }
 0x11b   : > { %v356_v62 = vmul.f32 0.5, %v355_v59  ;;  %v408_v28 = vperm.slane %v402_v23, 1  ;;  %v425_v32 = vperm.slane %v402_v23, 2  ;;  %v442_v33 = vperm.slane %v402_v23, 3 }
 0x11c   : > { %v370_v13 = vmul.f32 %v650_v1, %v363_v2  ;;  %v403_v36 = vperm.slane %v402_v23, 0  ;;  %v459_v37 = vperm.slane %v402_v23, 4 }
 0x11d   : > { %v357_v63 = vsub.f32 1.5, %v356_v62 }
 0x11e   : > { %v660_v0 = vpop.eup %659  ;;  %v377_v18 = vadd.f32 %v651_v11, %v370_v13 }
 0x11f   : > { %v358_v4 = vmul.f32 %v658_v55, %v357_v63  ;;  %v344_v5 = vmul.f32 %v660_v0, %v331_v56  ;;  %vm350_vm11 = vweird.f32 %v660_v0 }
 0x120   : > { %vm351_vm13 = vmor %vm349_vm12, %vm350_vm11  ;;  %v399_v26 = vmul.f32 %v614_v20, %v377_v18 }
 0x121   : > { %v362_v9 = vsel %vm361_vm8, %v658_v55, %v358_v4  ;;  %v345_v10 = vmul.f32 %v660_v0, %v344_v5 }
 0x122   : > { %v365_v14 = vmul.f32 %v362_v9, %v749_v30  ;;  %v409_v35 = vmul.f32 %v408_v28, %v399_v26  ;;  %v426_v40 = vmul.f32 %v425_v32, %v399_v26  ;;  %v443_v43 = vmul.f32 %v442_v33, %v399_v26 }
 0x123   : > { %v346_v15 = vmul.f32 0.5, %v345_v10  ;;  %v404_v48 = vmul.f32 %v403_v36, %v399_v26  ;;  %v460_v49 = vmul.f32 %v459_v37, %v399_v26 }
 0x124   : > { %v372_v16 = vmul.f32 %v650_v1, %v365_v14  ;;  %v433_v53 = vrot.slane %v426_v40, 2  ;;  %v450_v61 = vrot.slane %v443_v43, 3 }
 0x125   : > { %v347_v17 = vsub.f32 1.5, %v346_v15  ;;  %v467_v4 = vrot.slane %v460_v49, 4 }
 0x126   : > { %v379_v21 = vadd.f32 %v651_v11, %v372_v16 }
 0x127   : > { %v348_v22 = vmul.f32 %v660_v0, %v347_v17  ;;  %v652_v17 = vld [vmem:[%s806_s6] ss:$0 sm:$0xff] }
 0x128   : > { %v401_v29 = vmul.f32 %v615_v24, %v379_v21 }
 0x129   : > { %v352_v25 = vsel %vm351_vm13, %v660_v0, %v348_v22 }
 0x12a   : > { %v364_v27 = vmul.f32 %v352_v25, %v752_v31  ;;  %v411_v38 = vmul.f32 %v408_v28, %v401_v29  ;;  %v428_v44 = vmul.f32 %v425_v32, %v401_v29  ;;  %v416_v31 = vrot.slane %v409_v35, 1 }
 0x12b   : > { %v445_v51 = vmul.f32 %v442_v33, %v401_v29  ;;  %v462_v59 = vmul.f32 %v459_v37, %v401_v29 }
 0x12c   : > { %v371_v30 = vmul.f32 %v650_v1, %v364_v27  ;;  %v419_v50 = vrot.slane %v411_v38, 1  ;;  %v436_v58 = vrot.slane %v428_v44, 2 }
 0x12d   : > { %v453_v2 = vrot.slane %v445_v51, 3  ;;  %v470_v10 = vrot.slane %v462_v59, 4 }
 0x12e   : > { %v378_v34 = vadd.f32 %v651_v11, %v371_v30 }
 0x130   : > { %v410_v39 = vmul.f32 %v408_v28, %v378_v34  ;;  %v427_v41 = vmul.f32 %v425_v32, %v378_v34  ;;  %v444_v42 = vmul.f32 %v442_v33, %v378_v34  ;;  %v461_v47 = vmul.f32 %v459_v37, %v378_v34 }
 0x131   : > { %v405_v55 = vmul.f32 %v403_v36, %v378_v34 }
 0x132   : > { %v417_v45 = vrot.slane %v410_v39, 1  ;;  %v434_v46 = vrot.slane %v427_v41, 2  ;;  %v451_v54 = vrot.slane %v444_v42, 3  ;;  %v468_v62 = vrot.slane %v461_v47, 4 }
 0x134   : > { %v418_v52 = vsel %vm415_vm14, %v416_v31, %v417_v45  ;;  %v420_v57 = vsel %vm415_vm14, %v417_v45, %v419_v50  ;;  %v435_v60 = vsel %vm432_vm15, %v433_v53, %v434_v46  ;;  %v437_v1 = vsel %vm432_vm15, %v434_v46, %v436_v58 }
 0x135   : > { %v423_v56 = vadd.f32 %v418_v52, %v404_v48  ;;  %v424_v63 = vadd.f32 %v420_v57, %v405_v55  ;;  %v452_v3 = vsel %vm449_vm2, %v450_v61, %v451_v54  ;;  %v454_v9 = vsel %vm449_vm2, %v451_v54, %v453_v2 }
 0x136   : > { %v469_v11 = vsel %vm466_vm3, %v467_v4, %v468_v62  ;;  %v471_v15 = vsel %vm466_vm3, %v468_v62, %v470_v10 }
 0x137   : > { %v440_v0 = vadd.f32 %v435_v60, %v423_v56  ;;  %v441_v5 = vadd.f32 %v437_v1, %v424_v63 }
 0x139   : > { %v457_v7 = vadd.f32 %v452_v3, %v440_v0  ;;  %v458_v13 = vadd.f32 %v454_v9, %v441_v5 }
 0x13b   : > { %v474_v14 = vadd.f32 %v469_v11, %v457_v7  ;;  %v475_v16 = vadd.f32 %v471_v15, %v458_v13 }
 0x13d   : > { %616 = vmatmul.msk.f32.vlgmr.msra.gmra.mxu0 %vm291_vm0, %v474_v14  ;;  %617 = vmatmul.msk.f32.vlgmr.msra.gmra.mxu1 %vm291_vm0, %v475_v16  ;;  %vm537_vm0 = vcmask 1042432  }
 0x13e   : > { %vm539_vm6 = vmor %vm537_vm0, %vm538_vm5 }
 0x1ba   : > { %v511_v18 = vpop.f32.mrf.mxu0  ;;  %v514_v20 = vpop.f32.mrf.mxu1 }
 0x1bb   : > { %v512_v19 = vadd.f32 %v652_v17, %v511_v18  ;;  %v515_v21 = vadd.f32 %v652_v17, %v514_v20 }
 0x1bd   : > { %v517_v22 = vmax.f32 %v512_v19, 0.0  ;;  %v518_v23 = vmax.f32 %v515_v21, 0.0 }
 0x1bf   : > { %v522_v24 = vrot.slane %v517_v22, 6  ;;  %v523_v25 = vrot.slane %v518_v23, 6 }
 0x1c1   : > { %v528_v26 = vadd.f32 %v522_v24, %v731_v6  ;;  %v524_v27 = vsel %vm521_vm4, %v522_v24, %v523_v25  ;;  %v530_v28 = vadd.f32 %v523_v25, %v742_v12 }
 0x1c2   : > { %v529_v30 = vadd.f32 %v524_v27, %v733_v8 }
 0x1c3   : > { %v531_v29 = vpack.c.bf16 %v528_v26, %v528_v26  ;;  %v533_v34 = vpack.c.bf16 %v530_v28, %v530_v28 }
 0x1c4   : > { %v532_v33 = vpack.c.bf16 %v529_v30, %v529_v30 }
 0x1c5   : > { %v618_v32 = vrot.slane %v531_v29, 9  ;;  %v545_v37 = vrot.slane %v533_v34, 5 }
 0x1c6   : > { %v542_v35 = vrot.slane %v532_v33, 5 }
 0x1c8   : > { %v543_v36 = vsel %vm539_vm6, %v618_v32, %v542_v35  ;;  %v544_v6 = vrot.slane %v542_v35, 4 }
 0x1c9   : > { %549 = vst.msk [vmem:[%s278_s30] sm:$0xf] %vm298_vm1, %v543_v36 }
 0x1ca   : > { %v546_v12 = vsel %vm539_vm6, %v544_v6, %v545_v37 }
 0x1cb   : > { %550 = vst.msk [vmem:[%s278_s30 + $0x4] sm:$0xf] %vm298_vm1, %v546_v12 }
 0x1cc PF: > { %s17_s24 = sadd.s32 1, %s667_s24  }
 0x1cd   : > { %p14_p4 = scmp.ge.s32.totalorder %s17_s24, 4  }
 0x1cf   :  { %16 = sbr.rel (!%p14_p4) target bundleno = 1 (0x1), region = 78 }

// kernel: qanet_forward.76
= control target key start
LH: loop header
LB: loop body
LE: loop exit
PB: predicated region body
PF: predicated region fallthrough
CT: control target
= control target key end

     0   :  { %s673_s21 = smov 0   ;;  %s753_s0 = inlined_call_operand.vmem [shape: bf16[2,20,32], index: 0, kind: input, shape index: {}]   ;;  %s754_s1 = inlined_call_operand.vmem [shape: f32[1,32], index: 1, kind: input, shape index: {}]   ;;  %s755_s2 = inlined_call_operand.vmem [shape: f32[1,32], index: 2, kind: input, shape index: {}]   ;;  %s756_s3 = inlined_call_operand.vmem [shape: f32[5,32], index: 3, kind: input, shape index: {}]   ;;  %s757_s4 = inlined_call_operand.vmem [shape: bf16[32,32], index: 4, kind: input, shape index: {}]   ;;  %s758_s5 = inlined_call_operand.vmem [shape: f32[1,32], index: 5, kind: input, shape index: {}]   ;;  %s759_s6 = inlined_call_operand.vmem [shape: bf16[2,16,32], index: 6, kind: output, shape index: {}]  }
   0x1 LB: > { %s573_s22 = sadd.s32 4294967295, %s634_s21   ;;  %p577_p0 = scmp.ge.s32.totalorder %s634_s21, 1  ;;  %s634_s21 = sphi %s673_s21, %s16_s21  }
   0x2   : > { %p212_p1 = scmp.lt.s32.totalorder %s634_s21, 3 }
   0x4   : > { %p213_p2 = pnand %p577_p0, %p212_p1 }
   0x5   : > { %p242_p3 = scmp.lt.s32.totalorder (!%p213_p2), %s573_s22, 1 }
   0x6   : > { %216 = sbr.rel (%p213_p2) target bundleno = 458 (0x1ca), region = 44 }
   0xb   : > { %s761_s22 = smov (!%p242_p3, %s573_s22), 1  ;;  %vm258_vm0 = vcmask 261120   ;;  %vm265_vm1 = vcmask 257024   ;;  %v636_v8 = vmov 32.0   ;;  %v601_v37 = vld [vmem:[%s757_s4 + $0x8] sm:$0xff]   ;;  %v594_v38 = vld [vmem:[%s757_s4] sm:$0xff]   ;;  %v347_v54 = vlaneseq }
   0xc   : > { %s606_s23 = smul.u32 12, %s761_s22  ;;  %620 = vrcp.f32 %v636_v8  ;;  %v600_v40 = vunpack.c.h.bf16 %v601_v37  ;;  %v599_v41 = vunpack.c.l.bf16 %v601_v37  ;;  %v596_v43 = vunpack.c.h.bf16 %v594_v38  ;;  %v617_v59 = vld [vmem:[%s754_s1] ss:$0 sm:$0xff]  ;;  %s588_s15 = sshll.u32 %s761_s22, 3 }
   0xd   : > { %v595_v46 = vunpack.c.l.bf16 %v594_v38  ;;  %v348_v61 = vshrl.u32 %v347_v54, 7  ;;  %vm382_vm14 = vcmask 1046528   ;;  %vm399_vm15 = vcmask 1045504   ;;  %s251_s18 = scalar_lea.vmem %s759_s6, %s588_s15 }
   0xe   : > { %s246_s26 = scalar_lea.vmem %s753_s0, %s606_s23  ;;  %473 = vmatpush.msra.mxu0 %v600_v40  ;;  %602 = vmatpush.msra.mxu1 %v600_v40 }
   0xf   : > { %v590_v0 = vld [vmem:[%s246_s26] sm:$0xff]   ;;  %v254_v3 = vld [vmem:[%s246_s26 + $0x8] sm:$0x3]  ;;  %vm351_vm9 = vcmp.ge.s32.totalorder %v348_v61, 2 }
  0x10   : > { %v687_v1 = vunpack.c.l.bf16 %v590_v0  ;;  %v689_v2 = vunpack.c.h.bf16 %v590_v0  ;;  %v695_v6 = vunpack.c.l.bf16 %v254_v3  ;;  %474 = vmatpush.msra.mxu0 %v599_v41  ;;  %603 = vmatpush.msra.mxu1 %v599_v41  ;;  %v350_v0 = vadd.s32 16, %v348_v61 }
  0x12   : > { %v259_v4 = vsel %vm258_vm0, %v687_v1, 0.0  ;;  %v262_v5 = vsel %vm258_vm0, %v689_v2, 0.0  ;;  %v266_v7 = vsel %vm265_vm1, %v695_v6, 0.0  ;;  %v621_v9 = vpop.eup %620  ;;  %475 = vmatpush.msra.mxu0 %v596_v43  ;;  %604 = vmatpush.msra.mxu1 %v596_v43  ;;  %vm356_vm10 = vcmp.lt.s32.totalorder %v350_v0, 18 }
  0x13   : > { %260 = vadd.xlane.f32.xlu0 %v259_v4  ;;  %263 = vadd.xlane.f32.xlu1 %v262_v5  ;;  %v270_v10 = vmul.f32 32.0, %v621_v9  ;;  %vm274_vm2 = vweird.f32 %v621_v9  ;;  %v618_v5 = vld [vmem:[%s755_s2] ss:$0 sm:$0xff] }
  0x14   : > { %476 = vmatpush.msra.mxu0 %v595_v46  ;;  %605 = vmatpush.msra.mxu1 %v595_v46 }
  0x15   : > { %v271_v11 = vsub.f32 1.0, %v270_v10 }
  0x17   : > { %v272_v12 = vmul.f32 %v621_v9, %v271_v11 }
  0x19   : > { %v273_v13 = vadd.f32 %v621_v9, %v272_v12 }
  0x1b   : > { %267 = vadd.xlane.f32.xlu0 %v266_v7  ;;  %v275_v14 = vsel %vm274_vm2, %v621_v9, %v273_v13  ;;  %v637_v13 = vmov 0.0   ;;  %vm416_vm2 = vcmask 1044480  }
  0x86   : > { %v261_v15 = vpop.xlane.xlu0 %260  ;;  %v264_v19 = vpop.xlane.xlu1 %263 }
  0x87   : > { %v276_v16 = vmul.f32 %v275_v14, %v261_v15  ;;  %v277_v23 = vmul.f32 %v275_v14, %v264_v19 }
  0x89   : > { %v279_v17 = vsub.f32 %v687_v1, %v276_v16  ;;  %v705_v25 = vsub.f32 %v689_v2, %v277_v23 }
  0x8b   : > { %v282_v18 = vmul.f32 %v279_v17, %v279_v17  ;;  %v283_v28 = vmul.f32 %v705_v25, %v705_v25 }
  0x8d   : > { %v285_v20 = vsel %vm258_vm0, %v282_v18, 0.0  ;;  %v288_v29 = vsel %vm258_vm0, %v283_v28, 0.0  ;;  %v582_v18 = vsel %vm356_vm10, 1.0, %v637_v13 }
  0x8e   : > { %286 = vadd.xlane.f32.xlu1 %v285_v20  ;;  %v268_v21 = vpop.xlane.xlu0 %267 }
  0x8f   : > { %v278_v22 = vmul.f32 %v275_v14, %v268_v21 }
  0x91   : > { %v702_v24 = vsub.f32 %v695_v6, %v278_v22 }
  0x93   : > { %v284_v26 = vmul.f32 %v702_v24, %v702_v24 }
  0x95   : > { %v291_v27 = vsel %vm265_vm1, %v284_v26, 0.0 }
  0x96   : > { %292 = vadd.xlane.f32.xlu2 %v291_v27 }
  0x9e   : > { %289 = vadd.xlane.f32.xlu2 %v288_v29 }
 0x101   : > { %v287_v30 = vpop.xlane.xlu1 %286 }
 0x102   : > { %v294_v31 = vmul.f32 %v287_v30, %v275_v14 }
 0x104   : > { %v297_v32 = vadd.f32 1e-05, %v294_v31 }
 0x106   : > { %622 = vrsqrt.f32 %v297_v32  ;;  %vm306_vm4 = vweird.f32 %v297_v32 }
 0x109   : > { %v293_v33 = vpop.xlane.xlu2 %292 }
 0x10a   : > { %v296_v34 = vmul.f32 %v293_v33, %v275_v14 }
 0x10c   : > { %v623_v35 = vpop.eup %622  ;;  %v299_v36 = vadd.f32 1e-05, %v296_v34 }
 0x10d   : > { %v301_v39 = vmul.f32 %v623_v35, %v297_v32  ;;  %vm307_vm3 = vweird.f32 %v623_v35 }
 0x10e   : > { %624 = vrsqrt.f32 %v299_v36  ;;  %vm308_vm5 = vmor %vm306_vm4, %vm307_vm3  ;;  %vm326_vm7 = vweird.f32 %v299_v36  ;;  %vm433_vm3 = vcmask 1043456   ;;  %vm488_vm4 = vcmask 1041408  }
 0x10f   : > { %v302_v42 = vmul.f32 %v623_v35, %v301_v39 }
 0x111   : > { %v303_v44 = vmul.f32 0.5, %v302_v42  ;;  %v290_v45 = vpop.xlane.xlu2 %289 }
 0x112   : > { %v295_v47 = vmul.f32 %v290_v45, %v275_v14  ;;  %v581_v14 = vsel %vm351_vm9, 1.0, %v637_v13 }
 0x113   : > { %v304_v48 = vsub.f32 1.5, %v303_v44 }
 0x114   : > { %v625_v49 = vpop.eup %624  ;;  %v298_v50 = vadd.f32 1e-05, %v295_v47 }
 0x115   : > { %v305_v51 = vmul.f32 %v623_v35, %v304_v48  ;;  %v321_v52 = vmul.f32 %v625_v49, %v299_v36  ;;  %vm327_vm6 = vweird.f32 %v625_v49 }
 0x116   : > { %626 = vrsqrt.f32 %v298_v50  ;;  %vm328_vm8 = vmor %vm326_vm7, %vm327_vm6  ;;  %vm316_vm12 = vweird.f32 %v298_v50 }
 0x117   : > { %v322_v53 = vmul.f32 %v625_v49, %v321_v52  ;;  %v309_v55 = vsel %vm308_vm5, %v623_v35, %v305_v51  ;;  %vm505_vm5 = vcmask 1046532  }
 0x118   : > { %v330_v60 = vmul.f32 %v309_v55, %v279_v17  ;;  %v369_v17 = vld [vmem:[%s756_s3] sm:$0x1f] }
 0x119   : > { %v323_v56 = vmul.f32 0.5, %v322_v53  ;;  %v375_v22 = vperm.slane %v369_v17, 1  ;;  %v392_v26 = vperm.slane %v369_v17, 2  ;;  %v409_v27 = vperm.slane %v369_v17, 3 }
 0x11a   : > { %v337_v7 = vmul.f32 %v617_v59, %v330_v60  ;;  %v370_v30 = vperm.slane %v369_v17, 0  ;;  %v426_v31 = vperm.slane %v369_v17, 4 }
 0x11b   : > { %v324_v57 = vsub.f32 1.5, %v323_v56 }
 0x11c   : > { %v627_v58 = vpop.eup %626  ;;  %v344_v12 = vadd.f32 %v618_v5, %v337_v7 }
 0x11d   : > { %v325_v62 = vmul.f32 %v625_v49, %v324_v57  ;;  %v311_v63 = vmul.f32 %v627_v58, %v298_v50  ;;  %vm317_vm11 = vweird.f32 %v627_v58 }
 0x11e   : > { %vm318_vm13 = vmor %vm316_vm12, %vm317_vm11  ;;  %v366_v20 = vmul.f32 %v581_v14, %v344_v12 }
 0x11f   : > { %v329_v3 = vsel %vm328_vm8, %v625_v49, %v325_v62  ;;  %v312_v4 = vmul.f32 %v627_v58, %v311_v63 }
 0x120   : > { %v332_v8 = vmul.f32 %v329_v3, %v702_v24  ;;  %v376_v29 = vmul.f32 %v375_v22, %v366_v20  ;;  %v393_v34 = vmul.f32 %v392_v26, %v366_v20  ;;  %v410_v37 = vmul.f32 %v409_v27, %v366_v20 }
 0x121   : > { %v313_v9 = vmul.f32 0.5, %v312_v4  ;;  %v371_v42 = vmul.f32 %v370_v30, %v366_v20  ;;  %v427_v43 = vmul.f32 %v426_v31, %v366_v20 }
 0x122   : > { %v339_v10 = vmul.f32 %v617_v59, %v332_v8  ;;  %v400_v47 = vrot.slane %v393_v34, 2  ;;  %v417_v55 = vrot.slane %v410_v37, 3 }
 0x123   : > { %v314_v11 = vsub.f32 1.5, %v313_v9  ;;  %v434_v62 = vrot.slane %v427_v43, 4 }
 0x124   : > { %v346_v15 = vadd.f32 %v618_v5, %v339_v10 }
 0x125   : > { %v315_v16 = vmul.f32 %v627_v58, %v314_v11  ;;  %v619_v11 = vld [vmem:[%s758_s5] ss:$0 sm:$0xff] }
 0x126   : > { %v368_v23 = vmul.f32 %v582_v18, %v346_v15 }
 0x127   : > { %v319_v19 = vsel %vm318_vm13, %v627_v58, %v315_v16 }
 0x128   : > { %v331_v21 = vmul.f32 %v319_v19, %v705_v25  ;;  %v378_v32 = vmul.f32 %v375_v22, %v368_v23  ;;  %v395_v38 = vmul.f32 %v392_v26, %v368_v23  ;;  %v383_v25 = vrot.slane %v376_v29, 1 }
 0x129   : > { %v412_v45 = vmul.f32 %v409_v27, %v368_v23  ;;  %v429_v53 = vmul.f32 %v426_v31, %v368_v23 }
 0x12a   : > { %v338_v24 = vmul.f32 %v617_v59, %v331_v21  ;;  %v386_v44 = vrot.slane %v378_v32, 1  ;;  %v403_v52 = vrot.slane %v395_v38, 2 }
 0x12b   : > { %v420_v60 = vrot.slane %v412_v45, 3  ;;  %v437_v4 = vrot.slane %v429_v53, 4 }
 0x12c   : > { %v345_v28 = vadd.f32 %v618_v5, %v338_v24 }
 0x12e   : > { %v377_v33 = vmul.f32 %v375_v22, %v345_v28  ;;  %v394_v35 = vmul.f32 %v392_v26, %v345_v28  ;;  %v411_v36 = vmul.f32 %v409_v27, %v345_v28  ;;  %v428_v41 = vmul.f32 %v426_v31, %v345_v28 }
 0x12f   : > { %v372_v49 = vmul.f32 %v370_v30, %v345_v28 }
 0x130   : > { %v384_v39 = vrot.slane %v377_v33, 1  ;;  %v401_v40 = vrot.slane %v394_v35, 2  ;;  %v418_v48 = vrot.slane %v411_v36, 3  ;;  %v435_v56 = vrot.slane %v428_v41, 4 }
 0x132   : > { %v385_v46 = vsel %vm382_vm14, %v383_v25, %v384_v39  ;;  %v387_v51 = vsel %vm382_vm14, %v384_v39, %v386_v44  ;;  %v402_v54 = vsel %vm399_vm15, %v400_v47, %v401_v40  ;;  %v404_v59 = vsel %vm399_vm15, %v401_v40, %v403_v52 }
 0x133   : > { %v390_v50 = vadd.f32 %v385_v46, %v371_v42  ;;  %v391_v57 = vadd.f32 %v387_v51, %v372_v49  ;;  %v419_v61 = vsel %vm416_vm2, %v417_v55, %v418_v48  ;;  %v421_v3 = vsel %vm416_vm2, %v418_v48, %v420_v60 }
 0x134   : > { %v436_v5 = vsel %vm433_vm3, %v434_v62, %v435_v56  ;;  %v438_v9 = vsel %vm433_vm3, %v435_v56, %v437_v4 }
 0x135   : > { %v407_v58 = vadd.f32 %v402_v54, %v390_v50  ;;  %v408_v63 = vadd.f32 %v404_v59, %v391_v57 }
 0x137   : > { %v424_v0 = vadd.f32 %v419_v61, %v407_v58  ;;  %v425_v7 = vadd.f32 %v421_v3, %v408_v63 }
 0x139   : > { %v441_v8 = vadd.f32 %v436_v5, %v424_v0  ;;  %v442_v10 = vadd.f32 %v438_v9, %v425_v7 }
 0x13b   : > { %583 = vmatmul.msk.f32.vlgmr.msra.gmra.mxu0 %vm258_vm0, %v441_v8  ;;  %584 = vmatmul.msk.f32.vlgmr.msra.gmra.mxu1 %vm258_vm0, %v442_v10  ;;  %vm504_vm0 = vcmask 1042432  }
 0x13c   : > { %vm506_vm6 = vmor %vm504_vm0, %vm505_vm5 }
 0x1b8   : > { %v478_v12 = vpop.f32.mrf.mxu0  ;;  %v481_v14 = vpop.f32.mrf.mxu1 }
 0x1b9   : > { %v479_v13 = vadd.f32 %v619_v11, %v478_v12  ;;  %v482_v15 = vadd.f32 %v619_v11, %v481_v14 }
 0x1bb   : > { %v484_v16 = vmax.f32 %v479_v13, 0.0  ;;  %v485_v17 = vmax.f32 %v482_v15, 0.0 }
 0x1bd   : > { %v489_v18 = vrot.slane %v484_v16, 6  ;;  %v490_v19 = vrot.slane %v485_v17, 6 }
 0x1bf   : > { %v495_v20 = vadd.f32 %v687_v1, %v489_v18  ;;  %v491_v21 = vsel %vm488_vm4, %v489_v18, %v490_v19  ;;  %v497_v22 = vadd.f32 %v490_v19, %v695_v6 }
 0x1c0   : > { %v496_v24 = vadd.f32 %v689_v2, %v491_v21 }
 0x1c1   : > { %v498_v23 = vpack.c.bf16 %v495_v20, %v495_v20  ;;  %v500_v28 = vpack.c.bf16 %v497_v22, %v497_v22 }
 0x1c2   : > { %v499_v27 = vpack.c.bf16 %v496_v24, %v496_v24 }
 0x1c3   : > { %v585_v26 = vrot.slane %v498_v23, 9  ;;  %v512_v31 = vrot.slane %v500_v28, 5 }
 0x1c4   : > { %v509_v29 = vrot.slane %v499_v27, 5 }
 0x1c6   : > { %v510_v30 = vsel %vm506_vm6, %v585_v26, %v509_v29  ;;  %v511_v1 = vrot.slane %v509_v29, 4 }
 0x1c7   : > { %516 = vst.msk [vmem:[%s251_s18] sm:$0xf] %vm265_vm1, %v510_v30 }
 0x1c8   : > { %v513_v6 = vsel %vm506_vm6, %v511_v1, %v512_v31 }
 0x1c9   : > { %517 = vst.msk [vmem:[%s251_s18 + $0x4] sm:$0xf] %vm265_vm1, %v513_v6 }
 0x1ca PF: > { %s16_s21 = sadd.s32 1, %s634_s21  }
 0x1cb   : > { %p13_p4 = scmp.ge.s32.totalorder %s16_s21, 4  }
 0x1cd   :  { %15 = sbr.rel (!%p13_p4) target bundleno = 1 (0x1), region = 74 }

// kernel: qanet_forward.74
= control target key start
LH: loop header
LB: loop body
LE: loop exit
PB: predicated region body
PF: predicated region fallthrough
CT: control target
= control target key end

     0   :  { %s1078_s30 = smov 0   ;;  %s1196_s0 = inlined_call_operand.vmem [shape: bf16[2,16,32], index: 0, kind: input, shape index: {}]   ;;  %s1197_s1 = inlined_call_operand.vmem [shape: bf16[2,8,32], index: 1, kind: input, shape index: {}]   ;;  %s1198_s2 = inlined_call_operand.vmem [shape: f32[1,32], index: 2, kind: input, shape index: {}]   ;;  %s1199_s3 = inlined_call_operand.vmem [shape: f32[1,32], index: 3, kind: input, shape index: {}]   ;;  %s1200_s4 = inlined_call_operand.vmem [shape: f32[1,32], index: 4, kind: input, shape index: {}]   ;;  %s1201_s5 = inlined_call_operand.vmem [shape: f32[2,1,16], index: 5, kind: input, shape index: {}]   ;;  %s1202_s6 = inlined_call_operand.vmem [shape: f32[2,1,8], index: 6, kind: input, shape index: {}]   ;;  %s1203_s7 = inlined_call_operand.vmem [shape: bf16[128,32], index: 7, kind: input, shape index: {}]   ;;  %s1204_s8 = inlined_call_operand.vmem [shape: f32[1,32], index: 8, kind: input, shape index: {}]   ;;  %s1205_s9 = inlined_call_operand.vmem [shape: bf16[2,16,32], index: 9, kind: output, shape index: {}]  }
   0x1 LB: > { %s919_s10 = sadd.s32 4294967295, %s1026_s30   ;;  %p923_p0 = scmp.ge.s32.totalorder %s1026_s30, 1  ;;  %s1026_s30 = sphi %s1078_s30, %s19_s30  }
   0x2   : > { %p312_p1 = scmp.lt.s32.totalorder %s1026_s30, 3 }
   0x4   : > { %p313_p2 = pnand %p923_p0, %p312_p1 }
   0x5   : > { %p358_p3 = scmp.lt.s32.totalorder (!%p313_p2), %s919_s10, 1 }
   0x6   : > { %316 = sbr.rel (%p313_p2) target bundleno = 992 (0x3e0), region = 56 }
   0xb   : > { %s1207_s10 = smov (!%p358_p3, %s919_s10), 1  ;;  %v1003_v0 = vld [vmem:[%s1200_s4] ss:$0 sm:$0xff]  ;;  %vm394_vm0 = vcmask 261120   ;;  %vm476_vm1 = vcmask 64512   ;;  %vm567_vm2 = vcmask 130048  }
   0xc   : > { %s949_s11 = sshll.u32 %s1207_s10, 3  ;;  %s926_s12 = sshll.u32 %s1207_s10, 2  ;;  %v1004_v1 = vld [vmem:[%s1198_s2] ss:$0 sm:$0xff]  ;;  %vm831_vm15 = vcmask 257024  }
   0xd   : > { %s362_s15 = scalar_lea.vmem %s1196_s0, %s949_s11  ;;  %s366_s18 = scalar_lea.vmem %s1197_s1, %s926_s12  ;;  %v385_v7 = vld [vmem:[%s1199_s3] sm:$0x1] }
   0xe   : > { %v952_v2 = vld [vmem:[%s362_s15] sm:$0xff]   ;;  %s372_s27 = scalar_lea.vmem %s1202_s6, %s1207_s10  ;;  %s369_s12 = scalar_lea.vmem %s1201_s5, %s1207_s10 }
   0xf   : > { %v382_v3 = vld [vmem:[%s366_s18] sm:$0xf]  ;;  %v1104_v5 = vunpack.c.l.bf16 %v952_v2  ;;  %v1106_v6 = vunpack.c.h.bf16 %v952_v2  ;;  %s377_s15 = scalar_lea.vmem %s1205_s9, %s949_s11 }
  0x10   : > { %v383_v4 = vunpack.c.l.bf16 %v382_v3  ;;  %v388_v15 = vld [vmem:[%s372_s27] sm:$0x1] }
  0x11   : > { %v430_v8 = vmul.f32 %v1003_v0, %v1104_v5  ;;  %v392_v9 = vmul.f32 %v1004_v1, %v1104_v5  ;;  %v393_v11 = vmul.f32 %v1004_v1, %v1106_v6  ;;  %v431_v12 = vmul.f32 %v1003_v0, %v1106_v6  ;;  %v1005_v23 = vld [vmem:[%s372_s27] ss:$0 sm:$0xff] }
  0x12   : > { %929 = vmatpush.xpose.msk.msra.mxu3 %vm394_vm0, %v383_v4  ;;  %931 = vmatpush.xpose.msk.msra.mxu1 %vm394_vm0, %v383_v4  ;;  %v469_v17 = vsub.f32 1.0, %v388_v15  ;;  %v387_v35 = vld [vmem:[%s369_s12] sm:$0x1] }
  0x13   : > { %613 = vmatpush.msra.mxu2 %v383_v4  ;;  %v395_v10 = vsel %vm394_vm0, %v392_v9, 0.0  ;;  %v398_v13 = vsel %vm394_vm0, %v393_v11, 0.0  ;;  %v561_v36 = vsub.f32 1.0, %v387_v35  ;;  %v1006_v38 = vld [vmem:[%s369_s12] ss:$0 sm:$0xff] }
  0x14   : > { %396 = vadd.xlane.f32.xlu0 %v395_v10  ;;  %v470_v19 = vmul.f32 -1e+30, %v469_v17 }
  0x15   : > { %930 = vmatmul.msk.f32.vlgmr.msra.gmra.mxu3 %vm394_vm0, %v385_v7  ;;  %932 = vmatmul.msk.f32.vlgmr.msra.gmra.mxu1 %vm394_vm0, %v430_v8  ;;  %v562_v37 = vmul.f32 -1e+30, %v561_v36 }
  0x16   : > { %638 = vmatpush.msrb.mxu3 %v1106_v6  ;;  %v472_v27 = vperm.slane %v470_v19, 0 }
  0x17   : > { %v564_v39 = vperm.slane %v562_v37, 0  ;;  %v991_v37 = vld [vmem:[%s1203_s7 + $0x28] sm:$0xff]  }
  0x18   : > { %639 = vmatpush.msrb.mxu3 %v1104_v5 }
  0x1c   : > { %399 = vadd.xlane.f32.xlu0 %v398_v13 }
  0x1d   : > { %933 = vmatmul.msk.f32.gmra.mxu1 %vm394_vm0, %v431_v12 }
  0x87   : > { %v397_v14 = vpop.xlane.xlu0 %396 }
  0x8f   : > { %v400_v21 = vpop.xlane.xlu0 %399 }
  0x92   : > { %v455_v16 = vpop.f32.mrf.mxu1 }
  0x93   : > { %v456_v18 = vadd.f32 %v455_v16, %v397_v14 }
  0x98   : > { %v424_v20 = vpop.f32.mrf.mxu3 }
  0x99   : > { %v461_v22 = vperm.slane %v424_v20, 0 }
  0x9a   : > { %v458_v24 = vpop.f32.mrf.mxu1 }
  0x9b   : > { %v459_v25 = vadd.f32 %v458_v24, %v400_v21  ;;  %v462_v26 = vadd.f32 %v461_v22, %v456_v18 }
  0x9d   : > { %525 = vxpose.xlu1.b32.start [1/2] (short) (narrow) %v462_v26, 8  ;;  %v467_v28 = vmul.f32 %v1005_v23, %v462_v26  ;;  %v463_v29 = vadd.f32 %v461_v22, %v459_v25 }
  0x9f   : > { %v474_v30 = vadd.f32 %v472_v27, %v467_v28  ;;  %v468_v31 = vmul.f32 %v1005_v23, %v463_v29 }
  0xa1   : > { %v477_v32 = vsel %vm476_vm1, %v474_v30, -inf  ;;  %v475_v33 = vadd.f32 %v472_v27, %v468_v31 }
  0xa2   : > { %478 = vmax.xlane.f32.xlu0 %v477_v32 }
  0xa3   : > { %v480_v34 = vsel %vm476_vm1, %v475_v33, -inf }
  0xa5   : > { %526 = vxpose.xlu1.b32.end [2/2] (short) (narrow) %v463_v29, 8 }
 0x105   : > { %481 = vmax.xlane.f32.xlu1 %v480_v34  ;;  %v987_v34 = vld [vmem:[%s1203_s7 + $0x8] sm:$0xff]  }
 0x106   : > { %v962_v36 = vunpack.c.h.bf16 %v987_v34 }
 0x108   : > { %746 = vmatpush.msrb.mxu2 %v962_v36 }
 0x115   : > { %v479_v49 = vpop.xlane.xlu0 %478 }
 0x116   : > { %v483_v52 = vsub.f32 %v474_v30, %v479_v49 }
 0x118   : > { %v485_v54 = vmul.f32 1.442695, %v483_v52 }
 0x141   : > { %v541_v40 = vpop.trf.xlu1 }
 0x142   : > { %v560_v41 = vmul.f32 %v1006_v38, %v541_v40  ;;  %v978_v40 = vunpack.c.h.bf16 %v991_v37 }
 0x144   : > { %v566_v42 = vadd.f32 %v564_v39, %v560_v41  ;;  %v961_v39 = vunpack.c.l.bf16 %v987_v34  ;;  %v988_v41 = vld [vmem:[%s1203_s7 + $0x10] sm:$0xff]   ;;  %777 = vmatpush.msrb.mxu1 %v978_v40 }
 0x146   : > { %v568_v43 = vsel %vm567_vm2, %v566_v42, -inf  ;;  %747 = vmatpush.msrb.mxu2 %v961_v39 }
 0x147   : > { %569 = vmax.xlane.f32.xlu2 %v568_v43  ;;  %v966_v43 = vunpack.c.h.bf16 %v988_v41 }
 0x178   : > { %v482_v44 = vpop.xlane.xlu1 %481 }
 0x179   : > { %v484_v45 = vsub.f32 %v475_v33, %v482_v44  ;;  %v989_v33 = vld [vmem:[%s1203_s7 + $0x18] sm:$0xff]  }
 0x17a   : > { %v970_v35 = vunpack.c.h.bf16 %v989_v33  ;;  %v969_v38 = vunpack.c.l.bf16 %v989_v33 }
 0x17b   : > { %v487_v46 = vmul.f32 1.442695, %v484_v45  ;;  %v977_v45 = vunpack.c.l.bf16 %v991_v37 }
 0x17c   : > { %717 = vmatpush.msra.mxu3 %v970_v35 }
 0x17d   : > { %1008 = vpow2.f32 %v487_v46  ;;  %v990_v46 = vld [vmem:[%s1203_s7 + $0x20] sm:$0xff]   ;;  %778 = vmatpush.msrb.mxu1 %v977_v45 }
 0x17e   : > { %718 = vmatpush.msra.mxu3 %v969_v38  ;;  %v974_v49 = vunpack.c.h.bf16 %v990_v46 }
 0x180   : > { %719 = vmatpush.msra.mxu3 %v966_v43  ;;  %779 = vmatpush.msrb.mxu1 %v974_v49 }
 0x183   : > { %v1135_v47 = vpop.eup %1008 }
 0x184   : > { %v492_v48 = vsel %vm476_vm1, %v1135_v47, 0.0 }
 0x185   : > { %493 = vadd.xlane.f32.xlu0 %v492_v48 }
 0x1ba   : > { %v570_v50 = vpop.xlane.xlu2 %569 }
 0x1bb   : > { %v571_v51 = vsub.f32 %v566_v42, %v570_v50  ;;  %v956_v42 = vld [vmem:[%s1203_s7] sm:$0xff]   ;;  %v973_v50 = vunpack.c.l.bf16 %v990_v46 }
 0x1bc   : > { %v958_v44 = vunpack.c.h.bf16 %v956_v42  ;;  %v957_v48 = vunpack.c.l.bf16 %v956_v42 }
 0x1bd   : > { %v572_v53 = vmul.f32 1.442695, %v571_v51  ;;  %780 = vmatpush.msrb.mxu1 %v973_v50  ;;  %v993_v51 = vld [vmem:[%s1203_s7 + $0x38] sm:$0xff]  }
 0x1be   : > { %748 = vmatpush.msrb.mxu2 %v958_v44  ;;  %v986_v52 = vunpack.c.h.bf16 %v993_v51 }
 0x1bf   : > { %1010 = vpow2.f32 %v572_v53 }
 0x1c0   : > { %1012 = vpow2.f32 %v485_v54  ;;  %749 = vmatpush.msrb.mxu2 %v957_v48  ;;  %v992_v54 = vld [vmem:[%s1203_s7 + $0x30] sm:$0xff]  }
 0x1c5   : > { %v1011_v55 = vpop.eup %1010 }
 0x1c6   : > { %v574_v56 = vsel %vm567_vm2, %v1011_v55, 0.0  ;;  %v1013_v57 = vpop.eup %1012 }
 0x1c7   : > { %575 = vadd.xlane.f32.xlu2 %v574_v56  ;;  %v489_v58 = vsel %vm476_vm1, %v1013_v57, 0.0  ;;  %v982_v56 = vunpack.c.h.bf16 %v992_v54 }
 0x1cf   : > { %490 = vadd.xlane.f32.xlu2 %v489_v58 }
 0x1f8   : > { %v494_v59 = vpop.xlane.xlu0 %493 }
 0x1f9   : > { %v521_v25 = vand.u32 2147483648, %v494_v59  ;;  %vm515_vm12 = vweird.f32 %v494_v59  ;;  %v519_v27 = vand.u32 2147483647, %v494_v59 }
 0x1fb   : > { %v522_v30 = vor.u32 1.1754944e-38, %v521_v25  ;;  %vm520_vm14 = vcmp.eq.f32.partialorder %v519_v27, 8.507059e+37 }
 0x23a   : > { %v576_v60 = vpop.xlane.xlu2 %575 }
 0x23b   : > { %1014 = vrcp.f32 %v576_v60  ;;  %v588_v2 = vand.u32 2147483648, %v576_v60  ;;  %v586_v7 = vand.u32 2147483647, %v576_v60  ;;  %vm582_vm4 = vweird.f32 %v576_v60 }
 0x23c   : > { %1016 = vrcp.f32 %v494_v59 }
 0x23d   : > { %v589_v10 = vor.u32 1.1754944e-38, %v588_v2  ;;  %vm587_vm6 = vcmp.eq.f32.partialorder %v586_v7, 8.507059e+37 }
 0x241   : > { %v1015_v61 = vpop.eup %1014 }
 0x242   : > { %v578_v62 = vmul.f32 %v1015_v61, %v576_v60  ;;  %v491_v63 = vpop.xlane.xlu2 %490  ;;  %v1017_v0 = vpop.eup %1016  ;;  %vm583_vm3 = vweird.f32 %v1015_v61 }
 0x243   : > { %1018 = vrcp.f32 %v491_v63  ;;  %v511_v3 = vmul.f32 %v1017_v0, %v494_v59  ;;  %vm584_vm5 = vmor %vm582_vm4, %vm583_vm3  ;;  %v506_v17 = vand.u32 2147483648, %v491_v63  ;;  %v504_v20 = vand.u32 2147483647, %v491_v63 }
 0x244   : > { %v579_v1 = vsub.f32 1.0, %v578_v62  ;;  %vm500_vm8 = vweird.f32 %v491_v63  ;;  %vm516_vm10 = vweird.f32 %v1017_v0 }
 0x245   : > { %v512_v11 = vsub.f32 1.0, %v511_v3  ;;  %v507_v22 = vor.u32 1.1754944e-38, %v506_v17  ;;  %vm505_vm11 = vcmp.eq.f32.partialorder %v504_v20, 8.507059e+37  ;;  %vm517_vm13 = vmor %vm515_vm12, %vm516_vm10 }
 0x246   : > { %v580_v4 = vmul.f32 %v1015_v61, %v579_v1 }
 0x247   : > { %v513_v18 = vmul.f32 %v1017_v0, %v512_v11 }
 0x248   : > { %v581_v8 = vadd.f32 %v1015_v61, %v580_v4 }
 0x249   : > { %v1019_v9 = vpop.eup %1018  ;;  %v514_v23 = vadd.f32 %v1017_v0, %v513_v18 }
 0x24a   : > { %v496_v12 = vmul.f32 %v1019_v9, %v491_v63  ;;  %v585_v13 = vsel %vm584_vm5, %v1015_v61, %v581_v8  ;;  %vm501_vm7 = vweird.f32 %v1019_v9 }
 0x24b   : > { %v590_v14 = vsel %vm587_vm6, %v589_v10, %v585_v13  ;;  %vm502_vm9 = vmor %vm500_vm8, %vm501_vm7  ;;  %v518_v29 = vsel %vm517_vm13, %v1017_v0, %v514_v23  ;;  %v1007_v10 = vld [vmem:[%s1204_s8] ss:$0 sm:$0xff] }
 0x24c   : > { %v497_v15 = vsub.f32 1.0, %v496_v12  ;;  %v591_v16 = vmul.f32 %v1011_v55, %v590_v14  ;;  %v523_v31 = vsel %vm520_vm14, %v522_v30, %v518_v29  ;;  %v985_v55 = vunpack.c.l.bf16 %v993_v51 }
 0x24d   : > { %v524_v32 = vmul.f32 %v1135_v47, %v523_v31  ;;  %v965_v47 = vunpack.c.l.bf16 %v988_v41 }
 0x24e   : > { %v498_v19 = vmul.f32 %v1019_v9, %v497_v15  ;;  %936 = vmatmul.msk.f32.vlgmr.msrb.gmra.mxu3 %vm567_vm2, %v591_v16 }
 0x24f   : > { %720 = vmatpush.msra.mxu3 %v965_v47 }
 0x250   : > { %v499_v21 = vadd.f32 %v1019_v9, %v498_v19 }
 0x252   : > { %v503_v24 = vsel %vm502_vm9, %v1019_v9, %v499_v21 }
 0x253   : > { %v508_v26 = vsel %vm505_vm11, %v507_v22, %v503_v24 }
 0x254   : > { %v509_v28 = vmul.f32 %v1013_v57, %v508_v26  ;;  %v981_v57 = vunpack.c.l.bf16 %v992_v54 }
 0x256   : > { %934 = vmatmul.msk.f32.vlgmr.msra.gmra.mxu2 %vm476_vm1, %v509_v28 }
 0x25e   : > { %935 = vmatmul.msk.f32.gmra.mxu2 %vm476_vm1, %v524_v32 }
 0x266   : > { %941 = vmatmul.msk.f32.vlgmr.msrb.gmra.mxu2 %vm394_vm0, %v1104_v5 }
 0x26e   : > { %942 = vmatmul.msk.f32.gmra.mxu2 %vm394_vm0, %v1106_v6 }
 0x2d1   : > { %v641_v53 = vpop.f32.mrf.mxu3 }
 0x2d2   : > { %659 = vmatpush.msra.mxu0 %v641_v53 }
 0x2d3   : > { %937 = vmatmul.msk.f32.vlgmr.msra.gmra.mxu0 %vm476_vm1, %v509_v28 }
 0x2d4   : > { %810 = vmatpush.msrb.mxu0 %v986_v52 }
 0x2d6   : > { %811 = vmatpush.msrb.mxu0 %v985_v55 }
 0x2d8   : > { %812 = vmatpush.msrb.mxu0 %v982_v56 }
 0x2d9   : > { %v615_v58 = vpop.f32.mrf.mxu2 }
 0x2da   : > { %v757_v59 = vmul.f32 %v1104_v5, %v615_v58  ;;  %939 = vmatmul.msk.f32.vlgmr.msra.gmra.mxu3 %vm394_vm0, %v615_v58  ;;  %813 = vmatpush.msrb.mxu0 %v981_v57 }
 0x2db   : > { %938 = vmatmul.msk.f32.gmra.mxu0 %vm476_vm1, %v524_v32 }
 0x2dc   : > { %943 = vmatmul.msk.f32.vlgmr.msrb.gmra.mxu1 %vm394_vm0, %v757_v59 }
 0x2e1   : > { %v618_v60 = vpop.f32.mrf.mxu2 }
 0x2e2   : > { %v758_v61 = vmul.f32 %v1106_v6, %v618_v60  ;;  %940 = vmatmul.msk.f32.gmra.mxu3 %vm394_vm0, %v618_v60 }
 0x2e4   : > { %944 = vmatmul.msk.f32.gmra.mxu1 %vm394_vm0, %v758_v61 }
 0x2e9   : > { %v751_v2 = vpop.f32.mrf.mxu2 }
 0x2f1   : > { %v754_v8 = vpop.f32.mrf.mxu2 }
 0x350   : > { %v661_v62 = vpop.f32.mrf.mxu0 }
 0x351   : > { %v790_v63 = vmul.f32 %v1104_v5, %v661_v62 }
 0x353   : > { %945 = vmatmul.msk.f32.vlgmr.msrb.gmra.mxu0 %vm394_vm0, %v790_v63 }
 0x358   : > { %v664_v0 = vpop.f32.mrf.mxu0 }
 0x359   : > { %v791_v1 = vmul.f32 %v1106_v6, %v664_v0  ;;  %v782_v7 = vpop.f32.mrf.mxu1 }
 0x35b   : > { %946 = vmatmul.msk.f32.gmra.mxu0 %vm394_vm0, %v791_v1 }
 0x35d   : > { %v722_v3 = vpop.f32.mrf.mxu3 }
 0x35e   : > { %v752_v4 = vadd.f32 %v751_v2, %v722_v3 }
 0x360   : > { %v788_v9 = vadd.f32 %v782_v7, %v752_v4 }
 0x361   : > { %v785_v15 = vpop.f32.mrf.mxu1 }
 0x365   : > { %v725_v11 = vpop.f32.mrf.mxu3 }
 0x366   : > { %v755_v13 = vadd.f32 %v754_v8, %v725_v11 }
 0x368   : > { %v789_v16 = vadd.f32 %v785_v15, %v755_v13 }
 0x3d0   : > { %v815_v5 = vpop.f32.mrf.mxu0 }
 0x3d1   : > { %v821_v12 = vadd.f32 %v815_v5, %v788_v9 }
 0x3d3   : > { %v827_v14 = vadd.f32 %v1007_v10, %v821_v12 }
 0x3d5   : > { %v829_v6 = vpack.c.bf16 %v827_v14, %v827_v14 }
 0x3d7   : > { %832 = vst.msk [vmem:[%s377_s15] sm:$0xf] %vm831_vm15, %v829_v6 }
 0x3d8   : > { %v818_v17 = vpop.f32.mrf.mxu0 }
 0x3d9   : > { %v822_v18 = vadd.f32 %v818_v17, %v789_v16 }
 0x3db   : > { %v828_v19 = vadd.f32 %v1007_v10, %v822_v18 }
 0x3dd   : > { %v830_v20 = vpack.c.bf16 %v828_v19, %v828_v19 }
 0x3df   : > { %833 = vst.msk [vmem:[%s377_s15 + $0x4] sm:$0xf] %vm831_vm15, %v830_v20 }
 0x3e0 PF: > { %s19_s30 = sadd.s32 1, %s1026_s30  }
 0x3e1   : > { %p16_p4 = scmp.ge.s32.totalorder %s19_s30, 4  }
 0x3e3   :  { %18 = sbr.rel (!%p16_p4) target bundleno = 1 (0x1), region = 95 }

// kernel: qanet_forward.111
= control target key start
LH: loop header
LB: loop body
LE: loop exit
PB: predicated region body
PF: predicated region fallthrough
CT: control target
= control target key end

     0   :  { %s1014_s0 = inlined_call_operand.vmem [shape: bf16[2,16,32], index: 0, kind: input, shape index: {}]   ;;  %s1015_s1 = inlined_call_operand.vmem [shape: bf16[2,16,32], index: 1, kind: input, shape index: {}]   ;;  %s1016_s2 = inlined_call_operand.vmem [shape: bf16[2,16,32], index: 2, kind: input, shape index: {}]   ;;  %s1017_s3 = inlined_call_operand.vmem [shape: f32[2,32], index: 3, kind: input, shape index: {}]   ;;  %s1018_s4 = inlined_call_operand.vmem [shape: f32[2,32], index: 4, kind: input, shape index: {}]   ;;  %s1019_s5 = inlined_call_operand.vmem [shape: f32[2,1,16], index: 5, kind: input, shape index: {}]   ;;  %s1020_s6 = inlined_call_operand.hbm [shape: f32[2,1,16], index: 6, kind: output, shape index: {0}]   ;;  %s1021_s7 = inlined_call_operand.hbm [shape: f32[2,1,16], index: 7, kind: output, shape index: {1}]  }
   0x1   :  { %1022 = sst [smem:[#allocation8_spill]] %s1014_s0 }
   0x2   :  { %13 = vsyncpa [#allocation3], 0 }
   0x3   :  { %15 = vsyncpa [#allocation3 + $0x1], 0 }
   0x4   :  { %16 = vsyncpa [#allocation5], 0 }
   0x5   :  { %18 = vsyncpa [#allocation5 + $0x1], 0  ;;  %s872_s24 = smov 0   ;;  %s874_s25 = smov 0  }
   0x6   :  { %s876_s26 = smov 0   ;;  %s878_s27 = smov 0  }
   0x7 LB: > { %s893_s28 = sadd.s32 4294967295, %s830_s27   ;;  %s645_s29 = sadd.s32 4294967294, %s830_s27   ;;  %s830_s27 = sphi %s878_s27, %s1029_s27   ;;  %s826_s26 = sphi %s876_s26, %s1028_s26   ;;  %s822_s25 = sphi %s874_s25, %s1027_s25   ;;  %s818_s24 = sphi %s872_s24, %s1026_s24  }
   0x8   : > { %s897_s30 = sadd.s32 1, %s830_s27   ;;  %s177_s8 = sadd.s32 1, %s826_s26 }
   0x9   : > { %s174_s9 = ssub.s32 %s830_s27, %s897_s30  ;;  %p187_p0 = scmp.ne.s32.totalorder %s826_s26, %s822_s25 }
   0xa   : > { %p175_p1 = scmp.eq.s32.totalorder %s174_s9, 0  ;;  %p188_p2 = scmp.eq.s32.totalorder %s893_s28, 1 }
   0xb   : > { %p193_p3 = scmp.ne.s32.totalorder %s822_s25, %s818_s24  ;;  %p194_p4 = scmp.eq.s32.totalorder %s645_s29, 1 }
   0xc   : > { %s908_s10 = scalar_select %p175_p1, %s826_s26, %s177_s8  }
   0xd   : > { %p910_p5 = por %p188_p2, %p187_p0  ;;  %p914_p6 = por %p194_p4, %p193_p3 }
   0xe   : > { %p648_p7 = scmp.ge.s32.totalorder %s830_s27, 1  ;;  %p274_p8 = scmp.lt.s32.totalorder %s830_s27, 3 }
  0x10   : > { %p275_p9 = pnand %p648_p7, %p274_p8 }
  0x11   : > { %p322_p10 = scmp.lt.s32.totalorder (!%p275_p9), %s893_s28, 1  ;;  %s1025_s0 = sld [smem:[#allocation8_spill]] (!%p275_p9) }
  0x12   : > { %278 = sbr.rel (%p275_p9) target bundleno = 443 (0x1bb), region = 44  ;;  %s525_s9 = scalar_lea.hbm (!%p275_p9), %s1021_s7, %s893_s28 }
  0x13   : > { %s756_s19 = scalar_lea.hbm (!%p275_p9), %s1020_s6, 2 }
  0x17   : > { %s922_s13 = scalar_select %p322_p10, %s893_s28, 1  ;;  %vm357_vm0 = vcmask 261120   ;;  %v352_v8 = vld [vmem:[%s1017_s3] sm:$0x3]  ;;  %vm470_vm1 = vcmask 122880  }
  0x18   : > { %v353_v10 = vld [vmem:[%s1018_s4] sm:$0x3]  ;;  %v356_v11 = vrot.slane %v352_v8, 1 }
  0x19   : > { %s669_s14 = sshll.u32 %s922_s13, 3  ;;  %v415_v12 = vrot.slane %v353_v10, 1 }
  0x1a   : > { %s331_s17 = scalar_lea.vmem %s1015_s1, %s669_s14  ;;  %s326_s20 = scalar_lea.vmem %s1025_s0, %s669_s14 }
  0x1b   : > { %v677_v0 = vld [vmem:[%s331_s17] sm:$0xff]   ;;  %s336_s23 = scalar_lea.vmem %s1016_s2, %s669_s14  ;;  %s339_s17 = scalar_lea.vmem %s1019_s5, %s922_s13 }
  0x1c   : > { %v673_v1 = vld [vmem:[%s326_s20] sm:$0xff]   ;;  %v679_v2 = vunpack.c.h.bf16 %v677_v0  ;;  %v678_v6 = vunpack.c.l.bf16 %v677_v0  ;;  %s961_s13 = sand.u32 1, %s822_s25   ;;  %s512_s20 = scalar_lea.hbm %s1020_s6, %s893_s28 }
  0x1d   : > { %v675_v3 = vunpack.c.h.bf16 %v673_v1  ;;  %v681_v4 = vld [vmem:[%s336_s23] sm:$0xff]   ;;  %v674_v7 = vunpack.c.l.bf16 %v673_v1  ;;  %s315_s21 = scalar_lea.vmem [#allocation2], %s961_s13  ;;  %s516_s23 = sshll.u32 %s512_s20, 4  ;;  %s517_s23 = int_to_ptr.hbm [resolvable:$true] %s516_s23 }
  0x1e   : > { %v683_v5 = vunpack.c.h.bf16 %v681_v4  ;;  %655 = vmatpush.xpose.msk.msra.mxu0 %vm357_vm0, %v679_v2  ;;  %v682_v9 = vunpack.c.l.bf16 %v681_v4  ;;  %v354_v13 = vld [vmem:[%s339_s17] sm:$0x1]  ;;  %s514_s22 = sshll.u32 %s315_s21, 4  ;;  %s500_s14 = scalar_lea.sflag [#allocation3], %s961_s13  ;;  %s515_s22 = int_to_ptr.vmem [resolvable:$true] %s514_s22 }
  0x1f   : > { %658 = vmatpush.xpose.msk.msra.mxu1 %vm357_vm0, %v675_v3  ;;  %664 = vmatpush.xpose.msk.msra.mxu3 %vm357_vm0, %v675_v3  ;;  %v467_v14 = vsub.f32 1.0, %v354_v13  ;;  %s750_s15 = sshra.s32 %s517_s23, 4  ;;  %s751_s15 = int_to_ptr.hbm [resolvable:$true] %s750_s15 }
  0x20   : > { %661 = vmatpush.xpose.msk.msra.mxu2 %vm357_vm0, %v683_v5  ;;  %s752_s16 = scalar_lea.hbm %s751_s15, 1  ;;  %p757_p0 = scmp.lt.s32.totalorder %s751_s15, %s1020_s6 }
  0x21   : > { %v468_v18 = vmul.f32 -1e+30, %v467_v14  ;;  %p753_p11 = scmp.ne.s32.totalorder %s751_s15, %s752_s16  ;;  %p758_p1 = scmp.lt.s32.totalorder %s756_s19, %s752_s16 }
  0x22   : > { %656 = vmatpush.xpose.msk.msra.mxu0 %vm357_vm0, %v678_v6 }
  0x23   : > { %659 = vmatpush.xpose.msk.msra.mxu1 %vm357_vm0, %v674_v7  ;;  %665 = vmatpush.xpose.msk.msra.mxu3 %vm357_vm0, %v674_v7  ;;  %p754_p12 = pnand %p753_p11, %p910_p5  ;;  %p759_p2 = por %p758_p1, %p757_p0 }
  0x24   : > { %662 = vmatpush.xpose.msk.msra.mxu2 %vm357_vm0, %v682_v9 }
  0x25   : > { %657 = vmatmul.msk.f32.vlgmr.msra.gmra.mxu0 %vm357_vm0, %v356_v11  ;;  %p755_p13 = pneg %p754_p12 }
  0x26   : > { %660 = vmatmul.msk.f32.vlgmr.msra.gmra.mxu1 %vm357_vm0, %v352_v8  ;;  %666 = vmatmul.msk.f32.vlgmr.msra.gmra.mxu3 %vm357_vm0, %v353_v10 }
  0x27   : > { %663 = vmatmul.msk.f32.vlgmr.msra.gmra.mxu2 %vm357_vm0, %v415_v12  ;;  %p760_p3 = pnand %p759_p2, %p755_p13 }
  0xa2   : > { %v383_v15 = vpop.f32.mrf.mxu0 }
  0xa3   : > { %v411_v16 = vpop.f32.mrf.mxu1 }
  0xa4   : > { %v412_v17 = vadd.f32 %v411_v16, %v383_v15 }
  0xa6   : > { %v466_v19 = vmul.f32 %v412_v17, %v354_v13 }
  0xa8   : > { %v469_v20 = vadd.f32 %v468_v18, %v466_v19 }
  0xa9   : > { %v463_v22 = vpop.f32.mrf.mxu3 }
  0xaa   : > { %v441_v21 = vpop.f32.mrf.mxu2  ;;  %v471_v23 = vsel %vm470_vm1, %v469_v20, -inf }
  0xab   : > { %v464_v24 = vadd.f32 %v463_v22, %v441_v21  ;;  %472 = vmax.xlane.f32.xlu0 %v471_v23 }
  0xad   : > { %v484_v25 = vmul.f32 %v464_v24, %v354_v13 }
  0xaf   : > { %v485_v26 = vadd.f32 %v484_v25, %v468_v18 }
  0xb1   : > { %v486_v27 = vsel %vm470_vm1, %v485_v26, -inf }
  0xb3   : > { %487 = vmax.xlane.f32.xlu0 %v486_v27 }
 0x11e   : > { %v473_v28 = vpop.xlane.xlu0 %472 }
 0x11f   : > { %v474_v29 = vsub.f32 %v469_v20, %v473_v28 }
 0x121   : > { %v475_v30 = vmul.f32 1.442695, %v474_v29 }
 0x123   : > { %728 = vpow2.f32 %v475_v30 }
 0x126   : > { %v488_v31 = vpop.xlane.xlu0 %487 }
 0x127   : > { %v489_v32 = vsub.f32 %v485_v26, %v488_v31 }
 0x129   : > { %v729_v33 = vpop.eup %728  ;;  %v490_v34 = vmul.f32 1.442695, %v489_v32 }
 0x12a   : > { %v477_v35 = vsel %vm470_vm1, %v729_v33, 0.0 }
 0x12b   : > { %730 = vpow2.f32 %v490_v34  ;;  %478 = vadd.xlane.f32.xlu1 %v477_v35 }
 0x131   : > { %v731_v36 = vpop.eup %730 }
 0x132   : > { %v492_v37 = vsel %vm470_vm1, %v731_v36, 0.0 }
 0x133   : > { %493 = vadd.xlane.f32.xlu1 %v492_v37 }
 0x19e   : > { %v479_v38 = vpop.xlane.xlu1 %478 }
 0x19f   : > { %732 = vlog2.f32 %v479_v38 }
 0x1a5   : > { %v733_v39 = vpop.eup %732 }
 0x1a6   : > { %v481_v40 = vmul.f32 0.6931472, %v733_v39  ;;  %v494_v41 = vpop.xlane.xlu1 %493 }
 0x1a7   : > { %734 = vlog2.f32 %v494_v41 }
 0x1a8   : > { %v482_v42 = vsub.f32 %v474_v29, %v481_v40 }
 0x1aa   : > { %483 = vst.msk [vmem:[%s315_s21] sm:$0x1] %vm470_vm1, %v482_v42 }
 0x1ab   : > { %763 = shalt.err (!%p760_p3)
}
 0x1ac   : > { %684 = dma.vmem_to_hbm [thread:$0]  (%p910_p5), %s515_s22, 16, %s517_s23, %s500_s14  }
 0x1ad   : > { %v735_v43 = vpop.eup %734  ;;  %s321_s28 = scalar_lea.vmem [#allocation4], %s961_s13  ;;  %s529_s29 = sshll.u32 %s525_s9, 4  ;;  %s530_s29 = int_to_ptr.hbm [resolvable:$true] %s529_s29 }
 0x1ae   : > { %s527_s21 = sshll.u32 %s321_s28, 4  ;;  %v496_v44 = vmul.f32 0.6931472, %v735_v43  ;;  %s504_s0 = scalar_lea.sflag [#allocation5], %s961_s13  ;;  %s528_s21 = int_to_ptr.vmem [resolvable:$true] %s527_s21 }
 0x1af   : > { %s778_s8 = sshra.s32 %s530_s29, 4  ;;  %s784_s23 = scalar_lea.hbm %s1021_s7, 2  ;;  %s779_s8 = int_to_ptr.hbm [resolvable:$true] %s778_s8 }
 0x1b0   : > { %v497_v45 = vsub.f32 %v489_v32, %v496_v44  ;;  %s780_s15 = scalar_lea.hbm %s779_s8, 1  ;;  %p785_p9 = scmp.lt.s32.totalorder %s779_s8, %s1021_s7 }
 0x1b1   : > { %p781_p4 = scmp.ne.s32.totalorder %s779_s8, %s780_s15  ;;  %p786_p10 = scmp.lt.s32.totalorder %s784_s23, %s780_s15 }
 0x1b2   : > { %498 = vst.msk [vmem:[%s321_s28] sm:$0x1] %vm470_vm1, %v497_v45 }
 0x1b3   : > { %p782_p7 = pnand %p781_p4, %p910_p5  ;;  %p787_p11 = por %p786_p10, %p785_p9 }
 0x1b5   : > { %p783_p8 = pneg %p782_p7 }
 0x1b7   : > { %p788_p12 = pnand %p787_p11, %p783_p8 }
 0x1b9   : > { %791 = shalt.err (!%p788_p12)
}
 0x1ba   : > { %685 = dma.vmem_to_hbm [thread:$0]  (%p910_p5), %s528_s21, 16, %s530_s29, %s504_s0  }
 0x1bb PF: > { %p695_p13 = scmp.ge.s32.totalorder %s830_s27, 2  ;;  %s541_s13 = sand.u32 1, %s818_s24  }
 0x1bc   : > { %s542_s17 = scalar_lea.sflag [#allocation3], %s541_s13 }
 0x1bd   : > { %p689_p0 = pnand %p695_p13, %p914_p6 }
 0x1bf   : > { %p690_p1 = pneg %p689_p0 }
 0x1c1   : > { %809 = dma.done.wait (%p690_p1), %s542_s17, 16  }
 0x1c2   : > { %811 = vsyncadd (%p690_p1), %s542_s17, 4294967280  ;;  %s551_s18 = scalar_lea.sflag [#allocation5], %s541_s13 }
 0x1c3   : > { %813 = dma.done.wait (%p690_p1), %s551_s18, 16  }
 0x1c4   : > { %815 = vsyncadd (%p690_p1), %s551_s18, 4294967280  ;;  %p21_p5 = scmp.ge.s32.totalorder %s897_s30, 4   ;;  %s1026_s24 = smov %s822_s25 }
 0x1c5   : > { %s1027_s25 = smov %s826_s26  ;;  %s1028_s26 = smov %s908_s10 }
 0x1c6   : > { %s1029_s27 = smov %s897_s30  ;;  %23 = sbr.rel (!%p21_p5) target bundleno = 7 (0x7), region = 105 }
 0x1cb   :  { %556 = vsyncpa [#allocation3], 1 }
 0x1cc   :  { %558 = vsyncpa [#allocation3 + $0x1], 1 }
 0x1cd   :  { %559 = vsyncpa [#allocation5], 1 }
 0x1ce   :  { %561 = vsyncpa [#allocation5 + $0x1], 1 }

</bundles_post_ra>
